<compile_context>
chip_gen: v7x
topology: tpu7x:2x2x1
jax: 0.10.0
libtpu: 0.0.40
codegen_flags: <defaults>
</compile_context>

<pallas_src>
import functools

import jax
import jax.numpy as jnp
from jax.experimental import pallas as pl
from jax.experimental.pallas import tpu as pltpu


def _normalize_padding(padding):
    if isinstance(padding, int):
        return padding, padding, padding, padding
    l, r, t, b = padding  # PyTorch ZeroPad2d ordering: (left, right, top, bottom)
    return l, r, t, b


# ---------------------------------------------------------------------------
# Fused per-layer kernel: ZeroPad2d -> Conv2d -> Identity -> ReLU -> MaxPool2d(2)
# ---------------------------------------------------------------------------
def _fused_conv_pool_kernel(x_ref, w_ref, b_ref, o_ref, *, k, stride, S, PH, PW, PHr):
    """x_ref : (1, S*S*PHr, PWr, Cin)  phase-decomposed padded input (bf16)
       w_ref : (k*k, Cin, Cout)        tap weights (bf16)
       b_ref : (1, 1, Cout)            bias (f32)
       o_ref : (1, PH, PW, Cout)       pooled output block
    """
    Cin = x_ref.shape[-1]
    Cout = w_ref.shape[-1]

    # Hoist the per-tap weight broadcasts out of the loops (JAX does not CSE broadcast_in_dim).
    wb = [jnp.broadcast_to(w_ref[t], (PH, Cin, Cout)) for t in range(k * k)]

    # One f32 accumulator per 2x2 pool offset (a, b).
    acc = [[jnp.zeros((PH, PW, Cout), jnp.float32) for _ in range(2)] for _ in range(2)]

    # u = a*stride + i, v = b*stride + j  (a, b: pool offsets; i, j: conv taps).
    for u in range(stride + k):
        a_taps = [(a, u - a * stride) for a in (0, 1) if 0 <= u - a * stride < k]
        if not a_taps:
            continue
        p, du = u % S, u // S
        for v in range(stride + k):
            b_taps = [(bb, v - bb * stride) for bb in (0, 1) if 0 <= v - bb * stride < k]
            if not b_taps:
                continue
            q, dv = v % S, v // S
            # Contiguous (PH, PW, Cin) window of phase plane (p, q); one load, reused
            # for every (pool offset, tap) pair that maps onto it.
            row0 = (p * S + q) * PHr + du
            win = x_ref[0, row0:row0 + PH, dv:dv + PW, :]
            for a, i in a_taps:
                for bb, j in b_taps:
                    acc[a][bb] = acc[a][bb] + jnp.einsum(
                        "pwc,pcd->pwd", win, wb[i * k + j],
                        preferred_element_type=jnp.float32)

    bias = b_ref[...]  # (1, 1, Cout), broadcasts over (PH, PW, Cout)
    pooled = None
    for a in (0, 1):
        for bb in (0, 1):
            y = jnp.maximum(acc[a][bb] + bias, 0.0)                   # bias + ReLU (f32)
            pooled = y if pooled is None else jnp.maximum(pooled, y)  # 2x2 max pool
    o_ref[0, :, :, :] = pooled.astype(o_ref.dtype)


def fused_conv_pool_layer(x_nhwc, w_taps, bias, *, k, stride, padding, out_dtype):
    """One Conv2dBlock (ZeroPad2d -> Conv2d -> Identity -> ReLU) + MaxPool2d(2), fused."""
    N, H, W, Cin = x_nhwc.shape
    Cout = w_taps.shape[-1]
    l, r, t, b = _normalize_padding(padding)

    Hp, Wp = H + t + b, W + l + r
    OH = (Hp - k) // stride + 1
    OW = (Wp - k) // stride + 1
    PH, PW = OH // 2, OW // 2                 # MaxPool2d(2) floors odd extents
    assert PH >= 1 and PW >= 1, "pooled output collapsed to zero size"

    S = 2 * stride                            # effective stride of the fused conv+pool
    D = (stride + k - 1) // S + 1             # row/col offsets needed per phase plane
    PHr, PWr = PH + D - 1, PW + D - 1
    Hp2, Wp2 = S * PHr, S * PWr               # phase-decomposable extents (>= all read rows/cols)

    # ZeroPad2d + extend/crop to exactly (Hp2, Wp2).  Extra rows/cols are never read.
    xp = jnp.pad(
        x_nhwc,
        ((0, 0),
         (t, max(b, Hp2 - H - t)),
         (l, max(r, Wp2 - W - l)),
         (0, 0)))[:, :Hp2, :Wp2, :]

    # Phase decomposition with period S:
    #   xph[n, (p*S + q)*PHr + rh, rw, c] = xp[n, rh*S + p, rw*S + q, c]
    xph = xp.reshape(N, PHr, S, PWr, S, Cin).transpose(0, 2, 4, 1, 3, 5)
    xph = xph.reshape(N, S * S * PHr, PWr, Cin).astype(jnp.bfloat16)

    kernel = functools.partial(
        _fused_conv_pool_kernel, k=k, stride=stride, S=S, PH=PH, PW=PW, PHr=PHr)

    # TODO(synk): for very large spatial extents, add a second grid axis over blocks of
    # pooled rows so a single image does not have to fit in VMEM.
    return pl.pallas_call(
        kernel,
        out_shape=jax.ShapeDtypeStruct((N, PH, PW, Cout), out_dtype),
        grid=(N,),
        in_specs=[
            pl.BlockSpec((1, S * S * PHr, PWr, Cin), lambda n: (n, 0, 0, 0)),
            pl.BlockSpec((k * k, Cin, Cout), lambda n: (0, 0, 0)),   # resident weights
            pl.BlockSpec((1, 1, Cout), lambda n: (0, 0, 0)),         # resident bias
        ],
        out_specs=pl.BlockSpec((1, PH, PW, Cout), lambda n: (n, 0, 0, 0)),
        compiler_params=pltpu.CompilerParams(
            dimension_semantics=("parallel",),          # shards batch across v7x's 2 TCs
            vmem_limit_bytes=32 * 1024 * 1024,          # explicit budget, safe on v7x (64 MiB)
        ),
    )(xph, w_taps, bias)


# ---------------------------------------------------------------------------
# SequentialConvPool2dBlock forward
# ---------------------------------------------------------------------------
def init_params(paras, key):
    """Synthetic Conv2d params.  Weight stored HWIO-style as (k, k, Cin, Cout)."""
    params = []
    for idx, (cin, cout, k, _stride, _pad) in enumerate(paras):
        kw_key, kb_key = jax.random.split(jax.random.fold_in(key, idx))
        fan_in = cin * k * k
        bound = 1.0 / (fan_in ** 0.5)
        w = jax.random.uniform(kw_key, (k, k, cin, cout), jnp.float32, -bound, bound)
        b = jax.random.uniform(kb_key, (1, 1, cout), jnp.float32, -bound, bound)
        params.append((w, b))
    return params


def sequential_conv_pool(x_nchw, paras, params):
    # NCHW -> NHWC (channels on the 128-lane axis); bf16 activations between layers.
    x = jnp.transpose(x_nchw.astype(jnp.bfloat16), (0, 2, 3, 1))
    n_layers = len(paras)
    for idx, ((cin, cout, k, stride, pad), (w, b)) in enumerate(zip(paras, params)):
        w_taps = w.reshape(k * k, cin, cout).astype(jnp.bfloat16)
        out_dtype = jnp.float32 if idx == n_layers - 1 else jnp.bfloat16
        x = fused_conv_pool_layer(
            x, w_taps, b, k=k, stride=stride, padding=pad, out_dtype=out_dtype)
    return jnp.transpose(x, (0, 3, 1, 2))     # NHWC -> NCHW


# ---------------------------------------------------------------------------
# Pure-JAX f32 reference (sanity check only)
# ---------------------------------------------------------------------------
def reference(x_nchw, paras, params):
    x = jnp.transpose(x_nchw, (0, 2, 3, 1))
    for (cin, cout, k, stride, pad), (w, b) in zip(paras, params):
        l, r, t, bt = _normalize_padding(pad)
        x = jnp.pad(x, ((0, 0), (t, bt), (l, r), (0, 0)))
        y = jax.lax.conv_general_dilated(
            x, w, window_strides=(stride, stride), padding="VALID",
            dimension_numbers=("NHWC", "HWIO", "NHWC"))
        y = jnp.maximum(y + b.reshape(1, 1, 1, cout), 0.0)
        x = jax.lax.reduce_window(
            y, -jnp.inf, jax.lax.max, (1, 2, 2, 1), (1, 2, 2, 1), "VALID")
    return jnp.transpose(x, (0, 3, 1, 2))


if __name__ == "__main__":
    key = jax.random.PRNGKey(0)
    # paras: sequence of (in_channels, out_channels, kernel_size, stride, padding)
    paras = [(4, 8, 4, 2, 1), (8, 16, 3, 1, 1)]
    params = init_params(paras, key)

    x = jax.random.normal(jax.random.fold_in(key, 123), (2, 4, 16, 16), jnp.float32)

    fwd = jax.jit(lambda xx, pp: sequential_conv_pool(xx, paras, pp))
    out = jax.block_until_ready(fwd(x, params))

    ref = jax.block_until_ready(reference(x, paras, params))
    assert out.shape == ref.shape == (2, 16, 2, 2), out.shape
    assert jnp.allclose(out, ref, atol=5e-2, rtol=5e-2), \
        float(jnp.max(jnp.abs(out - ref)))

    print("KERNEL_OK")
</pallas_src>

<mosaic_0001>
module attributes {stable_mosaic.version = 11 : i64} {
  func.func @_fused_conv_pool_kernel(%arg0: i32, %arg1: memref<1x80x5x4xbf16, #tpu.memory_space<vmem>>, %arg2: memref<16x4x8xbf16, #tpu.memory_space<vmem>>, %arg3: memref<1x1x8xf32, #tpu.memory_space<vmem>>, %arg4: memref<1x4x4x8xbf16, #tpu.memory_space<vmem>>) attributes {dimension_semantics = [#tpu.dimension_semantics<parallel>], iteration_bounds = array<i64: 2>, scalar_prefetch = 0 : i64, scratch_operands = 0 : i64, tpu.core_type = #tpu.core_type<tc>, window_params = [{transform_indices = @transform_0, window_bounds = array<i64: 1, 80, 5, 4>}, {pipeline_mode = #tpu.pipeline_mode<synchronous>, transform_indices = @transform_1, window_bounds = array<i64: 16, 4, 8>}, {pipeline_mode = #tpu.pipeline_mode<synchronous>, transform_indices = @transform_2, window_bounds = array<i64: 1, 1, 8>}, {transform_indices = @transform_3, window_bounds = array<i64: 1, 4, 4, 8>}]} {
    %c0 = arith.constant 0 : index
    %c0_0 = arith.constant 0 : index
    %c0_1 = arith.constant 0 : index
    %0 = vector.load %arg2[%c0, %c0_0, %c0_1] : memref<16x4x8xbf16, #tpu.memory_space<vmem>>, vector<1x4x8xbf16>
    %1 = vector.shape_cast %0 : vector<1x4x8xbf16> to vector<4x8xbf16>
    %2 = vector.shape_cast %1 : vector<4x8xbf16> to vector<1x4x8xbf16>
    %3 = vector.broadcast %2 : vector<1x4x8xbf16> to vector<4x4x8xbf16>
    %c1 = arith.constant 1 : index
    %c0_2 = arith.constant 0 : index
    %c0_3 = arith.constant 0 : index
    %4 = vector.load %arg2[%c1, %c0_2, %c0_3] : memref<16x4x8xbf16, #tpu.memory_space<vmem>>, vector<1x4x8xbf16>
    %5 = vector.shape_cast %4 : vector<1x4x8xbf16> to vector<4x8xbf16>
    %6 = vector.shape_cast %5 : vector<4x8xbf16> to vector<1x4x8xbf16>
    %7 = vector.broadcast %6 : vector<1x4x8xbf16> to vector<4x4x8xbf16>
    %c2 = arith.constant 2 : index
    %c0_4 = arith.constant 0 : index
    %c0_5 = arith.constant 0 : index
    %8 = vector.load %arg2[%c2, %c0_4, %c0_5] : memref<16x4x8xbf16, #tpu.memory_space<vmem>>, vector<1x4x8xbf16>
    %9 = vector.shape_cast %8 : vector<1x4x8xbf16> to vector<4x8xbf16>
    %10 = vector.shape_cast %9 : vector<4x8xbf16> to vector<1x4x8xbf16>
    %11 = vector.broadcast %10 : vector<1x4x8xbf16> to vector<4x4x8xbf16>
    %c3 = arith.constant 3 : index
    %c0_6 = arith.constant 0 : index
    %c0_7 = arith.constant 0 : index
    %12 = vector.load %arg2[%c3, %c0_6, %c0_7] : memref<16x4x8xbf16, #tpu.memory_space<vmem>>, vector<1x4x8xbf16>
    %13 = vector.shape_cast %12 : vector<1x4x8xbf16> to vector<4x8xbf16>
    %14 = vector.shape_cast %13 : vector<4x8xbf16> to vector<1x4x8xbf16>
    %15 = vector.broadcast %14 : vector<1x4x8xbf16> to vector<4x4x8xbf16>
    %c4 = arith.constant 4 : index
    %c0_8 = arith.constant 0 : index
    %c0_9 = arith.constant 0 : index
    %16 = vector.load %arg2[%c4, %c0_8, %c0_9] : memref<16x4x8xbf16, #tpu.memory_space<vmem>>, vector<1x4x8xbf16>
    %17 = vector.shape_cast %16 : vector<1x4x8xbf16> to vector<4x8xbf16>
    %18 = vector.shape_cast %17 : vector<4x8xbf16> to vector<1x4x8xbf16>
    %19 = vector.broadcast %18 : vector<1x4x8xbf16> to vector<4x4x8xbf16>
    %c5 = arith.constant 5 : index
    %c0_10 = arith.constant 0 : index
    %c0_11 = arith.constant 0 : index
    %20 = vector.load %arg2[%c5, %c0_10, %c0_11] : memref<16x4x8xbf16, #tpu.memory_space<vmem>>, vector<1x4x8xbf16>
    %21 = vector.shape_cast %20 : vector<1x4x8xbf16> to vector<4x8xbf16>
    %22 = vector.shape_cast %21 : vector<4x8xbf16> to vector<1x4x8xbf16>
    %23 = vector.broadcast %22 : vector<1x4x8xbf16> to vector<4x4x8xbf16>
    %c6 = arith.constant 6 : index
    %c0_12 = arith.constant 0 : index
    %c0_13 = arith.constant 0 : index
    %24 = vector.load %arg2[%c6, %c0_12, %c0_13] : memref<16x4x8xbf16, #tpu.memory_space<vmem>>, vector<1x4x8xbf16>
    %25 = vector.shape_cast %24 : vector<1x4x8xbf16> to vector<4x8xbf16>
    %26 = vector.shape_cast %25 : vector<4x8xbf16> to vector<1x4x8xbf16>
    %27 = vector.broadcast %26 : vector<1x4x8xbf16> to vector<4x4x8xbf16>
    %c7 = arith.constant 7 : index
    %c0_14 = arith.constant 0 : index
    %c0_15 = arith.constant 0 : index
    %28 = vector.load %arg2[%c7, %c0_14, %c0_15] : memref<16x4x8xbf16, #tpu.memory_space<vmem>>, vector<1x4x8xbf16>
    %29 = vector.shape_cast %28 : vector<1x4x8xbf16> to vector<4x8xbf16>
    %30 = vector.shape_cast %29 : vector<4x8xbf16> to vector<1x4x8xbf16>
    %31 = vector.broadcast %30 : vector<1x4x8xbf16> to vector<4x4x8xbf16>
    %c8 = arith.constant 8 : index
    %c0_16 = arith.constant 0 : index
    %c0_17 = arith.constant 0 : index
    %32 = vector.load %arg2[%c8, %c0_16, %c0_17] : memref<16x4x8xbf16, #tpu.memory_space<vmem>>, vector<1x4x8xbf16>
    %33 = vector.shape_cast %32 : vector<1x4x8xbf16> to vector<4x8xbf16>
    %34 = vector.shape_cast %33 : vector<4x8xbf16> to vector<1x4x8xbf16>
    %35 = vector.broadcast %34 : vector<1x4x8xbf16> to vector<4x4x8xbf16>
    %c9 = arith.constant 9 : index
    %c0_18 = arith.constant 0 : index
    %c0_19 = arith.constant 0 : index
    %36 = vector.load %arg2[%c9, %c0_18, %c0_19] : memref<16x4x8xbf16, #tpu.memory_space<vmem>>, vector<1x4x8xbf16>
    %37 = vector.shape_cast %36 : vector<1x4x8xbf16> to vector<4x8xbf16>
    %38 = vector.shape_cast %37 : vector<4x8xbf16> to vector<1x4x8xbf16>
    %39 = vector.broadcast %38 : vector<1x4x8xbf16> to vector<4x4x8xbf16>
    %c10 = arith.constant 10 : index
    %c0_20 = arith.constant 0 : index
    %c0_21 = arith.constant 0 : index
    %40 = vector.load %arg2[%c10, %c0_20, %c0_21] : memref<16x4x8xbf16, #tpu.memory_space<vmem>>, vector<1x4x8xbf16>
    %41 = vector.shape_cast %40 : vector<1x4x8xbf16> to vector<4x8xbf16>
    %42 = vector.shape_cast %41 : vector<4x8xbf16> to vector<1x4x8xbf16>
    %43 = vector.broadcast %42 : vector<1x4x8xbf16> to vector<4x4x8xbf16>
    %c11 = arith.constant 11 : index
    %c0_22 = arith.constant 0 : index
    %c0_23 = arith.constant 0 : index
    %44 = vector.load %arg2[%c11, %c0_22, %c0_23] : memref<16x4x8xbf16, #tpu.memory_space<vmem>>, vector<1x4x8xbf16>
    %45 = vector.shape_cast %44 : vector<1x4x8xbf16> to vector<4x8xbf16>
    %46 = vector.shape_cast %45 : vector<4x8xbf16> to vector<1x4x8xbf16>
    %47 = vector.broadcast %46 : vector<1x4x8xbf16> to vector<4x4x8xbf16>
    %c12 = arith.constant 12 : index
    %c0_24 = arith.constant 0 : index
    %c0_25 = arith.constant 0 : index
    %48 = vector.load %arg2[%c12, %c0_24, %c0_25] : memref<16x4x8xbf16, #tpu.memory_space<vmem>>, vector<1x4x8xbf16>
    %49 = vector.shape_cast %48 : vector<1x4x8xbf16> to vector<4x8xbf16>
    %50 = vector.shape_cast %49 : vector<4x8xbf16> to vector<1x4x8xbf16>
    %51 = vector.broadcast %50 : vector<1x4x8xbf16> to vector<4x4x8xbf16>
    %c13 = arith.constant 13 : index
    %c0_26 = arith.constant 0 : index
    %c0_27 = arith.constant 0 : index
    %52 = vector.load %arg2[%c13, %c0_26, %c0_27] : memref<16x4x8xbf16, #tpu.memory_space<vmem>>, vector<1x4x8xbf16>
    %53 = vector.shape_cast %52 : vector<1x4x8xbf16> to vector<4x8xbf16>
    %54 = vector.shape_cast %53 : vector<4x8xbf16> to vector<1x4x8xbf16>
    %55 = vector.broadcast %54 : vector<1x4x8xbf16> to vector<4x4x8xbf16>
    %c14 = arith.constant 14 : index
    %c0_28 = arith.constant 0 : index
    %c0_29 = arith.constant 0 : index
    %56 = vector.load %arg2[%c14, %c0_28, %c0_29] : memref<16x4x8xbf16, #tpu.memory_space<vmem>>, vector<1x4x8xbf16>
    %57 = vector.shape_cast %56 : vector<1x4x8xbf16> to vector<4x8xbf16>
    %58 = vector.shape_cast %57 : vector<4x8xbf16> to vector<1x4x8xbf16>
    %59 = vector.broadcast %58 : vector<1x4x8xbf16> to vector<4x4x8xbf16>
    %c15 = arith.constant 15 : index
    %c0_30 = arith.constant 0 : index
    %c0_31 = arith.constant 0 : index
    %60 = vector.load %arg2[%c15, %c0_30, %c0_31] : memref<16x4x8xbf16, #tpu.memory_space<vmem>>, vector<1x4x8xbf16>
    %61 = vector.shape_cast %60 : vector<1x4x8xbf16> to vector<4x8xbf16>
    %62 = vector.shape_cast %61 : vector<4x8xbf16> to vector<1x4x8xbf16>
    %63 = vector.broadcast %62 : vector<1x4x8xbf16> to vector<4x4x8xbf16>
    %cst = arith.constant 0.000000e+00 : f32
    %64 = vector.broadcast %cst : f32 to vector<4x4x8xf32>
    %cst_32 = arith.constant 0.000000e+00 : f32
    %65 = vector.broadcast %cst_32 : f32 to vector<4x4x8xf32>
    %cst_33 = arith.constant 0.000000e+00 : f32
    %66 = vector.broadcast %cst_33 : f32 to vector<4x4x8xf32>
    %cst_34 = arith.constant 0.000000e+00 : f32
    %67 = vector.broadcast %cst_34 : f32 to vector<4x4x8xf32>
    %c0_35 = arith.constant 0 : index
    %c0_36 = arith.constant 0 : index
    %c0_37 = arith.constant 0 : index
    %c0_38 = arith.constant 0 : index
    %68 = vector.load %arg1[%c0_35, %c0_36, %c0_37, %c0_38] : memref<1x80x5x4xbf16, #tpu.memory_space<vmem>>, vector<1x4x4x4xbf16>
    %69 = vector.shape_cast %68 : vector<1x4x4x4xbf16> to vector<4x4x4xbf16>
    "tpu.trace_start"() <{level = 10 : i32, message = "pwc,pcd->pwd"}> : () -> ()
    %cst_39 = arith.constant dense<0.000000e+00> : vector<4x4x8xf32>
    %70 = tpu.matmul %69, %3, %cst_39 {dimension_numbers = #tpu.dot_dimension_numbers<[2], [1], [1], [2], [0, 0, 0, 1, 1, 2], [0], [0]>} : vector<4x4x4xbf16>, vector<4x4x8xbf16>, vector<4x4x8xf32> -> vector<4x4x8xf32>
    "tpu.trace_stop"() : () -> ()
    %71 = arith.addf %64, %70 : vector<4x4x8xf32>
    %c0_40 = arith.constant 0 : index
    %c5_41 = arith.constant 5 : index
    %c0_42 = arith.constant 0 : index
    %c0_43 = arith.constant 0 : index
    %72 = vector.load %arg1[%c0_40, %c5_41, %c0_42, %c0_43] : memref<1x80x5x4xbf16, #tpu.memory_space<vmem>>, vector<1x4x4x4xbf16>
    %73 = vector.shape_cast %72 : vector<1x4x4x4xbf16> to vector<4x4x4xbf16>
    "tpu.trace_start"() <{level = 10 : i32, message = "pwc,pcd->pwd"}> : () -> ()
    %cst_44 = arith.constant dense<0.000000e+00> : vector<4x4x8xf32>
    %74 = tpu.matmul %73, %7, %cst_44 {dimension_numbers = #tpu.dot_dimension_numbers<[2], [1], [1], [2], [0, 0, 0, 1, 1, 2], [0], [0]>} : vector<4x4x4xbf16>, vector<4x4x8xbf16>, vector<4x4x8xf32> -> vector<4x4x8xf32>
    "tpu.trace_stop"() : () -> ()
    %75 = arith.addf %71, %74 : vector<4x4x8xf32>
    %c0_45 = arith.constant 0 : index
    %c10_46 = arith.constant 10 : index
    %c0_47 = arith.constant 0 : index
    %c0_48 = arith.constant 0 : index
    %76 = vector.load %arg1[%c0_45, %c10_46, %c0_47, %c0_48] : memref<1x80x5x4xbf16, #tpu.memory_space<vmem>>, vector<1x4x4x4xbf16>
    %77 = vector.shape_cast %76 : vector<1x4x4x4xbf16> to vector<4x4x4xbf16>
    "tpu.trace_start"() <{level = 10 : i32, message = "pwc,pcd->pwd"}> : () -> ()
    %cst_49 = arith.constant dense<0.000000e+00> : vector<4x4x8xf32>
    %78 = tpu.matmul %77, %11, %cst_49 {dimension_numbers = #tpu.dot_dimension_numbers<[2], [1], [1], [2], [0, 0, 0, 1, 1, 2], [0], [0]>} : vector<4x4x4xbf16>, vector<4x4x8xbf16>, vector<4x4x8xf32> -> vector<4x4x8xf32>
    "tpu.trace_stop"() : () -> ()
    %79 = arith.addf %75, %78 : vector<4x4x8xf32>
    "tpu.trace_start"() <{level = 10 : i32, message = "pwc,pcd->pwd"}> : () -> ()
    %cst_50 = arith.constant dense<0.000000e+00> : vector<4x4x8xf32>
    %80 = tpu.matmul %77, %3, %cst_50 {dimension_numbers = #tpu.dot_dimension_numbers<[2], [1], [1], [2], [0, 0, 0, 1, 1, 2], [0], [0]>} : vector<4x4x4xbf16>, vector<4x4x8xbf16>, vector<4x4x8xf32> -> vector<4x4x8xf32>
    "tpu.trace_stop"() : () -> ()
    %81 = arith.addf %65, %80 : vector<4x4x8xf32>
    %c0_51 = arith.constant 0 : index
    %c15_52 = arith.constant 15 : index
    %c0_53 = arith.constant 0 : index
    %c0_54 = arith.constant 0 : index
    %82 = vector.load %arg1[%c0_51, %c15_52, %c0_53, %c0_54] : memref<1x80x5x4xbf16, #tpu.memory_space<vmem>>, vector<1x4x4x4xbf16>
    %83 = vector.shape_cast %82 : vector<1x4x4x4xbf16> to vector<4x4x4xbf16>
    "tpu.trace_start"() <{level = 10 : i32, message = "pwc,pcd->pwd"}> : () -> ()
    %cst_55 = arith.constant dense<0.000000e+00> : vector<4x4x8xf32>
    %84 = tpu.matmul %83, %15, %cst_55 {dimension_numbers = #tpu.dot_dimension_numbers<[2], [1], [1], [2], [0, 0, 0, 1, 1, 2], [0], [0]>} : vector<4x4x4xbf16>, vector<4x4x8xbf16>, vector<4x4x8xf32> -> vector<4x4x8xf32>
    "tpu.trace_stop"() : () -> ()
    %85 = arith.addf %79, %84 : vector<4x4x8xf32>
    "tpu.trace_start"() <{level = 10 : i32, message = "pwc,pcd->pwd"}> : () -> ()
    %cst_56 = arith.constant dense<0.000000e+00> : vector<4x4x8xf32>
    %86 = tpu.matmul %83, %7, %cst_56 {dimension_numbers = #tpu.dot_dimension_numbers<[2], [1], [1], [2], [0, 0, 0, 1, 1, 2], [0], [0]>} : vector<4x4x4xbf16>, vector<4x4x8xbf16>, vector<4x4x8xf32> -> vector<4x4x8xf32>
    "tpu.trace_stop"() : () -> ()
    %87 = arith.addf %81, %86 : vector<4x4x8xf32>
    %c0_57 = arith.constant 0 : index
    %c0_58 = arith.constant 0 : index
    %c1_59 = arith.constant 1 : index
    %c0_60 = arith.constant 0 : index
    %88 = vector.load %arg1[%c0_57, %c0_58, %c1_59, %c0_60] : memref<1x80x5x4xbf16, #tpu.memory_space<vmem>>, vector<1x4x4x4xbf16>
    %89 = vector.shape_cast %88 : vector<1x4x4x4xbf16> to vector<4x4x4xbf16>
    "tpu.trace_start"() <{level = 10 : i32, message = "pwc,pcd->pwd"}> : () -> ()
    %cst_61 = arith.constant dense<0.000000e+00> : vector<4x4x8xf32>
    %90 = tpu.matmul %89, %11, %cst_61 {dimension_numbers = #tpu.dot_dimension_numbers<[2], [1], [1], [2], [0, 0, 0, 1, 1, 2], [0], [0]>} : vector<4x4x4xbf16>, vector<4x4x8xbf16>, vector<4x4x8xf32> -> vector<4x4x8xf32>
    "tpu.trace_stop"() : () -> ()
    %91 = arith.addf %87, %90 : vector<4x4x8xf32>
    %c0_62 = arith.constant 0 : index
    %c5_63 = arith.constant 5 : index
    %c1_64 = arith.constant 1 : index
    %c0_65 = arith.constant 0 : index
    %92 = vector.load %arg1[%c0_62, %c5_63, %c1_64, %c0_65] : memref<1x80x5x4xbf16, #tpu.memory_space<vmem>>, vector<1x4x4x4xbf16>
    %93 = vector.shape_cast %92 : vector<1x4x4x4xbf16> to vector<4x4x4xbf16>
    "tpu.trace_start"() <{level = 10 : i32, message = "pwc,pcd->pwd"}> : () -> ()
    %cst_66 = arith.constant dense<0.000000e+00> : vector<4x4x8xf32>
    %94 = tpu.matmul %93, %15, %cst_66 {dimension_numbers = #tpu.dot_dimension_numbers<[2], [1], [1], [2], [0, 0, 0, 1, 1, 2], [0], [0]>} : vector<4x4x4xbf16>, vector<4x4x8xbf16>, vector<4x4x8xf32> -> vector<4x4x8xf32>
    "tpu.trace_stop"() : () -> ()
    %95 = arith.addf %91, %94 : vector<4x4x8xf32>
    %c0_67 = arith.constant 0 : index
    %c20 = arith.constant 20 : index
    %c0_68 = arith.constant 0 : index
    %c0_69 = arith.constant 0 : index
    %96 = vector.load %arg1[%c0_67, %c20, %c0_68, %c0_69] : memref<1x80x5x4xbf16, #tpu.memory_space<vmem>>, vector<1x4x4x4xbf16>
    %97 = vector.shape_cast %96 : vector<1x4x4x4xbf16> to vector<4x4x4xbf16>
    "tpu.trace_start"() <{level = 10 : i32, message = "pwc,pcd->pwd"}> : () -> ()
    %cst_70 = arith.constant dense<0.000000e+00> : vector<4x4x8xf32>
    %98 = tpu.matmul %97, %19, %cst_70 {dimension_numbers = #tpu.dot_dimension_numbers<[2], [1], [1], [2], [0, 0, 0, 1, 1, 2], [0], [0]>} : vector<4x4x4xbf16>, vector<4x4x8xbf16>, vector<4x4x8xf32> -> vector<4x4x8xf32>
    "tpu.trace_stop"() : () -> ()
    %99 = arith.addf %85, %98 : vector<4x4x8xf32>
    %c0_71 = arith.constant 0 : index
    %c25 = arith.constant 25 : index
    %c0_72 = arith.constant 0 : index
    %c0_73 = arith.constant 0 : index
    %100 = vector.load %arg1[%c0_71, %c25, %c0_72, %c0_73] : memref<1x80x5x4xbf16, #tpu.memory_space<vmem>>, vector<1x4x4x4xbf16>
    %101 = vector.shape_cast %100 : vector<1x4x4x4xbf16> to vector<4x4x4xbf16>
    "tpu.trace_start"() <{level = 10 : i32, message = "pwc,pcd->pwd"}> : () -> ()
    %cst_74 = arith.constant dense<0.000000e+00> : vector<4x4x8xf32>
    %102 = tpu.matmul %101, %23, %cst_74 {dimension_numbers = #tpu.dot_dimension_numbers<[2], [1], [1], [2], [0, 0, 0, 1, 1, 2], [0], [0]>} : vector<4x4x4xbf16>, vector<4x4x8xbf16>, vector<4x4x8xf32> -> vector<4x4x8xf32>
    "tpu.trace_stop"() : () -> ()
    %103 = arith.addf %99, %102 : vector<4x4x8xf32>
    %c0_75 = arith.constant 0 : index
    %c30 = arith.constant 30 : index
    %c0_76 = arith.constant 0 : index
    %c0_77 = arith.constant 0 : index
    %104 = vector.load %arg1[%c0_75, %c30, %c0_76, %c0_77] : memref<1x80x5x4xbf16, #tpu.memory_space<vmem>>, vector<1x4x4x4xbf16>
    %105 = vector.shape_cast %104 : vector<1x4x4x4xbf16> to vector<4x4x4xbf16>
    "tpu.trace_start"() <{level = 10 : i32, message = "pwc,pcd->pwd"}> : () -> ()
    %cst_78 = arith.constant dense<0.000000e+00> : vector<4x4x8xf32>
    %106 = tpu.matmul %105, %27, %cst_78 {dimension_numbers = #tpu.dot_dimension_numbers<[2], [1], [1], [2], [0, 0, 0, 1, 1, 2], [0], [0]>} : vector<4x4x4xbf16>, vector<4x4x8xbf16>, vector<4x4x8xf32> -> vector<4x4x8xf32>
    "tpu.trace_stop"() : () -> ()
    %107 = arith.addf %103, %106 : vector<4x4x8xf32>
    "tpu.trace_start"() <{level = 10 : i32, message = "pwc,pcd->pwd"}> : () -> ()
    %cst_79 = arith.constant dense<0.000000e+00> : vector<4x4x8xf32>
    %108 = tpu.matmul %105, %19, %cst_79 {dimension_numbers = #tpu.dot_dimension_numbers<[2], [1], [1], [2], [0, 0, 0, 1, 1, 2], [0], [0]>} : vector<4x4x4xbf16>, vector<4x4x8xbf16>, vector<4x4x8xf32> -> vector<4x4x8xf32>
    "tpu.trace_stop"() : () -> ()
    %109 = arith.addf %95, %108 : vector<4x4x8xf32>
    %c0_80 = arith.constant 0 : index
    %c35 = arith.constant 35 : index
    %c0_81 = arith.constant 0 : index
    %c0_82 = arith.constant 0 : index
    %110 = vector.load %arg1[%c0_80, %c35, %c0_81, %c0_82] : memref<1x80x5x4xbf16, #tpu.memory_space<vmem>>, vector<1x4x4x4xbf16>
    %111 = vector.shape_cast %110 : vector<1x4x4x4xbf16> to vector<4x4x4xbf16>
    "tpu.trace_start"() <{level = 10 : i32, message = "pwc,pcd->pwd"}> : () -> ()
    %cst_83 = arith.constant dense<0.000000e+00> : vector<4x4x8xf32>
    %112 = tpu.matmul %111, %31, %cst_83 {dimension_numbers = #tpu.dot_dimension_numbers<[2], [1], [1], [2], [0, 0, 0, 1, 1, 2], [0], [0]>} : vector<4x4x4xbf16>, vector<4x4x8xbf16>, vector<4x4x8xf32> -> vector<4x4x8xf32>
    "tpu.trace_stop"() : () -> ()
    %113 = arith.addf %107, %112 : vector<4x4x8xf32>
    "tpu.trace_start"() <{level = 10 : i32, message = "pwc,pcd->pwd"}> : () -> ()
    %cst_84 = arith.constant dense<0.000000e+00> : vector<4x4x8xf32>
    %114 = tpu.matmul %111, %23, %cst_84 {dimension_numbers = #tpu.dot_dimension_numbers<[2], [1], [1], [2], [0, 0, 0, 1, 1, 2], [0], [0]>} : vector<4x4x4xbf16>, vector<4x4x8xbf16>, vector<4x4x8xf32> -> vector<4x4x8xf32>
    "tpu.trace_stop"() : () -> ()
    %115 = arith.addf %109, %114 : vector<4x4x8xf32>
    %c0_85 = arith.constant 0 : index
    %c20_86 = arith.constant 20 : index
    %c1_87 = arith.constant 1 : index
    %c0_88 = arith.constant 0 : index
    %116 = vector.load %arg1[%c0_85, %c20_86, %c1_87, %c0_88] : memref<1x80x5x4xbf16, #tpu.memory_space<vmem>>, vector<1x4x4x4xbf16>
    %117 = vector.shape_cast %116 : vector<1x4x4x4xbf16> to vector<4x4x4xbf16>
    "tpu.trace_start"() <{level = 10 : i32, message = "pwc,pcd->pwd"}> : () -> ()
    %cst_89 = arith.constant dense<0.000000e+00> : vector<4x4x8xf32>
    %118 = tpu.matmul %117, %27, %cst_89 {dimension_numbers = #tpu.dot_dimension_numbers<[2], [1], [1], [2], [0, 0, 0, 1, 1, 2], [0], [0]>} : vector<4x4x4xbf16>, vector<4x4x8xbf16>, vector<4x4x8xf32> -> vector<4x4x8xf32>
    "tpu.trace_stop"() : () -> ()
    %119 = arith.addf %115, %118 : vector<4x4x8xf32>
    %c0_90 = arith.constant 0 : index
    %c25_91 = arith.constant 25 : index
    %c1_92 = arith.constant 1 : index
    %c0_93 = arith.constant 0 : index
    %120 = vector.load %arg1[%c0_90, %c25_91, %c1_92, %c0_93] : memref<1x80x5x4xbf16, #tpu.memory_space<vmem>>, vector<1x4x4x4xbf16>
    %121 = vector.shape_cast %120 : vector<1x4x4x4xbf16> to vector<4x4x4xbf16>
    "tpu.trace_start"() <{level = 10 : i32, message = "pwc,pcd->pwd"}> : () -> ()
    %cst_94 = arith.constant dense<0.000000e+00> : vector<4x4x8xf32>
    %122 = tpu.matmul %121, %31, %cst_94 {dimension_numbers = #tpu.dot_dimension_numbers<[2], [1], [1], [2], [0, 0, 0, 1, 1, 2], [0], [0]>} : vector<4x4x4xbf16>, vector<4x4x8xbf16>, vector<4x4x8xf32> -> vector<4x4x8xf32>
    "tpu.trace_stop"() : () -> ()
    %123 = arith.addf %119, %122 : vector<4x4x8xf32>
    %c0_95 = arith.constant 0 : index
    %c40 = arith.constant 40 : index
    %c0_96 = arith.constant 0 : index
    %c0_97 = arith.constant 0 : index
    %124 = vector.load %arg1[%c0_95, %c40, %c0_96, %c0_97] : memref<1x80x5x4xbf16, #tpu.memory_space<vmem>>, vector<1x4x4x4xbf16>
    %125 = vector.shape_cast %124 : vector<1x4x4x4xbf16> to vector<4x4x4xbf16>
    "tpu.trace_start"() <{level = 10 : i32, message = "pwc,pcd->pwd"}> : () -> ()
    %cst_98 = arith.constant dense<0.000000e+00> : vector<4x4x8xf32>
    %126 = tpu.matmul %125, %35, %cst_98 {dimension_numbers = #tpu.dot_dimension_numbers<[2], [1], [1], [2], [0, 0, 0, 1, 1, 2], [0], [0]>} : vector<4x4x4xbf16>, vector<4x4x8xbf16>, vector<4x4x8xf32> -> vector<4x4x8xf32>
    "tpu.trace_stop"() : () -> ()
    %127 = arith.addf %113, %126 : vector<4x4x8xf32>
    "tpu.trace_start"() <{level = 10 : i32, message = "pwc,pcd->pwd"}> : () -> ()
    %cst_99 = arith.constant dense<0.000000e+00> : vector<4x4x8xf32>
    %128 = tpu.matmul %125, %3, %cst_99 {dimension_numbers = #tpu.dot_dimension_numbers<[2], [1], [1], [2], [0, 0, 0, 1, 1, 2], [0], [0]>} : vector<4x4x4xbf16>, vector<4x4x8xbf16>, vector<4x4x8xf32> -> vector<4x4x8xf32>
    "tpu.trace_stop"() : () -> ()
    %129 = arith.addf %66, %128 : vector<4x4x8xf32>
    %c0_100 = arith.constant 0 : index
    %c45 = arith.constant 45 : index
    %c0_101 = arith.constant 0 : index
    %c0_102 = arith.constant 0 : index
    %130 = vector.load %arg1[%c0_100, %c45, %c0_101, %c0_102] : memref<1x80x5x4xbf16, #tpu.memory_space<vmem>>, vector<1x4x4x4xbf16>
    %131 = vector.shape_cast %130 : vector<1x4x4x4xbf16> to vector<4x4x4xbf16>
    "tpu.trace_start"() <{level = 10 : i32, message = "pwc,pcd->pwd"}> : () -> ()
    %cst_103 = arith.constant dense<0.000000e+00> : vector<4x4x8xf32>
    %132 = tpu.matmul %131, %39, %cst_103 {dimension_numbers = #tpu.dot_dimension_numbers<[2], [1], [1], [2], [0, 0, 0, 1, 1, 2], [0], [0]>} : vector<4x4x4xbf16>, vector<4x4x8xbf16>, vector<4x4x8xf32> -> vector<4x4x8xf32>
    "tpu.trace_stop"() : () -> ()
    %133 = arith.addf %127, %132 : vector<4x4x8xf32>
    "tpu.trace_start"() <{level = 10 : i32, message = "pwc,pcd->pwd"}> : () -> ()
    %cst_104 = arith.constant dense<0.000000e+00> : vector<4x4x8xf32>
    %134 = tpu.matmul %131, %7, %cst_104 {dimension_numbers = #tpu.dot_dimension_numbers<[2], [1], [1], [2], [0, 0, 0, 1, 1, 2], [0], [0]>} : vector<4x4x4xbf16>, vector<4x4x8xbf16>, vector<4x4x8xf32> -> vector<4x4x8xf32>
    "tpu.trace_stop"() : () -> ()
    %135 = arith.addf %129, %134 : vector<4x4x8xf32>
    %c0_105 = arith.constant 0 : index
    %c50 = arith.constant 50 : index
    %c0_106 = arith.constant 0 : index
    %c0_107 = arith.constant 0 : index
    %136 = vector.load %arg1[%c0_105, %c50, %c0_106, %c0_107] : memref<1x80x5x4xbf16, #tpu.memory_space<vmem>>, vector<1x4x4x4xbf16>
    %137 = vector.shape_cast %136 : vector<1x4x4x4xbf16> to vector<4x4x4xbf16>
    "tpu.trace_start"() <{level = 10 : i32, message = "pwc,pcd->pwd"}> : () -> ()
    %cst_108 = arith.constant dense<0.000000e+00> : vector<4x4x8xf32>
    %138 = tpu.matmul %137, %43, %cst_108 {dimension_numbers = #tpu.dot_dimension_numbers<[2], [1], [1], [2], [0, 0, 0, 1, 1, 2], [0], [0]>} : vector<4x4x4xbf16>, vector<4x4x8xbf16>, vector<4x4x8xf32> -> vector<4x4x8xf32>
    "tpu.trace_stop"() : () -> ()
    %139 = arith.addf %133, %138 : vector<4x4x8xf32>
    "tpu.trace_start"() <{level = 10 : i32, message = "pwc,pcd->pwd"}> : () -> ()
    %cst_109 = arith.constant dense<0.000000e+00> : vector<4x4x8xf32>
    %140 = tpu.matmul %137, %35, %cst_109 {dimension_numbers = #tpu.dot_dimension_numbers<[2], [1], [1], [2], [0, 0, 0, 1, 1, 2], [0], [0]>} : vector<4x4x4xbf16>, vector<4x4x8xbf16>, vector<4x4x8xf32> -> vector<4x4x8xf32>
    "tpu.trace_stop"() : () -> ()
    %141 = arith.addf %123, %140 : vector<4x4x8xf32>
    "tpu.trace_start"() <{level = 10 : i32, message = "pwc,pcd->pwd"}> : () -> ()
    %cst_110 = arith.constant dense<0.000000e+00> : vector<4x4x8xf32>
    %142 = tpu.matmul %137, %11, %cst_110 {dimension_numbers = #tpu.dot_dimension_numbers<[2], [1], [1], [2], [0, 0, 0, 1, 1, 2], [0], [0]>} : vector<4x4x4xbf16>, vector<4x4x8xbf16>, vector<4x4x8xf32> -> vector<4x4x8xf32>
    "tpu.trace_stop"() : () -> ()
    %143 = arith.addf %135, %142 : vector<4x4x8xf32>
    "tpu.trace_start"() <{level = 10 : i32, message = "pwc,pcd->pwd"}> : () -> ()
    %cst_111 = arith.constant dense<0.000000e+00> : vector<4x4x8xf32>
    %144 = tpu.matmul %137, %3, %cst_111 {dimension_numbers = #tpu.dot_dimension_numbers<[2], [1], [1], [2], [0, 0, 0, 1, 1, 2], [0], [0]>} : vector<4x4x4xbf16>, vector<4x4x8xbf16>, vector<4x4x8xf32> -> vector<4x4x8xf32>
    "tpu.trace_stop"() : () -> ()
    %145 = arith.addf %67, %144 : vector<4x4x8xf32>
    %c0_112 = arith.constant 0 : index
    %c55 = arith.constant 55 : index
    %c0_113 = arith.constant 0 : index
    %c0_114 = arith.constant 0 : index
    %146 = vector.load %arg1[%c0_112, %c55, %c0_113, %c0_114] : memref<1x80x5x4xbf16, #tpu.memory_space<vmem>>, vector<1x4x4x4xbf16>
    %147 = vector.shape_cast %146 : vector<1x4x4x4xbf16> to vector<4x4x4xbf16>
    "tpu.trace_start"() <{level = 10 : i32, message = "pwc,pcd->pwd"}> : () -> ()
    %cst_115 = arith.constant dense<0.000000e+00> : vector<4x4x8xf32>
    %148 = tpu.matmul %147, %47, %cst_115 {dimension_numbers = #tpu.dot_dimension_numbers<[2], [1], [1], [2], [0, 0, 0, 1, 1, 2], [0], [0]>} : vector<4x4x4xbf16>, vector<4x4x8xbf16>, vector<4x4x8xf32> -> vector<4x4x8xf32>
    "tpu.trace_stop"() : () -> ()
    %149 = arith.addf %139, %148 : vector<4x4x8xf32>
    "tpu.trace_start"() <{level = 10 : i32, message = "pwc,pcd->pwd"}> : () -> ()
    %cst_116 = arith.constant dense<0.000000e+00> : vector<4x4x8xf32>
    %150 = tpu.matmul %147, %39, %cst_116 {dimension_numbers = #tpu.dot_dimension_numbers<[2], [1], [1], [2], [0, 0, 0, 1, 1, 2], [0], [0]>} : vector<4x4x4xbf16>, vector<4x4x8xbf16>, vector<4x4x8xf32> -> vector<4x4x8xf32>
    "tpu.trace_stop"() : () -> ()
    %151 = arith.addf %141, %150 : vector<4x4x8xf32>
    "tpu.trace_start"() <{level = 10 : i32, message = "pwc,pcd->pwd"}> : () -> ()
    %cst_117 = arith.constant dense<0.000000e+00> : vector<4x4x8xf32>
    %152 = tpu.matmul %147, %15, %cst_117 {dimension_numbers = #tpu.dot_dimension_numbers<[2], [1], [1], [2], [0, 0, 0, 1, 1, 2], [0], [0]>} : vector<4x4x4xbf16>, vector<4x4x8xbf16>, vector<4x4x8xf32> -> vector<4x4x8xf32>
    "tpu.trace_stop"() : () -> ()
    %153 = arith.addf %143, %152 : vector<4x4x8xf32>
    "tpu.trace_start"() <{level = 10 : i32, message = "pwc,pcd->pwd"}> : () -> ()
    %cst_118 = arith.constant dense<0.000000e+00> : vector<4x4x8xf32>
    %154 = tpu.matmul %147, %7, %cst_118 {dimension_numbers = #tpu.dot_dimension_numbers<[2], [1], [1], [2], [0, 0, 0, 1, 1, 2], [0], [0]>} : vector<4x4x4xbf16>, vector<4x4x8xbf16>, vector<4x4x8xf32> -> vector<4x4x8xf32>
    "tpu.trace_stop"() : () -> ()
    %155 = arith.addf %145, %154 : vector<4x4x8xf32>
    %c0_119 = arith.constant 0 : index
    %c40_120 = arith.constant 40 : index
    %c1_121 = arith.constant 1 : index
    %c0_122 = arith.constant 0 : index
    %156 = vector.load %arg1[%c0_119, %c40_120, %c1_121, %c0_122] : memref<1x80x5x4xbf16, #tpu.memory_space<vmem>>, vector<1x4x4x4xbf16>
    %157 = vector.shape_cast %156 : vector<1x4x4x4xbf16> to vector<4x4x4xbf16>
    "tpu.trace_start"() <{level = 10 : i32, message = "pwc,pcd->pwd"}> : () -> ()
    %cst_123 = arith.constant dense<0.000000e+00> : vector<4x4x8xf32>
    %158 = tpu.matmul %157, %43, %cst_123 {dimension_numbers = #tpu.dot_dimension_numbers<[2], [1], [1], [2], [0, 0, 0, 1, 1, 2], [0], [0]>} : vector<4x4x4xbf16>, vector<4x4x8xbf16>, vector<4x4x8xf32> -> vector<4x4x8xf32>
    "tpu.trace_stop"() : () -> ()
    %159 = arith.addf %151, %158 : vector<4x4x8xf32>
    "tpu.trace_start"() <{level = 10 : i32, message = "pwc,pcd->pwd"}> : () -> ()
    %cst_124 = arith.constant dense<0.000000e+00> : vector<4x4x8xf32>
    %160 = tpu.matmul %157, %11, %cst_124 {dimension_numbers = #tpu.dot_dimension_numbers<[2], [1], [1], [2], [0, 0, 0, 1, 1, 2], [0], [0]>} : vector<4x4x4xbf16>, vector<4x4x8xbf16>, vector<4x4x8xf32> -> vector<4x4x8xf32>
    "tpu.trace_stop"() : () -> ()
    %161 = arith.addf %155, %160 : vector<4x4x8xf32>
    %c0_125 = arith.constant 0 : index
    %c45_126 = arith.constant 45 : index
    %c1_127 = arith.constant 1 : index
    %c0_128 = arith.constant 0 : index
    %162 = vector.load %arg1[%c0_125, %c45_126, %c1_127, %c0_128] : memref<1x80x5x4xbf16, #tpu.memory_space<vmem>>, vector<1x4x4x4xbf16>
    %163 = vector.shape_cast %162 : vector<1x4x4x4xbf16> to vector<4x4x4xbf16>
    "tpu.trace_start"() <{level = 10 : i32, message = "pwc,pcd->pwd"}> : () -> ()
    %cst_129 = arith.constant dense<0.000000e+00> : vector<4x4x8xf32>
    %164 = tpu.matmul %163, %47, %cst_129 {dimension_numbers = #tpu.dot_dimension_numbers<[2], [1], [1], [2], [0, 0, 0, 1, 1, 2], [0], [0]>} : vector<4x4x4xbf16>, vector<4x4x8xbf16>, vector<4x4x8xf32> -> vector<4x4x8xf32>
    "tpu.trace_stop"() : () -> ()
    %165 = arith.addf %159, %164 : vector<4x4x8xf32>
    "tpu.trace_start"() <{level = 10 : i32, message = "pwc,pcd->pwd"}> : () -> ()
    %cst_130 = arith.constant dense<0.000000e+00> : vector<4x4x8xf32>
    %166 = tpu.matmul %163, %15, %cst_130 {dimension_numbers = #tpu.dot_dimension_numbers<[2], [1], [1], [2], [0, 0, 0, 1, 1, 2], [0], [0]>} : vector<4x4x4xbf16>, vector<4x4x8xbf16>, vector<4x4x8xf32> -> vector<4x4x8xf32>
    "tpu.trace_stop"() : () -> ()
    %167 = arith.addf %161, %166 : vector<4x4x8xf32>
    %c0_131 = arith.constant 0 : index
    %c60 = arith.constant 60 : index
    %c0_132 = arith.constant 0 : index
    %c0_133 = arith.constant 0 : index
    %168 = vector.load %arg1[%c0_131, %c60, %c0_132, %c0_133] : memref<1x80x5x4xbf16, #tpu.memory_space<vmem>>, vector<1x4x4x4xbf16>
    %169 = vector.shape_cast %168 : vector<1x4x4x4xbf16> to vector<4x4x4xbf16>
    "tpu.trace_start"() <{level = 10 : i32, message = "pwc,pcd->pwd"}> : () -> ()
    %cst_134 = arith.constant dense<0.000000e+00> : vector<4x4x8xf32>
    %170 = tpu.matmul %169, %51, %cst_134 {dimension_numbers = #tpu.dot_dimension_numbers<[2], [1], [1], [2], [0, 0, 0, 1, 1, 2], [0], [0]>} : vector<4x4x4xbf16>, vector<4x4x8xbf16>, vector<4x4x8xf32> -> vector<4x4x8xf32>
    "tpu.trace_stop"() : () -> ()
    %171 = arith.addf %149, %170 : vector<4x4x8xf32>
    "tpu.trace_start"() <{level = 10 : i32, message = "pwc,pcd->pwd"}> : () -> ()
    %cst_135 = arith.constant dense<0.000000e+00> : vector<4x4x8xf32>
    %172 = tpu.matmul %169, %19, %cst_135 {dimension_numbers = #tpu.dot_dimension_numbers<[2], [1], [1], [2], [0, 0, 0, 1, 1, 2], [0], [0]>} : vector<4x4x4xbf16>, vector<4x4x8xbf16>, vector<4x4x8xf32> -> vector<4x4x8xf32>
    "tpu.trace_stop"() : () -> ()
    %173 = arith.addf %153, %172 : vector<4x4x8xf32>
    %c0_136 = arith.constant 0 : index
    %c65 = arith.constant 65 : index
    %c0_137 = arith.constant 0 : index
    %c0_138 = arith.constant 0 : index
    %174 = vector.load %arg1[%c0_136, %c65, %c0_137, %c0_138] : memref<1x80x5x4xbf16, #tpu.memory_space<vmem>>, vector<1x4x4x4xbf16>
    %175 = vector.shape_cast %174 : vector<1x4x4x4xbf16> to vector<4x4x4xbf16>
    "tpu.trace_start"() <{level = 10 : i32, message = "pwc,pcd->pwd"}> : () -> ()
    %cst_139 = arith.constant dense<0.000000e+00> : vector<4x4x8xf32>
    %176 = tpu.matmul %175, %55, %cst_139 {dimension_numbers = #tpu.dot_dimension_numbers<[2], [1], [1], [2], [0, 0, 0, 1, 1, 2], [0], [0]>} : vector<4x4x4xbf16>, vector<4x4x8xbf16>, vector<4x4x8xf32> -> vector<4x4x8xf32>
    "tpu.trace_stop"() : () -> ()
    %177 = arith.addf %171, %176 : vector<4x4x8xf32>
    "tpu.trace_start"() <{level = 10 : i32, message = "pwc,pcd->pwd"}> : () -> ()
    %cst_140 = arith.constant dense<0.000000e+00> : vector<4x4x8xf32>
    %178 = tpu.matmul %175, %23, %cst_140 {dimension_numbers = #tpu.dot_dimension_numbers<[2], [1], [1], [2], [0, 0, 0, 1, 1, 2], [0], [0]>} : vector<4x4x4xbf16>, vector<4x4x8xbf16>, vector<4x4x8xf32> -> vector<4x4x8xf32>
    "tpu.trace_stop"() : () -> ()
    %179 = arith.addf %173, %178 : vector<4x4x8xf32>
    %c0_141 = arith.constant 0 : index
    %c70 = arith.constant 70 : index
    %c0_142 = arith.constant 0 : index
    %c0_143 = arith.constant 0 : index
    %180 = vector.load %arg1[%c0_141, %c70, %c0_142, %c0_143] : memref<1x80x5x4xbf16, #tpu.memory_space<vmem>>, vector<1x4x4x4xbf16>
    %181 = vector.shape_cast %180 : vector<1x4x4x4xbf16> to vector<4x4x4xbf16>
    "tpu.trace_start"() <{level = 10 : i32, message = "pwc,pcd->pwd"}> : () -> ()
    %cst_144 = arith.constant dense<0.000000e+00> : vector<4x4x8xf32>
    %182 = tpu.matmul %181, %59, %cst_144 {dimension_numbers = #tpu.dot_dimension_numbers<[2], [1], [1], [2], [0, 0, 0, 1, 1, 2], [0], [0]>} : vector<4x4x4xbf16>, vector<4x4x8xbf16>, vector<4x4x8xf32> -> vector<4x4x8xf32>
    "tpu.trace_stop"() : () -> ()
    %183 = arith.addf %177, %182 : vector<4x4x8xf32>
    "tpu.trace_start"() <{level = 10 : i32, message = "pwc,pcd->pwd"}> : () -> ()
    %cst_145 = arith.constant dense<0.000000e+00> : vector<4x4x8xf32>
    %184 = tpu.matmul %181, %51, %cst_145 {dimension_numbers = #tpu.dot_dimension_numbers<[2], [1], [1], [2], [0, 0, 0, 1, 1, 2], [0], [0]>} : vector<4x4x4xbf16>, vector<4x4x8xbf16>, vector<4x4x8xf32> -> vector<4x4x8xf32>
    "tpu.trace_stop"() : () -> ()
    %185 = arith.addf %165, %184 : vector<4x4x8xf32>
    "tpu.trace_start"() <{level = 10 : i32, message = "pwc,pcd->pwd"}> : () -> ()
    %cst_146 = arith.constant dense<0.000000e+00> : vector<4x4x8xf32>
    %186 = tpu.matmul %181, %27, %cst_146 {dimension_numbers = #tpu.dot_dimension_numbers<[2], [1], [1], [2], [0, 0, 0, 1, 1, 2], [0], [0]>} : vector<4x4x4xbf16>, vector<4x4x8xbf16>, vector<4x4x8xf32> -> vector<4x4x8xf32>
    "tpu.trace_stop"() : () -> ()
    %187 = arith.addf %179, %186 : vector<4x4x8xf32>
    "tpu.trace_start"() <{level = 10 : i32, message = "pwc,pcd->pwd"}> : () -> ()
    %cst_147 = arith.constant dense<0.000000e+00> : vector<4x4x8xf32>
    %188 = tpu.matmul %181, %19, %cst_147 {dimension_numbers = #tpu.dot_dimension_numbers<[2], [1], [1], [2], [0, 0, 0, 1, 1, 2], [0], [0]>} : vector<4x4x4xbf16>, vector<4x4x8xbf16>, vector<4x4x8xf32> -> vector<4x4x8xf32>
    "tpu.trace_stop"() : () -> ()
    %189 = arith.addf %167, %188 : vector<4x4x8xf32>
    %c0_148 = arith.constant 0 : index
    %c75 = arith.constant 75 : index
    %c0_149 = arith.constant 0 : index
    %c0_150 = arith.constant 0 : index
    %190 = vector.load %arg1[%c0_148, %c75, %c0_149, %c0_150] : memref<1x80x5x4xbf16, #tpu.memory_space<vmem>>, vector<1x4x4x4xbf16>
    %191 = vector.shape_cast %190 : vector<1x4x4x4xbf16> to vector<4x4x4xbf16>
    "tpu.trace_start"() <{level = 10 : i32, message = "pwc,pcd->pwd"}> : () -> ()
    %cst_151 = arith.constant dense<0.000000e+00> : vector<4x4x8xf32>
    %192 = tpu.matmul %191, %63, %cst_151 {dimension_numbers = #tpu.dot_dimension_numbers<[2], [1], [1], [2], [0, 0, 0, 1, 1, 2], [0], [0]>} : vector<4x4x4xbf16>, vector<4x4x8xbf16>, vector<4x4x8xf32> -> vector<4x4x8xf32>
    "tpu.trace_stop"() : () -> ()
    %193 = arith.addf %183, %192 : vector<4x4x8xf32>
    "tpu.trace_start"() <{level = 10 : i32, message = "pwc,pcd->pwd"}> : () -> ()
    %cst_152 = arith.constant dense<0.000000e+00> : vector<4x4x8xf32>
    %194 = tpu.matmul %191, %55, %cst_152 {dimension_numbers = #tpu.dot_dimension_numbers<[2], [1], [1], [2], [0, 0, 0, 1, 1, 2], [0], [0]>} : vector<4x4x4xbf16>, vector<4x4x8xbf16>, vector<4x4x8xf32> -> vector<4x4x8xf32>
    "tpu.trace_stop"() : () -> ()
    %195 = arith.addf %185, %194 : vector<4x4x8xf32>
    "tpu.trace_start"() <{level = 10 : i32, message = "pwc,pcd->pwd"}> : () -> ()
    %cst_153 = arith.constant dense<0.000000e+00> : vector<4x4x8xf32>
    %196 = tpu.matmul %191, %31, %cst_153 {dimension_numbers = #tpu.dot_dimension_numbers<[2], [1], [1], [2], [0, 0, 0, 1, 1, 2], [0], [0]>} : vector<4x4x4xbf16>, vector<4x4x8xbf16>, vector<4x4x8xf32> -> vector<4x4x8xf32>
    "tpu.trace_stop"() : () -> ()
    %197 = arith.addf %187, %196 : vector<4x4x8xf32>
    "tpu.trace_start"() <{level = 10 : i32, message = "pwc,pcd->pwd"}> : () -> ()
    %cst_154 = arith.constant dense<0.000000e+00> : vector<4x4x8xf32>
    %198 = tpu.matmul %191, %23, %cst_154 {dimension_numbers = #tpu.dot_dimension_numbers<[2], [1], [1], [2], [0, 0, 0, 1, 1, 2], [0], [0]>} : vector<4x4x4xbf16>, vector<4x4x8xbf16>, vector<4x4x8xf32> -> vector<4x4x8xf32>
    "tpu.trace_stop"() : () -> ()
    %199 = arith.addf %189, %198 : vector<4x4x8xf32>
    %c0_155 = arith.constant 0 : index
    %c60_156 = arith.constant 60 : index
    %c1_157 = arith.constant 1 : index
    %c0_158 = arith.constant 0 : index
    %200 = vector.load %arg1[%c0_155, %c60_156, %c1_157, %c0_158] : memref<1x80x5x4xbf16, #tpu.memory_space<vmem>>, vector<1x4x4x4xbf16>
    %201 = vector.shape_cast %200 : vector<1x4x4x4xbf16> to vector<4x4x4xbf16>
    "tpu.trace_start"() <{level = 10 : i32, message = "pwc,pcd->pwd"}> : () -> ()
    %cst_159 = arith.constant dense<0.000000e+00> : vector<4x4x8xf32>
    %202 = tpu.matmul %201, %59, %cst_159 {dimension_numbers = #tpu.dot_dimension_numbers<[2], [1], [1], [2], [0, 0, 0, 1, 1, 2], [0], [0]>} : vector<4x4x4xbf16>, vector<4x4x8xbf16>, vector<4x4x8xf32> -> vector<4x4x8xf32>
    "tpu.trace_stop"() : () -> ()
    %203 = arith.addf %195, %202 : vector<4x4x8xf32>
    "tpu.trace_start"() <{level = 10 : i32, message = "pwc,pcd->pwd"}> : () -> ()
    %cst_160 = arith.constant dense<0.000000e+00> : vector<4x4x8xf32>
    %204 = tpu.matmul %201, %27, %cst_160 {dimension_numbers = #tpu.dot_dimension_numbers<[2], [1], [1], [2], [0, 0, 0, 1, 1, 2], [0], [0]>} : vector<4x4x4xbf16>, vector<4x4x8xbf16>, vector<4x4x8xf32> -> vector<4x4x8xf32>
    "tpu.trace_stop"() : () -> ()
    %205 = arith.addf %199, %204 : vector<4x4x8xf32>
    %c0_161 = arith.constant 0 : index
    %c65_162 = arith.constant 65 : index
    %c1_163 = arith.constant 1 : index
    %c0_164 = arith.constant 0 : index
    %206 = vector.load %arg1[%c0_161, %c65_162, %c1_163, %c0_164] : memref<1x80x5x4xbf16, #tpu.memory_space<vmem>>, vector<1x4x4x4xbf16>
    %207 = vector.shape_cast %206 : vector<1x4x4x4xbf16> to vector<4x4x4xbf16>
    "tpu.trace_start"() <{level = 10 : i32, message = "pwc,pcd->pwd"}> : () -> ()
    %cst_165 = arith.constant dense<0.000000e+00> : vector<4x4x8xf32>
    %208 = tpu.matmul %207, %63, %cst_165 {dimension_numbers = #tpu.dot_dimension_numbers<[2], [1], [1], [2], [0, 0, 0, 1, 1, 2], [0], [0]>} : vector<4x4x4xbf16>, vector<4x4x8xbf16>, vector<4x4x8xf32> -> vector<4x4x8xf32>
    "tpu.trace_stop"() : () -> ()
    %209 = arith.addf %203, %208 : vector<4x4x8xf32>
    "tpu.trace_start"() <{level = 10 : i32, message = "pwc,pcd->pwd"}> : () -> ()
    %cst_166 = arith.constant dense<0.000000e+00> : vector<4x4x8xf32>
    %210 = tpu.matmul %207, %31, %cst_166 {dimension_numbers = #tpu.dot_dimension_numbers<[2], [1], [1], [2], [0, 0, 0, 1, 1, 2], [0], [0]>} : vector<4x4x4xbf16>, vector<4x4x8xbf16>, vector<4x4x8xf32> -> vector<4x4x8xf32>
    "tpu.trace_stop"() : () -> ()
    %211 = arith.addf %205, %210 : vector<4x4x8xf32>
    %c0_167 = arith.constant 0 : index
    %c1_168 = arith.constant 1 : index
    %c0_169 = arith.constant 0 : index
    %c0_170 = arith.constant 0 : index
    %212 = vector.load %arg1[%c0_167, %c1_168, %c0_169, %c0_170] : memref<1x80x5x4xbf16, #tpu.memory_space<vmem>>, vector<1x4x4x4xbf16>
    %213 = vector.shape_cast %212 : vector<1x4x4x4xbf16> to vector<4x4x4xbf16>
    "tpu.trace_start"() <{level = 10 : i32, message = "pwc,pcd->pwd"}> : () -> ()
    %cst_171 = arith.constant dense<0.000000e+00> : vector<4x4x8xf32>
    %214 = tpu.matmul %213, %35, %cst_171 {dimension_numbers = #tpu.dot_dimension_numbers<[2], [1], [1], [2], [0, 0, 0, 1, 1, 2], [0], [0]>} : vector<4x4x4xbf16>, vector<4x4x8xbf16>, vector<4x4x8xf32> -> vector<4x4x8xf32>
    "tpu.trace_stop"() : () -> ()
    %215 = arith.addf %197, %214 : vector<4x4x8xf32>
    %c0_172 = arith.constant 0 : index
    %c6_173 = arith.constant 6 : index
    %c0_174 = arith.constant 0 : index
    %c0_175 = arith.constant 0 : index
    %216 = vector.load %arg1[%c0_172, %c6_173, %c0_174, %c0_175] : memref<1x80x5x4xbf16, #tpu.memory_space<vmem>>, vector<1x4x4x4xbf16>
    %217 = vector.shape_cast %216 : vector<1x4x4x4xbf16> to vector<4x4x4xbf16>
    "tpu.trace_start"() <{level = 10 : i32, message = "pwc,pcd->pwd"}> : () -> ()
    %cst_176 = arith.constant dense<0.000000e+00> : vector<4x4x8xf32>
    %218 = tpu.matmul %217, %39, %cst_176 {dimension_numbers = #tpu.dot_dimension_numbers<[2], [1], [1], [2], [0, 0, 0, 1, 1, 2], [0], [0]>} : vector<4x4x4xbf16>, vector<4x4x8xbf16>, vector<4x4x8xf32> -> vector<4x4x8xf32>
    "tpu.trace_stop"() : () -> ()
    %219 = arith.addf %215, %218 : vector<4x4x8xf32>
    %c0_177 = arith.constant 0 : index
    %c11_178 = arith.constant 11 : index
    %c0_179 = arith.constant 0 : index
    %c0_180 = arith.constant 0 : index
    %220 = vector.load %arg1[%c0_177, %c11_178, %c0_179, %c0_180] : memref<1x80x5x4xbf16, #tpu.memory_space<vmem>>, vector<1x4x4x4xbf16>
    %221 = vector.shape_cast %220 : vector<1x4x4x4xbf16> to vector<4x4x4xbf16>
    "tpu.trace_start"() <{level = 10 : i32, message = "pwc,pcd->pwd"}> : () -> ()
    %cst_181 = arith.constant dense<0.000000e+00> : vector<4x4x8xf32>
    %222 = tpu.matmul %221, %43, %cst_181 {dimension_numbers = #tpu.dot_dimension_numbers<[2], [1], [1], [2], [0, 0, 0, 1, 1, 2], [0], [0]>} : vector<4x4x4xbf16>, vector<4x4x8xbf16>, vector<4x4x8xf32> -> vector<4x4x8xf32>
    "tpu.trace_stop"() : () -> ()
    %223 = arith.addf %219, %222 : vector<4x4x8xf32>
    "tpu.trace_start"() <{level = 10 : i32, message = "pwc,pcd->pwd"}> : () -> ()
    %cst_182 = arith.constant dense<0.000000e+00> : vector<4x4x8xf32>
    %224 = tpu.matmul %221, %35, %cst_182 {dimension_numbers = #tpu.dot_dimension_numbers<[2], [1], [1], [2], [0, 0, 0, 1, 1, 2], [0], [0]>} : vector<4x4x4xbf16>, vector<4x4x8xbf16>, vector<4x4x8xf32> -> vector<4x4x8xf32>
    "tpu.trace_stop"() : () -> ()
    %225 = arith.addf %211, %224 : vector<4x4x8xf32>
    %c0_183 = arith.constant 0 : index
    %c16 = arith.constant 16 : index
    %c0_184 = arith.constant 0 : index
    %c0_185 = arith.constant 0 : index
    %226 = vector.load %arg1[%c0_183, %c16, %c0_184, %c0_185] : memref<1x80x5x4xbf16, #tpu.memory_space<vmem>>, vector<1x4x4x4xbf16>
    %227 = vector.shape_cast %226 : vector<1x4x4x4xbf16> to vector<4x4x4xbf16>
    "tpu.trace_start"() <{level = 10 : i32, message = "pwc,pcd->pwd"}> : () -> ()
    %cst_186 = arith.constant dense<0.000000e+00> : vector<4x4x8xf32>
    %228 = tpu.matmul %227, %47, %cst_186 {dimension_numbers = #tpu.dot_dimension_numbers<[2], [1], [1], [2], [0, 0, 0, 1, 1, 2], [0], [0]>} : vector<4x4x4xbf16>, vector<4x4x8xbf16>, vector<4x4x8xf32> -> vector<4x4x8xf32>
    "tpu.trace_stop"() : () -> ()
    %229 = arith.addf %223, %228 : vector<4x4x8xf32>
    "tpu.trace_start"() <{level = 10 : i32, message = "pwc,pcd->pwd"}> : () -> ()
    %cst_187 = arith.constant dense<0.000000e+00> : vector<4x4x8xf32>
    %230 = tpu.matmul %227, %39, %cst_187 {dimension_numbers = #tpu.dot_dimension_numbers<[2], [1], [1], [2], [0, 0, 0, 1, 1, 2], [0], [0]>} : vector<4x4x4xbf16>, vector<4x4x8xbf16>, vector<4x4x8xf32> -> vector<4x4x8xf32>
    "tpu.trace_stop"() : () -> ()
    %231 = arith.addf %225, %230 : vector<4x4x8xf32>
    %c0_188 = arith.constant 0 : index
    %c1_189 = arith.constant 1 : index
    %c1_190 = arith.constant 1 : index
    %c0_191 = arith.constant 0 : index
    %232 = vector.load %arg1[%c0_188, %c1_189, %c1_190, %c0_191] : memref<1x80x5x4xbf16, #tpu.memory_space<vmem>>, vector<1x4x4x4xbf16>
    %233 = vector.shape_cast %232 : vector<1x4x4x4xbf16> to vector<4x4x4xbf16>
    "tpu.trace_start"() <{level = 10 : i32, message = "pwc,pcd->pwd"}> : () -> ()
    %cst_192 = arith.constant dense<0.000000e+00> : vector<4x4x8xf32>
    %234 = tpu.matmul %233, %43, %cst_192 {dimension_numbers = #tpu.dot_dimension_numbers<[2], [1], [1], [2], [0, 0, 0, 1, 1, 2], [0], [0]>} : vector<4x4x4xbf16>, vector<4x4x8xbf16>, vector<4x4x8xf32> -> vector<4x4x8xf32>
    "tpu.trace_stop"() : () -> ()
    %235 = arith.addf %231, %234 : vector<4x4x8xf32>
    %c0_193 = arith.constant 0 : index
    %c6_194 = arith.constant 6 : index
    %c1_195 = arith.constant 1 : index
    %c0_196 = arith.constant 0 : index
    %236 = vector.load %arg1[%c0_193, %c6_194, %c1_195, %c0_196] : memref<1x80x5x4xbf16, #tpu.memory_space<vmem>>, vector<1x4x4x4xbf16>
    %237 = vector.shape_cast %236 : vector<1x4x4x4xbf16> to vector<4x4x4xbf16>
    "tpu.trace_start"() <{level = 10 : i32, message = "pwc,pcd->pwd"}> : () -> ()
    %cst_197 = arith.constant dense<0.000000e+00> : vector<4x4x8xf32>
    %238 = tpu.matmul %237, %47, %cst_197 {dimension_numbers = #tpu.dot_dimension_numbers<[2], [1], [1], [2], [0, 0, 0, 1, 1, 2], [0], [0]>} : vector<4x4x4xbf16>, vector<4x4x8xbf16>, vector<4x4x8xf32> -> vector<4x4x8xf32>
    "tpu.trace_stop"() : () -> ()
    %239 = arith.addf %235, %238 : vector<4x4x8xf32>
    %c0_198 = arith.constant 0 : index
    %c21 = arith.constant 21 : index
    %c0_199 = arith.constant 0 : index
    %c0_200 = arith.constant 0 : index
    %240 = vector.load %arg1[%c0_198, %c21, %c0_199, %c0_200] : memref<1x80x5x4xbf16, #tpu.memory_space<vmem>>, vector<1x4x4x4xbf16>
    %241 = vector.shape_cast %240 : vector<1x4x4x4xbf16> to vector<4x4x4xbf16>
    "tpu.trace_start"() <{level = 10 : i32, message = "pwc,pcd->pwd"}> : () -> ()
    %cst_201 = arith.constant dense<0.000000e+00> : vector<4x4x8xf32>
    %242 = tpu.matmul %241, %51, %cst_201 {dimension_numbers = #tpu.dot_dimension_numbers<[2], [1], [1], [2], [0, 0, 0, 1, 1, 2], [0], [0]>} : vector<4x4x4xbf16>, vector<4x4x8xbf16>, vector<4x4x8xf32> -> vector<4x4x8xf32>
    "tpu.trace_stop"() : () -> ()
    %243 = arith.addf %229, %242 : vector<4x4x8xf32>
    %c0_202 = arith.constant 0 : index
    %c26 = arith.constant 26 : index
    %c0_203 = arith.constant 0 : index
    %c0_204 = arith.constant 0 : index
    %244 = vector.load %arg1[%c0_202, %c26, %c0_203, %c0_204] : memref<1x80x5x4xbf16, #tpu.memory_space<vmem>>, vector<1x4x4x4xbf16>
    %245 = vector.shape_cast %244 : vector<1x4x4x4xbf16> to vector<4x4x4xbf16>
    "tpu.trace_start"() <{level = 10 : i32, message = "pwc,pcd->pwd"}> : () -> ()
    %cst_205 = arith.constant dense<0.000000e+00> : vector<4x4x8xf32>
    %246 = tpu.matmul %245, %55, %cst_205 {dimension_numbers = #tpu.dot_dimension_numbers<[2], [1], [1], [2], [0, 0, 0, 1, 1, 2], [0], [0]>} : vector<4x4x4xbf16>, vector<4x4x8xbf16>, vector<4x4x8xf32> -> vector<4x4x8xf32>
    "tpu.trace_stop"() : () -> ()
    %247 = arith.addf %243, %246 : vector<4x4x8xf32>
    %c0_206 = arith.constant 0 : index
    %c31 = arith.constant 31 : index
    %c0_207 = arith.constant 0 : index
    %c0_208 = arith.constant 0 : index
    %248 = vector.load %arg1[%c0_206, %c31, %c0_207, %c0_208] : memref<1x80x5x4xbf16, #tpu.memory_space<vmem>>, vector<1x4x4x4xbf16>
    %249 = vector.shape_cast %248 : vector<1x4x4x4xbf16> to vector<4x4x4xbf16>
    "tpu.trace_start"() <{level = 10 : i32, message = "pwc,pcd->pwd"}> : () -> ()
    %cst_209 = arith.constant dense<0.000000e+00> : vector<4x4x8xf32>
    %250 = tpu.matmul %249, %59, %cst_209 {dimension_numbers = #tpu.dot_dimension_numbers<[2], [1], [1], [2], [0, 0, 0, 1, 1, 2], [0], [0]>} : vector<4x4x4xbf16>, vector<4x4x8xbf16>, vector<4x4x8xf32> -> vector<4x4x8xf32>
    "tpu.trace_stop"() : () -> ()
    %251 = arith.addf %247, %250 : vector<4x4x8xf32>
    "tpu.trace_start"() <{level = 10 : i32, message = "pwc,pcd->pwd"}> : () -> ()
    %cst_210 = arith.constant dense<0.000000e+00> : vector<4x4x8xf32>
    %252 = tpu.matmul %249, %51, %cst_210 {dimension_numbers = #tpu.dot_dimension_numbers<[2], [1], [1], [2], [0, 0, 0, 1, 1, 2], [0], [0]>} : vector<4x4x4xbf16>, vector<4x4x8xbf16>, vector<4x4x8xf32> -> vector<4x4x8xf32>
    "tpu.trace_stop"() : () -> ()
    %253 = arith.addf %239, %252 : vector<4x4x8xf32>
    %c0_211 = arith.constant 0 : index
    %c36 = arith.constant 36 : index
    %c0_212 = arith.constant 0 : index
    %c0_213 = arith.constant 0 : index
    %254 = vector.load %arg1[%c0_211, %c36, %c0_212, %c0_213] : memref<1x80x5x4xbf16, #tpu.memory_space<vmem>>, vector<1x4x4x4xbf16>
    %255 = vector.shape_cast %254 : vector<1x4x4x4xbf16> to vector<4x4x4xbf16>
    "tpu.trace_start"() <{level = 10 : i32, message = "pwc,pcd->pwd"}> : () -> ()
    %cst_214 = arith.constant dense<0.000000e+00> : vector<4x4x8xf32>
    %256 = tpu.matmul %255, %63, %cst_214 {dimension_numbers = #tpu.dot_dimension_numbers<[2], [1], [1], [2], [0, 0, 0, 1, 1, 2], [0], [0]>} : vector<4x4x4xbf16>, vector<4x4x8xbf16>, vector<4x4x8xf32> -> vector<4x4x8xf32>
    "tpu.trace_stop"() : () -> ()
    %257 = arith.addf %251, %256 : vector<4x4x8xf32>
    "tpu.trace_start"() <{level = 10 : i32, message = "pwc,pcd->pwd"}> : () -> ()
    %cst_215 = arith.constant dense<0.000000e+00> : vector<4x4x8xf32>
    %258 = tpu.matmul %255, %55, %cst_215 {dimension_numbers = #tpu.dot_dimension_numbers<[2], [1], [1], [2], [0, 0, 0, 1, 1, 2], [0], [0]>} : vector<4x4x4xbf16>, vector<4x4x8xbf16>, vector<4x4x8xf32> -> vector<4x4x8xf32>
    "tpu.trace_stop"() : () -> ()
    %259 = arith.addf %253, %258 : vector<4x4x8xf32>
    %c0_216 = arith.constant 0 : index
    %c21_217 = arith.constant 21 : index
    %c1_218 = arith.constant 1 : index
    %c0_219 = arith.constant 0 : index
    %260 = vector.load %arg1[%c0_216, %c21_217, %c1_218, %c0_219] : memref<1x80x5x4xbf16, #tpu.memory_space<vmem>>, vector<1x4x4x4xbf16>
    %261 = vector.shape_cast %260 : vector<1x4x4x4xbf16> to vector<4x4x4xbf16>
    "tpu.trace_start"() <{level = 10 : i32, message = "pwc,pcd->pwd"}> : () -> ()
    %cst_220 = arith.constant dense<0.000000e+00> : vector<4x4x8xf32>
    %262 = tpu.matmul %261, %59, %cst_220 {dimension_numbers = #tpu.dot_dimension_numbers<[2], [1], [1], [2], [0, 0, 0, 1, 1, 2], [0], [0]>} : vector<4x4x4xbf16>, vector<4x4x8xbf16>, vector<4x4x8xf32> -> vector<4x4x8xf32>
    "tpu.trace_stop"() : () -> ()
    %263 = arith.addf %259, %262 : vector<4x4x8xf32>
    %c0_221 = arith.constant 0 : index
    %c26_222 = arith.constant 26 : index
    %c1_223 = arith.constant 1 : index
    %c0_224 = arith.constant 0 : index
    %264 = vector.load %arg1[%c0_221, %c26_222, %c1_223, %c0_224] : memref<1x80x5x4xbf16, #tpu.memory_space<vmem>>, vector<1x4x4x4xbf16>
    %265 = vector.shape_cast %264 : vector<1x4x4x4xbf16> to vector<4x4x4xbf16>
    "tpu.trace_start"() <{level = 10 : i32, message = "pwc,pcd->pwd"}> : () -> ()
    %cst_225 = arith.constant dense<0.000000e+00> : vector<4x4x8xf32>
    %266 = tpu.matmul %265, %63, %cst_225 {dimension_numbers = #tpu.dot_dimension_numbers<[2], [1], [1], [2], [0, 0, 0, 1, 1, 2], [0], [0]>} : vector<4x4x4xbf16>, vector<4x4x8xbf16>, vector<4x4x8xf32> -> vector<4x4x8xf32>
    "tpu.trace_stop"() : () -> ()
    %267 = arith.addf %263, %266 : vector<4x4x8xf32>
    %c0_226 = arith.constant 0 : index
    %c0_227 = arith.constant 0 : index
    %c0_228 = arith.constant 0 : index
    %268 = vector.load %arg3[%c0_226, %c0_227, %c0_228] : memref<1x1x8xf32, #tpu.memory_space<vmem>>, vector<1x1x8xf32>
    %269 = vector.broadcast %268 : vector<1x1x8xf32> to vector<4x4x8xf32>
    %270 = arith.addf %193, %269 : vector<4x4x8xf32>
    %cst_229 = arith.constant 0.000000e+00 : f32
    %271 = vector.broadcast %cst_229 : f32 to vector<4x4x8xf32>
    %272 = arith.maximumf %270, %271 : vector<4x4x8xf32>
    %273 = vector.broadcast %268 : vector<1x1x8xf32> to vector<4x4x8xf32>
    %274 = arith.addf %209, %273 : vector<4x4x8xf32>
    %cst_230 = arith.constant 0.000000e+00 : f32
    %275 = vector.broadcast %cst_230 : f32 to vector<4x4x8xf32>
    %276 = arith.maximumf %274, %275 : vector<4x4x8xf32>
    %277 = arith.maximumf %272, %276 : vector<4x4x8xf32>
    %278 = vector.broadcast %268 : vector<1x1x8xf32> to vector<4x4x8xf32>
    %279 = arith.addf %257, %278 : vector<4x4x8xf32>
    %cst_231 = arith.constant 0.000000e+00 : f32
    %280 = vector.broadcast %cst_231 : f32 to vector<4x4x8xf32>
    %281 = arith.maximumf %279, %280 : vector<4x4x8xf32>
    %282 = arith.maximumf %277, %281 : vector<4x4x8xf32>
    %283 = vector.broadcast %268 : vector<1x1x8xf32> to vector<4x4x8xf32>
    %284 = arith.addf %267, %283 : vector<4x4x8xf32>
    %cst_232 = arith.constant 0.000000e+00 : f32
    %285 = vector.broadcast %cst_232 : f32 to vector<4x4x8xf32>
    %286 = arith.maximumf %284, %285 : vector<4x4x8xf32>
    %287 = arith.maximumf %282, %286 : vector<4x4x8xf32>
    %288 = arith.truncf %287 : vector<4x4x8xf32> to vector<4x4x8xbf16>
    %c0_233 = arith.constant 0 : index
    %c0_234 = arith.constant 0 : index
    %c0_235 = arith.constant 0 : index
    %c0_236 = arith.constant 0 : index
    %289 = vector.load %arg4[%c0_233, %c0_234, %c0_235, %c0_236] : memref<1x4x4x8xbf16, #tpu.memory_space<vmem>>, vector<1x4x4x8xbf16>
    %290 = vector.shape_cast %289 : vector<1x4x4x8xbf16> to vector<4x4x8xbf16>
    %291 = vector.shape_cast %288 : vector<4x4x8xbf16> to vector<1x4x4x8xbf16>
    tpu.vector_store %arg4[%c0_233, %c0_234, %c0_235, %c0_236], %291 {strides = array<i32>} : memref<1x4x4x8xbf16, #tpu.memory_space<vmem>>, vector<1x4x4x8xbf16>,
    return
  }
  func.func @transform_0(%arg0: i32) -> (i32, i32, i32, i32) {
    %c0_i32 = arith.constant 0 : i32
    %c0_i32_0 = arith.constant 0 : i32
    %c0_i32_1 = arith.constant 0 : i32
    %c0_i32_2 = arith.constant 0 : i32
    return %arg0, %c0_i32, %c0_i32_0, %c0_i32_1 : i32, i32, i32, i32
  }
  func.func @transform_1(%arg0: i32) -> (i32, i32, i32) {
    %c0_i32 = arith.constant 0 : i32
    %c0_i32_0 = arith.constant 0 : i32
    %c0_i32_1 = arith.constant 0 : i32
    %c0_i32_2 = arith.constant 0 : i32
    return %c0_i32, %c0_i32_0, %c0_i32_1 : i32, i32, i32
  }
  func.func @transform_2(%arg0: i32) -> (i32, i32, i32) {
    %c0_i32 = arith.constant 0 : i32
    %c0_i32_0 = arith.constant 0 : i32
    %c0_i32_1 = arith.constant 0 : i32
    %c0_i32_2 = arith.constant 0 : i32
    return %c0_i32, %c0_i32_0, %c0_i32_1 : i32, i32, i32
  }
  func.func @transform_3(%arg0: i32) -> (i32, i32, i32, i32) {
    %c0_i32 = arith.constant 0 : i32
    %c0_i32_0 = arith.constant 0 : i32
    %c0_i32_1 = arith.constant 0 : i32
    %c0_i32_2 = arith.constant 0 : i32
    return %arg0, %c0_i32, %c0_i32_0, %c0_i32_1 : i32, i32, i32, i32
  }
}

module attributes {stable_mosaic.version = 11 : i64} {
  func.func @_fused_conv_pool_kernel(%arg0: i32, %arg1: memref<1x12x3x8xbf16, #tpu.memory_space<vmem>>, %arg2: memref<9x8x16xbf16, #tpu.memory_space<vmem>>, %arg3: memref<1x1x16xf32, #tpu.memory_space<vmem>>, %arg4: memref<1x2x2x16xf32, #tpu.memory_space<vmem>>) attributes {dimension_semantics = [#tpu.dimension_semantics<parallel>], iteration_bounds = array<i64: 2>, scalar_prefetch = 0 : i64, scratch_operands = 0 : i64, tpu.core_type = #tpu.core_type<tc>, window_params = [{transform_indices = @transform_0, window_bounds = array<i64: 1, 12, 3, 8>}, {pipeline_mode = #tpu.pipeline_mode<synchronous>, transform_indices = @transform_1, window_bounds = array<i64: 9, 8, 16>}, {pipeline_mode = #tpu.pipeline_mode<synchronous>, transform_indices = @transform_2, window_bounds = array<i64: 1, 1, 16>}, {transform_indices = @transform_3, window_bounds = array<i64: 1, 2, 2, 16>}]} {
    %c0 = arith.constant 0 : index
    %c0_0 = arith.constant 0 : index
    %c0_1 = arith.constant 0 : index
    %0 = vector.load %arg2[%c0, %c0_0, %c0_1] : memref<9x8x16xbf16, #tpu.memory_space<vmem>>, vector<1x8x16xbf16>
    %1 = vector.shape_cast %0 : vector<1x8x16xbf16> to vector<8x16xbf16>
    %2 = vector.shape_cast %1 : vector<8x16xbf16> to vector<1x8x16xbf16>
    %3 = vector.broadcast %2 : vector<1x8x16xbf16> to vector<2x8x16xbf16>
    %c1 = arith.constant 1 : index
    %c0_2 = arith.constant 0 : index
    %c0_3 = arith.constant 0 : index
    %4 = vector.load %arg2[%c1, %c0_2, %c0_3] : memref<9x8x16xbf16, #tpu.memory_space<vmem>>, vector<1x8x16xbf16>
    %5 = vector.shape_cast %4 : vector<1x8x16xbf16> to vector<8x16xbf16>
    %6 = vector.shape_cast %5 : vector<8x16xbf16> to vector<1x8x16xbf16>
    %7 = vector.broadcast %6 : vector<1x8x16xbf16> to vector<2x8x16xbf16>
    %c2 = arith.constant 2 : index
    %c0_4 = arith.constant 0 : index
    %c0_5 = arith.constant 0 : index
    %8 = vector.load %arg2[%c2, %c0_4, %c0_5] : memref<9x8x16xbf16, #tpu.memory_space<vmem>>, vector<1x8x16xbf16>
    %9 = vector.shape_cast %8 : vector<1x8x16xbf16> to vector<8x16xbf16>
    %10 = vector.shape_cast %9 : vector<8x16xbf16> to vector<1x8x16xbf16>
    %11 = vector.broadcast %10 : vector<1x8x16xbf16> to vector<2x8x16xbf16>
    %c3 = arith.constant 3 : index
    %c0_6 = arith.constant 0 : index
    %c0_7 = arith.constant 0 : index
    %12 = vector.load %arg2[%c3, %c0_6, %c0_7] : memref<9x8x16xbf16, #tpu.memory_space<vmem>>, vector<1x8x16xbf16>
    %13 = vector.shape_cast %12 : vector<1x8x16xbf16> to vector<8x16xbf16>
    %14 = vector.shape_cast %13 : vector<8x16xbf16> to vector<1x8x16xbf16>
    %15 = vector.broadcast %14 : vector<1x8x16xbf16> to vector<2x8x16xbf16>
    %c4 = arith.constant 4 : index
    %c0_8 = arith.constant 0 : index
    %c0_9 = arith.constant 0 : index
    %16 = vector.load %arg2[%c4, %c0_8, %c0_9] : memref<9x8x16xbf16, #tpu.memory_space<vmem>>, vector<1x8x16xbf16>
    %17 = vector.shape_cast %16 : vector<1x8x16xbf16> to vector<8x16xbf16>
    %18 = vector.shape_cast %17 : vector<8x16xbf16> to vector<1x8x16xbf16>
    %19 = vector.broadcast %18 : vector<1x8x16xbf16> to vector<2x8x16xbf16>
    %c5 = arith.constant 5 : index
    %c0_10 = arith.constant 0 : index
    %c0_11 = arith.constant 0 : index
    %20 = vector.load %arg2[%c5, %c0_10, %c0_11] : memref<9x8x16xbf16, #tpu.memory_space<vmem>>, vector<1x8x16xbf16>
    %21 = vector.shape_cast %20 : vector<1x8x16xbf16> to vector<8x16xbf16>
    %22 = vector.shape_cast %21 : vector<8x16xbf16> to vector<1x8x16xbf16>
    %23 = vector.broadcast %22 : vector<1x8x16xbf16> to vector<2x8x16xbf16>
    %c6 = arith.constant 6 : index
    %c0_12 = arith.constant 0 : index
    %c0_13 = arith.constant 0 : index
    %24 = vector.load %arg2[%c6, %c0_12, %c0_13] : memref<9x8x16xbf16, #tpu.memory_space<vmem>>, vector<1x8x16xbf16>
    %25 = vector.shape_cast %24 : vector<1x8x16xbf16> to vector<8x16xbf16>
    %26 = vector.shape_cast %25 : vector<8x16xbf16> to vector<1x8x16xbf16>
    %27 = vector.broadcast %26 : vector<1x8x16xbf16> to vector<2x8x16xbf16>
    %c7 = arith.constant 7 : index
    %c0_14 = arith.constant 0 : index
    %c0_15 = arith.constant 0 : index
    %28 = vector.load %arg2[%c7, %c0_14, %c0_15] : memref<9x8x16xbf16, #tpu.memory_space<vmem>>, vector<1x8x16xbf16>
    %29 = vector.shape_cast %28 : vector<1x8x16xbf16> to vector<8x16xbf16>
    %30 = vector.shape_cast %29 : vector<8x16xbf16> to vector<1x8x16xbf16>
    %31 = vector.broadcast %30 : vector<1x8x16xbf16> to vector<2x8x16xbf16>
    %c8 = arith.constant 8 : index
    %c0_16 = arith.constant 0 : index
    %c0_17 = arith.constant 0 : index
    %32 = vector.load %arg2[%c8, %c0_16, %c0_17] : memref<9x8x16xbf16, #tpu.memory_space<vmem>>, vector<1x8x16xbf16>
    %33 = vector.shape_cast %32 : vector<1x8x16xbf16> to vector<8x16xbf16>
    %34 = vector.shape_cast %33 : vector<8x16xbf16> to vector<1x8x16xbf16>
    %35 = vector.broadcast %34 : vector<1x8x16xbf16> to vector<2x8x16xbf16>
    %cst = arith.constant 0.000000e+00 : f32
    %36 = vector.broadcast %cst : f32 to vector<2x2x16xf32>
    %cst_18 = arith.constant 0.000000e+00 : f32
    %37 = vector.broadcast %cst_18 : f32 to vector<2x2x16xf32>
    %cst_19 = arith.constant 0.000000e+00 : f32
    %38 = vector.broadcast %cst_19 : f32 to vector<2x2x16xf32>
    %cst_20 = arith.constant 0.000000e+00 : f32
    %39 = vector.broadcast %cst_20 : f32 to vector<2x2x16xf32>
    %c0_21 = arith.constant 0 : index
    %c0_22 = arith.constant 0 : index
    %c0_23 = arith.constant 0 : index
    %c0_24 = arith.constant 0 : index
    %40 = vector.load %arg1[%c0_21, %c0_22, %c0_23, %c0_24] : memref<1x12x3x8xbf16, #tpu.memory_space<vmem>>, vector<1x2x2x8xbf16>
    %41 = vector.shape_cast %40 : vector<1x2x2x8xbf16> to vector<2x2x8xbf16>
    "tpu.trace_start"() <{level = 10 : i32, message = "pwc,pcd->pwd"}> : () -> ()
    %cst_25 = arith.constant dense<0.000000e+00> : vector<2x2x16xf32>
    %42 = tpu.matmul %41, %3, %cst_25 {dimension_numbers = #tpu.dot_dimension_numbers<[2], [1], [1], [2], [0, 0, 0, 1, 1, 2], [0], [0]>} : vector<2x2x8xbf16>, vector<2x8x16xbf16>, vector<2x2x16xf32> -> vector<2x2x16xf32>
    "tpu.trace_stop"() : () -> ()
    %43 = arith.addf %36, %42 : vector<2x2x16xf32>
    %c0_26 = arith.constant 0 : index
    %c3_27 = arith.constant 3 : index
    %c0_28 = arith.constant 0 : index
    %c0_29 = arith.constant 0 : index
    %44 = vector.load %arg1[%c0_26, %c3_27, %c0_28, %c0_29] : memref<1x12x3x8xbf16, #tpu.memory_space<vmem>>, vector<1x2x2x8xbf16>
    %45 = vector.shape_cast %44 : vector<1x2x2x8xbf16> to vector<2x2x8xbf16>
    "tpu.trace_start"() <{level = 10 : i32, message = "pwc,pcd->pwd"}> : () -> ()
    %cst_30 = arith.constant dense<0.000000e+00> : vector<2x2x16xf32>
    %46 = tpu.matmul %45, %7, %cst_30 {dimension_numbers = #tpu.dot_dimension_numbers<[2], [1], [1], [2], [0, 0, 0, 1, 1, 2], [0], [0]>} : vector<2x2x8xbf16>, vector<2x8x16xbf16>, vector<2x2x16xf32> -> vector<2x2x16xf32>
    "tpu.trace_stop"() : () -> ()
    %47 = arith.addf %43, %46 : vector<2x2x16xf32>
    "tpu.trace_start"() <{level = 10 : i32, message = "pwc,pcd->pwd"}> : () -> ()
    %cst_31 = arith.constant dense<0.000000e+00> : vector<2x2x16xf32>
    %48 = tpu.matmul %45, %3, %cst_31 {dimension_numbers = #tpu.dot_dimension_numbers<[2], [1], [1], [2], [0, 0, 0, 1, 1, 2], [0], [0]>} : vector<2x2x8xbf16>, vector<2x8x16xbf16>, vector<2x2x16xf32> -> vector<2x2x16xf32>
    "tpu.trace_stop"() : () -> ()
    %49 = arith.addf %37, %48 : vector<2x2x16xf32>
    %c0_32 = arith.constant 0 : index
    %c0_33 = arith.constant 0 : index
    %c1_34 = arith.constant 1 : index
    %c0_35 = arith.constant 0 : index
    %50 = vector.load %arg1[%c0_32, %c0_33, %c1_34, %c0_35] : memref<1x12x3x8xbf16, #tpu.memory_space<vmem>>, vector<1x2x2x8xbf16>
    %51 = vector.shape_cast %50 : vector<1x2x2x8xbf16> to vector<2x2x8xbf16>
    "tpu.trace_start"() <{level = 10 : i32, message = "pwc,pcd->pwd"}> : () -> ()
    %cst_36 = arith.constant dense<0.000000e+00> : vector<2x2x16xf32>
    %52 = tpu.matmul %51, %11, %cst_36 {dimension_numbers = #tpu.dot_dimension_numbers<[2], [1], [1], [2], [0, 0, 0, 1, 1, 2], [0], [0]>} : vector<2x2x8xbf16>, vector<2x8x16xbf16>, vector<2x2x16xf32> -> vector<2x2x16xf32>
    "tpu.trace_stop"() : () -> ()
    %53 = arith.addf %47, %52 : vector<2x2x16xf32>
    "tpu.trace_start"() <{level = 10 : i32, message = "pwc,pcd->pwd"}> : () -> ()
    %cst_37 = arith.constant dense<0.000000e+00> : vector<2x2x16xf32>
    %54 = tpu.matmul %51, %7, %cst_37 {dimension_numbers = #tpu.dot_dimension_numbers<[2], [1], [1], [2], [0, 0, 0, 1, 1, 2], [0], [0]>} : vector<2x2x8xbf16>, vector<2x8x16xbf16>, vector<2x2x16xf32> -> vector<2x2x16xf32>
    "tpu.trace_stop"() : () -> ()
    %55 = arith.addf %49, %54 : vector<2x2x16xf32>
    %c0_38 = arith.constant 0 : index
    %c3_39 = arith.constant 3 : index
    %c1_40 = arith.constant 1 : index
    %c0_41 = arith.constant 0 : index
    %56 = vector.load %arg1[%c0_38, %c3_39, %c1_40, %c0_41] : memref<1x12x3x8xbf16, #tpu.memory_space<vmem>>, vector<1x2x2x8xbf16>
    %57 = vector.shape_cast %56 : vector<1x2x2x8xbf16> to vector<2x2x8xbf16>
    "tpu.trace_start"() <{level = 10 : i32, message = "pwc,pcd->pwd"}> : () -> ()
    %cst_42 = arith.constant dense<0.000000e+00> : vector<2x2x16xf32>
    %58 = tpu.matmul %57, %11, %cst_42 {dimension_numbers = #tpu.dot_dimension_numbers<[2], [1], [1], [2], [0, 0, 0, 1, 1, 2], [0], [0]>} : vector<2x2x8xbf16>, vector<2x8x16xbf16>, vector<2x2x16xf32> -> vector<2x2x16xf32>
    "tpu.trace_stop"() : () -> ()
    %59 = arith.addf %55, %58 : vector<2x2x16xf32>
    %c0_43 = arith.constant 0 : index
    %c6_44 = arith.constant 6 : index
    %c0_45 = arith.constant 0 : index
    %c0_46 = arith.constant 0 : index
    %60 = vector.load %arg1[%c0_43, %c6_44, %c0_45, %c0_46] : memref<1x12x3x8xbf16, #tpu.memory_space<vmem>>, vector<1x2x2x8xbf16>
    %61 = vector.shape_cast %60 : vector<1x2x2x8xbf16> to vector<2x2x8xbf16>
    "tpu.trace_start"() <{level = 10 : i32, message = "pwc,pcd->pwd"}> : () -> ()
    %cst_47 = arith.constant dense<0.000000e+00> : vector<2x2x16xf32>
    %62 = tpu.matmul %61, %15, %cst_47 {dimension_numbers = #tpu.dot_dimension_numbers<[2], [1], [1], [2], [0, 0, 0, 1, 1, 2], [0], [0]>} : vector<2x2x8xbf16>, vector<2x8x16xbf16>, vector<2x2x16xf32> -> vector<2x2x16xf32>
    "tpu.trace_stop"() : () -> ()
    %63 = arith.addf %53, %62 : vector<2x2x16xf32>
    "tpu.trace_start"() <{level = 10 : i32, message = "pwc,pcd->pwd"}> : () -> ()
    %cst_48 = arith.constant dense<0.000000e+00> : vector<2x2x16xf32>
    %64 = tpu.matmul %61, %3, %cst_48 {dimension_numbers = #tpu.dot_dimension_numbers<[2], [1], [1], [2], [0, 0, 0, 1, 1, 2], [0], [0]>} : vector<2x2x8xbf16>, vector<2x8x16xbf16>, vector<2x2x16xf32> -> vector<2x2x16xf32>
    "tpu.trace_stop"() : () -> ()
    %65 = arith.addf %38, %64 : vector<2x2x16xf32>
    %c0_49 = arith.constant 0 : index
    %c9 = arith.constant 9 : index
    %c0_50 = arith.constant 0 : index
    %c0_51 = arith.constant 0 : index
    %66 = vector.load %arg1[%c0_49, %c9, %c0_50, %c0_51] : memref<1x12x3x8xbf16, #tpu.memory_space<vmem>>, vector<1x2x2x8xbf16>
    %67 = vector.shape_cast %66 : vector<1x2x2x8xbf16> to vector<2x2x8xbf16>
    "tpu.trace_start"() <{level = 10 : i32, message = "pwc,pcd->pwd"}> : () -> ()
    %cst_52 = arith.constant dense<0.000000e+00> : vector<2x2x16xf32>
    %68 = tpu.matmul %67, %19, %cst_52 {dimension_numbers = #tpu.dot_dimension_numbers<[2], [1], [1], [2], [0, 0, 0, 1, 1, 2], [0], [0]>} : vector<2x2x8xbf16>, vector<2x8x16xbf16>, vector<2x2x16xf32> -> vector<2x2x16xf32>
    "tpu.trace_stop"() : () -> ()
    %69 = arith.addf %63, %68 : vector<2x2x16xf32>
    "tpu.trace_start"() <{level = 10 : i32, message = "pwc,pcd->pwd"}> : () -> ()
    %cst_53 = arith.constant dense<0.000000e+00> : vector<2x2x16xf32>
    %70 = tpu.matmul %67, %15, %cst_53 {dimension_numbers = #tpu.dot_dimension_numbers<[2], [1], [1], [2], [0, 0, 0, 1, 1, 2], [0], [0]>} : vector<2x2x8xbf16>, vector<2x8x16xbf16>, vector<2x2x16xf32> -> vector<2x2x16xf32>
    "tpu.trace_stop"() : () -> ()
    %71 = arith.addf %59, %70 : vector<2x2x16xf32>
    "tpu.trace_start"() <{level = 10 : i32, message = "pwc,pcd->pwd"}> : () -> ()
    %cst_54 = arith.constant dense<0.000000e+00> : vector<2x2x16xf32>
    %72 = tpu.matmul %67, %7, %cst_54 {dimension_numbers = #tpu.dot_dimension_numbers<[2], [1], [1], [2], [0, 0, 0, 1, 1, 2], [0], [0]>} : vector<2x2x8xbf16>, vector<2x8x16xbf16>, vector<2x2x16xf32> -> vector<2x2x16xf32>
    "tpu.trace_stop"() : () -> ()
    %73 = arith.addf %65, %72 : vector<2x2x16xf32>
    "tpu.trace_start"() <{level = 10 : i32, message = "pwc,pcd->pwd"}> : () -> ()
    %cst_55 = arith.constant dense<0.000000e+00> : vector<2x2x16xf32>
    %74 = tpu.matmul %67, %3, %cst_55 {dimension_numbers = #tpu.dot_dimension_numbers<[2], [1], [1], [2], [0, 0, 0, 1, 1, 2], [0], [0]>} : vector<2x2x8xbf16>, vector<2x8x16xbf16>, vector<2x2x16xf32> -> vector<2x2x16xf32>
    "tpu.trace_stop"() : () -> ()
    %75 = arith.addf %39, %74 : vector<2x2x16xf32>
    %c0_56 = arith.constant 0 : index
    %c6_57 = arith.constant 6 : index
    %c1_58 = arith.constant 1 : index
    %c0_59 = arith.constant 0 : index
    %76 = vector.load %arg1[%c0_56, %c6_57, %c1_58, %c0_59] : memref<1x12x3x8xbf16, #tpu.memory_space<vmem>>, vector<1x2x2x8xbf16>
    %77 = vector.shape_cast %76 : vector<1x2x2x8xbf16> to vector<2x2x8xbf16>
    "tpu.trace_start"() <{level = 10 : i32, message = "pwc,pcd->pwd"}> : () -> ()
    %cst_60 = arith.constant dense<0.000000e+00> : vector<2x2x16xf32>
    %78 = tpu.matmul %77, %23, %cst_60 {dimension_numbers = #tpu.dot_dimension_numbers<[2], [1], [1], [2], [0, 0, 0, 1, 1, 2], [0], [0]>} : vector<2x2x8xbf16>, vector<2x8x16xbf16>, vector<2x2x16xf32> -> vector<2x2x16xf32>
    "tpu.trace_stop"() : () -> ()
    %79 = arith.addf %69, %78 : vector<2x2x16xf32>
    "tpu.trace_start"() <{level = 10 : i32, message = "pwc,pcd->pwd"}> : () -> ()
    %cst_61 = arith.constant dense<0.000000e+00> : vector<2x2x16xf32>
    %80 = tpu.matmul %77, %19, %cst_61 {dimension_numbers = #tpu.dot_dimension_numbers<[2], [1], [1], [2], [0, 0, 0, 1, 1, 2], [0], [0]>} : vector<2x2x8xbf16>, vector<2x8x16xbf16>, vector<2x2x16xf32> -> vector<2x2x16xf32>
    "tpu.trace_stop"() : () -> ()
    %81 = arith.addf %71, %80 : vector<2x2x16xf32>
    "tpu.trace_start"() <{level = 10 : i32, message = "pwc,pcd->pwd"}> : () -> ()
    %cst_62 = arith.constant dense<0.000000e+00> : vector<2x2x16xf32>
    %82 = tpu.matmul %77, %11, %cst_62 {dimension_numbers = #tpu.dot_dimension_numbers<[2], [1], [1], [2], [0, 0, 0, 1, 1, 2], [0], [0]>} : vector<2x2x8xbf16>, vector<2x8x16xbf16>, vector<2x2x16xf32> -> vector<2x2x16xf32>
    "tpu.trace_stop"() : () -> ()
    %83 = arith.addf %73, %82 : vector<2x2x16xf32>
    "tpu.trace_start"() <{level = 10 : i32, message = "pwc,pcd->pwd"}> : () -> ()
    %cst_63 = arith.constant dense<0.000000e+00> : vector<2x2x16xf32>
    %84 = tpu.matmul %77, %7, %cst_63 {dimension_numbers = #tpu.dot_dimension_numbers<[2], [1], [1], [2], [0, 0, 0, 1, 1, 2], [0], [0]>} : vector<2x2x8xbf16>, vector<2x8x16xbf16>, vector<2x2x16xf32> -> vector<2x2x16xf32>
    "tpu.trace_stop"() : () -> ()
    %85 = arith.addf %75, %84 : vector<2x2x16xf32>
    %c0_64 = arith.constant 0 : index
    %c9_65 = arith.constant 9 : index
    %c1_66 = arith.constant 1 : index
    %c0_67 = arith.constant 0 : index
    %86 = vector.load %arg1[%c0_64, %c9_65, %c1_66, %c0_67] : memref<1x12x3x8xbf16, #tpu.memory_space<vmem>>, vector<1x2x2x8xbf16>
    %87 = vector.shape_cast %86 : vector<1x2x2x8xbf16> to vector<2x2x8xbf16>
    "tpu.trace_start"() <{level = 10 : i32, message = "pwc,pcd->pwd"}> : () -> ()
    %cst_68 = arith.constant dense<0.000000e+00> : vector<2x2x16xf32>
    %88 = tpu.matmul %87, %23, %cst_68 {dimension_numbers = #tpu.dot_dimension_numbers<[2], [1], [1], [2], [0, 0, 0, 1, 1, 2], [0], [0]>} : vector<2x2x8xbf16>, vector<2x8x16xbf16>, vector<2x2x16xf32> -> vector<2x2x16xf32>
    "tpu.trace_stop"() : () -> ()
    %89 = arith.addf %81, %88 : vector<2x2x16xf32>
    "tpu.trace_start"() <{level = 10 : i32, message = "pwc,pcd->pwd"}> : () -> ()
    %cst_69 = arith.constant dense<0.000000e+00> : vector<2x2x16xf32>
    %90 = tpu.matmul %87, %11, %cst_69 {dimension_numbers = #tpu.dot_dimension_numbers<[2], [1], [1], [2], [0, 0, 0, 1, 1, 2], [0], [0]>} : vector<2x2x8xbf16>, vector<2x8x16xbf16>, vector<2x2x16xf32> -> vector<2x2x16xf32>
    "tpu.trace_stop"() : () -> ()
    %91 = arith.addf %85, %90 : vector<2x2x16xf32>
    %c0_70 = arith.constant 0 : index
    %c1_71 = arith.constant 1 : index
    %c0_72 = arith.constant 0 : index
    %c0_73 = arith.constant 0 : index
    %92 = vector.load %arg1[%c0_70, %c1_71, %c0_72, %c0_73] : memref<1x12x3x8xbf16, #tpu.memory_space<vmem>>, vector<1x2x2x8xbf16>
    %93 = vector.shape_cast %92 : vector<1x2x2x8xbf16> to vector<2x2x8xbf16>
    "tpu.trace_start"() <{level = 10 : i32, message = "pwc,pcd->pwd"}> : () -> ()
    %cst_74 = arith.constant dense<0.000000e+00> : vector<2x2x16xf32>
    %94 = tpu.matmul %93, %27, %cst_74 {dimension_numbers = #tpu.dot_dimension_numbers<[2], [1], [1], [2], [0, 0, 0, 1, 1, 2], [0], [0]>} : vector<2x2x8xbf16>, vector<2x8x16xbf16>, vector<2x2x16xf32> -> vector<2x2x16xf32>
    "tpu.trace_stop"() : () -> ()
    %95 = arith.addf %79, %94 : vector<2x2x16xf32>
    "tpu.trace_start"() <{level = 10 : i32, message = "pwc,pcd->pwd"}> : () -> ()
    %cst_75 = arith.constant dense<0.000000e+00> : vector<2x2x16xf32>
    %96 = tpu.matmul %93, %15, %cst_75 {dimension_numbers = #tpu.dot_dimension_numbers<[2], [1], [1], [2], [0, 0, 0, 1, 1, 2], [0], [0]>} : vector<2x2x8xbf16>, vector<2x8x16xbf16>, vector<2x2x16xf32> -> vector<2x2x16xf32>
    "tpu.trace_stop"() : () -> ()
    %97 = arith.addf %83, %96 : vector<2x2x16xf32>
    %c0_76 = arith.constant 0 : index
    %c4_77 = arith.constant 4 : index
    %c0_78 = arith.constant 0 : index
    %c0_79 = arith.constant 0 : index
    %98 = vector.load %arg1[%c0_76, %c4_77, %c0_78, %c0_79] : memref<1x12x3x8xbf16, #tpu.memory_space<vmem>>, vector<1x2x2x8xbf16>
    %99 = vector.shape_cast %98 : vector<1x2x2x8xbf16> to vector<2x2x8xbf16>
    "tpu.trace_start"() <{level = 10 : i32, message = "pwc,pcd->pwd"}> : () -> ()
    %cst_80 = arith.constant dense<0.000000e+00> : vector<2x2x16xf32>
    %100 = tpu.matmul %99, %31, %cst_80 {dimension_numbers = #tpu.dot_dimension_numbers<[2], [1], [1], [2], [0, 0, 0, 1, 1, 2], [0], [0]>} : vector<2x2x8xbf16>, vector<2x8x16xbf16>, vector<2x2x16xf32> -> vector<2x2x16xf32>
    "tpu.trace_stop"() : () -> ()
    %101 = arith.addf %95, %100 : vector<2x2x16xf32>
    "tpu.trace_start"() <{level = 10 : i32, message = "pwc,pcd->pwd"}> : () -> ()
    %cst_81 = arith.constant dense<0.000000e+00> : vector<2x2x16xf32>
    %102 = tpu.matmul %99, %27, %cst_81 {dimension_numbers = #tpu.dot_dimension_numbers<[2], [1], [1], [2], [0, 0, 0, 1, 1, 2], [0], [0]>} : vector<2x2x8xbf16>, vector<2x8x16xbf16>, vector<2x2x16xf32> -> vector<2x2x16xf32>
    "tpu.trace_stop"() : () -> ()
    %103 = arith.addf %89, %102 : vector<2x2x16xf32>
    "tpu.trace_start"() <{level = 10 : i32, message = "pwc,pcd->pwd"}> : () -> ()
    %cst_82 = arith.constant dense<0.000000e+00> : vector<2x2x16xf32>
    %104 = tpu.matmul %99, %19, %cst_82 {dimension_numbers = #tpu.dot_dimension_numbers<[2], [1], [1], [2], [0, 0, 0, 1, 1, 2], [0], [0]>} : vector<2x2x8xbf16>, vector<2x8x16xbf16>, vector<2x2x16xf32> -> vector<2x2x16xf32>
    "tpu.trace_stop"() : () -> ()
    %105 = arith.addf %97, %104 : vector<2x2x16xf32>
    "tpu.trace_start"() <{level = 10 : i32, message = "pwc,pcd->pwd"}> : () -> ()
    %cst_83 = arith.constant dense<0.000000e+00> : vector<2x2x16xf32>
    %106 = tpu.matmul %99, %15, %cst_83 {dimension_numbers = #tpu.dot_dimension_numbers<[2], [1], [1], [2], [0, 0, 0, 1, 1, 2], [0], [0]>} : vector<2x2x8xbf16>, vector<2x8x16xbf16>, vector<2x2x16xf32> -> vector<2x2x16xf32>
    "tpu.trace_stop"() : () -> ()
    %107 = arith.addf %91, %106 : vector<2x2x16xf32>
    %c0_84 = arith.constant 0 : index
    %c1_85 = arith.constant 1 : index
    %c1_86 = arith.constant 1 : index
    %c0_87 = arith.constant 0 : index
    %108 = vector.load %arg1[%c0_84, %c1_85, %c1_86, %c0_87] : memref<1x12x3x8xbf16, #tpu.memory_space<vmem>>, vector<1x2x2x8xbf16>
    %109 = vector.shape_cast %108 : vector<1x2x2x8xbf16> to vector<2x2x8xbf16>
    "tpu.trace_start"() <{level = 10 : i32, message = "pwc,pcd->pwd"}> : () -> ()
    %cst_88 = arith.constant dense<0.000000e+00> : vector<2x2x16xf32>
    %110 = tpu.matmul %109, %35, %cst_88 {dimension_numbers = #tpu.dot_dimension_numbers<[2], [1], [1], [2], [0, 0, 0, 1, 1, 2], [0], [0]>} : vector<2x2x8xbf16>, vector<2x8x16xbf16>, vector<2x2x16xf32> -> vector<2x2x16xf32>
    "tpu.trace_stop"() : () -> ()
    %111 = arith.addf %101, %110 : vector<2x2x16xf32>
    "tpu.trace_start"() <{level = 10 : i32, message = "pwc,pcd->pwd"}> : () -> ()
    %cst_89 = arith.constant dense<0.000000e+00> : vector<2x2x16xf32>
    %112 = tpu.matmul %109, %31, %cst_89 {dimension_numbers = #tpu.dot_dimension_numbers<[2], [1], [1], [2], [0, 0, 0, 1, 1, 2], [0], [0]>} : vector<2x2x8xbf16>, vector<2x8x16xbf16>, vector<2x2x16xf32> -> vector<2x2x16xf32>
    "tpu.trace_stop"() : () -> ()
    %113 = arith.addf %103, %112 : vector<2x2x16xf32>
    "tpu.trace_start"() <{level = 10 : i32, message = "pwc,pcd->pwd"}> : () -> ()
    %cst_90 = arith.constant dense<0.000000e+00> : vector<2x2x16xf32>
    %114 = tpu.matmul %109, %23, %cst_90 {dimension_numbers = #tpu.dot_dimension_numbers<[2], [1], [1], [2], [0, 0, 0, 1, 1, 2], [0], [0]>} : vector<2x2x8xbf16>, vector<2x8x16xbf16>, vector<2x2x16xf32> -> vector<2x2x16xf32>
    "tpu.trace_stop"() : () -> ()
    %115 = arith.addf %105, %114 : vector<2x2x16xf32>
    "tpu.trace_start"() <{level = 10 : i32, message = "pwc,pcd->pwd"}> : () -> ()
    %cst_91 = arith.constant dense<0.000000e+00> : vector<2x2x16xf32>
    %116 = tpu.matmul %109, %19, %cst_91 {dimension_numbers = #tpu.dot_dimension_numbers<[2], [1], [1], [2], [0, 0, 0, 1, 1, 2], [0], [0]>} : vector<2x2x8xbf16>, vector<2x8x16xbf16>, vector<2x2x16xf32> -> vector<2x2x16xf32>
    "tpu.trace_stop"() : () -> ()
    %117 = arith.addf %107, %116 : vector<2x2x16xf32>
    %c0_92 = arith.constant 0 : index
    %c4_93 = arith.constant 4 : index
    %c1_94 = arith.constant 1 : index
    %c0_95 = arith.constant 0 : index
    %118 = vector.load %arg1[%c0_92, %c4_93, %c1_94, %c0_95] : memref<1x12x3x8xbf16, #tpu.memory_space<vmem>>, vector<1x2x2x8xbf16>
    %119 = vector.shape_cast %118 : vector<1x2x2x8xbf16> to vector<2x2x8xbf16>
    "tpu.trace_start"() <{level = 10 : i32, message = "pwc,pcd->pwd"}> : () -> ()
    %cst_96 = arith.constant dense<0.000000e+00> : vector<2x2x16xf32>
    %120 = tpu.matmul %119, %35, %cst_96 {dimension_numbers = #tpu.dot_dimension_numbers<[2], [1], [1], [2], [0, 0, 0, 1, 1, 2], [0], [0]>} : vector<2x2x8xbf16>, vector<2x8x16xbf16>, vector<2x2x16xf32> -> vector<2x2x16xf32>
    "tpu.trace_stop"() : () -> ()
    %121 = arith.addf %113, %120 : vector<2x2x16xf32>
    "tpu.trace_start"() <{level = 10 : i32, message = "pwc,pcd->pwd"}> : () -> ()
    %cst_97 = arith.constant dense<0.000000e+00> : vector<2x2x16xf32>
    %122 = tpu.matmul %119, %23, %cst_97 {dimension_numbers = #tpu.dot_dimension_numbers<[2], [1], [1], [2], [0, 0, 0, 1, 1, 2], [0], [0]>} : vector<2x2x8xbf16>, vector<2x8x16xbf16>, vector<2x2x16xf32> -> vector<2x2x16xf32>
    "tpu.trace_stop"() : () -> ()
    %123 = arith.addf %117, %122 : vector<2x2x16xf32>
    %c0_98 = arith.constant 0 : index
    %c7_99 = arith.constant 7 : index
    %c0_100 = arith.constant 0 : index
    %c0_101 = arith.constant 0 : index
    %124 = vector.load %arg1[%c0_98, %c7_99, %c0_100, %c0_101] : memref<1x12x3x8xbf16, #tpu.memory_space<vmem>>, vector<1x2x2x8xbf16>
    %125 = vector.shape_cast %124 : vector<1x2x2x8xbf16> to vector<2x2x8xbf16>
    "tpu.trace_start"() <{level = 10 : i32, message = "pwc,pcd->pwd"}> : () -> ()
    %cst_102 = arith.constant dense<0.000000e+00> : vector<2x2x16xf32>
    %126 = tpu.matmul %125, %27, %cst_102 {dimension_numbers = #tpu.dot_dimension_numbers<[2], [1], [1], [2], [0, 0, 0, 1, 1, 2], [0], [0]>} : vector<2x2x8xbf16>, vector<2x8x16xbf16>, vector<2x2x16xf32> -> vector<2x2x16xf32>
    "tpu.trace_stop"() : () -> ()
    %127 = arith.addf %115, %126 : vector<2x2x16xf32>
    %c0_103 = arith.constant 0 : index
    %c10 = arith.constant 10 : index
    %c0_104 = arith.constant 0 : index
    %c0_105 = arith.constant 0 : index
    %128 = vector.load %arg1[%c0_103, %c10, %c0_104, %c0_105] : memref<1x12x3x8xbf16, #tpu.memory_space<vmem>>, vector<1x2x2x8xbf16>
    %129 = vector.shape_cast %128 : vector<1x2x2x8xbf16> to vector<2x2x8xbf16>
    "tpu.trace_start"() <{level = 10 : i32, message = "pwc,pcd->pwd"}> : () -> ()
    %cst_106 = arith.constant dense<0.000000e+00> : vector<2x2x16xf32>
    %130 = tpu.matmul %129, %31, %cst_106 {dimension_numbers = #tpu.dot_dimension_numbers<[2], [1], [1], [2], [0, 0, 0, 1, 1, 2], [0], [0]>} : vector<2x2x8xbf16>, vector<2x8x16xbf16>, vector<2x2x16xf32> -> vector<2x2x16xf32>
    "tpu.trace_stop"() : () -> ()
    %131 = arith.addf %127, %130 : vector<2x2x16xf32>
    "tpu.trace_start"() <{level = 10 : i32, message = "pwc,pcd->pwd"}> : () -> ()
    %cst_107 = arith.constant dense<0.000000e+00> : vector<2x2x16xf32>
    %132 = tpu.matmul %129, %27, %cst_107 {dimension_numbers = #tpu.dot_dimension_numbers<[2], [1], [1], [2], [0, 0, 0, 1, 1, 2], [0], [0]>} : vector<2x2x8xbf16>, vector<2x8x16xbf16>, vector<2x2x16xf32> -> vector<2x2x16xf32>
    "tpu.trace_stop"() : () -> ()
    %133 = arith.addf %123, %132 : vector<2x2x16xf32>
    %c0_108 = arith.constant 0 : index
    %c7_109 = arith.constant 7 : index
    %c1_110 = arith.constant 1 : index
    %c0_111 = arith.constant 0 : index
    %134 = vector.load %arg1[%c0_108, %c7_109, %c1_110, %c0_111] : memref<1x12x3x8xbf16, #tpu.memory_space<vmem>>, vector<1x2x2x8xbf16>
    %135 = vector.shape_cast %134 : vector<1x2x2x8xbf16> to vector<2x2x8xbf16>
    "tpu.trace_start"() <{level = 10 : i32, message = "pwc,pcd->pwd"}> : () -> ()
    %cst_112 = arith.constant dense<0.000000e+00> : vector<2x2x16xf32>
    %136 = tpu.matmul %135, %35, %cst_112 {dimension_numbers = #tpu.dot_dimension_numbers<[2], [1], [1], [2], [0, 0, 0, 1, 1, 2], [0], [0]>} : vector<2x2x8xbf16>, vector<2x8x16xbf16>, vector<2x2x16xf32> -> vector<2x2x16xf32>
    "tpu.trace_stop"() : () -> ()
    %137 = arith.addf %131, %136 : vector<2x2x16xf32>
    "tpu.trace_start"() <{level = 10 : i32, message = "pwc,pcd->pwd"}> : () -> ()
    %cst_113 = arith.constant dense<0.000000e+00> : vector<2x2x16xf32>
    %138 = tpu.matmul %135, %31, %cst_113 {dimension_numbers = #tpu.dot_dimension_numbers<[2], [1], [1], [2], [0, 0, 0, 1, 1, 2], [0], [0]>} : vector<2x2x8xbf16>, vector<2x8x16xbf16>, vector<2x2x16xf32> -> vector<2x2x16xf32>
    "tpu.trace_stop"() : () -> ()
    %139 = arith.addf %133, %138 : vector<2x2x16xf32>
    %c0_114 = arith.constant 0 : index
    %c10_115 = arith.constant 10 : index
    %c1_116 = arith.constant 1 : index
    %c0_117 = arith.constant 0 : index
    %140 = vector.load %arg1[%c0_114, %c10_115, %c1_116, %c0_117] : memref<1x12x3x8xbf16, #tpu.memory_space<vmem>>, vector<1x2x2x8xbf16>
    %141 = vector.shape_cast %140 : vector<1x2x2x8xbf16> to vector<2x2x8xbf16>
    "tpu.trace_start"() <{level = 10 : i32, message = "pwc,pcd->pwd"}> : () -> ()
    %cst_118 = arith.constant dense<0.000000e+00> : vector<2x2x16xf32>
    %142 = tpu.matmul %141, %35, %cst_118 {dimension_numbers = #tpu.dot_dimension_numbers<[2], [1], [1], [2], [0, 0, 0, 1, 1, 2], [0], [0]>} : vector<2x2x8xbf16>, vector<2x8x16xbf16>, vector<2x2x16xf32> -> vector<2x2x16xf32>
    "tpu.trace_stop"() : () -> ()
    %143 = arith.addf %139, %142 : vector<2x2x16xf32>
    %c0_119 = arith.constant 0 : index
    %c0_120 = arith.constant 0 : index
    %c0_121 = arith.constant 0 : index
    %144 = vector.load %arg3[%c0_119, %c0_120, %c0_121] : memref<1x1x16xf32, #tpu.memory_space<vmem>>, vector<1x1x16xf32>
    %145 = vector.broadcast %144 : vector<1x1x16xf32> to vector<2x2x16xf32>
    %146 = arith.addf %111, %145 : vector<2x2x16xf32>
    %cst_122 = arith.constant 0.000000e+00 : f32
    %147 = vector.broadcast %cst_122 : f32 to vector<2x2x16xf32>
    %148 = arith.maximumf %146, %147 : vector<2x2x16xf32>
    %149 = vector.broadcast %144 : vector<1x1x16xf32> to vector<2x2x16xf32>
    %150 = arith.addf %121, %149 : vector<2x2x16xf32>
    %cst_123 = arith.constant 0.000000e+00 : f32
    %151 = vector.broadcast %cst_123 : f32 to vector<2x2x16xf32>
    %152 = arith.maximumf %150, %151 : vector<2x2x16xf32>
    %153 = arith.maximumf %148, %152 : vector<2x2x16xf32>
    %154 = vector.broadcast %144 : vector<1x1x16xf32> to vector<2x2x16xf32>
    %155 = arith.addf %137, %154 : vector<2x2x16xf32>
    %cst_124 = arith.constant 0.000000e+00 : f32
    %156 = vector.broadcast %cst_124 : f32 to vector<2x2x16xf32>
    %157 = arith.maximumf %155, %156 : vector<2x2x16xf32>
    %158 = arith.maximumf %153, %157 : vector<2x2x16xf32>
    %159 = vector.broadcast %144 : vector<1x1x16xf32> to vector<2x2x16xf32>
    %160 = arith.addf %143, %159 : vector<2x2x16xf32>
    %cst_125 = arith.constant 0.000000e+00 : f32
    %161 = vector.broadcast %cst_125 : f32 to vector<2x2x16xf32>
    %162 = arith.maximumf %160, %161 : vector<2x2x16xf32>
    %163 = arith.maximumf %158, %162 : vector<2x2x16xf32>
    %c0_126 = arith.constant 0 : index
    %c0_127 = arith.constant 0 : index
    %c0_128 = arith.constant 0 : index
    %c0_129 = arith.constant 0 : index
    %164 = vector.load %arg4[%c0_126, %c0_127, %c0_128, %c0_129] : memref<1x2x2x16xf32, #tpu.memory_space<vmem>>, vector<1x2x2x16xf32>
    %165 = vector.shape_cast %164 : vector<1x2x2x16xf32> to vector<2x2x16xf32>
    %166 = vector.shape_cast %163 : vector<2x2x16xf32> to vector<1x2x2x16xf32>
    tpu.vector_store %arg4[%c0_126, %c0_127, %c0_128, %c0_129], %166 {strides = array<i32>} : memref<1x2x2x16xf32, #tpu.memory_space<vmem>>, vector<1x2x2x16xf32>,
    return
  }
  func.func @transform_0(%arg0: i32) -> (i32, i32, i32, i32) {
    %c0_i32 = arith.constant 0 : i32
    %c0_i32_0 = arith.constant 0 : i32
    %c0_i32_1 = arith.constant 0 : i32
    %c0_i32_2 = arith.constant 0 : i32
    return %arg0, %c0_i32, %c0_i32_0, %c0_i32_1 : i32, i32, i32, i32
  }
  func.func @transform_1(%arg0: i32) -> (i32, i32, i32) {
    %c0_i32 = arith.constant 0 : i32
    %c0_i32_0 = arith.constant 0 : i32
    %c0_i32_1 = arith.constant 0 : i32
    %c0_i32_2 = arith.constant 0 : i32
    return %c0_i32, %c0_i32_0, %c0_i32_1 : i32, i32, i32
  }
  func.func @transform_2(%arg0: i32) -> (i32, i32, i32) {
    %c0_i32 = arith.constant 0 : i32
    %c0_i32_0 = arith.constant 0 : i32
    %c0_i32_1 = arith.constant 0 : i32
    %c0_i32_2 = arith.constant 0 : i32
    return %c0_i32, %c0_i32_0, %c0_i32_1 : i32, i32, i32
  }
  func.func @transform_3(%arg0: i32) -> (i32, i32, i32, i32) {
    %c0_i32 = arith.constant 0 : i32
    %c0_i32_0 = arith.constant 0 : i32
    %c0_i32_1 = arith.constant 0 : i32
    %c0_i32_2 = arith.constant 0 : i32
    return %arg0, %c0_i32, %c0_i32_0, %c0_i32_1 : i32, i32, i32, i32
  }
}

</mosaic_0001>

<bundles_post_ra>
// kernel: _lambda_.3
= control target key start
LH: loop header
LB: loop body
LE: loop exit
PB: predicated region body
PF: predicated region fallthrough
CT: control target
= control target key end

     0   :  { %8 = vsyncpa [#allocation3], 0  ;;  %s5091_s0 = inlined_call_operand.vmem [shape: bf16[2,12,3,8], index: 0, kind: input, shape index: {}]   ;;  %s5092_s1 = inlined_call_operand.vmem [shape: bf16[9,8,16], index: 1, kind: input, shape index: {}]   ;;  %s5093_s2 = inlined_call_operand.vmem [shape: f32[1,1,16], index: 2, kind: input, shape index: {}]   ;;  %s5094_s3 = inlined_call_operand.hbm [shape: f32[2,2,2,16], index: 3, kind: output, shape index: {}]  }
   0x1   :  { %10 = vsyncpa [#allocation3 + $0x1], 0  ;;  %s4481_s12 = smov 0   ;;  %s4483_s13 = smov 0  }
   0x2   :  { %s4485_s14 = smov 0   ;;  %s4487_s15 = smov 0  }
   0x3 LB: > { %s4502_s16 = sadd.s32 4294967295, %s4454_s15   ;;  %s3635_s17 = sadd.s32 4294967294, %s4454_s15   ;;  %s4454_s15 = sphi %s4487_s15, %s5100_s15   ;;  %s4450_s14 = sphi %s4485_s14, %s5099_s14   ;;  %s4446_s13 = sphi %s4483_s13, %s5098_s13   ;;  %s4442_s12 = sphi %s4481_s12, %s5097_s12  }
   0x4   : > { %s4506_s18 = sadd.s32 1, %s4454_s15   ;;  %s91_s19 = sadd.s32 1, %s4450_s14 }
   0x5   : > { %s88_s20 = ssub.s32 %s4454_s15, %s4506_s18  ;;  %p101_p0 = scmp.ne.s32.totalorder %s4450_s14, %s4446_s13 }
   0x6   : > { %p89_p1 = scmp.eq.s32.totalorder %s88_s20, 0  ;;  %p102_p2 = scmp.eq.s32.totalorder %s4502_s16, 1 }
   0x7   : > { %p107_p3 = scmp.ne.s32.totalorder %s4446_s13, %s4442_s12  ;;  %p108_p4 = scmp.eq.s32.totalorder %s3635_s17, 1 }
   0x8   : > { %s4517_s21 = scalar_select %p89_p1, %s4450_s14, %s91_s19  }
   0x9   : > { %p4519_p5 = por %p102_p2, %p101_p0  ;;  %p4523_p6 = por %p108_p4, %p107_p3 }
   0xa   : > { %p3638_p7 = scmp.ge.s32.totalorder %s4454_s15, 1  ;;  %p140_p8 = scmp.lt.s32.totalorder %s4454_s15, 3 }
   0xc   : > { %p141_p9 = pnand %p3638_p7, %p140_p8 }
   0xd   : > { %v3641_v0 = vld [vmem:[%s5092_s1 + $0x4] sm:$0xf] (!%p141_p9)  ;;  %vm196_vm0 = vcmask (!%p141_p9), 1043456   ;;  %p164_p10 = scmp.lt.s32.totalorder (!%p141_p9), %s4502_s16, 1  ;;  %v4456_v1 = vmov (!%p141_p9), 0.0   ;;  %vm4457_vm1 = vmmov (!%p141_p9), 0  }
   0xe   : > { %144 = sbr.rel (%p141_p9) target bundleno = 542 (0x21e), region = 32  ;;  %3916 = vmatprep.subr.bf16.mxu0 (!%p141_p9), %v4456_v1  ;;  %3922 = vmatprep.subr.bf16.mxu1 (!%p141_p9), %v4456_v1  ;;  %v4536_v2 = vsel (!%p141_p9), %vm196_vm0, %v3641_v0, 0  ;;  %v170_v3 = vld [vmem:[%s5092_s1] sm:$0xf] (!%p141_p9)  ;;  %vm192_vm2 = vcmask (!%p141_p9), 64512   ;;  %s161_s4 = sand.u32 (!%p141_p9), 1, %s4446_s13  }
   0xf   : > { %3917 = vmatpush3.bf16.msra.mxu0 (!%p141_p9), %v4536_v2  ;;  %3923 = vmatpush3.bf16.msra.mxu1 (!%p141_p9), %v4536_v2  ;;  %v4556_v4 = vsel (!%p141_p9), %vm196_vm0, %v170_v3, 0  ;;  %v3642_v9 = vld [vmem:[%s5092_s1 + $0x8] sm:$0xf] (!%p141_p9)  ;;  %v3643_v29 = vld [vmem:[%s5092_s1 + $0xc] sm:$0xf] (!%p141_p9)  ;;  %s3771_s6 = sshll.u32 (!%p141_p9), %s4502_s16, 6 }
  0x10   : > { %3918 = vmatprep.mubr.msk.bf16.mxu0 (!%p141_p9), %vm4457_vm1, %v4456_v1  ;;  %3924 = vmatprep.mubr.msk.bf16.mxu1 (!%p141_p9), %vm4457_vm1, %v4456_v1  ;;  %v4578_v14 = vsel (!%p141_p9), %vm196_vm0, %v3642_v9, 0  ;;  %v4632_v32 = vsel (!%p141_p9), %vm196_vm0, %v3643_v29, 0  ;;  %v3644_v33 = vld [vmem:[%s5092_s1 + $0x10] sm:$0xf] (!%p141_p9)  ;;  %v3645_v41 = vld [vmem:[%s5092_s1 + $0x14] sm:$0xf] (!%p141_p9)  ;;  %s5046_s11 = scalar_lea.hbm (!%p141_p9), %s5094_s3, %s3771_s6 }
  0x11   : > { %3928 = vmatprep.subr.bf16.mxu0 (!%p141_p9), %v4456_v1  ;;  %3934 = vmatprep.subr.bf16.mxu1 (!%p141_p9), %v4456_v1  ;;  %v4651_v36 = vsel (!%p141_p9), %vm196_vm0, %v3644_v33, 0  ;;  %v4711_v44 = vsel (!%p141_p9), %vm196_vm0, %v3645_v41, 0  ;;  %v3646_v61 = vld [vmem:[%s5092_s1 + $0x18] sm:$0xf] (!%p141_p9)  ;;  %vm3556_vm3 = vcmask (!%p141_p9), 123904   ;;  %s4458_s19 = smov (!%p141_p9), [#allocation2]  }
  0x12   : > { %v4800_v62 = vsel (!%p141_p9), %vm196_vm0, %v3646_v61, 0  ;;  %s4396_s20 = sshll.u32 (!%p141_p9), %s4458_s19, 4  ;;  %s4397_s20 = int_to_ptr.vmem [resolvable:$false] %s4396_s20 }
  0x13   : > { %s4398_s24 = scalar_lea.vmem (!%p141_p9), %s4397_s20, 128 }
  0x15   : > { %s165_s26 = scalar_select %p164_p10, %s4502_s16, 1 }
  0x16   : > { %s5050_s16 = scalar_lea.sflag [#allocation3], %s161_s4 }
  0x17   : > { %s4348_s29 = smul.u32 24, %s165_s26 }
  0x19   : > { %s4553_s5 = scalar_lea.vmem %s5091_s0, %s4348_s29 }
  0x1a   : > { %v3649_v5 = vld [vmem:[%s4553_s5 + $0x6] sm:$0x1]  ;;  %v3650_v6 = vld [vmem:[%s4553_s5 + $0x8] sm:$0x1]  ;;  %v187_v12 = vld [vmem:[%s4553_s5] sm:$0x1] }
  0x1b   : > { %3919 = vmatmul.mubr.msk.bf16.vlgmr.msra.gmra.mrb[0].mxu0 %vm192_vm2, %v3649_v5  ;;  %3925 = vmatmul.mubr.msk.bf16.vlgmr.msra.gmra.mrb[0].mxu1 %vm192_vm2, %v3650_v6  ;;  %v3655_v7 = vld.sshfl [vmem:[%s4553_s5] sm:$0x3 pattern:$0x76325410]  ;;  %v188_v13 = vld [vmem:[%s4553_s5 + $0x2] sm:$0x1] }
  0x1c   : > { %3929 = vmatpush3.bf16.msra.mxu0 %v4556_v4  ;;  %3935 = vmatpush3.bf16.msra.mxu1 %v4556_v4  ;;  %v3657_v8 = vld.sshfl [vmem:[%s4553_s5 + $0x2] sm:$0x3 pattern:$0x76325410]  ;;  %v385_v10 = vshll.u32 %v3655_v7, 16  ;;  %v383_v15 = vshrl.u32 %v3655_v7, 16 }
  0x1d   : > { %3930 = vmatprep.mubr.msk.bf16.mxu0 %vm4457_vm1, %v4456_v1  ;;  %3936 = vmatprep.mubr.msk.bf16.mxu1 %vm4457_vm1, %v4456_v1  ;;  %v446_v11 = vshll.u32 %v3657_v8, 16  ;;  %v444_v17 = vshrl.u32 %v3657_v8, 16  ;;  %v3665_v21 = vld.sshfl [vmem:[%s4553_s5 + $0x6] sm:$0x3 pattern:$0x76325410] }
  0x1e   : > { %3940 = vmatprep.subr.bf16.mxu0 %v4456_v1  ;;  %3946 = vmatprep.subr.bf16.mxu1 %v4456_v1  ;;  %v387_v16 = vrot.slane %v385_v10, 1  ;;  %v3667_v22 = vld.sshfl [vmem:[%s4553_s5 + $0x8] sm:$0x3 pattern:$0x76325410]  ;;  %v668_v23 = vshll.u32 %v3665_v21, 16 }
  0x1f   : > { %v448_v18 = vrot.slane %v446_v11, 1  ;;  %v726_v24 = vshll.u32 %v3667_v22, 16  ;;  %v666_v25 = vshrl.u32 %v3665_v21, 16  ;;  %v724_v27 = vshrl.u32 %v3667_v22, 16  ;;  %v3669_v34 = vld [vmem:[%s4553_s5 + $0xc] sm:$0x1] }
  0x20   : > { %v388_v19 = vor.u32 %v387_v16, %v383_v15  ;;  %v670_v26 = vrot.slane %v668_v23, 1  ;;  %v3670_v35 = vld [vmem:[%s4553_s5 + $0xe] sm:$0x1]  ;;  %v4664_v37 = vld [vmem:[%s4553_s5 + $0x12] sm:$0x1] }
  0x21   : > { %v4590_v20 = vor.u32 %v448_v18, %v444_v17  ;;  %v728_v28 = vrot.slane %v726_v24, 1  ;;  %v4667_v38 = vld [vmem:[%s4553_s5 + $0x14] sm:$0x1]  ;;  %v3705_v63 = vld [vmem:[%s4553_s5 + $0x2] sm:$0x1] }
  0x22   : > { %v671_v30 = vor.u32 %v670_v26, %v666_v25  ;;  %v3685_v39 = vld.sshfl [vmem:[%s4553_s5 + $0xc] sm:$0x3 pattern:$0x76325410]  ;;  %v3706_v0 = vld [vmem:[%s4553_s5 + $0x4] sm:$0x1] }
  0x23   : > { %3931 = vmatmul.mubr.msk.bf16.vlgmr.msra.gmra.mrb[4].mxu0 %vm192_vm2, %v187_v12  ;;  %3937 = vmatmul.mubr.msk.bf16.vlgmr.msra.gmra.mrb[4].mxu1 %vm192_vm2, %v188_v13  ;;  %v4629_v31 = vor.u32 %v728_v28, %v724_v27  ;;  %v3687_v40 = vld.sshfl [vmem:[%s4553_s5 + $0xe] sm:$0x3 pattern:$0x76325410]  ;;  %v1218_v42 = vshll.u32 %v3685_v39, 16  ;;  %v1216_v45 = vshrl.u32 %v3685_v39, 16 }
  0x24   : > { %3941 = vmatpush3.bf16.msra.mxu0 %v4578_v14  ;;  %3947 = vmatpush3.bf16.msra.mxu1 %v4578_v14  ;;  %v1279_v43 = vshll.u32 %v3687_v40, 16  ;;  %v1277_v47 = vshrl.u32 %v3687_v40, 16  ;;  %v3699_v51 = vld.sshfl [vmem:[%s4553_s5 + $0x12] sm:$0x3 pattern:$0x76325410] }
  0x25   : > { %3942 = vmatprep.mubr.msk.bf16.mxu0 %vm4457_vm1, %v4456_v1  ;;  %3948 = vmatprep.mubr.msk.bf16.mxu1 %vm4457_vm1, %v4456_v1  ;;  %v1220_v46 = vrot.slane %v1218_v42, 1  ;;  %v3701_v52 = vld.sshfl [vmem:[%s4553_s5 + $0x14] sm:$0x3 pattern:$0x76325410]  ;;  %v1665_v53 = vshll.u32 %v3699_v51, 16 }
  0x26   : > { %3952 = vmatprep.subr.bf16.mxu0 %v4456_v1  ;;  %3958 = vmatprep.subr.bf16.mxu1 %v4456_v1  ;;  %v1281_v48 = vrot.slane %v1279_v43, 1  ;;  %v1723_v54 = vshll.u32 %v3701_v52, 16  ;;  %v1663_v55 = vshrl.u32 %v3699_v51, 16  ;;  %v1721_v57 = vshrl.u32 %v3701_v52, 16  ;;  %v3648_v7 = vld [vmem:[%s5092_s1 + $0x20] sm:$0xf] }
  0x27   : > { %v1221_v49 = vor.u32 %v1220_v46, %v1216_v45  ;;  %v1667_v56 = vrot.slane %v1665_v53, 1  ;;  %v4878_v9 = vsel %vm196_vm0, %v3648_v7, 0  ;;  %v3737_v13 = vld.sshfl [vmem:[%s4553_s5 + $0xa] sm:$0x3 pattern:$0x76325410] }
  0x28   : > { %v4723_v50 = vor.u32 %v1281_v48, %v1277_v47  ;;  %v1725_v58 = vrot.slane %v1723_v54, 1  ;;  %v2810_v18 = vshll.u32 %v3737_v13, 16  ;;  %v2808_v24 = vshrl.u32 %v3737_v13, 16  ;;  %v3741_v53 = vld [vmem:[%s4553_s5 + $0xe] sm:$0x1] }
  0x29   : > { %v1668_v59 = vor.u32 %v1667_v56, %v1663_v55  ;;  %v3742_v54 = vld [vmem:[%s4553_s5 + $0x10] sm:$0x1] }
  0x2a   : > { %v4783_v60 = vor.u32 %v1725_v58, %v1721_v57  ;;  %v2812_v25 = vrot.slane %v2810_v18, 1 }
  0x2b   : > { %3943 = vmatmul.mubr.msk.bf16.vlgmr.msra.gmra.mrb[8].mxu0 %vm192_vm2, %v388_v19  ;;  %3949 = vmatmul.mubr.msk.bf16.vlgmr.msra.gmra.mrb[8].mxu1 %vm192_vm2, %v4590_v20 }
  0x2c   : > { %3953 = vmatpush3.bf16.msra.mxu0 %v4536_v2  ;;  %3959 = vmatpush3.bf16.msra.mxu1 %v4536_v2 }
  0x2d   : > { %3954 = vmatprep.mubr.msk.bf16.mxu0 %vm4457_vm1, %v4456_v1  ;;  %3960 = vmatprep.mubr.msk.bf16.mxu1 %vm4457_vm1, %v4456_v1 }
  0x2e   : > { %3964 = vmatprep.subr.bf16.mxu0 %v4456_v1  ;;  %3970 = vmatprep.subr.bf16.mxu1 %v4456_v1 }
  0x33   : > { %3955 = vmatmul.mubr.msk.bf16.vlgmr.msra.gmra.mrb[12].mxu0 %vm192_vm2, %v388_v19  ;;  %3961 = vmatmul.mubr.msk.bf16.vlgmr.msra.gmra.mrb[12].mxu1 %vm192_vm2, %v4590_v20 }
  0x34   : > { %3965 = vmatpush3.bf16.msra.mxu0 %v4556_v4  ;;  %3971 = vmatpush3.bf16.msra.mxu1 %v4556_v4 }
  0x35   : > { %3966 = vmatprep.mubr.msk.bf16.mxu0 %vm4457_vm1, %v4456_v1  ;;  %3972 = vmatprep.mubr.msk.bf16.mxu1 %vm4457_vm1, %v4456_v1 }
  0x36   : > { %3976 = vmatprep.subr.bf16.mxu0 %v4456_v1  ;;  %3982 = vmatprep.subr.bf16.mxu1 %v4456_v1 }
  0x3b   : > { %3967 = vmatmul.mubr.msk.bf16.vlgmr.msra.gmra.mrb[16].mxu0 %vm192_vm2, %v3649_v5  ;;  %3973 = vmatmul.mubr.msk.bf16.vlgmr.msra.gmra.mrb[16].mxu1 %vm192_vm2, %v3650_v6  ;;  %v3712_v5 = vld [vmem:[%s4553_s5 + $0xa] sm:$0x1]  ;;  %v3725_v6 = vld.sshfl [vmem:[%s4553_s5 + $0x4] sm:$0x3 pattern:$0x76325410] }
  0x3c   : > { %3977 = vmatpush3.bf16.msra.mxu0 %v4578_v14  ;;  %3983 = vmatpush3.bf16.msra.mxu1 %v4578_v14  ;;  %v2444_v8 = vshll.u32 %v3725_v6, 16  ;;  %v2442_v10 = vshrl.u32 %v3725_v6, 16  ;;  %v3746_v6 = vld [vmem:[%s4553_s5 + $0x16] sm:$0x1] }
  0x3d   : > { %3978 = vmatprep.mubr.msk.bf16.mxu0 %vm4457_vm1, %v4456_v1  ;;  %3984 = vmatprep.mubr.msk.bf16.mxu1 %vm4457_vm1, %v4456_v1 }
  0x3e   : > { %3988 = vmatprep.subr.bf16.mxu0 %v4456_v1  ;;  %3994 = vmatprep.subr.bf16.mxu1 %v4456_v1  ;;  %v2446_v11 = vrot.slane %v2444_v8, 1 }
  0x40   : > { %v2447_v12 = vor.u32 %v2446_v11, %v2442_v10  ;;  %v3755_v10 = vld.sshfl [vmem:[%s4553_s5 + $0x10] sm:$0x3 pattern:$0x76325410] }
  0x43   : > { %3979 = vmatmul.mubr.msk.bf16.vlgmr.msra.gmra.mrb[20].mxu0 %vm192_vm2, %v671_v30  ;;  %3985 = vmatmul.mubr.msk.bf16.vlgmr.msra.gmra.mrb[20].mxu1 %vm192_vm2, %v4629_v31 }
  0x44   : > { %3989 = vmatpush3.bf16.msra.mxu0 %v4632_v32  ;;  %3995 = vmatpush3.bf16.msra.mxu1 %v4632_v32 }
  0x45   : > { %3990 = vmatprep.mubr.msk.bf16.mxu0 %vm4457_vm1, %v4456_v1  ;;  %3996 = vmatprep.mubr.msk.bf16.mxu1 %vm4457_vm1, %v4456_v1 }
  0x46   : > { %4000 = vmatprep.subr.bf16.mxu0 %v4456_v1  ;;  %4006 = vmatprep.subr.bf16.mxu1 %v4456_v1 }
  0x4b   : > { %3991 = vmatmul.mubr.msk.bf16.vlgmr.msra.gmra.mrb[24].mxu0 %vm192_vm2, %v3669_v34  ;;  %3997 = vmatmul.mubr.msk.bf16.vlgmr.msra.gmra.mrb[24].mxu1 %vm192_vm2, %v3670_v35 }
  0x4c   : > { %4001 = vmatpush3.bf16.msra.mxu0 %v4651_v36  ;;  %4007 = vmatpush3.bf16.msra.mxu1 %v4651_v36 }
  0x4d   : > { %4002 = vmatprep.mubr.msk.bf16.mxu0 %vm4457_vm1, %v4456_v1  ;;  %4008 = vmatprep.mubr.msk.bf16.mxu1 %vm4457_vm1, %v4456_v1 }
  0x4e   : > { %4012 = vmatprep.subr.bf16.mxu0 %v4456_v1  ;;  %4018 = vmatprep.subr.bf16.mxu1 %v4456_v1 }
  0x53   : > { %4003 = vmatmul.mubr.msk.bf16.vlgmr.msra.gmra.mrb[28].mxu0 %vm192_vm2, %v4664_v37  ;;  %4009 = vmatmul.mubr.msk.bf16.vlgmr.msra.gmra.mrb[28].mxu1 %vm192_vm2, %v4667_v38 }
  0x54   : > { %4013 = vmatpush3.bf16.msra.mxu0 %v4632_v32  ;;  %4019 = vmatpush3.bf16.msra.mxu1 %v4632_v32 }
  0x55   : > { %4014 = vmatprep.mubr.msk.bf16.mxu0 %vm4457_vm1, %v4456_v1  ;;  %4020 = vmatprep.mubr.msk.bf16.mxu1 %vm4457_vm1, %v4456_v1 }
  0x56   : > { %4024 = vmatprep.subr.bf16.mxu0 %v4456_v1  ;;  %4030 = vmatprep.subr.bf16.mxu1 %v4456_v1 }
  0x5b   : > { %4015 = vmatmul.mubr.msk.bf16.vlgmr.msra.gmra.mrb[32].mxu0 %vm192_vm2, %v4664_v37  ;;  %4021 = vmatmul.mubr.msk.bf16.vlgmr.msra.gmra.mrb[32].mxu1 %vm192_vm2, %v4667_v38 }
  0x5c   : > { %4025 = vmatpush3.bf16.msra.mxu0 %v4536_v2  ;;  %4031 = vmatpush3.bf16.msra.mxu1 %v4536_v2 }
  0x5d   : > { %4026 = vmatprep.mubr.msk.bf16.mxu0 %vm4457_vm1, %v4456_v1  ;;  %4032 = vmatprep.mubr.msk.bf16.mxu1 %vm4457_vm1, %v4456_v1 }
  0x5e   : > { %4036 = vmatprep.subr.bf16.mxu0 %v4456_v1  ;;  %4042 = vmatprep.subr.bf16.mxu1 %v4456_v1 }
  0x63   : > { %4027 = vmatmul.mubr.msk.bf16.vlgmr.msra.gmra.mrb[36].mxu0 %vm192_vm2, %v4664_v37  ;;  %4033 = vmatmul.mubr.msk.bf16.vlgmr.msra.gmra.mrb[36].mxu1 %vm192_vm2, %v4667_v38 }
  0x64   : > { %4037 = vmatpush3.bf16.msra.mxu0 %v4556_v4  ;;  %4043 = vmatpush3.bf16.msra.mxu1 %v4556_v4 }
  0x65   : > { %4038 = vmatprep.mubr.msk.bf16.mxu0 %vm4457_vm1, %v4456_v1  ;;  %4044 = vmatprep.mubr.msk.bf16.mxu1 %vm4457_vm1, %v4456_v1 }
  0x66   : > { %4048 = vmatprep.subr.bf16.mxu0 %v4456_v1  ;;  %4054 = vmatprep.subr.bf16.mxu1 %v4456_v1 }
  0x6b   : > { %4039 = vmatmul.mubr.msk.bf16.vlgmr.msra.gmra.mrb[40].mxu0 %vm192_vm2, %v3669_v34  ;;  %4045 = vmatmul.mubr.msk.bf16.vlgmr.msra.gmra.mrb[40].mxu1 %vm192_vm2, %v3670_v35 }
  0x6c   : > { %4049 = vmatpush3.bf16.msra.mxu0 %v4711_v44  ;;  %4055 = vmatpush3.bf16.msra.mxu1 %v4711_v44 }
  0x6d   : > { %4050 = vmatprep.mubr.msk.bf16.mxu0 %vm4457_vm1, %v4456_v1  ;;  %4056 = vmatprep.mubr.msk.bf16.mxu1 %vm4457_vm1, %v4456_v1 }
  0x6e   : > { %4060 = vmatprep.subr.bf16.mxu0 %v4456_v1  ;;  %4066 = vmatprep.subr.bf16.mxu1 %v4456_v1 }
  0x73   : > { %4051 = vmatmul.mubr.msk.bf16.vlgmr.msra.gmra.mrb[44].mxu0 %vm192_vm2, %v1221_v49  ;;  %4057 = vmatmul.mubr.msk.bf16.vlgmr.msra.gmra.mrb[44].mxu1 %vm192_vm2, %v4723_v50 }
  0x74   : > { %4061 = vmatpush3.bf16.msra.mxu0 %v4651_v36  ;;  %4067 = vmatpush3.bf16.msra.mxu1 %v4651_v36 }
  0x75   : > { %4062 = vmatprep.mubr.msk.bf16.mxu0 %vm4457_vm1, %v4456_v1  ;;  %4068 = vmatprep.mubr.msk.bf16.mxu1 %vm4457_vm1, %v4456_v1 }
  0x76   : > { %4072 = vmatprep.subr.bf16.mxu0 %v4456_v1  ;;  %4078 = vmatprep.subr.bf16.mxu1 %v4456_v1 }
  0x7b   : > { %4063 = vmatmul.mubr.msk.bf16.vlgmr.msra.gmra.mrb[48].mxu0 %vm192_vm2, %v1221_v49  ;;  %4069 = vmatmul.mubr.msk.bf16.vlgmr.msra.gmra.mrb[48].mxu1 %vm192_vm2, %v4723_v50 }
  0x7c   : > { %4073 = vmatpush3.bf16.msra.mxu0 %v4578_v14  ;;  %4079 = vmatpush3.bf16.msra.mxu1 %v4578_v14 }
  0x7d   : > { %4074 = vmatprep.mubr.msk.bf16.mxu0 %vm4457_vm1, %v4456_v1  ;;  %4080 = vmatprep.mubr.msk.bf16.mxu1 %vm4457_vm1, %v4456_v1 }
  0x7e   : > { %4084 = vmatprep.subr.bf16.mxu0 %v4456_v1  ;;  %4090 = vmatprep.subr.bf16.mxu1 %v4456_v1 }
  0x83   : > { %4075 = vmatmul.mubr.msk.bf16.vlgmr.msra.gmra.mrb[52].mxu0 %vm192_vm2, %v1221_v49  ;;  %4081 = vmatmul.mubr.msk.bf16.vlgmr.msra.gmra.mrb[52].mxu1 %vm192_vm2, %v4723_v50 }
  0x84   : > { %4085 = vmatpush3.bf16.msra.mxu0 %v4536_v2  ;;  %4091 = vmatpush3.bf16.msra.mxu1 %v4536_v2  ;;  %v3647_v2 = vld [vmem:[%s5092_s1 + $0x1c] sm:$0xf] }
  0x85   : > { %4086 = vmatprep.mubr.msk.bf16.mxu0 %vm4457_vm1, %v4456_v1  ;;  %4092 = vmatprep.mubr.msk.bf16.mxu1 %vm4457_vm1, %v4456_v1  ;;  %v4829_v3 = vsel %vm196_vm0, %v3647_v2, 0 }
  0x86   : > { %4096 = vmatprep.subr.bf16.mxu0 %v4456_v1  ;;  %4102 = vmatprep.subr.bf16.mxu1 %v4456_v1 }
  0x8b   : > { %4087 = vmatmul.mubr.msk.bf16.vlgmr.msra.gmra.mrb[56].mxu0 %vm192_vm2, %v1221_v49  ;;  %4093 = vmatmul.mubr.msk.bf16.vlgmr.msra.gmra.mrb[56].mxu1 %vm192_vm2, %v4723_v50 }
  0x8c   : > { %4097 = vmatpush3.bf16.msra.mxu0 %v4556_v4  ;;  %4103 = vmatpush3.bf16.msra.mxu1 %v4556_v4  ;;  %v3711_v4 = vld [vmem:[%s4553_s5 + $0x8] sm:$0x1] }
  0x8d   : > { %4098 = vmatprep.mubr.msk.bf16.mxu0 %vm4457_vm1, %v4456_v1  ;;  %4104 = vmatprep.mubr.msk.bf16.mxu1 %vm4457_vm1, %v4456_v1 }
  0x8e   : > { %4108 = vmatprep.subr.bf16.mxu0 %v4456_v1  ;;  %4114 = vmatprep.subr.bf16.mxu1 %v4456_v1 }
  0x93   : > { %4099 = vmatmul.mubr.msk.bf16.vlgmr.msra.gmra.mrb[60].mxu0 %vm192_vm2, %v4664_v37  ;;  %4105 = vmatmul.mubr.msk.bf16.vlgmr.msra.gmra.mrb[60].mxu1 %vm192_vm2, %v4667_v38 }
  0x94   : > { %4109 = vmatpush3.bf16.msra.mxu0 %v4711_v44  ;;  %4115 = vmatpush3.bf16.msra.mxu1 %v4711_v44 }
  0x95   : > { %4110 = vmatprep.mubr.msk.bf16.mxu0 %vm4457_vm1, %v4456_v1  ;;  %4116 = vmatprep.mubr.msk.bf16.mxu1 %vm4457_vm1, %v4456_v1 }
  0x96   : > { %4120 = vmatprep.subr.bf16.mxu0 %v4456_v1  ;;  %4126 = vmatprep.subr.bf16.mxu1 %v4456_v1 }
  0x9b   : > { %4111 = vmatmul.mubr.msk.bf16.vlgmr.msra.gmra.mrb[64].mxu0 %vm192_vm2, %v1668_v59  ;;  %4117 = vmatmul.mubr.msk.bf16.vlgmr.msra.gmra.mrb[64].mxu1 %vm192_vm2, %v4783_v60 }
  0x9c   : > { %4121 = vmatpush3.bf16.msra.mxu0 %v4578_v14  ;;  %4127 = vmatpush3.bf16.msra.mxu1 %v4578_v14 }
  0x9d   : > { %4122 = vmatprep.mubr.msk.bf16.mxu0 %vm4457_vm1, %v4456_v1  ;;  %4128 = vmatprep.mubr.msk.bf16.mxu1 %vm4457_vm1, %v4456_v1 }
  0x9e   : > { %4132 = vmatprep.subr.bf16.mxu0 %v4456_v1  ;;  %4138 = vmatprep.subr.bf16.mxu1 %v4456_v1 }
  0xa3   : > { %4123 = vmatmul.mubr.msk.bf16.vlgmr.msra.gmra.mrb[68].mxu0 %vm192_vm2, %v1668_v59  ;;  %4129 = vmatmul.mubr.msk.bf16.vlgmr.msra.gmra.mrb[68].mxu1 %vm192_vm2, %v4783_v60 }
  0xa4   : > { %4133 = vmatpush3.bf16.msra.mxu0 %v4800_v62  ;;  %4139 = vmatpush3.bf16.msra.mxu1 %v4800_v62 }
  0xa5   : > { %4134 = vmatprep.mubr.msk.bf16.mxu0 %vm4457_vm1, %v4456_v1  ;;  %4140 = vmatprep.mubr.msk.bf16.mxu1 %vm4457_vm1, %v4456_v1 }
  0xa6   : > { %4144 = vmatprep.subr.bf16.mxu0 %v4456_v1  ;;  %4150 = vmatprep.subr.bf16.mxu1 %v4456_v1 }
  0xab   : > { %4135 = vmatmul.mubr.msk.bf16.vlgmr.msra.gmra.mrb[72].mxu0 %vm192_vm2, %v3705_v63  ;;  %4141 = vmatmul.mubr.msk.bf16.vlgmr.msra.gmra.mrb[72].mxu1 %vm192_vm2, %v3706_v0 }
  0xac   : > { %4145 = vmatpush3.bf16.msra.mxu0 %v4632_v32  ;;  %4151 = vmatpush3.bf16.msra.mxu1 %v4632_v32 }
  0xad   : > { %4146 = vmatprep.mubr.msk.bf16.mxu0 %vm4457_vm1, %v4456_v1  ;;  %4152 = vmatprep.mubr.msk.bf16.mxu1 %vm4457_vm1, %v4456_v1 }
  0xae   : > { %4156 = vmatprep.subr.bf16.mxu0 %v4456_v1  ;;  %4162 = vmatprep.subr.bf16.mxu1 %v4456_v1 }
  0xb3   : > { %4147 = vmatmul.mubr.msk.bf16.vlgmr.msra.gmra.mrb[76].mxu0 %vm192_vm2, %v3705_v63  ;;  %4153 = vmatmul.mubr.msk.bf16.vlgmr.msra.gmra.mrb[76].mxu1 %vm192_vm2, %v3706_v0 }
  0xb4   : > { %4157 = vmatpush3.bf16.msra.mxu0 %v4829_v3  ;;  %4163 = vmatpush3.bf16.msra.mxu1 %v4829_v3 }
  0xb5   : > { %4158 = vmatprep.mubr.msk.bf16.mxu0 %vm4457_vm1, %v4456_v1  ;;  %4164 = vmatprep.mubr.msk.bf16.mxu1 %vm4457_vm1, %v4456_v1 }
  0xb6   : > { %4168 = vmatprep.subr.bf16.mxu0 %v4456_v1  ;;  %4174 = vmatprep.subr.bf16.mxu1 %v4456_v1 }
  0xbb   : > { %4159 = vmatmul.mubr.msk.bf16.vlgmr.msra.gmra.mrb[80].mxu0 %vm192_vm2, %v3711_v4  ;;  %4165 = vmatmul.mubr.msk.bf16.vlgmr.msra.gmra.mrb[80].mxu1 %vm192_vm2, %v3712_v5 }
  0xbc   : > { %4169 = vmatpush3.bf16.msra.mxu0 %v4800_v62  ;;  %4175 = vmatpush3.bf16.msra.mxu1 %v4800_v62 }
  0xbd   : > { %4170 = vmatprep.mubr.msk.bf16.mxu0 %vm4457_vm1, %v4456_v1  ;;  %4176 = vmatprep.mubr.msk.bf16.mxu1 %vm4457_vm1, %v4456_v1 }
  0xbe   : > { %4180 = vmatprep.subr.bf16.mxu0 %v4456_v1  ;;  %4186 = vmatprep.subr.bf16.mxu1 %v4456_v1 }
  0xc3   : > { %4171 = vmatmul.mubr.msk.bf16.vlgmr.msra.gmra.mrb[84].mxu0 %vm192_vm2, %v3711_v4  ;;  %4177 = vmatmul.mubr.msk.bf16.vlgmr.msra.gmra.mrb[84].mxu1 %vm192_vm2, %v3712_v5 }
  0xc4   : > { %4181 = vmatpush3.bf16.msra.mxu0 %v4651_v36  ;;  %4187 = vmatpush3.bf16.msra.mxu1 %v4651_v36 }
  0xc5   : > { %4182 = vmatprep.mubr.msk.bf16.mxu0 %vm4457_vm1, %v4456_v1  ;;  %4188 = vmatprep.mubr.msk.bf16.mxu1 %vm4457_vm1, %v4456_v1 }
  0xc6   : > { %4192 = vmatprep.subr.bf16.mxu0 %v4456_v1  ;;  %4198 = vmatprep.subr.bf16.mxu1 %v4456_v1 }
  0xcb   : > { %4183 = vmatmul.mubr.msk.bf16.vlgmr.msra.gmra.mrb[88].mxu0 %vm192_vm2, %v3711_v4  ;;  %4189 = vmatmul.mubr.msk.bf16.vlgmr.msra.gmra.mrb[88].mxu1 %vm192_vm2, %v3712_v5 }
  0xcc   : > { %4193 = vmatpush3.bf16.msra.mxu0 %v4632_v32  ;;  %4199 = vmatpush3.bf16.msra.mxu1 %v4632_v32  ;;  %v2813_v32 = vor.u32 %v2812_v25, %v2808_v24 }
  0xcd   : > { %4194 = vmatprep.mubr.msk.bf16.mxu0 %vm4457_vm1, %v4456_v1  ;;  %4200 = vmatprep.mubr.msk.bf16.mxu1 %vm4457_vm1, %v4456_v1 }
  0xce   : > { %4204 = vmatprep.subr.bf16.mxu0 %v4456_v1  ;;  %4210 = vmatprep.subr.bf16.mxu1 %v4456_v1 }
  0xd3   : > { %4195 = vmatmul.mubr.msk.bf16.vlgmr.msra.gmra.mrb[92].mxu0 %vm192_vm2, %v3711_v4  ;;  %4201 = vmatmul.mubr.msk.bf16.vlgmr.msra.gmra.mrb[92].mxu1 %vm192_vm2, %v3712_v5  ;;  %v3745_v5 = vld [vmem:[%s4553_s5 + $0x14] sm:$0x1] }
  0xd4   : > { %4205 = vmatpush3.bf16.msra.mxu0 %v4878_v9  ;;  %4211 = vmatpush3.bf16.msra.mxu1 %v4878_v9 }
  0xd5   : > { %4206 = vmatprep.mubr.msk.bf16.mxu0 %vm4457_vm1, %v4456_v1  ;;  %4212 = vmatprep.mubr.msk.bf16.mxu1 %vm4457_vm1, %v4456_v1 }
  0xd6   : > { %4216 = vmatprep.subr.bf16.mxu0 %v4456_v1  ;;  %4222 = vmatprep.subr.bf16.mxu1 %v4456_v1 }
  0xdb   : > { %4207 = vmatmul.mubr.msk.bf16.vlgmr.msra.gmra.mrb[96].mxu0 %vm192_vm2, %v4590_v20  ;;  %4213 = vmatmul.mubr.msk.bf16.vlgmr.msra.gmra.mrb[96].mxu1 %vm192_vm2, %v2447_v12 }
  0xdc   : > { %4217 = vmatpush3.bf16.msra.mxu0 %v4829_v3  ;;  %4223 = vmatpush3.bf16.msra.mxu1 %v4829_v3 }
  0xdd   : > { %4218 = vmatprep.mubr.msk.bf16.mxu0 %vm4457_vm1, %v4456_v1  ;;  %4224 = vmatprep.mubr.msk.bf16.mxu1 %vm4457_vm1, %v4456_v1 }
  0xde   : > { %4228 = vmatprep.subr.bf16.mxu0 %v4456_v1  ;;  %4234 = vmatprep.subr.bf16.mxu1 %v4456_v1 }
  0xe3   : > { %4219 = vmatmul.mubr.msk.bf16.vlgmr.msra.gmra.mrb[100].mxu0 %vm192_vm2, %v4590_v20  ;;  %4225 = vmatmul.mubr.msk.bf16.vlgmr.msra.gmra.mrb[100].mxu1 %vm192_vm2, %v2447_v12 }
  0xe4   : > { %4229 = vmatpush3.bf16.msra.mxu0 %v4711_v44  ;;  %4235 = vmatpush3.bf16.msra.mxu1 %v4711_v44 }
  0xe5   : > { %4230 = vmatprep.mubr.msk.bf16.mxu0 %vm4457_vm1, %v4456_v1  ;;  %4236 = vmatprep.mubr.msk.bf16.mxu1 %vm4457_vm1, %v4456_v1 }
  0xe6   : > { %4240 = vmatprep.subr.bf16.mxu0 %v4456_v1  ;;  %4246 = vmatprep.subr.bf16.mxu1 %v4456_v1 }
  0xeb   : > { %4231 = vmatmul.mubr.msk.bf16.vlgmr.msra.gmra.mrb[104].mxu0 %vm192_vm2, %v4590_v20  ;;  %4237 = vmatmul.mubr.msk.bf16.vlgmr.msra.gmra.mrb[104].mxu1 %vm192_vm2, %v2447_v12 }
  0xec   : > { %4241 = vmatpush3.bf16.msra.mxu0 %v4651_v36  ;;  %4247 = vmatpush3.bf16.msra.mxu1 %v4651_v36 }
  0xed   : > { %4242 = vmatprep.mubr.msk.bf16.mxu0 %vm4457_vm1, %v4456_v1  ;;  %4248 = vmatprep.mubr.msk.bf16.mxu1 %vm4457_vm1, %v4456_v1 }
  0xee   : > { %v234_v14 = vpop.f32.mrb[0].mxu0  ;;  %v277_v15 = vpop.f32.mrb[0].mxu1  ;;  %4252 = vmatprep.subr.bf16.mxu0 %v4456_v1  ;;  %4258 = vmatprep.subr.bf16.mxu1 %v4456_v1 }
  0xef   : > { %v3920_v16 = vpop.f32.mrb[1].mxu0  ;;  %v3926_v17 = vpop.f32.mrb[1].mxu1 }
  0xf0   : > { %v237_v19 = vpop.f32.mrb[2].mxu0  ;;  %v280_v21 = vpop.f32.mrb[2].mxu1  ;;  %v3276_v17 = vshll.u32 %v3755_v10, 16 }
  0xf1   : > { %v3921_v22 = vpop.f32.mrb[3].mxu0  ;;  %v3927_v23 = vpop.f32.mrb[3].mxu1 }
  0xf2   : > { %v3274_v22 = vshrl.u32 %v3755_v10, 16  ;;  %v3278_v23 = vrot.slane %v3276_v17, 1 }
  0xf3   : > { %4243 = vmatmul.mubr.msk.bf16.vlgmr.msra.gmra.mrb[108].mxu0 %vm192_vm2, %v4590_v20  ;;  %4249 = vmatmul.mubr.msk.bf16.vlgmr.msra.gmra.mrb[108].mxu1 %vm192_vm2, %v2447_v12 }
  0xf4   : > { %4253 = vmatpush3.bf16.msra.mxu0 %v4878_v9  ;;  %4259 = vmatpush3.bf16.msra.mxu1 %v4878_v9 }
  0xf5   : > { %4254 = vmatprep.mubr.msk.bf16.mxu0 %vm4457_vm1, %v4456_v1  ;;  %4260 = vmatprep.mubr.msk.bf16.mxu1 %vm4457_vm1, %v4456_v1 }
  0xf6   : > { %v323_v26 = vpop.f32.mrb[4].mxu0  ;;  %v366_v27 = vpop.f32.mrb[4].mxu1  ;;  %4264 = vmatprep.subr.bf16.mxu0 %v4456_v1  ;;  %4270 = vmatprep.subr.bf16.mxu1 %v4456_v1 }
  0xf7   : > { %v324_v20 = vadd.f32 %v323_v26, %v234_v14  ;;  %v367_v28 = vadd.f32 %v366_v27, %v277_v15  ;;  %v3932_v29 = vpop.f32.mrb[5].mxu0  ;;  %v3938_v30 = vpop.f32.mrb[5].mxu1 }
  0xf8   : > { %v326_v33 = vpop.f32.mrb[6].mxu0  ;;  %v369_v34 = vpop.f32.mrb[6].mxu1  ;;  %v3279_v29 = vor.u32 %v3278_v23, %v3274_v22 }
  0xf9   : > { %v3933_v35 = vpop.f32.mrb[7].mxu0  ;;  %v3939_v36 = vpop.f32.mrb[7].mxu1 }
  0xfa   : > { %v3763_v35 = vld.sshfl [vmem:[%s4553_s5 + $0x16] sm:$0x3 pattern:$0x76325410]  ;;  %s3639_s5 = sshll.u32 %s161_s4, 2 }
  0xfb   : > { %4255 = vmatmul.mubr.msk.bf16.vlgmr.msra.gmra.mrb[112].mxu0 %vm192_vm2, %v4629_v31  ;;  %4261 = vmatmul.mubr.msk.bf16.vlgmr.msra.gmra.mrb[112].mxu1 %vm192_vm2, %v2813_v32  ;;  %s163_s7 = scalar_lea.vmem [#allocation2], %s3639_s5 }
  0xfc   : > { %4265 = vmatpush3.bf16.msra.mxu0 %v4711_v44  ;;  %4271 = vmatpush3.bf16.msra.mxu1 %v4711_v44  ;;  %s3573_s8 = sshll.u32 %s163_s7, 4  ;;  %s5048_s8 = int_to_ptr.vmem [resolvable:$true] %s3573_s8 }
  0xfd   : > { %4266 = vmatprep.mubr.msk.bf16.mxu0 %vm4457_vm1, %v4456_v1  ;;  %4272 = vmatprep.mubr.msk.bf16.mxu1 %vm4457_vm1, %v4456_v1  ;;  %s4392_s17 = scalar_lea.vmem %s5048_s8, 64  ;;  %p4399_p0 = scmp.lt.s32.totalorder %s5048_s8, %s4397_s20 }
  0xfe   : > { %v429_v37 = vpop.f32.mrb[8].mxu0  ;;  %v487_v38 = vpop.f32.mrb[8].mxu1  ;;  %4276 = vmatprep.subr.bf16.mxu0 %v4456_v1  ;;  %4282 = vmatprep.subr.bf16.mxu1 %v4456_v1  ;;  %p4393_p11 = scmp.ne.s32.totalorder %s5048_s8, %s4392_s17  ;;  %p4400_p1 = scmp.lt.s32.totalorder %s4398_s24, %s4392_s17 }
  0xff   : > { %v4946_v39 = vadd.f32 %v429_v37, %v324_v20  ;;  %v4948_v40 = vadd.f32 %v487_v38, %v367_v28  ;;  %v3944_v41 = vpop.f32.mrb[9].mxu0  ;;  %v3950_v42 = vpop.f32.mrb[9].mxu1 }
 0x100   : > { %v432_v43 = vpop.f32.mrb[10].mxu0  ;;  %v490_v44 = vpop.f32.mrb[10].mxu1  ;;  %v3478_v42 = vshll.u32 %v3763_v35, 16  ;;  %p4394_p12 = pnand %p4393_p11, %p4519_p5  ;;  %p4401_p2 = por %p4400_p1, %p4399_p0 }
 0x101   : > { %v3945_v45 = vpop.f32.mrb[11].mxu0  ;;  %v3951_v46 = vpop.f32.mrb[11].mxu1 }
 0x102   : > { %v3476_v46 = vshrl.u32 %v3763_v35, 16  ;;  %p4395_p13 = pneg %p4394_p12 }
 0x103   : > { %4267 = vmatmul.mubr.msk.bf16.vlgmr.msra.gmra.mrb[116].mxu0 %vm192_vm2, %v4629_v31  ;;  %4273 = vmatmul.mubr.msk.bf16.vlgmr.msra.gmra.mrb[116].mxu1 %vm192_vm2, %v2813_v32 }
 0x104   : > { %4277 = vmatpush3.bf16.msra.mxu0 %v4800_v62  ;;  %4283 = vmatpush3.bf16.msra.mxu1 %v4800_v62  ;;  %p4402_p3 = pnand %p4401_p2, %p4395_p13 }
 0x105   : > { %4278 = vmatprep.mubr.msk.bf16.mxu0 %vm4457_vm1, %v4456_v1  ;;  %4284 = vmatprep.mubr.msk.bf16.mxu1 %vm4457_vm1, %v4456_v1 }
 0x106   : > { %v529_v47 = vpop.f32.mrb[12].mxu0  ;;  %v569_v48 = vpop.f32.mrb[12].mxu1  ;;  %4288 = vmatprep.subr.bf16.mxu0 %v4456_v1  ;;  %4294 = vmatprep.subr.bf16.mxu1 %v4456_v1 }
 0x107   : > { %v3956_v49 = vpop.f32.mrb[13].mxu0  ;;  %v3962_v31 = vpop.f32.mrb[13].mxu1 }
 0x108   : > { %v532_v51 = vpop.f32.mrb[14].mxu0  ;;  %v572_v52 = vpop.f32.mrb[14].mxu1 }
 0x109   : > { %v3957_v55 = vpop.f32.mrb[15].mxu0  ;;  %v3963_v56 = vpop.f32.mrb[15].mxu1 }
 0x10b   : > { %4279 = vmatmul.mubr.msk.bf16.vlgmr.msra.gmra.mrb[120].mxu0 %vm192_vm2, %v3741_v53  ;;  %4285 = vmatmul.mubr.msk.bf16.vlgmr.msra.gmra.mrb[120].mxu1 %vm192_vm2, %v3742_v54 }
 0x10c   : > { %4289 = vmatpush3.bf16.msra.mxu0 %v4829_v3  ;;  %4295 = vmatpush3.bf16.msra.mxu1 %v4829_v3 }
 0x10d   : > { %4290 = vmatprep.mubr.msk.bf16.mxu0 %vm4457_vm1, %v4456_v1  ;;  %4296 = vmatprep.mubr.msk.bf16.mxu1 %vm4457_vm1, %v4456_v1 }
 0x10e   : > { %v609_v57 = vpop.f32.mrb[16].mxu0  ;;  %v649_v58 = vpop.f32.mrb[16].mxu1  ;;  %4300 = vmatprep.subr.bf16.mxu0 %v4456_v1  ;;  %4306 = vmatprep.subr.bf16.mxu1 %v4456_v1 }
 0x10f   : > { %v610_v59 = vadd.f32 %v609_v57, %v529_v47  ;;  %v650_v61 = vadd.f32 %v649_v58, %v569_v48  ;;  %v3968_v63 = vpop.f32.mrb[17].mxu0  ;;  %v3974_v0 = vpop.f32.mrb[17].mxu1  ;;  %v3480_v47 = vrot.slane %v3478_v42, 1 }
 0x110   : > { %v612_v2 = vpop.f32.mrb[18].mxu0  ;;  %v652_v4 = vpop.f32.mrb[18].mxu1 }
 0x111   : > { %v3969_v7 = vpop.f32.mrb[19].mxu0  ;;  %v3975_v8 = vpop.f32.mrb[19].mxu1  ;;  %v3481_v53 = vor.u32 %v3480_v47, %v3476_v46 }
 0x113   : > { %4291 = vmatmul.mubr.msk.bf16.vlgmr.msra.gmra.mrb[124].mxu0 %vm192_vm2, %v3745_v5  ;;  %4297 = vmatmul.mubr.msk.bf16.vlgmr.msra.gmra.mrb[124].mxu1 %vm192_vm2, %v3746_v6 }
 0x114   : > { %4301 = vmatpush3.bf16.msra.mxu0 %v4800_v62  ;;  %4307 = vmatpush3.bf16.msra.mxu1 %v4800_v62 }
 0x115   : > { %4302 = vmatprep.mubr.msk.bf16.mxu0 %vm4457_vm1, %v4456_v1  ;;  %4308 = vmatprep.mubr.msk.bf16.mxu1 %vm4457_vm1, %v4456_v1 }
 0x116   : > { %v709_v11 = vpop.f32.mrb[20].mxu0  ;;  %v767_v12 = vpop.f32.mrb[20].mxu1  ;;  %4312 = vmatprep.subr.bf16.mxu0 %v4456_v1  ;;  %4318 = vmatprep.subr.bf16.mxu1 %v4456_v1 }
 0x117   : > { %v773_v13 = vadd.f32 %v709_v11, %v610_v59  ;;  %v774_v14 = vadd.f32 %v767_v12, %v650_v61  ;;  %v3980_v15 = vpop.f32.mrb[21].mxu0  ;;  %v3986_v16 = vpop.f32.mrb[21].mxu1 }
 0x118   : > { %v712_v18 = vpop.f32.mrb[22].mxu0  ;;  %v770_v62 = vpop.f32.mrb[22].mxu1 }
 0x119   : > { %v3981_v19 = vpop.f32.mrb[23].mxu0  ;;  %v3987_v21 = vpop.f32.mrb[23].mxu1 }
 0x11b   : > { %4303 = vmatmul.mubr.msk.bf16.vlgmr.msra.gmra.mrb[128].mxu0 %vm192_vm2, %v3745_v5  ;;  %4309 = vmatmul.mubr.msk.bf16.vlgmr.msra.gmra.mrb[128].mxu1 %vm192_vm2, %v3746_v6 }
 0x11c   : > { %4313 = vmatpush3.bf16.msra.mxu0 %v4878_v9  ;;  %4319 = vmatpush3.bf16.msra.mxu1 %v4878_v9 }
 0x11d   : > { %4314 = vmatprep.mubr.msk.bf16.mxu0 %vm4457_vm1, %v4456_v1  ;;  %4320 = vmatprep.mubr.msk.bf16.mxu1 %vm4457_vm1, %v4456_v1 }
 0x11e   : > { %v818_v24 = vpop.f32.mrb[24].mxu0  ;;  %v861_v25 = vpop.f32.mrb[24].mxu1  ;;  %4324 = vmatprep.subr.bf16.mxu0 %v4456_v1  ;;  %4330 = vmatprep.subr.bf16.mxu1 %v4456_v1 }
 0x11f   : > { %v867_v26 = vadd.f32 %v818_v24, %v4946_v39  ;;  %v868_v27 = vadd.f32 %v861_v25, %v4948_v40  ;;  %v3992_v20 = vpop.f32.mrb[25].mxu0  ;;  %v3998_v28 = vpop.f32.mrb[25].mxu1 }
 0x120   : > { %v821_v30 = vpop.f32.mrb[26].mxu0  ;;  %v864_v32 = vpop.f32.mrb[26].mxu1 }
 0x121   : > { %v3993_v33 = vpop.f32.mrb[27].mxu0  ;;  %v3999_v34 = vpop.f32.mrb[27].mxu1 }
 0x123   : > { %4315 = vmatmul.mubr.msk.bf16.vlgmr.msra.gmra.mrb[132].mxu0 %vm192_vm2, %v4723_v50  ;;  %4321 = vmatmul.mubr.msk.bf16.vlgmr.msra.gmra.mrb[132].mxu1 %vm192_vm2, %v3279_v29 }
 0x124   : > { %4325 = vmatpush3.bf16.msra.mxu0 %v4829_v3  ;;  %4331 = vmatpush3.bf16.msra.mxu1 %v4829_v3 }
 0x125   : > { %4326 = vmatprep.mubr.msk.bf16.mxu0 %vm4457_vm1, %v4456_v1  ;;  %4332 = vmatprep.mubr.msk.bf16.mxu1 %vm4457_vm1, %v4456_v1 }
 0x126   : > { %v912_v36 = vpop.f32.mrb[28].mxu0  ;;  %v955_v37 = vpop.f32.mrb[28].mxu1  ;;  %4336 = vmatprep.subr.bf16.mxu0 %v4456_v1  ;;  %4342 = vmatprep.subr.bf16.mxu1 %v4456_v1 }
 0x127   : > { %v961_v38 = vadd.f32 %v912_v36, %v867_v26  ;;  %v962_v39 = vadd.f32 %v955_v37, %v868_v27  ;;  %v4004_v40 = vpop.f32.mrb[29].mxu0  ;;  %v4010_v41 = vpop.f32.mrb[29].mxu1 }
 0x128   : > { %v915_v43 = vpop.f32.mrb[30].mxu0  ;;  %v958_v3 = vpop.f32.mrb[30].mxu1 }
 0x129   : > { %v4005_v44 = vpop.f32.mrb[31].mxu0  ;;  %v4011_v45 = vpop.f32.mrb[31].mxu1 }
 0x12b   : > { %4327 = vmatmul.mubr.msk.bf16.vlgmr.msra.gmra.mrb[136].mxu0 %vm192_vm2, %v4723_v50  ;;  %4333 = vmatmul.mubr.msk.bf16.vlgmr.msra.gmra.mrb[136].mxu1 %vm192_vm2, %v3279_v29 }
 0x12c   : > { %4337 = vmatpush3.bf16.msra.mxu0 %v4878_v9  ;;  %4343 = vmatpush3.bf16.msra.mxu1 %v4878_v9 }
 0x12d   : > { %4338 = vmatprep.mubr.msk.bf16.mxu0 %vm4457_vm1, %v4456_v1  ;;  %4344 = vmatprep.mubr.msk.bf16.mxu1 %vm4457_vm1, %v4456_v1 }
 0x12e   : > { %v997_v48 = vpop.f32.mrb[32].mxu0  ;;  %v1037_v49 = vpop.f32.mrb[32].mxu1 }
 0x12f   : > { %v1043_v31 = vadd.f32 %v997_v48, %v773_v13  ;;  %v1044_v51 = vadd.f32 %v1037_v49, %v774_v14  ;;  %v4016_v52 = vpop.f32.mrb[33].mxu0  ;;  %v4022_v50 = vpop.f32.mrb[33].mxu1 }
 0x130   : > { %v1000_v54 = vpop.f32.mrb[34].mxu0  ;;  %v1040_v55 = vpop.f32.mrb[34].mxu1 }
 0x131   : > { %v4017_v56 = vpop.f32.mrb[35].mxu0  ;;  %v4023_v57 = vpop.f32.mrb[35].mxu1 }
 0x133   : > { %4339 = vmatmul.mubr.msk.bf16.vlgmr.msra.gmra.mrb[140].mxu0 %vm192_vm2, %v4783_v60  ;;  %4345 = vmatmul.mubr.msk.bf16.vlgmr.msra.gmra.mrb[140].mxu1 %vm192_vm2, %v3481_v53 }
 0x136   : > { %v1079_v9 = vpop.f32.mrb[36].mxu0  ;;  %v1119_v58 = vpop.f32.mrb[36].mxu1 }
 0x137   : > { %v4028_v59 = vpop.f32.mrb[37].mxu0  ;;  %v4034_v1 = vpop.f32.mrb[37].mxu1 }
 0x138   : > { %v1082_v61 = vpop.f32.mrb[38].mxu0  ;;  %v1122_v63 = vpop.f32.mrb[38].mxu1 }
 0x139   : > { %v4029_v0 = vpop.f32.mrb[39].mxu0  ;;  %v4035_v2 = vpop.f32.mrb[39].mxu1 }
 0x13e   : > { %v1159_v4 = vpop.f32.mrb[40].mxu0  ;;  %v1199_v5 = vpop.f32.mrb[40].mxu1 }
 0x13f   : > { %v1160_v6 = vadd.f32 %v1159_v4, %v1079_v9  ;;  %v1200_v7 = vadd.f32 %v1199_v5, %v1119_v58  ;;  %v4040_v8 = vpop.f32.mrb[41].mxu0  ;;  %v4046_v10 = vpop.f32.mrb[41].mxu1 }
 0x140   : > { %v1162_v11 = vpop.f32.mrb[42].mxu0  ;;  %v1202_v12 = vpop.f32.mrb[42].mxu1 }
 0x141   : > { %v4041_v13 = vpop.f32.mrb[43].mxu0  ;;  %v4047_v60 = vpop.f32.mrb[43].mxu1 }
 0x146   : > { %v1262_v14 = vpop.f32.mrb[44].mxu0  ;;  %v1320_v15 = vpop.f32.mrb[44].mxu1 }
 0x147   : > { %v5022_v16 = vadd.f32 %v1262_v14, %v961_v38  ;;  %v5024_v17 = vadd.f32 %v1320_v15, %v962_v39  ;;  %v4052_v18 = vpop.f32.mrb[45].mxu0  ;;  %v4058_v62 = vpop.f32.mrb[45].mxu1 }
 0x148   : > { %v1265_v19 = vpop.f32.mrb[46].mxu0  ;;  %v1323_v21 = vpop.f32.mrb[46].mxu1 }
 0x149   : > { %v4053_v22 = vpop.f32.mrb[47].mxu0  ;;  %v4059_v23 = vpop.f32.mrb[47].mxu1 }
 0x14e   : > { %v1362_v24 = vpop.f32.mrb[48].mxu0  ;;  %v1402_v25 = vpop.f32.mrb[48].mxu1 }
 0x14f   : > { %v1408_v26 = vadd.f32 %v1362_v24, %v1043_v31  ;;  %v1409_v27 = vadd.f32 %v1402_v25, %v1044_v51  ;;  %v4064_v20 = vpop.f32.mrb[49].mxu0  ;;  %v4070_v28 = vpop.f32.mrb[49].mxu1 }
 0x150   : > { %v1365_v29 = vpop.f32.mrb[50].mxu0  ;;  %v1405_v30 = vpop.f32.mrb[50].mxu1 }
 0x151   : > { %v4065_v32 = vpop.f32.mrb[51].mxu0  ;;  %v4071_v33 = vpop.f32.mrb[51].mxu1 }
 0x156   : > { %v1444_v34 = vpop.f32.mrb[52].mxu0  ;;  %v1484_v35 = vpop.f32.mrb[52].mxu1 }
 0x157   : > { %v1490_v36 = vadd.f32 %v1444_v34, %v1160_v6  ;;  %v1491_v37 = vadd.f32 %v1484_v35, %v1200_v7  ;;  %v4076_v38 = vpop.f32.mrb[53].mxu0  ;;  %v4082_v39 = vpop.f32.mrb[53].mxu1 }
 0x158   : > { %v1447_v40 = vpop.f32.mrb[54].mxu0  ;;  %v1487_v41 = vpop.f32.mrb[54].mxu1 }
 0x159   : > { %v4077_v42 = vpop.f32.mrb[55].mxu0  ;;  %v4083_v43 = vpop.f32.mrb[55].mxu1 }
 0x15e   : > { %v1526_v3 = vpop.f32.mrb[56].mxu0  ;;  %v1566_v44 = vpop.f32.mrb[56].mxu1 }
 0x15f   : > { %v4088_v45 = vpop.f32.mrb[57].mxu0  ;;  %v4094_v46 = vpop.f32.mrb[57].mxu1 }
 0x160   : > { %v1529_v47 = vpop.f32.mrb[58].mxu0  ;;  %v1569_v48 = vpop.f32.mrb[58].mxu1 }
 0x161   : > { %v4089_v49 = vpop.f32.mrb[59].mxu0  ;;  %v4095_v31 = vpop.f32.mrb[59].mxu1 }
 0x166   : > { %v1606_v51 = vpop.f32.mrb[60].mxu0  ;;  %v1646_v52 = vpop.f32.mrb[60].mxu1 }
 0x167   : > { %v1607_v50 = vadd.f32 %v1606_v51, %v1526_v3  ;;  %v1647_v53 = vadd.f32 %v1646_v52, %v1566_v44  ;;  %v4100_v54 = vpop.f32.mrb[61].mxu0  ;;  %v4106_v55 = vpop.f32.mrb[61].mxu1 }
 0x168   : > { %v1609_v56 = vpop.f32.mrb[62].mxu0  ;;  %v1649_v57 = vpop.f32.mrb[62].mxu1 }
 0x169   : > { %v4101_v9 = vpop.f32.mrb[63].mxu0  ;;  %v4107_v58 = vpop.f32.mrb[63].mxu1 }
 0x16e   : > { %v1706_v59 = vpop.f32.mrb[64].mxu0  ;;  %v1764_v1 = vpop.f32.mrb[64].mxu1 }
 0x16f   : > { %v1770_v61 = vadd.f32 %v1706_v59, %v1408_v26  ;;  %v1771_v63 = vadd.f32 %v1764_v1, %v1409_v27  ;;  %v4112_v0 = vpop.f32.mrb[65].mxu0  ;;  %v4118_v2 = vpop.f32.mrb[65].mxu1 }
 0x170   : > { %v1709_v4 = vpop.f32.mrb[66].mxu0  ;;  %v1767_v5 = vpop.f32.mrb[66].mxu1 }
 0x171   : > { %v4113_v6 = vpop.f32.mrb[67].mxu0  ;;  %v4119_v7 = vpop.f32.mrb[67].mxu1 }
 0x176   : > { %v1806_v8 = vpop.f32.mrb[68].mxu0  ;;  %v1846_v10 = vpop.f32.mrb[68].mxu1 }
 0x177   : > { %v1852_v11 = vadd.f32 %v1806_v8, %v1607_v50  ;;  %v1853_v12 = vadd.f32 %v1846_v10, %v1647_v53  ;;  %v4124_v13 = vpop.f32.mrb[69].mxu0  ;;  %v4130_v60 = vpop.f32.mrb[69].mxu1 }
 0x178   : > { %v1809_v14 = vpop.f32.mrb[70].mxu0  ;;  %v1849_v15 = vpop.f32.mrb[70].mxu1 }
 0x179   : > { %v4125_v18 = vpop.f32.mrb[71].mxu0  ;;  %v4131_v62 = vpop.f32.mrb[71].mxu1 }
 0x17e   : > { %v1897_v19 = vpop.f32.mrb[72].mxu0  ;;  %v1940_v21 = vpop.f32.mrb[72].mxu1 }
 0x17f   : > { %v1946_v22 = vadd.f32 %v1897_v19, %v5022_v16  ;;  %v1947_v23 = vadd.f32 %v1940_v21, %v5024_v17  ;;  %v4136_v24 = vpop.f32.mrb[73].mxu0  ;;  %v4142_v25 = vpop.f32.mrb[73].mxu1 }
 0x180   : > { %v1900_v26 = vpop.f32.mrb[74].mxu0  ;;  %v1943_v27 = vpop.f32.mrb[74].mxu1 }
 0x181   : > { %v4137_v20 = vpop.f32.mrb[75].mxu0  ;;  %v4143_v28 = vpop.f32.mrb[75].mxu1 }
 0x186   : > { %v1982_v29 = vpop.f32.mrb[76].mxu0  ;;  %v2022_v30 = vpop.f32.mrb[76].mxu1 }
 0x187   : > { %v2028_v32 = vadd.f32 %v1982_v29, %v1490_v36  ;;  %v2029_v33 = vadd.f32 %v2022_v30, %v1491_v37  ;;  %v4148_v34 = vpop.f32.mrb[77].mxu0  ;;  %v4154_v35 = vpop.f32.mrb[77].mxu1 }
 0x188   : > { %v1985_v38 = vpop.f32.mrb[78].mxu0  ;;  %v2025_v39 = vpop.f32.mrb[78].mxu1 }
 0x189   : > { %v4149_v40 = vpop.f32.mrb[79].mxu0  ;;  %v4155_v41 = vpop.f32.mrb[79].mxu1 }
 0x18e   : > { %v2073_v42 = vpop.f32.mrb[80].mxu0  ;;  %v2116_v16 = vpop.f32.mrb[80].mxu1 }
 0x18f   : > { %v2122_v43 = vadd.f32 %v2073_v42, %v1946_v22  ;;  %v2123_v17 = vadd.f32 %v2116_v16, %v1947_v23  ;;  %v4160_v3 = vpop.f32.mrb[81].mxu0  ;;  %v4166_v44 = vpop.f32.mrb[81].mxu1 }
 0x190   : > { %v2076_v45 = vpop.f32.mrb[82].mxu0  ;;  %v2119_v46 = vpop.f32.mrb[82].mxu1 }
 0x191   : > { %v4161_v47 = vpop.f32.mrb[83].mxu0  ;;  %v4167_v48 = vpop.f32.mrb[83].mxu1 }
 0x196   : > { %v2158_v49 = vpop.f32.mrb[84].mxu0  ;;  %v2198_v31 = vpop.f32.mrb[84].mxu1 }
 0x197   : > { %v2204_v36 = vadd.f32 %v2158_v49, %v1770_v61  ;;  %v2205_v37 = vadd.f32 %v2198_v31, %v1771_v63  ;;  %v4172_v51 = vpop.f32.mrb[85].mxu0  ;;  %v4178_v52 = vpop.f32.mrb[85].mxu1 }
 0x198   : > { %v2161_v50 = vpop.f32.mrb[86].mxu0  ;;  %v2201_v53 = vpop.f32.mrb[86].mxu1 }
 0x199   : > { %v4173_v54 = vpop.f32.mrb[87].mxu0  ;;  %v4179_v55 = vpop.f32.mrb[87].mxu1  ;;  %v5031_v50 = vld [vmem:[%s5093_s2] ss:$0 sm:$0xff] }
 0x19e   : > { %v2240_v56 = vpop.f32.mrb[88].mxu0  ;;  %v2280_v57 = vpop.f32.mrb[88].mxu1 }
 0x19f   : > { %v2286_v9 = vadd.f32 %v2240_v56, %v2028_v32  ;;  %v2287_v58 = vadd.f32 %v2280_v57, %v2029_v33  ;;  %v4184_v59 = vpop.f32.mrb[89].mxu0  ;;  %v4190_v1 = vpop.f32.mrb[89].mxu1 }
 0x1a0   : > { %v2243_v0 = vpop.f32.mrb[90].mxu0  ;;  %v2283_v2 = vpop.f32.mrb[90].mxu1 }
 0x1a1   : > { %v4185_v4 = vpop.f32.mrb[91].mxu0  ;;  %v4191_v5 = vpop.f32.mrb[91].mxu1 }
 0x1a6   : > { %v2322_v6 = vpop.f32.mrb[92].mxu0  ;;  %v2362_v7 = vpop.f32.mrb[92].mxu1 }
 0x1a7   : > { %v2368_v61 = vadd.f32 %v2322_v6, %v1852_v11  ;;  %v2369_v63 = vadd.f32 %v2362_v7, %v1853_v12  ;;  %v4196_v8 = vpop.f32.mrb[93].mxu0  ;;  %v4202_v10 = vpop.f32.mrb[93].mxu1 }
 0x1a8   : > { %v2325_v13 = vpop.f32.mrb[94].mxu0  ;;  %v2365_v60 = vpop.f32.mrb[94].mxu1 }
 0x1a9   : > { %v4197_v14 = vpop.f32.mrb[95].mxu0  ;;  %v4203_v15 = vpop.f32.mrb[95].mxu1 }
 0x1ae   : > { %v2427_v18 = vpop.f32.mrb[96].mxu0  ;;  %v2485_v62 = vpop.f32.mrb[96].mxu1 }
 0x1af   : > { %v2491_v19 = vadd.f32 %v2427_v18, %v2122_v43  ;;  %v2492_v21 = vadd.f32 %v2485_v62, %v2123_v17  ;;  %v4208_v22 = vpop.f32.mrb[97].mxu0  ;;  %v4214_v23 = vpop.f32.mrb[97].mxu1 }
 0x1b0   : > { %v2430_v24 = vpop.f32.mrb[98].mxu0  ;;  %v2488_v25 = vpop.f32.mrb[98].mxu1 }
 0x1b1   : > { %v4209_v26 = vpop.f32.mrb[99].mxu0  ;;  %v4215_v27 = vpop.f32.mrb[99].mxu1  ;;  %v3534_v55 = vadd.f32 %v5031_v50, %v2491_v19  ;;  %v3535_v56 = vadd.f32 %v5031_v50, %v2492_v21 }
 0x1b3   : > { %v3536_v7 = vmax.f32 %v3534_v55, 0.0 }
 0x1b6   : > { %v2527_v20 = vpop.f32.mrb[100].mxu0  ;;  %v2567_v28 = vpop.f32.mrb[100].mxu1 }
 0x1b7   : > { %v2573_v11 = vadd.f32 %v2527_v20, %v2204_v36  ;;  %v2574_v12 = vadd.f32 %v2567_v28, %v2205_v37  ;;  %v4220_v29 = vpop.f32.mrb[101].mxu0  ;;  %v4226_v30 = vpop.f32.mrb[101].mxu1 }
 0x1b8   : > { %v2530_v32 = vpop.f32.mrb[102].mxu0  ;;  %v2570_v33 = vpop.f32.mrb[102].mxu1 }
 0x1b9   : > { %v4221_v34 = vpop.f32.mrb[103].mxu0  ;;  %v4227_v35 = vpop.f32.mrb[103].mxu1 }
 0x1be   : > { %v2609_v38 = vpop.f32.mrb[104].mxu0  ;;  %v2649_v39 = vpop.f32.mrb[104].mxu1 }
 0x1bf   : > { %v2655_v40 = vadd.f32 %v2609_v38, %v2286_v9  ;;  %v2656_v41 = vadd.f32 %v2649_v39, %v2287_v58  ;;  %v4232_v42 = vpop.f32.mrb[105].mxu0  ;;  %v4238_v16 = vpop.f32.mrb[105].mxu1 }
 0x1c0   : > { %v2612_v43 = vpop.f32.mrb[106].mxu0  ;;  %v2652_v17 = vpop.f32.mrb[106].mxu1 }
 0x1c1   : > { %v4233_v3 = vpop.f32.mrb[107].mxu0  ;;  %v4239_v44 = vpop.f32.mrb[107].mxu1 }
 0x1c6   : > { %v2691_v45 = vpop.f32.mrb[108].mxu0  ;;  %v2731_v46 = vpop.f32.mrb[108].mxu1 }
 0x1c7   : > { %v2737_v47 = vadd.f32 %v2691_v45, %v2368_v61  ;;  %v2738_v48 = vadd.f32 %v2731_v46, %v2369_v63  ;;  %v4244_v49 = vpop.f32.mrb[109].mxu0  ;;  %v4250_v31 = vpop.f32.mrb[109].mxu1  ;;  %v3537_v61 = vmax.f32 %v3535_v56, 0.0 }
 0x1c8   : > { %v2694_v36 = vpop.f32.mrb[110].mxu0  ;;  %v2734_v37 = vpop.f32.mrb[110].mxu1 }
 0x1c9   : > { %v4245_v51 = vpop.f32.mrb[111].mxu0  ;;  %v4251_v52 = vpop.f32.mrb[111].mxu1 }
 0x1ce   : > { %v2793_v53 = vpop.f32.mrb[112].mxu0  ;;  %v2851_v54 = vpop.f32.mrb[112].mxu1 }
 0x1cf   : > { %v2857_v57 = vadd.f32 %v2793_v53, %v2573_v11  ;;  %v2858_v9 = vadd.f32 %v2851_v54, %v2574_v12  ;;  %v4256_v58 = vpop.f32.mrb[113].mxu0  ;;  %v4262_v59 = vpop.f32.mrb[113].mxu1 }
 0x1d0   : > { %v2796_v1 = vpop.f32.mrb[114].mxu0  ;;  %v2854_v0 = vpop.f32.mrb[114].mxu1 }
 0x1d1   : > { %v3538_v2 = vadd.f32 %v5031_v50, %v2857_v57  ;;  %v3539_v4 = vadd.f32 %v5031_v50, %v2858_v9  ;;  %v4257_v5 = vpop.f32.mrb[115].mxu0  ;;  %v4263_v6 = vpop.f32.mrb[115].mxu1 }
 0x1d3   : > { %v3540_v63 = vmax.f32 %v3538_v2, 0.0  ;;  %v3541_v8 = vmax.f32 %v3539_v4, 0.0 }
 0x1d5   : > { %v3542_v10 = vmax.f32 %v3536_v7, %v3540_v63  ;;  %v3543_v13 = vmax.f32 %v3537_v61, %v3541_v8 }
 0x1d6   : > { %v2893_v60 = vpop.f32.mrb[116].mxu0  ;;  %v2933_v14 = vpop.f32.mrb[116].mxu1 }
 0x1d7   : > { %v2939_v15 = vadd.f32 %v2893_v60, %v2737_v47  ;;  %v2940_v18 = vadd.f32 %v2933_v14, %v2738_v48  ;;  %v4268_v62 = vpop.f32.mrb[117].mxu0  ;;  %v4274_v19 = vpop.f32.mrb[117].mxu1 }
 0x1d8   : > { %v2896_v21 = vpop.f32.mrb[118].mxu0  ;;  %v2936_v22 = vpop.f32.mrb[118].mxu1 }
 0x1d9   : > { %v4269_v23 = vpop.f32.mrb[119].mxu0  ;;  %v4275_v24 = vpop.f32.mrb[119].mxu1 }
 0x1de   : > { %v2981_v25 = vpop.f32.mrb[120].mxu0  ;;  %v3024_v26 = vpop.f32.mrb[120].mxu1 }
 0x1df   : > { %v3030_v27 = vadd.f32 %v2981_v25, %v2655_v40  ;;  %v3031_v20 = vadd.f32 %v3024_v26, %v2656_v41  ;;  %v4280_v28 = vpop.f32.mrb[121].mxu0  ;;  %v4286_v11 = vpop.f32.mrb[121].mxu1 }
 0x1e0   : > { %v2984_v12 = vpop.f32.mrb[122].mxu0  ;;  %v3027_v29 = vpop.f32.mrb[122].mxu1 }
 0x1e1   : > { %v4281_v30 = vpop.f32.mrb[123].mxu0  ;;  %v4287_v32 = vpop.f32.mrb[123].mxu1 }
 0x1e6   : > { %v3072_v33 = vpop.f32.mrb[124].mxu0  ;;  %v3115_v34 = vpop.f32.mrb[124].mxu1 }
 0x1e7   : > { %v3121_v35 = vadd.f32 %v3072_v33, %v3030_v27  ;;  %v3122_v38 = vadd.f32 %v3115_v34, %v3031_v20  ;;  %v4292_v39 = vpop.f32.mrb[125].mxu0  ;;  %v4298_v42 = vpop.f32.mrb[125].mxu1 }
 0x1e8   : > { %v3075_v16 = vpop.f32.mrb[126].mxu0  ;;  %v3118_v43 = vpop.f32.mrb[126].mxu1 }
 0x1e9   : > { %v4293_v17 = vpop.f32.mrb[127].mxu0  ;;  %v4299_v3 = vpop.f32.mrb[127].mxu1 }
 0x1ee   : > { %v3157_v44 = vpop.f32.mrb[128].mxu0  ;;  %v3197_v45 = vpop.f32.mrb[128].mxu1 }
 0x1ef   : > { %v3203_v40 = vadd.f32 %v3157_v44, %v2939_v15  ;;  %v3204_v41 = vadd.f32 %v3197_v45, %v2940_v18  ;;  %v4304_v46 = vpop.f32.mrb[129].mxu0  ;;  %v4310_v47 = vpop.f32.mrb[129].mxu1 }
 0x1f0   : > { %v3160_v48 = vpop.f32.mrb[130].mxu0  ;;  %v3200_v49 = vpop.f32.mrb[130].mxu1 }
 0x1f1   : > { %v4305_v31 = vpop.f32.mrb[131].mxu0  ;;  %v4311_v36 = vpop.f32.mrb[131].mxu1 }
 0x1f6   : > { %v3259_v37 = vpop.f32.mrb[132].mxu0  ;;  %v3317_v51 = vpop.f32.mrb[132].mxu1 }
 0x1f7   : > { %v3323_v52 = vadd.f32 %v3259_v37, %v3121_v35  ;;  %v3324_v53 = vadd.f32 %v3317_v51, %v3122_v38  ;;  %v4316_v54 = vpop.f32.mrb[133].mxu0  ;;  %v4322_v55 = vpop.f32.mrb[133].mxu1 }
 0x1f8   : > { %v3262_v56 = vpop.f32.mrb[134].mxu0  ;;  %v3320_v57 = vpop.f32.mrb[134].mxu1 }
 0x1f9   : > { %v3544_v9 = vadd.f32 %v5031_v50, %v3323_v52  ;;  %v3545_v58 = vadd.f32 %v5031_v50, %v3324_v53  ;;  %v4317_v59 = vpop.f32.mrb[135].mxu0  ;;  %v4323_v1 = vpop.f32.mrb[135].mxu1 }
 0x1fb   : > { %v3546_v0 = vmax.f32 %v3544_v9, 0.0  ;;  %v3547_v2 = vmax.f32 %v3545_v58, 0.0 }
 0x1fd   : > { %v3548_v4 = vmax.f32 %v3542_v10, %v3546_v0  ;;  %v3549_v5 = vmax.f32 %v3543_v13, %v3547_v2 }
 0x1fe   : > { %v3359_v6 = vpop.f32.mrb[136].mxu0  ;;  %v3399_v7 = vpop.f32.mrb[136].mxu1 }
 0x1ff   : > { %v3405_v61 = vadd.f32 %v3359_v6, %v3203_v40  ;;  %v3406_v63 = vadd.f32 %v3399_v7, %v3204_v41  ;;  %v4328_v8 = vpop.f32.mrb[137].mxu0  ;;  %v4334_v60 = vpop.f32.mrb[137].mxu1 }
 0x200   : > { %v3362_v14 = vpop.f32.mrb[138].mxu0  ;;  %v3402_v15 = vpop.f32.mrb[138].mxu1 }
 0x201   : > { %v4329_v18 = vpop.f32.mrb[139].mxu0  ;;  %v4335_v62 = vpop.f32.mrb[139].mxu1 }
 0x206   : > { %v3461_v19 = vpop.f32.mrb[140].mxu0  ;;  %v3519_v21 = vpop.f32.mrb[140].mxu1 }
 0x207   : > { %v3525_v22 = vadd.f32 %v3461_v19, %v3405_v61  ;;  %v3526_v23 = vadd.f32 %v3519_v21, %v3406_v63  ;;  %v4340_v24 = vpop.f32.mrb[141].mxu0  ;;  %v4346_v10 = vpop.f32.mrb[141].mxu1 }
 0x208   : > { %v3464_v13 = vpop.f32.mrb[142].mxu0  ;;  %v3522_v25 = vpop.f32.mrb[142].mxu1 }
 0x209   : > { %v3550_v26 = vadd.f32 %v5031_v50, %v3525_v22  ;;  %v3551_v27 = vadd.f32 %v5031_v50, %v3526_v23  ;;  %v4341_v20 = vpop.f32.mrb[143].mxu0  ;;  %v4347_v28 = vpop.f32.mrb[143].mxu1 }
 0x20b   : > { %v3552_v11 = vmax.f32 %v3550_v26, 0.0  ;;  %v3553_v12 = vmax.f32 %v3551_v27, 0.0 }
 0x20d   : > { %v3554_v50 = vmax.f32 %v3548_v4, %v3552_v11  ;;  %v3555_v29 = vmax.f32 %v3549_v5, %v3553_v12 }
 0x20f   : > { %3557 = vst.msk [vmem:[%s163_s7] sm:$0x3] %vm3556_vm3, %v3554_v50  ;;  %3558 = vst.msk [vmem:[%s163_s7 + $0x2] sm:$0x3] %vm3556_vm3, %v3555_v29 }
 0x210   : > { %4405 = shalt.err (!%p4402_p3)
}
 0x211   : > { %s4406_s25 = scalar_lea.hbm %s5046_s11, 64  ;;  %s4410_s28 = scalar_lea.hbm %s5094_s3, 128 }
 0x212   : > { %p4407_p4 = scmp.ne.s32.totalorder %s5046_s11, %s4406_s25  ;;  %p4411_p9 = scmp.lt.u32.totalorder %s5046_s11, %s5094_s3 }
 0x213   : > { %p4412_p10 = scmp.lt.u32.totalorder %s4410_s28, %s4406_s25  ;;  %p4414_p12 = scmp.lt.u32.totalorder %s4406_s25, %s5046_s11 }
 0x214   : > { %p4408_p7 = pnand %p4407_p4, %p4519_p5 }
 0x215   : > { %p4413_p11 = por %p4412_p10, %p4411_p9 }
 0x216   : > { %p4409_p8 = pneg %p4408_p7 }
 0x217   : > { %p4415_p13 = por %p4414_p12, %p4413_p11 }
 0x219   : > { %p4416_p0 = pnand %p4415_p13, %p4409_p8 }
 0x21b   : > { %4419 = shalt.err (!%p4416_p0)
}
 0x21c   : > { %s4459_s4 = smov 32   ;;  %s4460_s5 = smov 2  }
 0x21d   : > { %4349 = dma.vmem_to_hbm [thread:$0]  (%p4519_p5), %s5048_s8, 64, %s5046_s11, %s5050_s16, %s4459_s4, %s4459_s4, %s4460_s5  }
 0x21e PF: > { %p4355_p1 = scmp.ge.s32.totalorder %s4454_s15, 2  ;;  %s3588_s6 = sand.u32 1, %s4442_s12  }
 0x21f   : > { %s3589_s7 = scalar_lea.sflag [#allocation3], %s3588_s6 }
 0x220   : > { %p4352_p2 = pnand %p4355_p1, %p4523_p6 }
 0x222   : > { %4437 = dma.done.wait (!%p4352_p2), %s3589_s7, 64  }
 0x223   : > { %4439 = vsyncadd (!%p4352_p2), %s3589_s7, 4294967232  ;;  %p13_p3 = scmp.ge.s32.totalorder %s4506_s18, 4   ;;  %s5097_s12 = smov %s4446_s13 }
 0x224   : > { %s5098_s13 = smov %s4450_s14  ;;  %s5099_s14 = smov %s4517_s21 }
 0x225   : > { %s5100_s15 = smov %s4506_s18  ;;  %15 = sbr.rel (!%p13_p3) target bundleno = 3 (0x3), region = 82 }
 0x22c   :  { %3594 = vsyncpa [#allocation3], 1 }
 0x22d   :  { %3596 = vsyncpa [#allocation3 + $0x1], 1 }

// kernel: _lambda_.2
= control target key start
LH: loop header
LB: loop body
LE: loop exit
PB: predicated region body
PF: predicated region fallthrough
CT: control target
= control target key end

     0   :  { %s14516_s12 = smov 0   ;;  %s16653_s0 = inlined_call_operand.vmem [shape: bf16[2,80,5,4], index: 0, kind: input, shape index: {}]   ;;  %s16654_s1 = inlined_call_operand.vmem [shape: bf16[16,4,8], index: 1, kind: input, shape index: {}]   ;;  %s16655_s2 = inlined_call_operand.vmem [shape: f32[1,1,8], index: 2, kind: input, shape index: {}]   ;;  %s16656_s3 = inlined_call_operand.vmem [shape: bf16[2,4,4,8], index: 3, kind: output, shape index: {}]  }
   0x1 LB: > { %s11911_s13 = sadd.s32 4294967295, %s14492_s12   ;;  %p11915_p0 = scmp.ge.s32.totalorder %s14492_s12, 1  ;;  %s14492_s12 = sphi %s14516_s12, %s13_s12  }
   0x2   : > { %p137_p1 = scmp.lt.s32.totalorder %s14492_s12, 3 }
   0x4   : > { %p138_p2 = pnand %p11915_p0, %p137_p1 }
   0x5   : > { %v11919_v0 = vld [vmem:[%s16654_s1 + $0x2] sm:$0x3] (!%p138_p2)  ;;  %vm216_vm0 = vcmask (!%p138_p2), 1041408   ;;  %p161_p3 = scmp.lt.s32.totalorder (!%p138_p2), %s11911_s13, 1  ;;  %v14494_v1 = vmov (!%p138_p2), 0.0   ;;  %vm14495_vm1 = vmmov (!%p138_p2), 0  }
   0x6   : > { %141 = sbr.rel (%p138_p2) target bundleno = 1257 (0x4e9), region = 32  ;;  %12890 = vmatprep.subr.bf16.mxu0 (!%p138_p2), %v14494_v1  ;;  %12896 = vmatprep.subr.bf16.mxu1 (!%p138_p2), %v14494_v1  ;;  %v14530_v2 = vsel (!%p138_p2), %vm216_vm0, %v11919_v0, 0  ;;  %vm212_vm2 = vcmask (!%p138_p2), 31744   ;;  %v172_v5 = vld [vmem:[%s16654_s1] sm:$0x3] (!%p138_p2)  ;;  %vm11851_vm3 = vcmask (!%p138_p2), 58368  }
   0x7   : > { %12891 = vmatpush3.bf16.msra.mxu0 (!%p138_p2), %v14530_v2  ;;  %12897 = vmatpush3.bf16.msra.mxu1 (!%p138_p2), %v14530_v2  ;;  %v14566_v8 = vsel (!%p138_p2), %vm216_vm0, %v172_v5, 0  ;;  %v11920_v11 = vld [vmem:[%s16654_s1 + $0x4] sm:$0x3] (!%p138_p2)  ;;  %v11921_v17 = vld [vmem:[%s16654_s1 + $0x6] sm:$0x3] (!%p138_p2) }
   0x8   : > { %12892 = vmatprep.mubr.msk.bf16.mxu0 (!%p138_p2), %vm14495_vm1, %v14494_v1  ;;  %12898 = vmatprep.mubr.msk.bf16.mxu1 (!%p138_p2), %vm14495_vm1, %v14494_v1  ;;  %v14592_v12 = vsel (!%p138_p2), %vm216_vm0, %v11920_v11, 0  ;;  %v14626_v20 = vsel (!%p138_p2), %vm216_vm0, %v11921_v17, 0  ;;  %v11922_v63 = vld [vmem:[%s16654_s1 + $0x8] sm:$0x3] (!%p138_p2) }
   0x9   : > { %12902 = vmatprep.subr.bf16.mxu0 (!%p138_p2), %v14494_v1  ;;  %12908 = vmatprep.subr.bf16.mxu1 (!%p138_p2), %v14494_v1 }
   0xd   : > { %s16658_s13 = smov (!%p161_p3, %s11911_s13), 1 }
   0xe   : > { %s14426_s16 = smul.u32 320, %s16658_s13 }
  0x10   : > { %s14546_s19 = scalar_lea.vmem %s16653_s0, %s14426_s16 }
  0x11   : > { %v11934_v3 = vld [vmem:[%s14546_s19 + $0x14] sm:$0x3]  ;;  %v11935_v4 = vld [vmem:[%s14546_s19 + $0x18] sm:$0x3]  ;;  %v11936_v6 = vld [vmem:[%s14546_s19 + $0x1c] sm:$0x3] }
  0x12   : > { %12893 = vmatmul.mubr.msk.bf16.vlgmr.msra.gmra.mrb[0].mxu0 %vm212_vm2, %v11934_v3  ;;  %12899 = vmatmul.mubr.msk.bf16.vlgmr.msra.gmra.mrb[0].mxu1 %vm212_vm2, %v11935_v4  ;;  %v11937_v7 = vld [vmem:[%s14546_s19 + $0x20] sm:$0x3]  ;;  %v204_v10 = vld [vmem:[%s14546_s19 + $0x4] sm:$0x3]  ;;  %v205_v13 = vld [vmem:[%s14546_s19 + $0x8] sm:$0x3] }
  0x13   : > { %12903 = vmatpush3.bf16.msra.mxu0 %v14530_v2  ;;  %12909 = vmatpush3.bf16.msra.mxu1 %v14530_v2  ;;  %v203_v9 = vld [vmem:[%s14546_s19] sm:$0x3]  ;;  %v206_v14 = vld [vmem:[%s14546_s19 + $0xc] sm:$0x3]  ;;  %v11946_v15 = vld [vmem:[%s14546_s19 + $0x28] sm:$0x3] }
  0x14   : > { %12904 = vmatprep.mubr.msk.bf16.mxu0 %vm14495_vm1, %v14494_v1  ;;  %12910 = vmatprep.mubr.msk.bf16.mxu1 %vm14495_vm1, %v14494_v1  ;;  %v11947_v16 = vld [vmem:[%s14546_s19 + $0x2c] sm:$0x3]  ;;  %v11948_v18 = vld [vmem:[%s14546_s19 + $0x30] sm:$0x3]  ;;  %v11949_v19 = vld [vmem:[%s14546_s19 + $0x34] sm:$0x3] }
  0x15   : > { %12914 = vmatprep.subr.bf16.mxu0 %v14494_v1  ;;  %12920 = vmatprep.subr.bf16.mxu1 %v14494_v1  ;;  %v11954_v21 = vld [vmem:[%s14546_s19 + $0x3c] sm:$0x3]  ;;  %v11955_v22 = vld [vmem:[%s14546_s19 + $0x40] sm:$0x3]  ;;  %v11956_v23 = vld [vmem:[%s14546_s19 + $0x44] sm:$0x3] }
  0x16   : > { %v11957_v24 = vld [vmem:[%s14546_s19 + $0x48] sm:$0x3]  ;;  %v14437_v25 = vld [vmem:[%s14546_s19] ss:$0 sps:$4 sm:$0x77]   ;;  %v14744_v4 = vsel %vm216_vm0, %v11922_v63, 0 }
  0x17   : > { %v14438_v26 = vld [vmem:[%s14546_s19 + $0x4] ss:$0 sps:$4 sm:$0x77]   ;;  %v1262_v27 = vshll.u32 %v14437_v25, 16  ;;  %v1260_v29 = vshrl.u32 %v14437_v25, 16 }
  0x18   : > { %v1315_v28 = vshll.u32 %v14438_v26, 16  ;;  %v14439_v30 = vld [vmem:[%s14546_s19 + $0x8] ss:$0 sps:$4 sm:$0x77]   ;;  %v1313_v32 = vshrl.u32 %v14438_v26, 16 }
  0x19   : > { %v1264_v31 = vrot.slane %v1262_v27, 1  ;;  %v14440_v34 = vld [vmem:[%s14546_s19 + $0xc] ss:$0 sps:$4 sm:$0x77]   ;;  %v1368_v37 = vshll.u32 %v14439_v30, 16  ;;  %v1366_v39 = vshrl.u32 %v14439_v30, 16 }
  0x1a   : > { %12905 = vmatmul.mubr.msk.bf16.vlgmr.msra.gmra.mrb[4].mxu0 %vm212_vm2, %v11936_v6  ;;  %12911 = vmatmul.mubr.msk.bf16.vlgmr.msra.gmra.mrb[4].mxu1 %vm212_vm2, %v11937_v7  ;;  %v1317_v33 = vrot.slane %v1315_v28, 1  ;;  %v1421_v38 = vshll.u32 %v14440_v34, 16  ;;  %v14441_v40 = vld [vmem:[%s14546_s19 + $0x14] ss:$0 sps:$4 sm:$0x77]   ;;  %v1419_v42 = vshrl.u32 %v14440_v34, 16 }
  0x1b   : > { %12915 = vmatpush3.bf16.msra.mxu0 %v14566_v8  ;;  %12921 = vmatpush3.bf16.msra.mxu1 %v14566_v8  ;;  %v1265_v35 = vor.u32 %v1264_v31, %v1260_v29  ;;  %v1370_v41 = vrot.slane %v1368_v37, 1  ;;  %v14442_v44 = vld [vmem:[%s14546_s19 + $0x18] ss:$0 sps:$4 sm:$0x77]   ;;  %v1482_v47 = vshll.u32 %v14441_v40, 16  ;;  %v1480_v49 = vshrl.u32 %v14441_v40, 16 }
  0x1c   : > { %12916 = vmatprep.mubr.msk.bf16.mxu0 %vm14495_vm1, %v14494_v1  ;;  %12922 = vmatprep.mubr.msk.bf16.mxu1 %vm14495_vm1, %v14494_v1  ;;  %v1318_v36 = vor.u32 %v1317_v33, %v1313_v32  ;;  %v1423_v43 = vrot.slane %v1421_v38, 1  ;;  %v1535_v48 = vshll.u32 %v14442_v44, 16  ;;  %v14443_v50 = vld [vmem:[%s14546_s19 + $0x1c] ss:$0 sps:$4 sm:$0x77]   ;;  %v1533_v52 = vshrl.u32 %v14442_v44, 16 }
  0x1d   : > { %12926 = vmatprep.subr.bf16.mxu0 %v14494_v1  ;;  %12932 = vmatprep.subr.bf16.mxu1 %v14494_v1  ;;  %v1371_v45 = vor.u32 %v1370_v41, %v1366_v39  ;;  %v1484_v51 = vrot.slane %v1482_v47, 1  ;;  %v14444_v54 = vld [vmem:[%s14546_s19 + $0x20] ss:$0 sps:$4 sm:$0x77]   ;;  %v1588_v57 = vshll.u32 %v14443_v50, 16  ;;  %v1586_v59 = vshrl.u32 %v14443_v50, 16 }
  0x1e   : > { %v1424_v46 = vor.u32 %v1423_v43, %v1419_v42  ;;  %v1537_v53 = vrot.slane %v1535_v48, 1  ;;  %v1641_v58 = vshll.u32 %v14444_v54, 16  ;;  %v1639_v61 = vshrl.u32 %v14444_v54, 16  ;;  %v11990_v5 = vld [vmem:[%s14546_s19 + $0x50] sm:$0x3] }
  0x1f   : > { %v1485_v55 = vor.u32 %v1484_v51, %v1480_v49  ;;  %v1590_v60 = vrot.slane %v1588_v57, 1  ;;  %v11991_v6 = vld [vmem:[%s14546_s19 + $0x54] sm:$0x3]  ;;  %v11923_v7 = vld [vmem:[%s16654_s1 + $0xa] sm:$0x3] }
  0x20   : > { %v1538_v56 = vor.u32 %v1537_v53, %v1533_v52  ;;  %v1643_v62 = vrot.slane %v1641_v58, 1  ;;  %v14774_v11 = vsel %vm216_vm0, %v11923_v7, 0  ;;  %v12001_v17 = vld [vmem:[%s14546_s19 + $0x70] sm:$0x3]  ;;  %v12018_v26 = vld [vmem:[%s14546_s19 + $0x8c] sm:$0x3] }
  0x21   : > { %v1591_v0 = vor.u32 %v1590_v60, %v1586_v59  ;;  %v12019_v27 = vld [vmem:[%s14546_s19 + $0x90] sm:$0x3]  ;;  %v12020_v28 = vld [vmem:[%s14546_s19 + $0x94] sm:$0x3]  ;;  %v12021_v29 = vld [vmem:[%s14546_s19 + $0x98] sm:$0x3] }
  0x22   : > { %12917 = vmatmul.mubr.msk.bf16.vlgmr.msra.gmra.mrb[8].mxu0 %vm212_vm2, %v203_v9  ;;  %12923 = vmatmul.mubr.msk.bf16.vlgmr.msra.gmra.mrb[8].mxu1 %vm212_vm2, %v204_v10  ;;  %v1644_v3 = vor.u32 %v1643_v62, %v1639_v61  ;;  %v11992_v9 = vld [vmem:[%s14546_s19 + $0x58] sm:$0x3]  ;;  %v11993_v10 = vld [vmem:[%s14546_s19 + $0x5c] sm:$0x3] }
  0x23   : > { %12927 = vmatpush3.bf16.msra.mxu0 %v14566_v8  ;;  %12933 = vmatpush3.bf16.msra.mxu1 %v14566_v8  ;;  %v14445_v30 = vld [vmem:[%s14546_s19 + $0x50] ss:$0 sps:$4 sm:$0x77]   ;;  %v14446_v31 = vld [vmem:[%s14546_s19 + $0x54] ss:$0 sps:$4 sm:$0x77]  }
  0x24   : > { %12928 = vmatprep.mubr.msk.bf16.mxu0 %vm14495_vm1, %v14494_v1  ;;  %12934 = vmatprep.mubr.msk.bf16.mxu1 %vm14495_vm1, %v14494_v1  ;;  %v2766_v34 = vshll.u32 %v14445_v30, 16  ;;  %v2764_v42 = vshrl.u32 %v14445_v30, 16  ;;  %v2817_v44 = vshrl.u32 %v14446_v31, 16  ;;  %v14448_v47 = vld [vmem:[%s14546_s19 + $0x5c] ss:$0 sps:$4 sm:$0x77]  }
  0x25   : > { %12938 = vmatprep.subr.bf16.mxu0 %v14494_v1  ;;  %12944 = vmatprep.subr.bf16.mxu1 %v14494_v1  ;;  %v14449_v60 = vld [vmem:[%s14546_s19 + $0x64] ss:$0 sps:$4 sm:$0x77]   ;;  %v14450_v61 = vld [vmem:[%s14546_s19 + $0x68] ss:$0 sps:$4 sm:$0x77]  }
  0x26   : > { %v2768_v43 = vrot.slane %v2766_v34, 1  ;;  %v2986_v7 = vshll.u32 %v14449_v60, 16  ;;  %v14452_v30 = vld [vmem:[%s14546_s19 + $0x70] ss:$0 sps:$4 sm:$0x77]  }
  0x28   : > { %v2769_v52 = vor.u32 %v2768_v43, %v2764_v42 }
  0x2a   : > { %12929 = vmatmul.mubr.msk.bf16.vlgmr.msra.gmra.mrb[12].mxu0 %vm212_vm2, %v205_v13  ;;  %12935 = vmatmul.mubr.msk.bf16.vlgmr.msra.gmra.mrb[12].mxu1 %vm212_vm2, %v206_v14  ;;  %v11998_v13 = vld [vmem:[%s14546_s19 + $0x64] sm:$0x3]  ;;  %v11999_v14 = vld [vmem:[%s14546_s19 + $0x68] sm:$0x3] }
  0x2b   : > { %12939 = vmatpush3.bf16.msra.mxu0 %v14592_v12  ;;  %12945 = vmatpush3.bf16.msra.mxu1 %v14592_v12 }
  0x2c   : > { %12940 = vmatprep.mubr.msk.bf16.mxu0 %vm14495_vm1, %v14494_v1  ;;  %12946 = vmatprep.mubr.msk.bf16.mxu1 %vm14495_vm1, %v14494_v1 }
  0x2d   : > { %12950 = vmatprep.subr.bf16.mxu0 %v14494_v1  ;;  %12956 = vmatprep.subr.bf16.mxu1 %v14494_v1 }
  0x32   : > { %12941 = vmatmul.mubr.msk.bf16.vlgmr.msra.gmra.mrb[16].mxu0 %vm212_vm2, %v11946_v15  ;;  %12947 = vmatmul.mubr.msk.bf16.vlgmr.msra.gmra.mrb[16].mxu1 %vm212_vm2, %v11947_v16 }
  0x33   : > { %12951 = vmatpush3.bf16.msra.mxu0 %v14592_v12  ;;  %12957 = vmatpush3.bf16.msra.mxu1 %v14592_v12 }
  0x34   : > { %12952 = vmatprep.mubr.msk.bf16.mxu0 %vm14495_vm1, %v14494_v1  ;;  %12958 = vmatprep.mubr.msk.bf16.mxu1 %vm14495_vm1, %v14494_v1 }
  0x35   : > { %12962 = vmatprep.subr.bf16.mxu0 %v14494_v1  ;;  %12968 = vmatprep.subr.bf16.mxu1 %v14494_v1 }
  0x3a   : > { %12953 = vmatmul.mubr.msk.bf16.vlgmr.msra.gmra.mrb[20].mxu0 %vm212_vm2, %v11948_v18  ;;  %12959 = vmatmul.mubr.msk.bf16.vlgmr.msra.gmra.mrb[20].mxu1 %vm212_vm2, %v11949_v19 }
  0x3b   : > { %12963 = vmatpush3.bf16.msra.mxu0 %v14626_v20  ;;  %12969 = vmatpush3.bf16.msra.mxu1 %v14626_v20 }
  0x3c   : > { %12964 = vmatprep.mubr.msk.bf16.mxu0 %vm14495_vm1, %v14494_v1  ;;  %12970 = vmatprep.mubr.msk.bf16.mxu1 %vm14495_vm1, %v14494_v1 }
  0x3d   : > { %12974 = vmatprep.subr.bf16.mxu0 %v14494_v1  ;;  %12980 = vmatprep.subr.bf16.mxu1 %v14494_v1 }
  0x42   : > { %12965 = vmatmul.mubr.msk.bf16.vlgmr.msra.gmra.mrb[24].mxu0 %vm212_vm2, %v11954_v21  ;;  %12971 = vmatmul.mubr.msk.bf16.vlgmr.msra.gmra.mrb[24].mxu1 %vm212_vm2, %v11955_v22 }
  0x43   : > { %12975 = vmatpush3.bf16.msra.mxu0 %v14626_v20  ;;  %12981 = vmatpush3.bf16.msra.mxu1 %v14626_v20 }
  0x44   : > { %12976 = vmatprep.mubr.msk.bf16.mxu0 %vm14495_vm1, %v14494_v1  ;;  %12982 = vmatprep.mubr.msk.bf16.mxu1 %vm14495_vm1, %v14494_v1 }
  0x45   : > { %12986 = vmatprep.subr.bf16.mxu0 %v14494_v1  ;;  %12992 = vmatprep.subr.bf16.mxu1 %v14494_v1 }
  0x4a   : > { %12977 = vmatmul.mubr.msk.bf16.vlgmr.msra.gmra.mrb[28].mxu0 %vm212_vm2, %v11956_v23  ;;  %12983 = vmatmul.mubr.msk.bf16.vlgmr.msra.gmra.mrb[28].mxu1 %vm212_vm2, %v11957_v24 }
  0x4b   : > { %12987 = vmatpush3.bf16.msra.mxu0 %v14530_v2  ;;  %12993 = vmatpush3.bf16.msra.mxu1 %v14530_v2 }
  0x4c   : > { %12988 = vmatprep.mubr.msk.bf16.mxu0 %vm14495_vm1, %v14494_v1  ;;  %12994 = vmatprep.mubr.msk.bf16.mxu1 %vm14495_vm1, %v14494_v1 }
  0x4d   : > { %12998 = vmatprep.subr.bf16.mxu0 %v14494_v1  ;;  %13004 = vmatprep.subr.bf16.mxu1 %v14494_v1 }
  0x52   : > { %12989 = vmatmul.mubr.msk.bf16.vlgmr.msra.gmra.mrb[32].mxu0 %vm212_vm2, %v11954_v21  ;;  %12995 = vmatmul.mubr.msk.bf16.vlgmr.msra.gmra.mrb[32].mxu1 %vm212_vm2, %v11955_v22  ;;  %v12007_v21 = vld [vmem:[%s14546_s19 + $0x7c] sm:$0x3]  ;;  %v12008_v22 = vld [vmem:[%s14546_s19 + $0x80] sm:$0x3] }
  0x53   : > { %12999 = vmatpush3.bf16.msra.mxu0 %v14530_v2  ;;  %13005 = vmatpush3.bf16.msra.mxu1 %v14530_v2 }
  0x54   : > { %13000 = vmatprep.mubr.msk.bf16.mxu0 %vm14495_vm1, %v14494_v1  ;;  %13006 = vmatprep.mubr.msk.bf16.mxu1 %vm14495_vm1, %v14494_v1 }
  0x55   : > { %13010 = vmatprep.subr.bf16.mxu0 %v14494_v1  ;;  %13016 = vmatprep.subr.bf16.mxu1 %v14494_v1 }
  0x5a   : > { %13001 = vmatmul.mubr.msk.bf16.vlgmr.msra.gmra.mrb[36].mxu0 %vm212_vm2, %v11956_v23  ;;  %13007 = vmatmul.mubr.msk.bf16.vlgmr.msra.gmra.mrb[36].mxu1 %vm212_vm2, %v11957_v24  ;;  %v12009_v23 = vld [vmem:[%s14546_s19 + $0x84] sm:$0x3]  ;;  %v11925_v24 = vld [vmem:[%s16654_s1 + $0xe] sm:$0x3] }
  0x5b   : > { %13011 = vmatpush3.bf16.msra.mxu0 %v14566_v8  ;;  %13017 = vmatpush3.bf16.msra.mxu1 %v14566_v8  ;;  %v14854_v25 = vsel %vm216_vm0, %v11925_v24, 0  ;;  %v2984_v24 = vshrl.u32 %v14449_v60, 16 }
  0x5c   : > { %13012 = vmatprep.mubr.msk.bf16.mxu0 %vm14495_vm1, %v14494_v1  ;;  %13018 = vmatprep.mubr.msk.bf16.mxu1 %vm14495_vm1, %v14494_v1 }
  0x5d   : > { %13022 = vmatprep.subr.bf16.mxu0 %v14494_v1  ;;  %13028 = vmatprep.subr.bf16.mxu1 %v14494_v1 }
  0x62   : > { %13013 = vmatmul.mubr.msk.bf16.vlgmr.msra.gmra.mrb[40].mxu0 %vm212_vm2, %v11946_v15  ;;  %13019 = vmatmul.mubr.msk.bf16.vlgmr.msra.gmra.mrb[40].mxu1 %vm212_vm2, %v11947_v16  ;;  %v11924_v15 = vld [vmem:[%s16654_s1 + $0xc] sm:$0x3] }
  0x63   : > { %13023 = vmatpush3.bf16.msra.mxu0 %v14566_v8  ;;  %13029 = vmatpush3.bf16.msra.mxu1 %v14566_v8  ;;  %v12000_v16 = vld [vmem:[%s14546_s19 + $0x6c] sm:$0x3] }
  0x64   : > { %13024 = vmatprep.mubr.msk.bf16.mxu0 %vm14495_vm1, %v14494_v1  ;;  %13030 = vmatprep.mubr.msk.bf16.mxu1 %vm14495_vm1, %v14494_v1 }
  0x65   : > { %13034 = vmatprep.subr.bf16.mxu0 %v14494_v1  ;;  %13040 = vmatprep.subr.bf16.mxu1 %v14494_v1 }
  0x6a   : > { %13025 = vmatmul.mubr.msk.bf16.vlgmr.msra.gmra.mrb[44].mxu0 %vm212_vm2, %v11948_v18  ;;  %13031 = vmatmul.mubr.msk.bf16.vlgmr.msra.gmra.mrb[44].mxu1 %vm212_vm2, %v11949_v19  ;;  %v14804_v18 = vsel %vm216_vm0, %v11924_v15, 0  ;;  %v12006_v19 = vld [vmem:[%s14546_s19 + $0x78] sm:$0x3] }
  0x6b   : > { %13035 = vmatpush3.bf16.msra.mxu0 %v14592_v12  ;;  %13041 = vmatpush3.bf16.msra.mxu1 %v14592_v12 }
  0x6c   : > { %13036 = vmatprep.mubr.msk.bf16.mxu0 %vm14495_vm1, %v14494_v1  ;;  %13042 = vmatprep.mubr.msk.bf16.mxu1 %vm14495_vm1, %v14494_v1 }
  0x6d   : > { %13046 = vmatprep.subr.bf16.mxu0 %v14494_v1  ;;  %13052 = vmatprep.subr.bf16.mxu1 %v14494_v1 }
  0x72   : > { %13037 = vmatmul.mubr.msk.bf16.vlgmr.msra.gmra.mrb[48].mxu0 %vm212_vm2, %v1265_v35  ;;  %13043 = vmatmul.mubr.msk.bf16.vlgmr.msra.gmra.mrb[48].mxu1 %vm212_vm2, %v1318_v36  ;;  %v2819_v35 = vshll.u32 %v14446_v31, 16 }
  0x73   : > { %13047 = vmatpush3.bf16.msra.mxu0 %v14592_v12  ;;  %13053 = vmatpush3.bf16.msra.mxu1 %v14592_v12 }
  0x74   : > { %13048 = vmatprep.mubr.msk.bf16.mxu0 %vm14495_vm1, %v14494_v1  ;;  %13054 = vmatprep.mubr.msk.bf16.mxu1 %vm14495_vm1, %v14494_v1 }
  0x75   : > { %13058 = vmatprep.subr.bf16.mxu0 %v14494_v1  ;;  %13064 = vmatprep.subr.bf16.mxu1 %v14494_v1 }
  0x7a   : > { %13049 = vmatmul.mubr.msk.bf16.vlgmr.msra.gmra.mrb[52].mxu0 %vm212_vm2, %v1371_v45  ;;  %13055 = vmatmul.mubr.msk.bf16.vlgmr.msra.gmra.mrb[52].mxu1 %vm212_vm2, %v1424_v46  ;;  %v2821_v45 = vrot.slane %v2819_v35, 1  ;;  %v14447_v46 = vld [vmem:[%s14546_s19 + $0x58] ss:$0 sps:$4 sm:$0x77]  }
  0x7b   : > { %13059 = vmatpush3.bf16.msra.mxu0 %v14626_v20  ;;  %13065 = vmatpush3.bf16.msra.mxu1 %v14626_v20  ;;  %v2872_v54 = vshll.u32 %v14447_v46, 16  ;;  %v2870_v62 = vshrl.u32 %v14447_v46, 16 }
  0x7c   : > { %13060 = vmatprep.mubr.msk.bf16.mxu0 %vm14495_vm1, %v14494_v1  ;;  %13066 = vmatprep.mubr.msk.bf16.mxu1 %vm14495_vm1, %v14494_v1  ;;  %v2822_v53 = vor.u32 %v2821_v45, %v2817_v44 }
  0x7d   : > { %13070 = vmatprep.subr.bf16.mxu0 %v14494_v1  ;;  %13076 = vmatprep.subr.bf16.mxu1 %v14494_v1  ;;  %v2874_v63 = vrot.slane %v2872_v54, 1 }
  0x82   : > { %13061 = vmatmul.mubr.msk.bf16.vlgmr.msra.gmra.mrb[56].mxu0 %vm212_vm2, %v1485_v55  ;;  %13067 = vmatmul.mubr.msk.bf16.vlgmr.msra.gmra.mrb[56].mxu1 %vm212_vm2, %v1538_v56  ;;  %v2925_v55 = vshll.u32 %v14448_v47, 16 }
  0x83   : > { %13071 = vmatpush3.bf16.msra.mxu0 %v14626_v20  ;;  %13077 = vmatpush3.bf16.msra.mxu1 %v14626_v20 }
  0x84   : > { %13072 = vmatprep.mubr.msk.bf16.mxu0 %vm14495_vm1, %v14494_v1  ;;  %13078 = vmatprep.mubr.msk.bf16.mxu1 %vm14495_vm1, %v14494_v1 }
  0x85   : > { %13082 = vmatprep.subr.bf16.mxu0 %v14494_v1  ;;  %13088 = vmatprep.subr.bf16.mxu1 %v14494_v1 }
  0x8a   : > { %13073 = vmatmul.mubr.msk.bf16.vlgmr.msra.gmra.mrb[60].mxu0 %vm212_vm2, %v1591_v0  ;;  %13079 = vmatmul.mubr.msk.bf16.vlgmr.msra.gmra.mrb[60].mxu1 %vm212_vm2, %v1644_v3  ;;  %v2923_v0 = vshrl.u32 %v14448_v47, 16  ;;  %v2927_v3 = vrot.slane %v2925_v55, 1  ;;  %v3143_v47 = vshrl.u32 %v14452_v30, 16 }
  0x8b   : > { %13083 = vmatpush3.bf16.msra.mxu0 %v14744_v4  ;;  %13089 = vmatpush3.bf16.msra.mxu1 %v14744_v4 }
  0x8c   : > { %13084 = vmatprep.mubr.msk.bf16.mxu0 %vm14495_vm1, %v14494_v1  ;;  %13090 = vmatprep.mubr.msk.bf16.mxu1 %vm14495_vm1, %v14494_v1 }
  0x8d   : > { %13094 = vmatprep.subr.bf16.mxu0 %v14494_v1  ;;  %13100 = vmatprep.subr.bf16.mxu1 %v14494_v1 }
  0x92   : > { %13085 = vmatmul.mubr.msk.bf16.vlgmr.msra.gmra.mrb[64].mxu0 %vm212_vm2, %v11990_v5  ;;  %13091 = vmatmul.mubr.msk.bf16.vlgmr.msra.gmra.mrb[64].mxu1 %vm212_vm2, %v11991_v6 }
  0x93   : > { %13095 = vmatpush3.bf16.msra.mxu0 %v14744_v4  ;;  %13101 = vmatpush3.bf16.msra.mxu1 %v14744_v4 }
  0x94   : > { %13096 = vmatprep.mubr.msk.bf16.mxu0 %vm14495_vm1, %v14494_v1  ;;  %13102 = vmatprep.mubr.msk.bf16.mxu1 %vm14495_vm1, %v14494_v1 }
  0x95   : > { %13106 = vmatprep.subr.bf16.mxu0 %v14494_v1  ;;  %13112 = vmatprep.subr.bf16.mxu1 %v14494_v1 }
  0x9a   : > { %13097 = vmatmul.mubr.msk.bf16.vlgmr.msra.gmra.mrb[68].mxu0 %vm212_vm2, %v11992_v9  ;;  %13103 = vmatmul.mubr.msk.bf16.vlgmr.msra.gmra.mrb[68].mxu1 %vm212_vm2, %v11993_v10  ;;  %v3039_v9 = vshll.u32 %v14450_v61, 16 }
  0x9b   : > { %13107 = vmatpush3.bf16.msra.mxu0 %v14774_v11  ;;  %13113 = vmatpush3.bf16.msra.mxu1 %v14774_v11 }
  0x9c   : > { %13108 = vmatprep.mubr.msk.bf16.mxu0 %vm14495_vm1, %v14494_v1  ;;  %13114 = vmatprep.mubr.msk.bf16.mxu1 %vm14495_vm1, %v14494_v1 }
  0x9d   : > { %13118 = vmatprep.subr.bf16.mxu0 %v14494_v1  ;;  %13124 = vmatprep.subr.bf16.mxu1 %v14494_v1 }
  0xa2   : > { %13109 = vmatmul.mubr.msk.bf16.vlgmr.msra.gmra.mrb[72].mxu0 %vm212_vm2, %v11998_v13  ;;  %13115 = vmatmul.mubr.msk.bf16.vlgmr.msra.gmra.mrb[72].mxu1 %vm212_vm2, %v11999_v14 }
  0xa3   : > { %13119 = vmatpush3.bf16.msra.mxu0 %v14774_v11  ;;  %13125 = vmatpush3.bf16.msra.mxu1 %v14774_v11 }
  0xa4   : > { %13120 = vmatprep.mubr.msk.bf16.mxu0 %vm14495_vm1, %v14494_v1  ;;  %13126 = vmatprep.mubr.msk.bf16.mxu1 %vm14495_vm1, %v14494_v1 }
  0xa5   : > { %13130 = vmatprep.subr.bf16.mxu0 %v14494_v1  ;;  %13136 = vmatprep.subr.bf16.mxu1 %v14494_v1 }
  0xaa   : > { %13121 = vmatmul.mubr.msk.bf16.vlgmr.msra.gmra.mrb[76].mxu0 %vm212_vm2, %v12000_v16  ;;  %13127 = vmatmul.mubr.msk.bf16.vlgmr.msra.gmra.mrb[76].mxu1 %vm212_vm2, %v12001_v17  ;;  %v2875_v16 = vor.u32 %v2874_v63, %v2870_v62  ;;  %v2928_v17 = vor.u32 %v2927_v3, %v2923_v0 }
  0xab   : > { %13131 = vmatpush3.bf16.msra.mxu0 %v14804_v18  ;;  %13137 = vmatpush3.bf16.msra.mxu1 %v14804_v18 }
  0xac   : > { %13132 = vmatprep.mubr.msk.bf16.mxu0 %vm14495_vm1, %v14494_v1  ;;  %13138 = vmatprep.mubr.msk.bf16.mxu1 %vm14495_vm1, %v14494_v1 }
  0xad   : > { %13142 = vmatprep.subr.bf16.mxu0 %v14494_v1  ;;  %13148 = vmatprep.subr.bf16.mxu1 %v14494_v1 }
  0xb2   : > { %13133 = vmatmul.mubr.msk.bf16.vlgmr.msra.gmra.mrb[80].mxu0 %vm212_vm2, %v12006_v19  ;;  %13139 = vmatmul.mubr.msk.bf16.vlgmr.msra.gmra.mrb[80].mxu1 %vm212_vm2, %v12007_v21 }
  0xb3   : > { %13143 = vmatpush3.bf16.msra.mxu0 %v14804_v18  ;;  %13149 = vmatpush3.bf16.msra.mxu1 %v14804_v18 }
  0xb4   : > { %13144 = vmatprep.mubr.msk.bf16.mxu0 %vm14495_vm1, %v14494_v1  ;;  %13150 = vmatprep.mubr.msk.bf16.mxu1 %vm14495_vm1, %v14494_v1 }
  0xb5   : > { %13154 = vmatprep.subr.bf16.mxu0 %v14494_v1  ;;  %13160 = vmatprep.subr.bf16.mxu1 %v14494_v1 }
  0xba   : > { %13145 = vmatmul.mubr.msk.bf16.vlgmr.msra.gmra.mrb[84].mxu0 %vm212_vm2, %v12008_v22  ;;  %13151 = vmatmul.mubr.msk.bf16.vlgmr.msra.gmra.mrb[84].mxu1 %vm212_vm2, %v12009_v23 }
  0xbb   : > { %13155 = vmatpush3.bf16.msra.mxu0 %v14744_v4  ;;  %13161 = vmatpush3.bf16.msra.mxu1 %v14744_v4 }
  0xbc   : > { %13156 = vmatprep.mubr.msk.bf16.mxu0 %vm14495_vm1, %v14494_v1  ;;  %13162 = vmatprep.mubr.msk.bf16.mxu1 %vm14495_vm1, %v14494_v1 }
  0xbd   : > { %13166 = vmatprep.subr.bf16.mxu0 %v14494_v1  ;;  %13172 = vmatprep.subr.bf16.mxu1 %v14494_v1 }
  0xc2   : > { %13157 = vmatmul.mubr.msk.bf16.vlgmr.msra.gmra.mrb[88].mxu0 %vm212_vm2, %v12006_v19  ;;  %13163 = vmatmul.mubr.msk.bf16.vlgmr.msra.gmra.mrb[88].mxu1 %vm212_vm2, %v12007_v21 }
  0xc3   : > { %13167 = vmatpush3.bf16.msra.mxu0 %v14744_v4  ;;  %13173 = vmatpush3.bf16.msra.mxu1 %v14744_v4 }
  0xc4   : > { %13168 = vmatprep.mubr.msk.bf16.mxu0 %vm14495_vm1, %v14494_v1  ;;  %13174 = vmatprep.mubr.msk.bf16.mxu1 %vm14495_vm1, %v14494_v1 }
  0xc5   : > { %13178 = vmatprep.subr.bf16.mxu0 %v14494_v1  ;;  %13184 = vmatprep.subr.bf16.mxu1 %v14494_v1 }
  0xca   : > { %13169 = vmatmul.mubr.msk.bf16.vlgmr.msra.gmra.mrb[92].mxu0 %vm212_vm2, %v12008_v22  ;;  %13175 = vmatmul.mubr.msk.bf16.vlgmr.msra.gmra.mrb[92].mxu1 %vm212_vm2, %v12009_v23 }
  0xcb   : > { %13179 = vmatpush3.bf16.msra.mxu0 %v14854_v25  ;;  %13185 = vmatpush3.bf16.msra.mxu1 %v14854_v25 }
  0xcc   : > { %13180 = vmatprep.mubr.msk.bf16.mxu0 %vm14495_vm1, %v14494_v1  ;;  %13186 = vmatprep.mubr.msk.bf16.mxu1 %vm14495_vm1, %v14494_v1 }
  0xcd   : > { %13190 = vmatprep.subr.bf16.mxu0 %v14494_v1  ;;  %13196 = vmatprep.subr.bf16.mxu1 %v14494_v1 }
  0xd2   : > { %13181 = vmatmul.mubr.msk.bf16.vlgmr.msra.gmra.mrb[96].mxu0 %vm212_vm2, %v12018_v26  ;;  %13187 = vmatmul.mubr.msk.bf16.vlgmr.msra.gmra.mrb[96].mxu1 %vm212_vm2, %v12019_v27 }
  0xd3   : > { %13191 = vmatpush3.bf16.msra.mxu0 %v14854_v25  ;;  %13197 = vmatpush3.bf16.msra.mxu1 %v14854_v25 }
  0xd4   : > { %13192 = vmatprep.mubr.msk.bf16.mxu0 %vm14495_vm1, %v14494_v1  ;;  %13198 = vmatprep.mubr.msk.bf16.mxu1 %vm14495_vm1, %v14494_v1 }
  0xd5   : > { %13202 = vmatprep.subr.bf16.mxu0 %v14494_v1  ;;  %13208 = vmatprep.subr.bf16.mxu1 %v14494_v1 }
  0xda   : > { %13193 = vmatmul.mubr.msk.bf16.vlgmr.msra.gmra.mrb[100].mxu0 %vm212_vm2, %v12020_v28  ;;  %13199 = vmatmul.mubr.msk.bf16.vlgmr.msra.gmra.mrb[100].mxu1 %vm212_vm2, %v12021_v29 }
  0xdb   : > { %13203 = vmatpush3.bf16.msra.mxu0 %v14774_v11  ;;  %13209 = vmatpush3.bf16.msra.mxu1 %v14774_v11 }
  0xdc   : > { %13204 = vmatprep.mubr.msk.bf16.mxu0 %vm14495_vm1, %v14494_v1  ;;  %13210 = vmatprep.mubr.msk.bf16.mxu1 %vm14495_vm1, %v14494_v1 }
  0xdd   : > { %13214 = vmatprep.subr.bf16.mxu0 %v14494_v1  ;;  %13220 = vmatprep.subr.bf16.mxu1 %v14494_v1 }
  0xe2   : > { %13205 = vmatmul.mubr.msk.bf16.vlgmr.msra.gmra.mrb[104].mxu0 %vm212_vm2, %v12018_v26  ;;  %13211 = vmatmul.mubr.msk.bf16.vlgmr.msra.gmra.mrb[104].mxu1 %vm212_vm2, %v12019_v27  ;;  %v2988_v26 = vrot.slane %v2986_v7, 1  ;;  %v3037_v27 = vshrl.u32 %v14450_v61, 16 }
  0xe3   : > { %13215 = vmatpush3.bf16.msra.mxu0 %v14774_v11  ;;  %13221 = vmatpush3.bf16.msra.mxu1 %v14774_v11 }
  0xe4   : > { %13216 = vmatprep.mubr.msk.bf16.mxu0 %vm14495_vm1, %v14494_v1  ;;  %13222 = vmatprep.mubr.msk.bf16.mxu1 %vm14495_vm1, %v14494_v1 }
  0xe5   : > { %v254_v32 = vpop.f32.mrb[0].mxu0  ;;  %v297_v33 = vpop.f32.mrb[0].mxu1  ;;  %13226 = vmatprep.subr.bf16.mxu0 %v14494_v1  ;;  %13232 = vmatprep.subr.bf16.mxu1 %v14494_v1 }
  0xe6   : > { %v12894_v36 = vpop.f32.mrb[1].mxu0  ;;  %v12900_v37 = vpop.f32.mrb[1].mxu1 }
  0xe7   : > { %v257_v38 = vpop.f32.mrb[2].mxu0  ;;  %v300_v39 = vpop.f32.mrb[2].mxu1 }
  0xe8   : > { %v12895_v40 = vpop.f32.mrb[3].mxu0  ;;  %v12901_v41 = vpop.f32.mrb[3].mxu1 }
  0xe9   : > { %v3145_v40 = vshll.u32 %v14452_v30, 16  ;;  %v14993_v30 = vld [vmem:[%s14546_s19 + $0xac] sm:$0x3] }
  0xea   : > { %13217 = vmatmul.mubr.msk.bf16.vlgmr.msra.gmra.mrb[108].mxu0 %vm212_vm2, %v12020_v28  ;;  %13223 = vmatmul.mubr.msk.bf16.vlgmr.msra.gmra.mrb[108].mxu1 %vm212_vm2, %v12021_v29  ;;  %v3041_v28 = vrot.slane %v3039_v9, 1  ;;  %v14451_v29 = vld [vmem:[%s14546_s19 + $0x6c] ss:$0 sps:$4 sm:$0x77]  }
  0xeb   : > { %13227 = vmatpush3.bf16.msra.mxu0 %v14804_v18  ;;  %13233 = vmatpush3.bf16.msra.mxu1 %v14804_v18  ;;  %v3092_v39 = vshll.u32 %v14451_v29, 16  ;;  %v3090_v45 = vshrl.u32 %v14451_v29, 16  ;;  %v14990_v29 = vld [vmem:[%s14546_s19 + $0xa8] sm:$0x3] }
  0xec   : > { %13228 = vmatprep.mubr.msk.bf16.mxu0 %vm14495_vm1, %v14494_v1  ;;  %13234 = vmatprep.mubr.msk.bf16.mxu1 %vm14495_vm1, %v14494_v1  ;;  %v3042_v34 = vor.u32 %v3041_v28, %v3037_v27 }
  0xed   : > { %v340_v48 = vpop.f32.mrb[4].mxu0  ;;  %v383_v49 = vpop.f32.mrb[4].mxu1  ;;  %13238 = vmatprep.subr.bf16.mxu0 %v14494_v1  ;;  %13244 = vmatprep.subr.bf16.mxu1 %v14494_v1  ;;  %v3094_v46 = vrot.slane %v3092_v39, 1 }
  0xee   : > { %v12906_v50 = vpop.f32.mrb[5].mxu0  ;;  %v12912_v51 = vpop.f32.mrb[5].mxu1 }
  0xef   : > { %v343_v56 = vpop.f32.mrb[6].mxu0  ;;  %v386_v57 = vpop.f32.mrb[6].mxu1  ;;  %v3147_v50 = vrot.slane %v3145_v40, 1  ;;  %v11926_v51 = vld [vmem:[%s16654_s1 + $0x10] sm:$0x3] }
  0xf0   : > { %v12907_v58 = vpop.f32.mrb[7].mxu0  ;;  %v12913_v59 = vpop.f32.mrb[7].mxu1  ;;  %v3095_v56 = vor.u32 %v3094_v46, %v3090_v45  ;;  %v14952_v62 = vsel %vm216_vm0, %v11926_v51, 0 }
  0xf1   : > { %v3148_v57 = vor.u32 %v3147_v50, %v3143_v47 }
  0xf2   : > { %13229 = vmatmul.mubr.msk.bf16.vlgmr.msra.gmra.mrb[112].mxu0 %vm212_vm2, %v2769_v52  ;;  %13235 = vmatmul.mubr.msk.bf16.vlgmr.msra.gmra.mrb[112].mxu1 %vm212_vm2, %v2822_v53 }
  0xf3   : > { %13239 = vmatpush3.bf16.msra.mxu0 %v14804_v18  ;;  %13245 = vmatpush3.bf16.msra.mxu1 %v14804_v18 }
  0xf4   : > { %13240 = vmatprep.mubr.msk.bf16.mxu0 %vm14495_vm1, %v14494_v1  ;;  %13246 = vmatprep.mubr.msk.bf16.mxu1 %vm14495_vm1, %v14494_v1 }
  0xf5   : > { %v429_v5 = vpop.f32.mrb[8].mxu0  ;;  %v472_v6 = vpop.f32.mrb[8].mxu1  ;;  %13250 = vmatprep.subr.bf16.mxu0 %v14494_v1  ;;  %13256 = vmatprep.subr.bf16.mxu1 %v14494_v1 }
  0xf6   : > { %v430_v10 = vadd.f32 %v429_v5, %v254_v32  ;;  %v473_v13 = vadd.f32 %v472_v6, %v297_v33  ;;  %v12918_v14 = vpop.f32.mrb[9].mxu0  ;;  %v12924_v15 = vpop.f32.mrb[9].mxu1  ;;  %v2989_v33 = vor.u32 %v2988_v26, %v2984_v24 }
  0xf7   : > { %v432_v19 = vpop.f32.mrb[10].mxu0  ;;  %v475_v21 = vpop.f32.mrb[10].mxu1  ;;  %v14968_v14 = vld [vmem:[%s14546_s19 + $0xa4] sm:$0x3] }
  0xf8   : > { %v12919_v22 = vpop.f32.mrb[11].mxu0  ;;  %v12925_v23 = vpop.f32.mrb[11].mxu1  ;;  %v11927_v21 = vld [vmem:[%s16654_s1 + $0x12] sm:$0x3] }
  0xfa   : > { %13241 = vmatmul.mubr.msk.bf16.vlgmr.msra.gmra.mrb[116].mxu0 %vm212_vm2, %v2875_v16  ;;  %13247 = vmatmul.mubr.msk.bf16.vlgmr.msra.gmra.mrb[116].mxu1 %vm212_vm2, %v2928_v17 }
  0xfb   : > { %13251 = vmatpush3.bf16.msra.mxu0 %v14854_v25  ;;  %13257 = vmatpush3.bf16.msra.mxu1 %v14854_v25 }
  0xfc   : > { %13252 = vmatprep.mubr.msk.bf16.mxu0 %vm14495_vm1, %v14494_v1  ;;  %13258 = vmatprep.mubr.msk.bf16.mxu1 %vm14495_vm1, %v14494_v1 }
  0xfd   : > { %v515_v31 = vpop.f32.mrb[12].mxu0  ;;  %v558_v32 = vpop.f32.mrb[12].mxu1  ;;  %13262 = vmatprep.subr.bf16.mxu0 %v14494_v1  ;;  %13268 = vmatprep.subr.bf16.mxu1 %v14494_v1 }
  0xfe   : > { %v516_v35 = vadd.f32 %v515_v31, %v340_v48  ;;  %v559_v36 = vadd.f32 %v558_v32, %v383_v49  ;;  %v12930_v37 = vpop.f32.mrb[13].mxu0  ;;  %v12936_v38 = vpop.f32.mrb[13].mxu1 }
  0xff   : > { %v518_v41 = vpop.f32.mrb[14].mxu0  ;;  %v561_v42 = vpop.f32.mrb[14].mxu1 }
 0x100   : > { %v12931_v43 = vpop.f32.mrb[15].mxu0  ;;  %v12937_v44 = vpop.f32.mrb[15].mxu1  ;;  %v12062_v42 = vld [vmem:[%s14546_s19 + $0xb4] sm:$0x3] }
 0x101   : > { %v12063_v43 = vld [vmem:[%s14546_s19 + $0xb8] sm:$0x3] }
 0x102   : > { %13253 = vmatmul.mubr.msk.bf16.vlgmr.msra.gmra.mrb[120].mxu0 %vm212_vm2, %v2989_v33  ;;  %13259 = vmatmul.mubr.msk.bf16.vlgmr.msra.gmra.mrb[120].mxu1 %vm212_vm2, %v3042_v34  ;;  %v14996_v33 = vsel %vm216_vm0, %v11927_v21, 0 }
 0x103   : > { %13263 = vmatpush3.bf16.msra.mxu0 %v14854_v25  ;;  %13269 = vmatpush3.bf16.msra.mxu1 %v14854_v25 }
 0x104   : > { %13264 = vmatprep.mubr.msk.bf16.mxu0 %vm14495_vm1, %v14494_v1  ;;  %13270 = vmatprep.mubr.msk.bf16.mxu1 %vm14495_vm1, %v14494_v1 }
 0x105   : > { %v609_v48 = vpop.f32.mrb[16].mxu0  ;;  %v652_v49 = vpop.f32.mrb[16].mxu1  ;;  %13274 = vmatprep.subr.bf16.mxu0 %v14494_v1  ;;  %13280 = vmatprep.subr.bf16.mxu1 %v14494_v1 }
 0x106   : > { %v744_v52 = vadd.f32 %v609_v48, %v430_v10  ;;  %v745_v53 = vadd.f32 %v652_v49, %v473_v13  ;;  %v12942_v54 = vpop.f32.mrb[17].mxu0  ;;  %v12948_v55 = vpop.f32.mrb[17].mxu1  ;;  %v14965_v13 = vld [vmem:[%s14546_s19 + $0xa0] sm:$0x3] }
 0x107   : > { %v612_v58 = vpop.f32.mrb[18].mxu0  ;;  %v655_v59 = vpop.f32.mrb[18].mxu1 }
 0x108   : > { %v12943_v60 = vpop.f32.mrb[19].mxu0  ;;  %v12949_v61 = vpop.f32.mrb[19].mxu1 }
 0x10a   : > { %13265 = vmatmul.mubr.msk.bf16.vlgmr.msra.gmra.mrb[124].mxu0 %vm212_vm2, %v3095_v56  ;;  %13271 = vmatmul.mubr.msk.bf16.vlgmr.msra.gmra.mrb[124].mxu1 %vm212_vm2, %v3148_v57 }
 0x10b   : > { %13275 = vmatpush3.bf16.msra.mxu0 %v14952_v62  ;;  %13281 = vmatpush3.bf16.msra.mxu1 %v14952_v62 }
 0x10c   : > { %13276 = vmatprep.mubr.msk.bf16.mxu0 %vm14495_vm1, %v14494_v1  ;;  %13282 = vmatprep.mubr.msk.bf16.mxu1 %vm14495_vm1, %v14494_v1 }
 0x10d   : > { %v695_v63 = vpop.f32.mrb[20].mxu0  ;;  %v738_v0 = vpop.f32.mrb[20].mxu1  ;;  %13286 = vmatprep.subr.bf16.mxu0 %v14494_v1  ;;  %13292 = vmatprep.subr.bf16.mxu1 %v14494_v1 }
 0x10e   : > { %v746_v3 = vadd.f32 %v695_v63, %v516_v35  ;;  %v747_v5 = vadd.f32 %v738_v0, %v559_v36  ;;  %v12954_v6 = vpop.f32.mrb[21].mxu0  ;;  %v12960_v7 = vpop.f32.mrb[21].mxu1 }
 0x10f   : > { %v698_v9 = vpop.f32.mrb[22].mxu0  ;;  %v741_v10 = vpop.f32.mrb[22].mxu1 }
 0x110   : > { %v12955_v15 = vpop.f32.mrb[23].mxu0  ;;  %v12961_v16 = vpop.f32.mrb[23].mxu1 }
 0x112   : > { %13277 = vmatmul.mubr.msk.bf16.vlgmr.msra.gmra.mrb[128].mxu0 %vm212_vm2, %v14965_v13  ;;  %13283 = vmatmul.mubr.msk.bf16.vlgmr.msra.gmra.mrb[128].mxu1 %vm212_vm2, %v14968_v14 }
 0x113   : > { %13287 = vmatpush3.bf16.msra.mxu0 %v14952_v62  ;;  %13293 = vmatpush3.bf16.msra.mxu1 %v14952_v62 }
 0x114   : > { %13288 = vmatprep.mubr.msk.bf16.mxu0 %vm14495_vm1, %v14494_v1  ;;  %13294 = vmatprep.mubr.msk.bf16.mxu1 %vm14495_vm1, %v14494_v1 }
 0x115   : > { %v793_v17 = vpop.f32.mrb[24].mxu0  ;;  %v836_v19 = vpop.f32.mrb[24].mxu1  ;;  %13298 = vmatprep.subr.bf16.mxu0 %v14494_v1  ;;  %13304 = vmatprep.subr.bf16.mxu1 %v14494_v1 }
 0x116   : > { %v14985_v22 = vadd.f32 %v793_v17, %v744_v52  ;;  %v14987_v23 = vadd.f32 %v836_v19, %v745_v53  ;;  %v12966_v24 = vpop.f32.mrb[25].mxu0  ;;  %v12972_v26 = vpop.f32.mrb[25].mxu1  ;;  %v12064_v52 = vld [vmem:[%s14546_s19 + $0xbc] sm:$0x3]  ;;  %v12065_v53 = vld [vmem:[%s14546_s19 + $0xc0] sm:$0x3] }
 0x117   : > { %v796_v27 = vpop.f32.mrb[26].mxu0  ;;  %v839_v28 = vpop.f32.mrb[26].mxu1 }
 0x118   : > { %v12967_v31 = vpop.f32.mrb[27].mxu0  ;;  %v12973_v32 = vpop.f32.mrb[27].mxu1 }
 0x11a   : > { %13289 = vmatmul.mubr.msk.bf16.vlgmr.msra.gmra.mrb[132].mxu0 %vm212_vm2, %v14990_v29  ;;  %13295 = vmatmul.mubr.msk.bf16.vlgmr.msra.gmra.mrb[132].mxu1 %vm212_vm2, %v14993_v30 }
 0x11b   : > { %13299 = vmatpush3.bf16.msra.mxu0 %v14996_v33  ;;  %13305 = vmatpush3.bf16.msra.mxu1 %v14996_v33 }
 0x11c   : > { %13300 = vmatprep.mubr.msk.bf16.mxu0 %vm14495_vm1, %v14494_v1  ;;  %13306 = vmatprep.mubr.msk.bf16.mxu1 %vm14495_vm1, %v14494_v1 }
 0x11d   : > { %v879_v34 = vpop.f32.mrb[28].mxu0  ;;  %v922_v35 = vpop.f32.mrb[28].mxu1  ;;  %13310 = vmatprep.subr.bf16.mxu0 %v14494_v1  ;;  %13316 = vmatprep.subr.bf16.mxu1 %v14494_v1 }
 0x11e   : > { %v15010_v36 = vadd.f32 %v879_v34, %v746_v3  ;;  %v15012_v37 = vadd.f32 %v922_v35, %v747_v5  ;;  %v12978_v38 = vpop.f32.mrb[29].mxu0  ;;  %v12984_v39 = vpop.f32.mrb[29].mxu1 }
 0x11f   : > { %v882_v40 = vpop.f32.mrb[30].mxu0  ;;  %v925_v41 = vpop.f32.mrb[30].mxu1 }
 0x120   : > { %v12979_v44 = vpop.f32.mrb[31].mxu0  ;;  %v12985_v45 = vpop.f32.mrb[31].mxu1 }
 0x122   : > { %13301 = vmatmul.mubr.msk.bf16.vlgmr.msra.gmra.mrb[136].mxu0 %vm212_vm2, %v12062_v42  ;;  %13307 = vmatmul.mubr.msk.bf16.vlgmr.msra.gmra.mrb[136].mxu1 %vm212_vm2, %v12063_v43 }
 0x123   : > { %13311 = vmatpush3.bf16.msra.mxu0 %v14996_v33  ;;  %13317 = vmatpush3.bf16.msra.mxu1 %v14996_v33 }
 0x124   : > { %13312 = vmatprep.mubr.msk.bf16.mxu0 %vm14495_vm1, %v14494_v1  ;;  %13318 = vmatprep.mubr.msk.bf16.mxu1 %vm14495_vm1, %v14494_v1 }
 0x125   : > { %v966_v46 = vpop.f32.mrb[32].mxu0  ;;  %v1006_v47 = vpop.f32.mrb[32].mxu1  ;;  %13322 = vmatprep.subr.bf16.mxu0 %v14494_v1  ;;  %13328 = vmatprep.subr.bf16.mxu1 %v14494_v1 }
 0x126   : > { %v12990_v50 = vpop.f32.mrb[33].mxu0  ;;  %v12996_v48 = vpop.f32.mrb[33].mxu1 }
 0x127   : > { %v969_v49 = vpop.f32.mrb[34].mxu0  ;;  %v1009_v51 = vpop.f32.mrb[34].mxu1 }
 0x128   : > { %v12991_v54 = vpop.f32.mrb[35].mxu0  ;;  %v12997_v55 = vpop.f32.mrb[35].mxu1 }
 0x129   : > { %v15089_v55 = vld [vmem:[%s14546_s19 + $0xc8] sm:$0x3] }
 0x12a   : > { %13313 = vmatmul.mubr.msk.bf16.vlgmr.msra.gmra.mrb[140].mxu0 %vm212_vm2, %v12064_v52  ;;  %13319 = vmatmul.mubr.msk.bf16.vlgmr.msra.gmra.mrb[140].mxu1 %vm212_vm2, %v12065_v53 }
 0x12b   : > { %13323 = vmatpush3.bf16.msra.mxu0 %v14530_v2  ;;  %13329 = vmatpush3.bf16.msra.mxu1 %v14530_v2 }
 0x12c   : > { %13324 = vmatprep.mubr.msk.bf16.mxu0 %vm14495_vm1, %v14494_v1  ;;  %13330 = vmatprep.mubr.msk.bf16.mxu1 %vm14495_vm1, %v14494_v1 }
 0x12d   : > { %v1046_v56 = vpop.f32.mrb[36].mxu0  ;;  %v1086_v57 = vpop.f32.mrb[36].mxu1  ;;  %13334 = vmatprep.subr.bf16.mxu0 %v14494_v1  ;;  %13340 = vmatprep.subr.bf16.mxu1 %v14494_v1 }
 0x12e   : > { %v13002_v58 = vpop.f32.mrb[37].mxu0  ;;  %v13008_v59 = vpop.f32.mrb[37].mxu1 }
 0x12f   : > { %v1049_v60 = vpop.f32.mrb[38].mxu0  ;;  %v1089_v61 = vpop.f32.mrb[38].mxu1 }
 0x130   : > { %v13003_v63 = vpop.f32.mrb[39].mxu0  ;;  %v13009_v0 = vpop.f32.mrb[39].mxu1 }
 0x132   : > { %13325 = vmatmul.mubr.msk.bf16.vlgmr.msra.gmra.mrb[144].mxu0 %vm212_vm2, %v12062_v42  ;;  %13331 = vmatmul.mubr.msk.bf16.vlgmr.msra.gmra.mrb[144].mxu1 %vm212_vm2, %v12063_v43 }
 0x133   : > { %13335 = vmatpush3.bf16.msra.mxu0 %v14530_v2  ;;  %13341 = vmatpush3.bf16.msra.mxu1 %v14530_v2 }
 0x134   : > { %13336 = vmatprep.mubr.msk.bf16.mxu0 %vm14495_vm1, %v14494_v1  ;;  %13342 = vmatprep.mubr.msk.bf16.mxu1 %vm14495_vm1, %v14494_v1 }
 0x135   : > { %v1126_v3 = vpop.f32.mrb[40].mxu0  ;;  %v1166_v5 = vpop.f32.mrb[40].mxu1  ;;  %13346 = vmatprep.subr.bf16.mxu0 %v14494_v1  ;;  %13352 = vmatprep.subr.bf16.mxu1 %v14494_v1 }
 0x136   : > { %v1127_v6 = vadd.f32 %v1126_v3, %v966_v46  ;;  %v1167_v7 = vadd.f32 %v1166_v5, %v1006_v47  ;;  %v13014_v9 = vpop.f32.mrb[41].mxu0  ;;  %v13020_v10 = vpop.f32.mrb[41].mxu1 }
 0x137   : > { %v1129_v15 = vpop.f32.mrb[42].mxu0  ;;  %v1169_v16 = vpop.f32.mrb[42].mxu1  ;;  %v15114_v9 = vld [vmem:[%s14546_s19 + $0xd4] sm:$0x3] }
 0x138   : > { %v13015_v17 = vpop.f32.mrb[43].mxu0  ;;  %v13021_v19 = vpop.f32.mrb[43].mxu1 }
 0x13a   : > { %13337 = vmatmul.mubr.msk.bf16.vlgmr.msra.gmra.mrb[148].mxu0 %vm212_vm2, %v12064_v52  ;;  %13343 = vmatmul.mubr.msk.bf16.vlgmr.msra.gmra.mrb[148].mxu1 %vm212_vm2, %v12065_v53 }
 0x13b   : > { %13347 = vmatpush3.bf16.msra.mxu0 %v14566_v8  ;;  %13353 = vmatpush3.bf16.msra.mxu1 %v14566_v8 }
 0x13c   : > { %13348 = vmatprep.mubr.msk.bf16.mxu0 %vm14495_vm1, %v14494_v1  ;;  %13354 = vmatprep.mubr.msk.bf16.mxu1 %vm14495_vm1, %v14494_v1 }
 0x13d   : > { %v1206_v21 = vpop.f32.mrb[44].mxu0  ;;  %v1246_v24 = vpop.f32.mrb[44].mxu1  ;;  %13358 = vmatprep.subr.bf16.mxu0 %v14494_v1  ;;  %13364 = vmatprep.subr.bf16.mxu1 %v14494_v1 }
 0x13e   : > { %v1207_v26 = vadd.f32 %v1206_v21, %v1046_v56  ;;  %v1247_v27 = vadd.f32 %v1246_v24, %v1086_v57  ;;  %v13026_v28 = vpop.f32.mrb[45].mxu0  ;;  %v13032_v31 = vpop.f32.mrb[45].mxu1  ;;  %v15092_v56 = vld [vmem:[%s14546_s19 + $0xcc] sm:$0x3] }
 0x13f   : > { %v1209_v32 = vpop.f32.mrb[46].mxu0  ;;  %v1249_v34 = vpop.f32.mrb[46].mxu1 }
 0x140   : > { %v13027_v35 = vpop.f32.mrb[47].mxu0  ;;  %v13033_v38 = vpop.f32.mrb[47].mxu1 }
 0x142   : > { %13349 = vmatmul.mubr.msk.bf16.vlgmr.msra.gmra.mrb[152].mxu0 %vm212_vm2, %v14965_v13  ;;  %13355 = vmatmul.mubr.msk.bf16.vlgmr.msra.gmra.mrb[152].mxu1 %vm212_vm2, %v14968_v14  ;;  %v11928_v13 = vld [vmem:[%s16654_s1 + $0x14] sm:$0x3] }
 0x143   : > { %13359 = vmatpush3.bf16.msra.mxu0 %v14566_v8  ;;  %13365 = vmatpush3.bf16.msra.mxu1 %v14566_v8  ;;  %v15074_v50 = vsel %vm216_vm0, %v11928_v13, 0 }
 0x144   : > { %13360 = vmatprep.mubr.msk.bf16.mxu0 %vm14495_vm1, %v14494_v1  ;;  %13366 = vmatprep.mubr.msk.bf16.mxu1 %vm14495_vm1, %v14494_v1 }
 0x145   : > { %v1303_v39 = vpop.f32.mrb[48].mxu0  ;;  %v1356_v40 = vpop.f32.mrb[48].mxu1  ;;  %13370 = vmatprep.subr.bf16.mxu0 %v14494_v1  ;;  %13376 = vmatprep.subr.bf16.mxu1 %v14494_v1 }
 0x146   : > { %v1468_v14 = vadd.f32 %v1303_v39, %v1127_v6  ;;  %v1469_v41 = vadd.f32 %v1356_v40, %v1167_v7  ;;  %v13038_v42 = vpop.f32.mrb[49].mxu0  ;;  %v13044_v43 = vpop.f32.mrb[49].mxu1  ;;  %v15111_v7 = vld [vmem:[%s14546_s19 + $0xd0] sm:$0x3] }
 0x147   : > { %v1306_v44 = vpop.f32.mrb[50].mxu0  ;;  %v1359_v45 = vpop.f32.mrb[50].mxu1 }
 0x148   : > { %v13039_v46 = vpop.f32.mrb[51].mxu0  ;;  %v13045_v47 = vpop.f32.mrb[51].mxu1 }
 0x14a   : > { %13361 = vmatmul.mubr.msk.bf16.vlgmr.msra.gmra.mrb[156].mxu0 %vm212_vm2, %v14990_v29  ;;  %13367 = vmatmul.mubr.msk.bf16.vlgmr.msra.gmra.mrb[156].mxu1 %vm212_vm2, %v14993_v30 }
 0x14b   : > { %13371 = vmatpush3.bf16.msra.mxu0 %v15074_v50  ;;  %13377 = vmatpush3.bf16.msra.mxu1 %v15074_v50 }
 0x14c   : > { %13372 = vmatprep.mubr.msk.bf16.mxu0 %vm14495_vm1, %v14494_v1  ;;  %13378 = vmatprep.mubr.msk.bf16.mxu1 %vm14495_vm1, %v14494_v1 }
 0x14d   : > { %v1409_v48 = vpop.f32.mrb[52].mxu0  ;;  %v1462_v49 = vpop.f32.mrb[52].mxu1  ;;  %13382 = vmatprep.subr.bf16.mxu0 %v14494_v1  ;;  %13388 = vmatprep.subr.bf16.mxu1 %v14494_v1 }
 0x14e   : > { %v1470_v29 = vadd.f32 %v1409_v48, %v1207_v26  ;;  %v1471_v51 = vadd.f32 %v1462_v49, %v1247_v27  ;;  %v13050_v30 = vpop.f32.mrb[53].mxu0  ;;  %v13056_v52 = vpop.f32.mrb[53].mxu1 }
 0x14f   : > { %v1412_v53 = vpop.f32.mrb[54].mxu0  ;;  %v1465_v54 = vpop.f32.mrb[54].mxu1  ;;  %v11929_v30 = vld [vmem:[%s16654_s1 + $0x16] sm:$0x3] }
 0x150   : > { %v13051_v57 = vpop.f32.mrb[55].mxu0  ;;  %v13057_v58 = vpop.f32.mrb[55].mxu1 }
 0x152   : > { %13373 = vmatmul.mubr.msk.bf16.vlgmr.msra.gmra.mrb[160].mxu0 %vm212_vm2, %v15089_v55  ;;  %13379 = vmatmul.mubr.msk.bf16.vlgmr.msra.gmra.mrb[160].mxu1 %vm212_vm2, %v15092_v56 }
 0x153   : > { %13383 = vmatpush3.bf16.msra.mxu0 %v15074_v50  ;;  %13389 = vmatpush3.bf16.msra.mxu1 %v15074_v50 }
 0x154   : > { %13384 = vmatprep.mubr.msk.bf16.mxu0 %vm14495_vm1, %v14494_v1  ;;  %13390 = vmatprep.mubr.msk.bf16.mxu1 %vm14495_vm1, %v14494_v1 }
 0x155   : > { %v1523_v59 = vpop.f32.mrb[56].mxu0  ;;  %v1576_v60 = vpop.f32.mrb[56].mxu1  ;;  %13394 = vmatprep.subr.bf16.mxu0 %v14494_v1  ;;  %13400 = vmatprep.subr.bf16.mxu1 %v14494_v1 }
 0x156   : > { %v15106_v61 = vadd.f32 %v1523_v59, %v1468_v14  ;;  %v15108_v63 = vadd.f32 %v1576_v60, %v1469_v41  ;;  %v13062_v0 = vpop.f32.mrb[57].mxu0  ;;  %v13068_v3 = vpop.f32.mrb[57].mxu1 }
 0x157   : > { %v1526_v5 = vpop.f32.mrb[58].mxu0  ;;  %v1579_v6 = vpop.f32.mrb[58].mxu1  ;;  %v15176_v3 = vsel %vm216_vm0, %v11929_v30, 0 }
 0x158   : > { %v13063_v10 = vpop.f32.mrb[59].mxu0  ;;  %v13069_v15 = vpop.f32.mrb[59].mxu1 }
 0x15a   : > { %13385 = vmatmul.mubr.msk.bf16.vlgmr.msra.gmra.mrb[164].mxu0 %vm212_vm2, %v15111_v7  ;;  %13391 = vmatmul.mubr.msk.bf16.vlgmr.msra.gmra.mrb[164].mxu1 %vm212_vm2, %v15114_v9 }
 0x15b   : > { %13395 = vmatpush3.bf16.msra.mxu0 %v14952_v62  ;;  %13401 = vmatpush3.bf16.msra.mxu1 %v14952_v62 }
 0x15c   : > { %13396 = vmatprep.mubr.msk.bf16.mxu0 %vm14495_vm1, %v14494_v1  ;;  %13402 = vmatprep.mubr.msk.bf16.mxu1 %vm14495_vm1, %v14494_v1 }
 0x15d   : > { %v1629_v16 = vpop.f32.mrb[60].mxu0  ;;  %v1682_v17 = vpop.f32.mrb[60].mxu1  ;;  %13406 = vmatprep.subr.bf16.mxu0 %v14494_v1  ;;  %13412 = vmatprep.subr.bf16.mxu1 %v14494_v1 }
 0x15e   : > { %v15128_v19 = vadd.f32 %v1629_v16, %v1470_v29  ;;  %v15130_v21 = vadd.f32 %v1682_v17, %v1471_v51  ;;  %v13074_v24 = vpop.f32.mrb[61].mxu0  ;;  %v13080_v26 = vpop.f32.mrb[61].mxu1 }
 0x15f   : > { %v1632_v27 = vpop.f32.mrb[62].mxu0  ;;  %v1685_v28 = vpop.f32.mrb[62].mxu1 }
 0x160   : > { %v13075_v31 = vpop.f32.mrb[63].mxu0  ;;  %v13081_v32 = vpop.f32.mrb[63].mxu1  ;;  %v15191_v27 = vld [vmem:[%s14546_s19 + $0xdc] sm:$0x3]  ;;  %v15194_v28 = vld [vmem:[%s14546_s19 + $0xe0] sm:$0x3] }
 0x162   : > { %13397 = vmatmul.mubr.msk.bf16.vlgmr.msra.gmra.mrb[168].mxu0 %vm212_vm2, %v15089_v55  ;;  %13403 = vmatmul.mubr.msk.bf16.vlgmr.msra.gmra.mrb[168].mxu1 %vm212_vm2, %v15092_v56 }
 0x163   : > { %13407 = vmatpush3.bf16.msra.mxu0 %v14952_v62  ;;  %13413 = vmatpush3.bf16.msra.mxu1 %v14952_v62 }
 0x164   : > { %13408 = vmatprep.mubr.msk.bf16.mxu0 %vm14495_vm1, %v14494_v1  ;;  %13414 = vmatprep.mubr.msk.bf16.mxu1 %vm14495_vm1, %v14494_v1 }
 0x165   : > { %v1737_v34 = vpop.f32.mrb[64].mxu0  ;;  %v1780_v35 = vpop.f32.mrb[64].mxu1  ;;  %13418 = vmatprep.subr.bf16.mxu0 %v14494_v1  ;;  %13424 = vmatprep.subr.bf16.mxu1 %v14494_v1 }
 0x166   : > { %v1872_v38 = vadd.f32 %v1737_v34, %v14985_v22  ;;  %v1873_v39 = vadd.f32 %v1780_v35, %v14987_v23  ;;  %v13086_v40 = vpop.f32.mrb[65].mxu0  ;;  %v13092_v13 = vpop.f32.mrb[65].mxu1 }
 0x167   : > { %v1740_v14 = vpop.f32.mrb[66].mxu0  ;;  %v1783_v41 = vpop.f32.mrb[66].mxu1 }
 0x168   : > { %v13087_v42 = vpop.f32.mrb[67].mxu0  ;;  %v13093_v43 = vpop.f32.mrb[67].mxu1 }
 0x169   : > { %v15213_v42 = vld [vmem:[%s14546_s19 + $0xe4] sm:$0x3]  ;;  %v15216_v43 = vld [vmem:[%s14546_s19 + $0xe8] sm:$0x3] }
 0x16a   : > { %13409 = vmatmul.mubr.msk.bf16.vlgmr.msra.gmra.mrb[172].mxu0 %vm212_vm2, %v15111_v7  ;;  %13415 = vmatmul.mubr.msk.bf16.vlgmr.msra.gmra.mrb[172].mxu1 %vm212_vm2, %v15114_v9 }
 0x16b   : > { %13419 = vmatpush3.bf16.msra.mxu0 %v14592_v12  ;;  %13425 = vmatpush3.bf16.msra.mxu1 %v14592_v12 }
 0x16c   : > { %13420 = vmatprep.mubr.msk.bf16.mxu0 %vm14495_vm1, %v14494_v1  ;;  %13426 = vmatprep.mubr.msk.bf16.mxu1 %vm14495_vm1, %v14494_v1 }
 0x16d   : > { %v1823_v22 = vpop.f32.mrb[68].mxu0  ;;  %v1866_v23 = vpop.f32.mrb[68].mxu1  ;;  %13430 = vmatprep.subr.bf16.mxu0 %v14494_v1  ;;  %13436 = vmatprep.subr.bf16.mxu1 %v14494_v1 }
 0x16e   : > { %v1874_v44 = vadd.f32 %v1823_v22, %v15010_v36  ;;  %v1875_v45 = vadd.f32 %v1866_v23, %v15012_v37  ;;  %v13098_v46 = vpop.f32.mrb[69].mxu0  ;;  %v13104_v47 = vpop.f32.mrb[69].mxu1 }
 0x16f   : > { %v1826_v48 = vpop.f32.mrb[70].mxu0  ;;  %v1869_v49 = vpop.f32.mrb[70].mxu1 }
 0x170   : > { %v13099_v29 = vpop.f32.mrb[71].mxu0  ;;  %v13105_v51 = vpop.f32.mrb[71].mxu1 }
 0x172   : > { %13421 = vmatmul.mubr.msk.bf16.vlgmr.msra.gmra.mrb[176].mxu0 %vm212_vm2, %v15089_v55  ;;  %13427 = vmatmul.mubr.msk.bf16.vlgmr.msra.gmra.mrb[176].mxu1 %vm212_vm2, %v15092_v56 }
 0x173   : > { %13431 = vmatpush3.bf16.msra.mxu0 %v14592_v12  ;;  %13437 = vmatpush3.bf16.msra.mxu1 %v14592_v12 }
 0x174   : > { %13432 = vmatprep.mubr.msk.bf16.mxu0 %vm14495_vm1, %v14494_v1  ;;  %13438 = vmatprep.mubr.msk.bf16.mxu1 %vm14495_vm1, %v14494_v1 }
 0x175   : > { %v1921_v36 = vpop.f32.mrb[72].mxu0  ;;  %v1964_v37 = vpop.f32.mrb[72].mxu1  ;;  %13442 = vmatprep.subr.bf16.mxu0 %v14494_v1  ;;  %13448 = vmatprep.subr.bf16.mxu1 %v14494_v1 }
 0x176   : > { %v2056_v52 = vadd.f32 %v1921_v36, %v1872_v38  ;;  %v2057_v53 = vadd.f32 %v1964_v37, %v1873_v39  ;;  %v13110_v54 = vpop.f32.mrb[73].mxu0  ;;  %v13116_v57 = vpop.f32.mrb[73].mxu1 }
 0x177   : > { %v1924_v58 = vpop.f32.mrb[74].mxu0  ;;  %v1967_v59 = vpop.f32.mrb[74].mxu1 }
 0x178   : > { %v13111_v60 = vpop.f32.mrb[75].mxu0  ;;  %v13117_v0 = vpop.f32.mrb[75].mxu1 }
 0x17a   : > { %13433 = vmatmul.mubr.msk.bf16.vlgmr.msra.gmra.mrb[180].mxu0 %vm212_vm2, %v15111_v7  ;;  %13439 = vmatmul.mubr.msk.bf16.vlgmr.msra.gmra.mrb[180].mxu1 %vm212_vm2, %v15114_v9 }
 0x17b   : > { %13443 = vmatpush3.bf16.msra.mxu0 %v15176_v3  ;;  %13449 = vmatpush3.bf16.msra.mxu1 %v15176_v3 }
 0x17c   : > { %13444 = vmatprep.mubr.msk.bf16.mxu0 %vm14495_vm1, %v14494_v1  ;;  %13450 = vmatprep.mubr.msk.bf16.mxu1 %vm14495_vm1, %v14494_v1 }
 0x17d   : > { %v2007_v5 = vpop.f32.mrb[76].mxu0  ;;  %v2050_v6 = vpop.f32.mrb[76].mxu1  ;;  %13454 = vmatprep.subr.bf16.mxu0 %v14494_v1  ;;  %13460 = vmatprep.subr.bf16.mxu1 %v14494_v1 }
 0x17e   : > { %v2058_v10 = vadd.f32 %v2007_v5, %v1874_v44  ;;  %v2059_v15 = vadd.f32 %v2050_v6, %v1875_v45  ;;  %v13122_v16 = vpop.f32.mrb[77].mxu0  ;;  %v13128_v17 = vpop.f32.mrb[77].mxu1 }
 0x17f   : > { %v2010_v24 = vpop.f32.mrb[78].mxu0  ;;  %v2053_v26 = vpop.f32.mrb[78].mxu1 }
 0x180   : > { %v13123_v31 = vpop.f32.mrb[79].mxu0  ;;  %v13129_v32 = vpop.f32.mrb[79].mxu1 }
 0x182   : > { %13445 = vmatmul.mubr.msk.bf16.vlgmr.msra.gmra.mrb[184].mxu0 %vm212_vm2, %v15191_v27  ;;  %13451 = vmatmul.mubr.msk.bf16.vlgmr.msra.gmra.mrb[184].mxu1 %vm212_vm2, %v15194_v28 }
 0x183   : > { %13455 = vmatpush3.bf16.msra.mxu0 %v15176_v3  ;;  %13461 = vmatpush3.bf16.msra.mxu1 %v15176_v3 }
 0x184   : > { %13456 = vmatprep.mubr.msk.bf16.mxu0 %vm14495_vm1, %v14494_v1  ;;  %13462 = vmatprep.mubr.msk.bf16.mxu1 %vm14495_vm1, %v14494_v1 }
 0x185   : > { %v2105_v34 = vpop.f32.mrb[80].mxu0  ;;  %v2148_v35 = vpop.f32.mrb[80].mxu1  ;;  %13466 = vmatprep.subr.bf16.mxu0 %v14494_v1  ;;  %13472 = vmatprep.subr.bf16.mxu1 %v14494_v1 }
 0x186   : > { %v15208_v38 = vadd.f32 %v2105_v34, %v2056_v52  ;;  %v15210_v39 = vadd.f32 %v2148_v35, %v2057_v53  ;;  %v13134_v40 = vpop.f32.mrb[81].mxu0  ;;  %v13140_v13 = vpop.f32.mrb[81].mxu1 }
 0x187   : > { %v2108_v14 = vpop.f32.mrb[82].mxu0  ;;  %v2151_v41 = vpop.f32.mrb[82].mxu1 }
 0x188   : > { %v13135_v22 = vpop.f32.mrb[83].mxu0  ;;  %v13141_v23 = vpop.f32.mrb[83].mxu1 }
 0x18a   : > { %13457 = vmatmul.mubr.msk.bf16.vlgmr.msra.gmra.mrb[188].mxu0 %vm212_vm2, %v15213_v42  ;;  %13463 = vmatmul.mubr.msk.bf16.vlgmr.msra.gmra.mrb[188].mxu1 %vm212_vm2, %v15216_v43 }
 0x18b   : > { %13467 = vmatpush3.bf16.msra.mxu0 %v14996_v33  ;;  %13473 = vmatpush3.bf16.msra.mxu1 %v14996_v33 }
 0x18c   : > { %13468 = vmatprep.mubr.msk.bf16.mxu0 %vm14495_vm1, %v14494_v1  ;;  %13474 = vmatprep.mubr.msk.bf16.mxu1 %vm14495_vm1, %v14494_v1 }
 0x18d   : > { %v2191_v44 = vpop.f32.mrb[84].mxu0  ;;  %v2234_v45 = vpop.f32.mrb[84].mxu1  ;;  %13478 = vmatprep.subr.bf16.mxu0 %v14494_v1  ;;  %13484 = vmatprep.subr.bf16.mxu1 %v14494_v1 }
 0x18e   : > { %v15230_v46 = vadd.f32 %v2191_v44, %v2058_v10  ;;  %v15232_v47 = vadd.f32 %v2234_v45, %v2059_v15  ;;  %v13146_v48 = vpop.f32.mrb[85].mxu0  ;;  %v13152_v49 = vpop.f32.mrb[85].mxu1 }
 0x18f   : > { %v2194_v29 = vpop.f32.mrb[86].mxu0  ;;  %v2237_v51 = vpop.f32.mrb[86].mxu1 }
 0x190   : > { %v13147_v36 = vpop.f32.mrb[87].mxu0  ;;  %v13153_v37 = vpop.f32.mrb[87].mxu1 }
 0x192   : > { %13469 = vmatmul.mubr.msk.bf16.vlgmr.msra.gmra.mrb[192].mxu0 %vm212_vm2, %v15191_v27  ;;  %13475 = vmatmul.mubr.msk.bf16.vlgmr.msra.gmra.mrb[192].mxu1 %vm212_vm2, %v15194_v28 }
 0x193   : > { %13479 = vmatpush3.bf16.msra.mxu0 %v14996_v33  ;;  %13485 = vmatpush3.bf16.msra.mxu1 %v14996_v33 }
 0x194   : > { %13480 = vmatprep.mubr.msk.bf16.mxu0 %vm14495_vm1, %v14494_v1  ;;  %13486 = vmatprep.mubr.msk.bf16.mxu1 %vm14495_vm1, %v14494_v1 }
 0x195   : > { %v2278_v30 = vpop.f32.mrb[88].mxu0  ;;  %v2318_v52 = vpop.f32.mrb[88].mxu1  ;;  %13490 = vmatprep.subr.bf16.mxu0 %v14494_v1  ;;  %13496 = vmatprep.subr.bf16.mxu1 %v14494_v1 }
 0x196   : > { %v15247_v53 = vadd.f32 %v2278_v30, %v15106_v61  ;;  %v15250_v54 = vadd.f32 %v2318_v52, %v15108_v63  ;;  %v13158_v57 = vpop.f32.mrb[89].mxu0  ;;  %v13164_v58 = vpop.f32.mrb[89].mxu1 }
 0x197   : > { %v2281_v59 = vpop.f32.mrb[90].mxu0  ;;  %v2321_v60 = vpop.f32.mrb[90].mxu1 }
 0x198   : > { %v13159_v0 = vpop.f32.mrb[91].mxu0  ;;  %v13165_v5 = vpop.f32.mrb[91].mxu1 }
 0x19a   : > { %13481 = vmatmul.mubr.msk.bf16.vlgmr.msra.gmra.mrb[196].mxu0 %vm212_vm2, %v15213_v42  ;;  %13487 = vmatmul.mubr.msk.bf16.vlgmr.msra.gmra.mrb[196].mxu1 %vm212_vm2, %v15216_v43 }
 0x19b   : > { %13491 = vmatpush3.bf16.msra.mxu0 %v14626_v20  ;;  %13497 = vmatpush3.bf16.msra.mxu1 %v14626_v20 }
 0x19c   : > { %13492 = vmatprep.mubr.msk.bf16.mxu0 %vm14495_vm1, %v14494_v1  ;;  %13498 = vmatprep.mubr.msk.bf16.mxu1 %vm14495_vm1, %v14494_v1 }
 0x19d   : > { %v2358_v61 = vpop.f32.mrb[92].mxu0  ;;  %v2398_v63 = vpop.f32.mrb[92].mxu1  ;;  %13502 = vmatprep.subr.bf16.mxu0 %v14494_v1  ;;  %13508 = vmatprep.subr.bf16.mxu1 %v14494_v1 }
 0x19e   : > { %v15265_v6 = vadd.f32 %v2358_v61, %v15128_v19  ;;  %v15268_v10 = vadd.f32 %v2398_v63, %v15130_v21  ;;  %v13170_v15 = vpop.f32.mrb[93].mxu0  ;;  %v13176_v16 = vpop.f32.mrb[93].mxu1 }
 0x19f   : > { %v2361_v17 = vpop.f32.mrb[94].mxu0  ;;  %v2401_v24 = vpop.f32.mrb[94].mxu1  ;;  %v14453_v15 = vld [vmem:[%s14546_s19 + $0xa0] ss:$0 sps:$4 sm:$0x77]  }
 0x1a0   : > { %v13171_v26 = vpop.f32.mrb[95].mxu0  ;;  %v13177_v31 = vpop.f32.mrb[95].mxu1  ;;  %v14454_v16 = vld [vmem:[%s14546_s19 + $0xa4] ss:$0 sps:$4 sm:$0x77]  }
 0x1a1   : > { %v5291_v17 = vshll.u32 %v14454_v16, 16 }
 0x1a2   : > { %13493 = vmatmul.mubr.msk.bf16.vlgmr.msra.gmra.mrb[200].mxu0 %vm212_vm2, %v15191_v27  ;;  %13499 = vmatmul.mubr.msk.bf16.vlgmr.msra.gmra.mrb[200].mxu1 %vm212_vm2, %v15194_v28 }
 0x1a3   : > { %13503 = vmatpush3.bf16.msra.mxu0 %v14626_v20  ;;  %13509 = vmatpush3.bf16.msra.mxu1 %v14626_v20 }
 0x1a4   : > { %13504 = vmatprep.mubr.msk.bf16.mxu0 %vm14495_vm1, %v14494_v1  ;;  %13510 = vmatprep.mubr.msk.bf16.mxu1 %vm14495_vm1, %v14494_v1 }
 0x1a5   : > { %v2453_v19 = vpop.f32.mrb[96].mxu0  ;;  %v2496_v21 = vpop.f32.mrb[96].mxu1  ;;  %13514 = vmatprep.subr.bf16.mxu0 %v14494_v1  ;;  %13520 = vmatprep.subr.bf16.mxu1 %v14494_v1 }
 0x1a6   : > { %v15283_v32 = vadd.f32 %v2453_v19, %v15208_v38  ;;  %v15286_v34 = vadd.f32 %v2496_v21, %v15210_v39  ;;  %v13182_v35 = vpop.f32.mrb[97].mxu0  ;;  %v13188_v40 = vpop.f32.mrb[97].mxu1 }
 0x1a7   : > { %v2456_v13 = vpop.f32.mrb[98].mxu0  ;;  %v2499_v14 = vpop.f32.mrb[98].mxu1  ;;  %v5236_v40 = vshrl.u32 %v14453_v15, 16 }
 0x1a8   : > { %v13183_v41 = vpop.f32.mrb[99].mxu0  ;;  %v13189_v22 = vpop.f32.mrb[99].mxu1  ;;  %v5289_v14 = vshrl.u32 %v14454_v16, 16 }
 0x1a9   : > { %v5293_v41 = vrot.slane %v5291_v17, 1  ;;  %v14455_v22 = vld [vmem:[%s14546_s19 + $0xa8] ss:$0 sps:$4 sm:$0x77]  }
 0x1aa   : > { %13505 = vmatmul.mubr.msk.bf16.vlgmr.msra.gmra.mrb[204].mxu0 %vm212_vm2, %v15213_v42  ;;  %13511 = vmatmul.mubr.msk.bf16.vlgmr.msra.gmra.mrb[204].mxu1 %vm212_vm2, %v15216_v43 }
 0x1ab   : > { %13515 = vmatpush3.bf16.msra.mxu0 %v14530_v2  ;;  %13521 = vmatpush3.bf16.msra.mxu1 %v14530_v2 }
 0x1ac   : > { %13516 = vmatprep.mubr.msk.bf16.mxu0 %vm14495_vm1, %v14494_v1  ;;  %13522 = vmatprep.mubr.msk.bf16.mxu1 %vm14495_vm1, %v14494_v1 }
 0x1ad   : > { %v2539_v38 = vpop.f32.mrb[100].mxu0  ;;  %v2582_v39 = vpop.f32.mrb[100].mxu1  ;;  %13526 = vmatprep.subr.bf16.mxu0 %v14494_v1  ;;  %13532 = vmatprep.subr.bf16.mxu1 %v14494_v1 }
 0x1ae   : > { %v15301_v23 = vadd.f32 %v2539_v38, %v15230_v46  ;;  %v15304_v44 = vadd.f32 %v2582_v39, %v15232_v47  ;;  %v13194_v45 = vpop.f32.mrb[101].mxu0  ;;  %v13200_v48 = vpop.f32.mrb[101].mxu1  ;;  %v14456_v38 = vld [vmem:[%s14546_s19 + $0xac] ss:$0 sps:$4 sm:$0x77]  }
 0x1af   : > { %v2542_v49 = vpop.f32.mrb[102].mxu0  ;;  %v2585_v29 = vpop.f32.mrb[102].mxu1 }
 0x1b0   : > { %v13195_v51 = vpop.f32.mrb[103].mxu0  ;;  %v13201_v36 = vpop.f32.mrb[103].mxu1 }
 0x1b1   : > { %v5344_v36 = vshll.u32 %v14455_v22, 16 }
 0x1b2   : > { %13517 = vmatmul.mubr.msk.bf16.vlgmr.msra.gmra.mrb[208].mxu0 %vm212_vm2, %v15191_v27  ;;  %13523 = vmatmul.mubr.msk.bf16.vlgmr.msra.gmra.mrb[208].mxu1 %vm212_vm2, %v15194_v28 }
 0x1b3   : > { %13527 = vmatpush3.bf16.msra.mxu0 %v14530_v2  ;;  %13533 = vmatpush3.bf16.msra.mxu1 %v14530_v2 }
 0x1b4   : > { %13528 = vmatprep.mubr.msk.bf16.mxu0 %vm14495_vm1, %v14494_v1  ;;  %13534 = vmatprep.mubr.msk.bf16.mxu1 %vm14495_vm1, %v14494_v1 }
 0x1b5   : > { %v2626_v46 = vpop.f32.mrb[104].mxu0  ;;  %v2666_v47 = vpop.f32.mrb[104].mxu1  ;;  %13538 = vmatprep.subr.bf16.mxu0 %v14494_v1  ;;  %13544 = vmatprep.subr.bf16.mxu1 %v14494_v1 }
 0x1b6   : > { %v2752_v27 = vadd.f32 %v2626_v46, %v15247_v53  ;;  %v2753_v28 = vadd.f32 %v2666_v47, %v15250_v54  ;;  %v13206_v37 = vpop.f32.mrb[105].mxu0  ;;  %v13212_v30 = vpop.f32.mrb[105].mxu1  ;;  %v5397_v46 = vshll.u32 %v14456_v38, 16 }
 0x1b7   : > { %v2629_v52 = vpop.f32.mrb[106].mxu0  ;;  %v2669_v2 = vpop.f32.mrb[106].mxu1  ;;  %v5342_v30 = vshrl.u32 %v14455_v22, 16 }
 0x1b8   : > { %v13207_v57 = vpop.f32.mrb[107].mxu0  ;;  %v13213_v58 = vpop.f32.mrb[107].mxu1  ;;  %v5346_v52 = vrot.slane %v5344_v36, 1  ;;  %v5395_v2 = vshrl.u32 %v14456_v38, 16 }
 0x1b9   : > { %v5399_v57 = vrot.slane %v5397_v46, 1  ;;  %v14459_v36 = vld [vmem:[%s14546_s19 + $0xbc] ss:$0 sps:$4 sm:$0x77]  }
 0x1ba   : > { %13529 = vmatmul.mubr.msk.bf16.vlgmr.msra.gmra.mrb[212].mxu0 %vm212_vm2, %v15213_v42  ;;  %13535 = vmatmul.mubr.msk.bf16.vlgmr.msra.gmra.mrb[212].mxu1 %vm212_vm2, %v15216_v43  ;;  %v14460_v46 = vld [vmem:[%s14546_s19 + $0xc0] ss:$0 sps:$4 sm:$0x77]  }
 0x1bb   : > { %13539 = vmatpush3.bf16.msra.mxu0 %v14566_v8  ;;  %13545 = vmatpush3.bf16.msra.mxu1 %v14566_v8 }
 0x1bc   : > { %13540 = vmatprep.mubr.msk.bf16.mxu0 %vm14495_vm1, %v14494_v1  ;;  %13546 = vmatprep.mubr.msk.bf16.mxu1 %vm14495_vm1, %v14494_v1 }
 0x1bd   : > { %v2706_v53 = vpop.f32.mrb[108].mxu0  ;;  %v2746_v54 = vpop.f32.mrb[108].mxu1  ;;  %13550 = vmatprep.subr.bf16.mxu0 %v14494_v1  ;;  %13556 = vmatprep.subr.bf16.mxu1 %v14494_v1 }
 0x1be   : > { %v2754_v42 = vadd.f32 %v2706_v53, %v15265_v6  ;;  %v2755_v43 = vadd.f32 %v2746_v54, %v15268_v10  ;;  %v13218_v59 = vpop.f32.mrb[109].mxu0  ;;  %v13224_v60 = vpop.f32.mrb[109].mxu1 }
 0x1bf   : > { %v2709_v0 = vpop.f32.mrb[110].mxu0  ;;  %v2749_v5 = vpop.f32.mrb[110].mxu1  ;;  %v5347_v60 = vor.u32 %v5346_v52, %v5342_v30 }
 0x1c0   : > { %v13219_v61 = vpop.f32.mrb[111].mxu0  ;;  %v13225_v63 = vpop.f32.mrb[111].mxu1  ;;  %v5400_v0 = vor.u32 %v5399_v57, %v5395_v2  ;;  %v5728_v2 = vshll.u32 %v14459_v36, 16  ;;  %v5781_v57 = vshll.u32 %v14460_v46, 16 }
 0x1c2   : > { %13541 = vmatmul.mubr.msk.bf16.vlgmr.msra.gmra.mrb[216].mxu0 %vm212_vm2, %v15089_v55  ;;  %13547 = vmatmul.mubr.msk.bf16.vlgmr.msra.gmra.mrb[216].mxu1 %vm212_vm2, %v15092_v56  ;;  %v5238_v55 = vshll.u32 %v14453_v15, 16 }
 0x1c3   : > { %13551 = vmatpush3.bf16.msra.mxu0 %v14566_v8  ;;  %13557 = vmatpush3.bf16.msra.mxu1 %v14566_v8 }
 0x1c4   : > { %13552 = vmatprep.mubr.msk.bf16.mxu0 %vm14495_vm1, %v14494_v1  ;;  %13558 = vmatprep.mubr.msk.bf16.mxu1 %vm14495_vm1, %v14494_v1  ;;  %v5240_v13 = vrot.slane %v5238_v55, 1 }
 0x1c5   : > { %v2807_v6 = vpop.f32.mrb[112].mxu0  ;;  %v2860_v10 = vpop.f32.mrb[112].mxu1  ;;  %13562 = vmatprep.subr.bf16.mxu0 %v14494_v1  ;;  %13568 = vmatprep.subr.bf16.mxu1 %v14494_v1 }
 0x1c6   : > { %v2972_v56 = vadd.f32 %v2807_v6, %v2752_v27  ;;  %v2973_v24 = vadd.f32 %v2860_v10, %v2753_v28  ;;  %v13230_v26 = vpop.f32.mrb[113].mxu0  ;;  %v13236_v8 = vpop.f32.mrb[113].mxu1 }
 0x1c7   : > { %v2810_v31 = vpop.f32.mrb[114].mxu0  ;;  %v2863_v19 = vpop.f32.mrb[114].mxu1 }
 0x1c8   : > { %v13231_v21 = vpop.f32.mrb[115].mxu0  ;;  %v13237_v35 = vpop.f32.mrb[115].mxu1  ;;  %v14457_v19 = vld [vmem:[%s14546_s19 + $0xb4] ss:$0 sps:$4 sm:$0x77]  }
 0x1c9   : > { %v14458_v21 = vld [vmem:[%s14546_s19 + $0xb8] ss:$0 sps:$4 sm:$0x77]  }
 0x1ca   : > { %13553 = vmatmul.mubr.msk.bf16.vlgmr.msra.gmra.mrb[220].mxu0 %vm212_vm2, %v15111_v7  ;;  %13559 = vmatmul.mubr.msk.bf16.vlgmr.msra.gmra.mrb[220].mxu1 %vm212_vm2, %v15114_v9  ;;  %v5241_v7 = vor.u32 %v5240_v13, %v5236_v40  ;;  %v5294_v9 = vor.u32 %v5293_v41, %v5289_v14  ;;  %v5622_v13 = vshll.u32 %v14457_v19, 16  ;;  %v5675_v14 = vshll.u32 %v14458_v21, 16 }
 0x1cb   : > { %13563 = vmatpush3.bf16.msra.mxu0 %v15074_v50  ;;  %13569 = vmatpush3.bf16.msra.mxu1 %v15074_v50 }
 0x1cc   : > { %13564 = vmatprep.mubr.msk.bf16.mxu0 %vm14495_vm1, %v14494_v1  ;;  %13570 = vmatprep.mubr.msk.bf16.mxu1 %vm14495_vm1, %v14494_v1 }
 0x1cd   : > { %v2913_v39 = vpop.f32.mrb[116].mxu0  ;;  %v2966_v45 = vpop.f32.mrb[116].mxu1  ;;  %13574 = vmatprep.subr.bf16.mxu0 %v14494_v1  ;;  %13580 = vmatprep.subr.bf16.mxu1 %v14494_v1 }
 0x1ce   : > { %v2974_v48 = vadd.f32 %v2913_v39, %v2754_v42  ;;  %v2975_v49 = vadd.f32 %v2966_v45, %v2755_v43  ;;  %v13242_v29 = vpop.f32.mrb[117].mxu0  ;;  %v13248_v51 = vpop.f32.mrb[117].mxu1 }
 0x1cf   : > { %v2916_v47 = vpop.f32.mrb[118].mxu0  ;;  %v2969_v27 = vpop.f32.mrb[118].mxu1  ;;  %v5673_v29 = vshrl.u32 %v14458_v21, 16  ;;  %v5677_v51 = vrot.slane %v5675_v14, 1 }
 0x1d0   : > { %v13243_v28 = vpop.f32.mrb[119].mxu0  ;;  %v13249_v37 = vpop.f32.mrb[119].mxu1 }
 0x1d1   : > { %v5678_v27 = vor.u32 %v5677_v51, %v5673_v29 }
 0x1d2   : > { %13565 = vmatmul.mubr.msk.bf16.vlgmr.msra.gmra.mrb[224].mxu0 %vm212_vm2, %v5241_v7  ;;  %13571 = vmatmul.mubr.msk.bf16.vlgmr.msra.gmra.mrb[224].mxu1 %vm212_vm2, %v5294_v9 }
 0x1d3   : > { %13575 = vmatpush3.bf16.msra.mxu0 %v15074_v50  ;;  %13581 = vmatpush3.bf16.msra.mxu1 %v15074_v50 }
 0x1d4   : > { %13576 = vmatprep.mubr.msk.bf16.mxu0 %vm14495_vm1, %v14494_v1  ;;  %13582 = vmatprep.mubr.msk.bf16.mxu1 %vm14495_vm1, %v14494_v1 }
 0x1d5   : > { %v3027_v58 = vpop.f32.mrb[120].mxu0  ;;  %v3080_v53 = vpop.f32.mrb[120].mxu1  ;;  %13586 = vmatprep.subr.bf16.mxu0 %v14494_v1  ;;  %13592 = vmatprep.subr.bf16.mxu1 %v14494_v1 }
 0x1d6   : > { %v15372_v54 = vadd.f32 %v3027_v58, %v2972_v56  ;;  %v15374_v42 = vadd.f32 %v3080_v53, %v2973_v24  ;;  %v13254_v43 = vpop.f32.mrb[121].mxu0  ;;  %v13260_v59 = vpop.f32.mrb[121].mxu1 }
 0x1d7   : > { %v3030_v5 = vpop.f32.mrb[122].mxu0  ;;  %v3083_v61 = vpop.f32.mrb[122].mxu1 }
 0x1d8   : > { %v13255_v63 = vpop.f32.mrb[123].mxu0  ;;  %v13261_v15 = vpop.f32.mrb[123].mxu1  ;;  %v5779_v5 = vshrl.u32 %v14460_v46, 16  ;;  %v5783_v61 = vrot.slane %v5781_v57, 1 }
 0x1da   : > { %13577 = vmatmul.mubr.msk.bf16.vlgmr.msra.gmra.mrb[228].mxu0 %vm212_vm2, %v5347_v60  ;;  %13583 = vmatmul.mubr.msk.bf16.vlgmr.msra.gmra.mrb[228].mxu1 %vm212_vm2, %v5400_v0 }
 0x1db   : > { %13587 = vmatpush3.bf16.msra.mxu0 %v14592_v12  ;;  %13593 = vmatpush3.bf16.msra.mxu1 %v14592_v12 }
 0x1dc   : > { %13588 = vmatprep.mubr.msk.bf16.mxu0 %vm14495_vm1, %v14494_v1  ;;  %13594 = vmatprep.mubr.msk.bf16.mxu1 %vm14495_vm1, %v14494_v1 }
 0x1dd   : > { %v3133_v16 = vpop.f32.mrb[124].mxu0  ;;  %v3186_v6 = vpop.f32.mrb[124].mxu1  ;;  %13598 = vmatprep.subr.bf16.mxu0 %v14494_v1  ;;  %13604 = vmatprep.subr.bf16.mxu1 %v14494_v1 }
 0x1de   : > { %v15386_v10 = vadd.f32 %v3133_v16, %v2974_v48  ;;  %v15388_v55 = vadd.f32 %v3186_v6, %v2975_v49  ;;  %v13266_v17 = vpop.f32.mrb[125].mxu0  ;;  %v13272_v56 = vpop.f32.mrb[125].mxu1  ;;  %v5620_v48 = vshrl.u32 %v14457_v19, 16  ;;  %v5624_v49 = vrot.slane %v5622_v13, 1 }
 0x1df   : > { %v3136_v24 = vpop.f32.mrb[126].mxu0  ;;  %v3189_v26 = vpop.f32.mrb[126].mxu1  ;;  %v5784_v56 = vor.u32 %v5783_v61, %v5779_v5  ;;  %v12152_v61 = vld [vmem:[%s14546_s19 + $0xf8] sm:$0x3] }
 0x1e0   : > { %v13267_v8 = vpop.f32.mrb[127].mxu0  ;;  %v13273_v31 = vpop.f32.mrb[127].mxu1  ;;  %v5625_v47 = vor.u32 %v5624_v49, %v5620_v48 }
 0x1e2   : > { %13589 = vmatmul.mubr.msk.bf16.vlgmr.msra.gmra.mrb[232].mxu0 %vm212_vm2, %v5241_v7  ;;  %13595 = vmatmul.mubr.msk.bf16.vlgmr.msra.gmra.mrb[232].mxu1 %vm212_vm2, %v5294_v9 }
 0x1e3   : > { %13599 = vmatpush3.bf16.msra.mxu0 %v14592_v12  ;;  %13605 = vmatpush3.bf16.msra.mxu1 %v14592_v12 }
 0x1e4   : > { %13600 = vmatprep.mubr.msk.bf16.mxu0 %vm14495_vm1, %v14494_v1  ;;  %13606 = vmatprep.mubr.msk.bf16.mxu1 %vm14495_vm1, %v14494_v1 }
 0x1e5   : > { %v3241_v35 = vpop.f32.mrb[128].mxu0  ;;  %v3284_v40 = vpop.f32.mrb[128].mxu1  ;;  %13610 = vmatprep.subr.bf16.mxu0 %v14494_v1  ;;  %13616 = vmatprep.subr.bf16.mxu1 %v14494_v1 }
 0x1e6   : > { %v3376_v41 = vadd.f32 %v3241_v35, %v15283_v32  ;;  %v3377_v12 = vadd.f32 %v3284_v40, %v15286_v34  ;;  %v13278_v22 = vpop.f32.mrb[129].mxu0  ;;  %v13284_v38 = vpop.f32.mrb[129].mxu1 }
 0x1e7   : > { %v3244_v39 = vpop.f32.mrb[130].mxu0  ;;  %v3287_v45 = vpop.f32.mrb[130].mxu1 }
 0x1e8   : > { %v13279_v7 = vpop.f32.mrb[131].mxu0  ;;  %v13285_v9 = vpop.f32.mrb[131].mxu1 }
 0x1e9   : > { %v11930_v7 = vld [vmem:[%s16654_s1 + $0x18] sm:$0x3] }
 0x1ea   : > { %13601 = vmatmul.mubr.msk.bf16.vlgmr.msra.gmra.mrb[236].mxu0 %vm212_vm2, %v5347_v60  ;;  %13607 = vmatmul.mubr.msk.bf16.vlgmr.msra.gmra.mrb[236].mxu1 %vm212_vm2, %v5400_v0  ;;  %v5726_v60 = vshrl.u32 %v14459_v36, 16  ;;  %v5730_v0 = vrot.slane %v5728_v2, 1  ;;  %v15460_v36 = vsel %vm216_vm0, %v11930_v7, 0 }
 0x1eb   : > { %13611 = vmatpush3.bf16.msra.mxu0 %v15176_v3  ;;  %13617 = vmatpush3.bf16.msra.mxu1 %v15176_v3 }
 0x1ec   : > { %13612 = vmatprep.mubr.msk.bf16.mxu0 %vm14495_vm1, %v14494_v1  ;;  %13618 = vmatprep.mubr.msk.bf16.mxu1 %vm14495_vm1, %v14494_v1  ;;  %v5731_v17 = vor.u32 %v5730_v0, %v5726_v60 }
 0x1ed   : > { %v3327_v32 = vpop.f32.mrb[132].mxu0  ;;  %v3370_v34 = vpop.f32.mrb[132].mxu1  ;;  %13622 = vmatprep.subr.bf16.mxu0 %v14494_v1  ;;  %13628 = vmatprep.subr.bf16.mxu1 %v14494_v1 }
 0x1ee   : > { %v3378_v28 = vadd.f32 %v3327_v32, %v15301_v23  ;;  %v3379_v37 = vadd.f32 %v3370_v34, %v15304_v44  ;;  %v13290_v30 = vpop.f32.mrb[133].mxu0  ;;  %v13296_v52 = vpop.f32.mrb[133].mxu1 }
 0x1ef   : > { %v3330_v58 = vpop.f32.mrb[134].mxu0  ;;  %v3373_v53 = vpop.f32.mrb[134].mxu1  ;;  %v12151_v30 = vld [vmem:[%s14546_s19 + $0xf4] sm:$0x3] }
 0x1f0   : > { %v13291_v43 = vpop.f32.mrb[135].mxu0  ;;  %v13297_v59 = vpop.f32.mrb[135].mxu1 }
 0x1f2   : > { %13613 = vmatmul.mubr.msk.bf16.vlgmr.msra.gmra.mrb[240].mxu0 %vm212_vm2, %v5625_v47  ;;  %13619 = vmatmul.mubr.msk.bf16.vlgmr.msra.gmra.mrb[240].mxu1 %vm212_vm2, %v5678_v27 }
 0x1f3   : > { %13623 = vmatpush3.bf16.msra.mxu0 %v15176_v3  ;;  %13629 = vmatpush3.bf16.msra.mxu1 %v15176_v3 }
 0x1f4   : > { %13624 = vmatprep.mubr.msk.bf16.mxu0 %vm14495_vm1, %v14494_v1  ;;  %13630 = vmatprep.mubr.msk.bf16.mxu1 %vm14495_vm1, %v14494_v1 }
 0x1f5   : > { %v3425_v23 = vpop.f32.mrb[136].mxu0  ;;  %v3468_v44 = vpop.f32.mrb[136].mxu1  ;;  %13634 = vmatprep.subr.bf16.mxu0 %v14494_v1  ;;  %13640 = vmatprep.subr.bf16.mxu1 %v14494_v1 }
 0x1f6   : > { %v15428_v63 = vadd.f32 %v3425_v23, %v3376_v41  ;;  %v15430_v15 = vadd.f32 %v3468_v44, %v3377_v12  ;;  %v13302_v16 = vpop.f32.mrb[137].mxu0  ;;  %v13308_v6 = vpop.f32.mrb[137].mxu1  ;;  %v12153_v23 = vld [vmem:[%s14546_s19 + $0xfc] sm:$0x3] }
 0x1f7   : > { %v3428_v24 = vpop.f32.mrb[138].mxu0  ;;  %v3471_v26 = vpop.f32.mrb[138].mxu1 }
 0x1f8   : > { %v13303_v8 = vpop.f32.mrb[139].mxu0  ;;  %v13309_v31 = vpop.f32.mrb[139].mxu1 }
 0x1fa   : > { %13625 = vmatmul.mubr.msk.bf16.vlgmr.msra.gmra.mrb[244].mxu0 %vm212_vm2, %v5731_v17  ;;  %13631 = vmatmul.mubr.msk.bf16.vlgmr.msra.gmra.mrb[244].mxu1 %vm212_vm2, %v5784_v56 }
 0x1fb   : > { %13635 = vmatpush3.bf16.msra.mxu0 %v14626_v20  ;;  %13641 = vmatpush3.bf16.msra.mxu1 %v14626_v20 }
 0x1fc   : > { %13636 = vmatprep.mubr.msk.bf16.mxu0 %vm14495_vm1, %v14494_v1  ;;  %13642 = vmatprep.mubr.msk.bf16.mxu1 %vm14495_vm1, %v14494_v1 }
 0x1fd   : > { %v3511_v19 = vpop.f32.mrb[140].mxu0  ;;  %v3554_v21 = vpop.f32.mrb[140].mxu1  ;;  %13646 = vmatprep.subr.bf16.mxu0 %v14494_v1  ;;  %13652 = vmatprep.subr.bf16.mxu1 %v14494_v1 }
 0x1fe   : > { %v15442_v35 = vadd.f32 %v3511_v19, %v3378_v28  ;;  %v15444_v40 = vadd.f32 %v3554_v21, %v3379_v37  ;;  %v13314_v13 = vpop.f32.mrb[141].mxu0  ;;  %v13320_v14 = vpop.f32.mrb[141].mxu1  ;;  %v12150_v37 = vld [vmem:[%s14546_s19 + $0xf0] sm:$0x3] }
 0x1ff   : > { %v3514_v41 = vpop.f32.mrb[142].mxu0  ;;  %v3557_v12 = vpop.f32.mrb[142].mxu1 }
 0x200   : > { %v13315_v22 = vpop.f32.mrb[143].mxu0  ;;  %v13321_v38 = vpop.f32.mrb[143].mxu1  ;;  %v11931_v12 = vld [vmem:[%s16654_s1 + $0x1a] sm:$0x3] }
 0x202   : > { %13637 = vmatmul.mubr.msk.bf16.vlgmr.msra.gmra.mrb[248].mxu0 %vm212_vm2, %v5625_v47  ;;  %13643 = vmatmul.mubr.msk.bf16.vlgmr.msra.gmra.mrb[248].mxu1 %vm212_vm2, %v5678_v27 }
 0x203   : > { %13647 = vmatpush3.bf16.msra.mxu0 %v14626_v20  ;;  %13653 = vmatpush3.bf16.msra.mxu1 %v14626_v20 }
 0x204   : > { %13648 = vmatprep.mubr.msk.bf16.mxu0 %vm14495_vm1, %v14494_v1  ;;  %13654 = vmatprep.mubr.msk.bf16.mxu1 %vm14495_vm1, %v14494_v1 }
 0x205   : > { %v3598_v39 = vpop.f32.mrb[144].mxu0  ;;  %v3638_v45 = vpop.f32.mrb[144].mxu1  ;;  %13658 = vmatprep.subr.bf16.mxu0 %v14494_v1  ;;  %13664 = vmatprep.subr.bf16.mxu1 %v14494_v1 }
 0x206   : > { %v13326_v9 = vpop.f32.mrb[145].mxu0  ;;  %v13332_v48 = vpop.f32.mrb[145].mxu1 }
 0x207   : > { %v3601_v49 = vpop.f32.mrb[146].mxu0  ;;  %v3641_v20 = vpop.f32.mrb[146].mxu1 }
 0x208   : > { %v13327_v29 = vpop.f32.mrb[147].mxu0  ;;  %v13333_v51 = vpop.f32.mrb[147].mxu1  ;;  %v15524_v20 = vsel %vm216_vm0, %v11931_v12, 0 }
 0x20a   : > { %13649 = vmatmul.mubr.msk.bf16.vlgmr.msra.gmra.mrb[252].mxu0 %vm212_vm2, %v5731_v17  ;;  %13655 = vmatmul.mubr.msk.bf16.vlgmr.msra.gmra.mrb[252].mxu1 %vm212_vm2, %v5784_v56 }
 0x20b   : > { %13659 = vmatpush3.bf16.msra.mxu0 %v15460_v36  ;;  %13665 = vmatpush3.bf16.msra.mxu1 %v15460_v36 }
 0x20c   : > { %13660 = vmatprep.mubr.msk.bf16.mxu0 %vm14495_vm1, %v14494_v1  ;;  %13666 = vmatprep.mubr.msk.bf16.mxu1 %vm14495_vm1, %v14494_v1 }
 0x20d   : > { %v3678_v46 = vpop.f32.mrb[148].mxu0  ;;  %v3718_v32 = vpop.f32.mrb[148].mxu1  ;;  %13670 = vmatprep.subr.bf16.mxu0 %v14494_v1  ;;  %13676 = vmatprep.subr.bf16.mxu1 %v14494_v1 }
 0x20e   : > { %v13338_v34 = vpop.f32.mrb[149].mxu0  ;;  %v13344_v47 = vpop.f32.mrb[149].mxu1 }
 0x20f   : > { %v3681_v27 = vpop.f32.mrb[150].mxu0  ;;  %v3721_v28 = vpop.f32.mrb[150].mxu1 }
 0x210   : > { %v13339_v52 = vpop.f32.mrb[151].mxu0  ;;  %v13345_v2 = vpop.f32.mrb[151].mxu1  ;;  %v12162_v27 = vld [vmem:[%s14546_s19 + $0x104] sm:$0x3]  ;;  %v12163_v28 = vld [vmem:[%s14546_s19 + $0x108] sm:$0x3] }
 0x212   : > { %13661 = vmatmul.mubr.msk.bf16.vlgmr.msra.gmra.mrb[0].mxu0 %vm212_vm2, %v12150_v37  ;;  %13667 = vmatmul.mubr.msk.bf16.vlgmr.msra.gmra.mrb[0].mxu1 %vm212_vm2, %v12151_v30 }
 0x213   : > { %13671 = vmatpush3.bf16.msra.mxu0 %v15460_v36  ;;  %13677 = vmatpush3.bf16.msra.mxu1 %v15460_v36 }
 0x214   : > { %13672 = vmatprep.mubr.msk.bf16.mxu0 %vm14495_vm1, %v14494_v1  ;;  %13678 = vmatprep.mubr.msk.bf16.mxu1 %vm14495_vm1, %v14494_v1 }
 0x215   : > { %v3758_v57 = vpop.f32.mrb[152].mxu0  ;;  %v3798_v58 = vpop.f32.mrb[152].mxu1  ;;  %13682 = vmatprep.subr.bf16.mxu0 %v14494_v1  ;;  %13688 = vmatprep.subr.bf16.mxu1 %v14494_v1 }
 0x216   : > { %v15484_v53 = vadd.f32 %v3758_v57, %v3598_v39  ;;  %v15486_v43 = vadd.f32 %v3798_v58, %v3638_v45  ;;  %v13350_v59 = vpop.f32.mrb[153].mxu0  ;;  %v13356_v60 = vpop.f32.mrb[153].mxu1 }
 0x217   : > { %v3761_v0 = vpop.f32.mrb[154].mxu0  ;;  %v3801_v5 = vpop.f32.mrb[154].mxu1 }
 0x218   : > { %v13351_v44 = vpop.f32.mrb[155].mxu0  ;;  %v13357_v16 = vpop.f32.mrb[155].mxu1  ;;  %v12164_v0 = vld [vmem:[%s14546_s19 + $0x10c] sm:$0x3]  ;;  %v12165_v5 = vld [vmem:[%s14546_s19 + $0x110] sm:$0x3] }
 0x21a   : > { %13673 = vmatmul.mubr.msk.bf16.vlgmr.msra.gmra.mrb[4].mxu0 %vm212_vm2, %v12152_v61  ;;  %13679 = vmatmul.mubr.msk.bf16.vlgmr.msra.gmra.mrb[4].mxu1 %vm212_vm2, %v12153_v23 }
 0x21b   : > { %13683 = vmatpush3.bf16.msra.mxu0 %v14744_v4  ;;  %13689 = vmatpush3.bf16.msra.mxu1 %v14744_v4 }
 0x21c   : > { %13684 = vmatprep.mubr.msk.bf16.mxu0 %vm14495_vm1, %v14494_v1  ;;  %13690 = vmatprep.mubr.msk.bf16.mxu1 %vm14495_vm1, %v14494_v1 }
 0x21d   : > { %v3838_v6 = vpop.f32.mrb[156].mxu0  ;;  %v3878_v17 = vpop.f32.mrb[156].mxu1  ;;  %13694 = vmatprep.subr.bf16.mxu0 %v14494_v1  ;;  %13700 = vmatprep.subr.bf16.mxu1 %v14494_v1 }
 0x21e   : > { %v15500_v56 = vadd.f32 %v3838_v6, %v3678_v46  ;;  %v15502_v24 = vadd.f32 %v3878_v17, %v3718_v32  ;;  %v13362_v26 = vpop.f32.mrb[157].mxu0  ;;  %v13368_v8 = vpop.f32.mrb[157].mxu1 }
 0x21f   : > { %v3841_v31 = vpop.f32.mrb[158].mxu0  ;;  %v3881_v19 = vpop.f32.mrb[158].mxu1 }
 0x220   : > { %v13363_v21 = vpop.f32.mrb[159].mxu0  ;;  %v13369_v13 = vpop.f32.mrb[159].mxu1 }
 0x221   : > { %v11932_v21 = vld [vmem:[%s16654_s1 + $0x1c] sm:$0x3] }
 0x222   : > { %13685 = vmatmul.mubr.msk.bf16.vlgmr.msra.gmra.mrb[8].mxu0 %vm212_vm2, %v12150_v37  ;;  %13691 = vmatmul.mubr.msk.bf16.vlgmr.msra.gmra.mrb[8].mxu1 %vm212_vm2, %v12151_v30 }
 0x223   : > { %13695 = vmatpush3.bf16.msra.mxu0 %v14744_v4  ;;  %13701 = vmatpush3.bf16.msra.mxu1 %v14744_v4 }
 0x224   : > { %13696 = vmatprep.mubr.msk.bf16.mxu0 %vm14495_vm1, %v14494_v1  ;;  %13702 = vmatprep.mubr.msk.bf16.mxu1 %vm14495_vm1, %v14494_v1 }
 0x225   : > { %v3929_v14 = vpop.f32.mrb[160].mxu0  ;;  %v3972_v41 = vpop.f32.mrb[160].mxu1  ;;  %13706 = vmatprep.subr.bf16.mxu0 %v14494_v1  ;;  %13712 = vmatprep.subr.bf16.mxu1 %v14494_v1 }
 0x226   : > { %v15518_v22 = vadd.f32 %v3929_v14, %v15428_v63  ;;  %v15521_v38 = vadd.f32 %v3972_v41, %v15430_v15  ;;  %v13374_v39 = vpop.f32.mrb[161].mxu0  ;;  %v13380_v45 = vpop.f32.mrb[161].mxu1 }
 0x227   : > { %v3932_v7 = vpop.f32.mrb[162].mxu0  ;;  %v3975_v9 = vpop.f32.mrb[162].mxu1 }
 0x228   : > { %v13375_v48 = vpop.f32.mrb[163].mxu0  ;;  %v13381_v49 = vpop.f32.mrb[163].mxu1 }
 0x229   : > { %v15598_v48 = vsel %vm216_vm0, %v11932_v21, 0 }
 0x22a   : > { %13697 = vmatmul.mubr.msk.bf16.vlgmr.msra.gmra.mrb[12].mxu0 %vm212_vm2, %v12152_v61  ;;  %13703 = vmatmul.mubr.msk.bf16.vlgmr.msra.gmra.mrb[12].mxu1 %vm212_vm2, %v12153_v23 }
 0x22b   : > { %13707 = vmatpush3.bf16.msra.mxu0 %v15524_v20  ;;  %13713 = vmatpush3.bf16.msra.mxu1 %v15524_v20 }
 0x22c   : > { %13708 = vmatprep.mubr.msk.bf16.mxu0 %vm14495_vm1, %v14494_v1  ;;  %13714 = vmatprep.mubr.msk.bf16.mxu1 %vm14495_vm1, %v14494_v1 }
 0x22d   : > { %v4015_v63 = vpop.f32.mrb[164].mxu0  ;;  %v4058_v15 = vpop.f32.mrb[164].mxu1  ;;  %13718 = vmatprep.subr.bf16.mxu0 %v14494_v1  ;;  %13724 = vmatprep.subr.bf16.mxu1 %v14494_v1 }
 0x22e   : > { %v15537_v29 = vadd.f32 %v4015_v63, %v15442_v35  ;;  %v15540_v51 = vadd.f32 %v4058_v15, %v15444_v40  ;;  %v13386_v46 = vpop.f32.mrb[165].mxu0  ;;  %v13392_v32 = vpop.f32.mrb[165].mxu1 }
 0x22f   : > { %v4018_v34 = vpop.f32.mrb[166].mxu0  ;;  %v4061_v47 = vpop.f32.mrb[166].mxu1 }
 0x230   : > { %v13387_v37 = vpop.f32.mrb[167].mxu0  ;;  %v13393_v30 = vpop.f32.mrb[167].mxu1  ;;  %v15617_v47 = vld [vmem:[%s14546_s19 + $0x118] sm:$0x3] }
 0x232   : > { %13709 = vmatmul.mubr.msk.bf16.vlgmr.msra.gmra.mrb[16].mxu0 %vm212_vm2, %v12162_v27  ;;  %13715 = vmatmul.mubr.msk.bf16.vlgmr.msra.gmra.mrb[16].mxu1 %vm212_vm2, %v12163_v28 }
 0x233   : > { %13719 = vmatpush3.bf16.msra.mxu0 %v15524_v20  ;;  %13725 = vmatpush3.bf16.msra.mxu1 %v15524_v20 }
 0x234   : > { %13720 = vmatprep.mubr.msk.bf16.mxu0 %vm14495_vm1, %v14494_v1  ;;  %13726 = vmatprep.mubr.msk.bf16.mxu1 %vm14495_vm1, %v14494_v1 }
 0x235   : > { %v4102_v35 = vpop.f32.mrb[168].mxu0  ;;  %v4142_v40 = vpop.f32.mrb[168].mxu1  ;;  %13730 = vmatprep.subr.bf16.mxu0 %v14494_v1  ;;  %13736 = vmatprep.subr.bf16.mxu1 %v14494_v1 }
 0x236   : > { %v15555_v52 = vadd.f32 %v4102_v35, %v15372_v54  ;;  %v15558_v2 = vadd.f32 %v4142_v40, %v15374_v42  ;;  %v13398_v57 = vpop.f32.mrb[169].mxu0  ;;  %v13404_v58 = vpop.f32.mrb[169].mxu1 }
 0x237   : > { %v4105_v59 = vpop.f32.mrb[170].mxu0  ;;  %v4145_v60 = vpop.f32.mrb[170].mxu1  ;;  %v15635_v58 = vld [vmem:[%s14546_s19 + $0x120] sm:$0x3] }
 0x238   : > { %v13399_v61 = vpop.f32.mrb[171].mxu0  ;;  %v13405_v23 = vpop.f32.mrb[171].mxu1  ;;  %v15638_v59 = vld [vmem:[%s14546_s19 + $0x124] sm:$0x3] }
 0x23a   : > { %13721 = vmatmul.mubr.msk.bf16.vlgmr.msra.gmra.mrb[20].mxu0 %vm212_vm2, %v12164_v0  ;;  %13727 = vmatmul.mubr.msk.bf16.vlgmr.msra.gmra.mrb[20].mxu1 %vm212_vm2, %v12165_v5 }
 0x23b   : > { %13731 = vmatpush3.bf16.msra.mxu0 %v14774_v11  ;;  %13737 = vmatpush3.bf16.msra.mxu1 %v14774_v11 }
 0x23c   : > { %13732 = vmatprep.mubr.msk.bf16.mxu0 %vm14495_vm1, %v14494_v1  ;;  %13738 = vmatprep.mubr.msk.bf16.mxu1 %vm14495_vm1, %v14494_v1 }
 0x23d   : > { %v4182_v54 = vpop.f32.mrb[172].mxu0  ;;  %v4222_v42 = vpop.f32.mrb[172].mxu1  ;;  %13742 = vmatprep.subr.bf16.mxu0 %v14494_v1  ;;  %13748 = vmatprep.subr.bf16.mxu1 %v14494_v1 }
 0x23e   : > { %v15573_v44 = vadd.f32 %v4182_v54, %v15386_v10  ;;  %v15576_v16 = vadd.f32 %v4222_v42, %v15388_v55  ;;  %v13410_v6 = vpop.f32.mrb[173].mxu0  ;;  %v13416_v17 = vpop.f32.mrb[173].mxu1 }
 0x23f   : > { %v4185_v26 = vpop.f32.mrb[174].mxu0  ;;  %v4225_v8 = vpop.f32.mrb[174].mxu1 }
 0x240   : > { %v13411_v31 = vpop.f32.mrb[175].mxu0  ;;  %v13417_v19 = vpop.f32.mrb[175].mxu1 }
 0x242   : > { %13733 = vmatmul.mubr.msk.bf16.vlgmr.msra.gmra.mrb[24].mxu0 %vm212_vm2, %v12162_v27  ;;  %13739 = vmatmul.mubr.msk.bf16.vlgmr.msra.gmra.mrb[24].mxu1 %vm212_vm2, %v12163_v28  ;;  %v15620_v27 = vld [vmem:[%s14546_s19 + $0x11c] sm:$0x3] }
 0x243   : > { %13743 = vmatpush3.bf16.msra.mxu0 %v14774_v11  ;;  %13749 = vmatpush3.bf16.msra.mxu1 %v14774_v11 }
 0x244   : > { %13744 = vmatprep.mubr.msk.bf16.mxu0 %vm14495_vm1, %v14494_v1  ;;  %13750 = vmatprep.mubr.msk.bf16.mxu1 %vm14495_vm1, %v14494_v1 }
 0x245   : > { %v4266_v10 = vpop.f32.mrb[176].mxu0  ;;  %v4306_v55 = vpop.f32.mrb[176].mxu1  ;;  %13754 = vmatprep.subr.bf16.mxu0 %v14494_v1  ;;  %13760 = vmatprep.subr.bf16.mxu1 %v14494_v1 }
 0x246   : > { %v15592_v13 = vadd.f32 %v4266_v10, %v15484_v53  ;;  %v15595_v14 = vadd.f32 %v4306_v55, %v15486_v43  ;;  %v13422_v41 = vpop.f32.mrb[177].mxu0  ;;  %v13428_v12 = vpop.f32.mrb[177].mxu1 }
 0x247   : > { %v4269_v39 = vpop.f32.mrb[178].mxu0  ;;  %v4309_v45 = vpop.f32.mrb[178].mxu1 }
 0x248   : > { %v13423_v7 = vpop.f32.mrb[179].mxu0  ;;  %v13429_v9 = vpop.f32.mrb[179].mxu1 }
 0x24a   : > { %13745 = vmatmul.mubr.msk.bf16.vlgmr.msra.gmra.mrb[28].mxu0 %vm212_vm2, %v12164_v0  ;;  %13751 = vmatmul.mubr.msk.bf16.vlgmr.msra.gmra.mrb[28].mxu1 %vm212_vm2, %v12165_v5 }
 0x24b   : > { %13755 = vmatpush3.bf16.msra.mxu0 %v15598_v48  ;;  %13761 = vmatpush3.bf16.msra.mxu1 %v15598_v48 }
 0x24c   : > { %13756 = vmatprep.mubr.msk.bf16.mxu0 %vm14495_vm1, %v14494_v1  ;;  %13762 = vmatprep.mubr.msk.bf16.mxu1 %vm14495_vm1, %v14494_v1 }
 0x24d   : > { %v4346_v53 = vpop.f32.mrb[180].mxu0  ;;  %v4386_v43 = vpop.f32.mrb[180].mxu1  ;;  %13766 = vmatprep.subr.bf16.mxu0 %v14494_v1  ;;  %13772 = vmatprep.subr.bf16.mxu1 %v14494_v1 }
 0x24e   : > { %v15611_v49 = vadd.f32 %v4346_v53, %v15500_v56  ;;  %v15614_v63 = vadd.f32 %v4386_v43, %v15502_v24  ;;  %v13434_v15 = vpop.f32.mrb[181].mxu0  ;;  %v13440_v46 = vpop.f32.mrb[181].mxu1 }
 0x24f   : > { %v4349_v32 = vpop.f32.mrb[182].mxu0  ;;  %v4389_v34 = vpop.f32.mrb[182].mxu1 }
 0x250   : > { %v13435_v28 = vpop.f32.mrb[183].mxu0  ;;  %v13441_v37 = vpop.f32.mrb[183].mxu1 }
 0x252   : > { %13757 = vmatmul.mubr.msk.bf16.vlgmr.msra.gmra.mrb[32].mxu0 %vm212_vm2, %v15617_v47  ;;  %13763 = vmatmul.mubr.msk.bf16.vlgmr.msra.gmra.mrb[32].mxu1 %vm212_vm2, %v15620_v27 }
 0x253   : > { %13767 = vmatpush3.bf16.msra.mxu0 %v15598_v48  ;;  %13773 = vmatpush3.bf16.msra.mxu1 %v15598_v48 }
 0x254   : > { %13768 = vmatprep.mubr.msk.bf16.mxu0 %vm14495_vm1, %v14494_v1  ;;  %13774 = vmatprep.mubr.msk.bf16.mxu1 %vm14495_vm1, %v14494_v1 }
 0x255   : > { %v4441_v56 = vpop.f32.mrb[184].mxu0  ;;  %v4484_v24 = vpop.f32.mrb[184].mxu1  ;;  %13778 = vmatprep.subr.bf16.mxu0 %v14494_v1  ;;  %13784 = vmatprep.subr.bf16.mxu1 %v14494_v1 }
 0x256   : > { %v13446_v30 = vpop.f32.mrb[185].mxu0  ;;  %v13452_v35 = vpop.f32.mrb[185].mxu1  ;;  %v15641_v60 = vadd.f32 %v4441_v56, %v15518_v22  ;;  %v15644_v0 = vadd.f32 %v4484_v24, %v15521_v38 }
 0x257   : > { %v4444_v40 = vpop.f32.mrb[186].mxu0  ;;  %v4487_v57 = vpop.f32.mrb[186].mxu1 }
 0x258   : > { %v13447_v5 = vpop.f32.mrb[187].mxu0  ;;  %v13453_v61 = vpop.f32.mrb[187].mxu1 }
 0x25a   : > { %13769 = vmatmul.mubr.msk.bf16.vlgmr.msra.gmra.mrb[36].mxu0 %vm212_vm2, %v15635_v58  ;;  %13775 = vmatmul.mubr.msk.bf16.vlgmr.msra.gmra.mrb[36].mxu1 %vm212_vm2, %v15638_v59 }
 0x25b   : > { %13779 = vmatpush3.bf16.msra.mxu0 %v15460_v36  ;;  %13785 = vmatpush3.bf16.msra.mxu1 %v15460_v36 }
 0x25c   : > { %13780 = vmatprep.mubr.msk.bf16.mxu0 %vm14495_vm1, %v14494_v1  ;;  %13786 = vmatprep.mubr.msk.bf16.mxu1 %vm14495_vm1, %v14494_v1 }
 0x25d   : > { %v4527_v22 = vpop.f32.mrb[188].mxu0  ;;  %v4570_v38 = vpop.f32.mrb[188].mxu1  ;;  %13790 = vmatprep.subr.bf16.mxu0 %v14494_v1  ;;  %13796 = vmatprep.subr.bf16.mxu1 %v14494_v1 }
 0x25e   : > { %v13458_v23 = vpop.f32.mrb[189].mxu0  ;;  %v13464_v54 = vpop.f32.mrb[189].mxu1  ;;  %v15659_v42 = vadd.f32 %v4527_v22, %v15537_v29  ;;  %v15662_v6 = vadd.f32 %v4570_v38, %v15540_v51 }
 0x25f   : > { %v4530_v17 = vpop.f32.mrb[190].mxu0  ;;  %v4573_v26 = vpop.f32.mrb[190].mxu1 }
 0x260   : > { %v13459_v8 = vpop.f32.mrb[191].mxu0  ;;  %v13465_v31 = vpop.f32.mrb[191].mxu1 }
 0x262   : > { %13781 = vmatmul.mubr.msk.bf16.vlgmr.msra.gmra.mrb[40].mxu0 %vm212_vm2, %v15617_v47  ;;  %13787 = vmatmul.mubr.msk.bf16.vlgmr.msra.gmra.mrb[40].mxu1 %vm212_vm2, %v15620_v27 }
 0x263   : > { %13791 = vmatpush3.bf16.msra.mxu0 %v15460_v36  ;;  %13797 = vmatpush3.bf16.msra.mxu1 %v15460_v36 }
 0x264   : > { %13792 = vmatprep.mubr.msk.bf16.mxu0 %vm14495_vm1, %v14494_v1  ;;  %13798 = vmatprep.mubr.msk.bf16.mxu1 %vm14495_vm1, %v14494_v1 }
 0x265   : > { %v4614_v29 = vpop.f32.mrb[192].mxu0  ;;  %v4654_v51 = vpop.f32.mrb[192].mxu1  ;;  %13802 = vmatprep.subr.bf16.mxu0 %v14494_v1  ;;  %13808 = vmatprep.subr.bf16.mxu1 %v14494_v1 }
 0x266   : > { %v15677_v19 = vadd.f32 %v4614_v29, %v15555_v52  ;;  %v15680_v10 = vadd.f32 %v4654_v51, %v15558_v2  ;;  %v13470_v55 = vpop.f32.mrb[193].mxu0  ;;  %v13476_v21 = vpop.f32.mrb[193].mxu1 }
 0x267   : > { %v4617_v41 = vpop.f32.mrb[194].mxu0  ;;  %v4657_v12 = vpop.f32.mrb[194].mxu1 }
 0x268   : > { %v13471_v39 = vpop.f32.mrb[195].mxu0  ;;  %v13477_v45 = vpop.f32.mrb[195].mxu1 }
 0x269   : > { %v15767_v45 = vld [vmem:[%s14546_s19 + $0x12c] sm:$0x3] }
 0x26a   : > { %13793 = vmatmul.mubr.msk.bf16.vlgmr.msra.gmra.mrb[44].mxu0 %vm212_vm2, %v15635_v58  ;;  %13799 = vmatmul.mubr.msk.bf16.vlgmr.msra.gmra.mrb[44].mxu1 %vm212_vm2, %v15638_v59 }
 0x26b   : > { %13803 = vmatpush3.bf16.msra.mxu0 %v14804_v18  ;;  %13809 = vmatpush3.bf16.msra.mxu1 %v14804_v18 }
 0x26c   : > { %13804 = vmatprep.mubr.msk.bf16.mxu0 %vm14495_vm1, %v14494_v1  ;;  %13810 = vmatprep.mubr.msk.bf16.mxu1 %vm14495_vm1, %v14494_v1 }
 0x26d   : > { %v4694_v52 = vpop.f32.mrb[196].mxu0  ;;  %v4734_v2 = vpop.f32.mrb[196].mxu1  ;;  %13814 = vmatprep.subr.bf16.mxu0 %v14494_v1  ;;  %13820 = vmatprep.subr.bf16.mxu1 %v14494_v1 }
 0x26e   : > { %v15695_v7 = vadd.f32 %v4694_v52, %v15573_v44  ;;  %v15698_v9 = vadd.f32 %v4734_v2, %v15576_v16  ;;  %v13482_v53 = vpop.f32.mrb[197].mxu0  ;;  %v13488_v43 = vpop.f32.mrb[197].mxu1  ;;  %v15770_v52 = vld [vmem:[%s14546_s19 + $0x130] sm:$0x3] }
 0x26f   : > { %v4697_v15 = vpop.f32.mrb[198].mxu0  ;;  %v4737_v46 = vpop.f32.mrb[198].mxu1 }
 0x270   : > { %v13483_v32 = vpop.f32.mrb[199].mxu0  ;;  %v13489_v34 = vpop.f32.mrb[199].mxu1 }
 0x272   : > { %13805 = vmatmul.mubr.msk.bf16.vlgmr.msra.gmra.mrb[48].mxu0 %vm212_vm2, %v15617_v47  ;;  %13811 = vmatmul.mubr.msk.bf16.vlgmr.msra.gmra.mrb[48].mxu1 %vm212_vm2, %v15620_v27 }
 0x273   : > { %13815 = vmatpush3.bf16.msra.mxu0 %v14804_v18  ;;  %13821 = vmatpush3.bf16.msra.mxu1 %v14804_v18 }
 0x274   : > { %13816 = vmatprep.mubr.msk.bf16.mxu0 %vm14495_vm1, %v14494_v1  ;;  %13822 = vmatprep.mubr.msk.bf16.mxu1 %vm14495_vm1, %v14494_v1 }
 0x275   : > { %v4778_v44 = vpop.f32.mrb[200].mxu0  ;;  %v4818_v16 = vpop.f32.mrb[200].mxu1  ;;  %13826 = vmatprep.subr.bf16.mxu0 %v14494_v1  ;;  %13832 = vmatprep.subr.bf16.mxu1 %v14494_v1 }
 0x276   : > { %v13494_v28 = vpop.f32.mrb[201].mxu0  ;;  %v13500_v37 = vpop.f32.mrb[201].mxu1  ;;  %v15713_v56 = vadd.f32 %v4778_v44, %v15592_v13  ;;  %v15716_v24 = vadd.f32 %v4818_v16, %v15595_v14 }
 0x277   : > { %v4781_v30 = vpop.f32.mrb[202].mxu0  ;;  %v4821_v35 = vpop.f32.mrb[202].mxu1  ;;  %v15789_v37 = vld [vmem:[%s14546_s19 + $0x134] sm:$0x3] }
 0x278   : > { %v13495_v40 = vpop.f32.mrb[203].mxu0  ;;  %v13501_v57 = vpop.f32.mrb[203].mxu1  ;;  %v15792_v30 = vld [vmem:[%s14546_s19 + $0x138] sm:$0x3] }
 0x27a   : > { %13817 = vmatmul.mubr.msk.bf16.vlgmr.msra.gmra.mrb[52].mxu0 %vm212_vm2, %v15635_v58  ;;  %13823 = vmatmul.mubr.msk.bf16.vlgmr.msra.gmra.mrb[52].mxu1 %vm212_vm2, %v15638_v59 }
 0x27b   : > { %13827 = vmatpush3.bf16.msra.mxu0 %v14744_v4  ;;  %13833 = vmatpush3.bf16.msra.mxu1 %v14744_v4 }
 0x27c   : > { %13828 = vmatprep.mubr.msk.bf16.mxu0 %vm14495_vm1, %v14494_v1  ;;  %13834 = vmatprep.mubr.msk.bf16.mxu1 %vm14495_vm1, %v14494_v1 }
 0x27d   : > { %v4858_v13 = vpop.f32.mrb[204].mxu0  ;;  %v4898_v14 = vpop.f32.mrb[204].mxu1  ;;  %13838 = vmatprep.subr.bf16.mxu0 %v14494_v1  ;;  %13844 = vmatprep.subr.bf16.mxu1 %v14494_v1 }
 0x27e   : > { %v13506_v5 = vpop.f32.mrb[205].mxu0  ;;  %v13512_v61 = vpop.f32.mrb[205].mxu1  ;;  %v15731_v22 = vadd.f32 %v4858_v13, %v15611_v49  ;;  %v15734_v38 = vadd.f32 %v4898_v14, %v15614_v63 }
 0x27f   : > { %v4861_v23 = vpop.f32.mrb[206].mxu0  ;;  %v4901_v54 = vpop.f32.mrb[206].mxu1 }
 0x280   : > { %v13507_v17 = vpop.f32.mrb[207].mxu0  ;;  %v13513_v26 = vpop.f32.mrb[207].mxu1 }
 0x282   : > { %13829 = vmatmul.mubr.msk.bf16.vlgmr.msra.gmra.mrb[56].mxu0 %vm212_vm2, %v15617_v47  ;;  %13835 = vmatmul.mubr.msk.bf16.vlgmr.msra.gmra.mrb[56].mxu1 %vm212_vm2, %v15620_v27  ;;  %v11933_v47 = vld [vmem:[%s16654_s1 + $0x1e] sm:$0x3] }
 0x283   : > { %13839 = vmatpush3.bf16.msra.mxu0 %v14744_v4  ;;  %13845 = vmatpush3.bf16.msra.mxu1 %v14744_v4  ;;  %v15752_v55 = vsel %vm216_vm0, %v11933_v47, 0 }
 0x284   : > { %13840 = vmatprep.mubr.msk.bf16.mxu0 %vm14495_vm1, %v14494_v1  ;;  %13846 = vmatprep.mubr.msk.bf16.mxu1 %vm14495_vm1, %v14494_v1 }
 0x285   : > { %v4942_v49 = vpop.f32.mrb[208].mxu0  ;;  %v4982_v63 = vpop.f32.mrb[208].mxu1  ;;  %13850 = vmatprep.subr.bf16.mxu0 %v14494_v1  ;;  %13856 = vmatprep.subr.bf16.mxu1 %v14494_v1 }
 0x286   : > { %v13518_v27 = vpop.f32.mrb[209].mxu0  ;;  %v13524_v8 = vpop.f32.mrb[209].mxu1 }
 0x287   : > { %v4945_v31 = vpop.f32.mrb[210].mxu0  ;;  %v4985_v4 = vpop.f32.mrb[210].mxu1 }
 0x288   : > { %v13519_v29 = vpop.f32.mrb[211].mxu0  ;;  %v13525_v51 = vpop.f32.mrb[211].mxu1 }
 0x28a   : > { %13841 = vmatmul.mubr.msk.bf16.vlgmr.msra.gmra.mrb[60].mxu0 %vm212_vm2, %v15635_v58  ;;  %13847 = vmatmul.mubr.msk.bf16.vlgmr.msra.gmra.mrb[60].mxu1 %vm212_vm2, %v15638_v59 }
 0x28b   : > { %13851 = vmatpush3.bf16.msra.mxu0 %v15752_v55  ;;  %13857 = vmatpush3.bf16.msra.mxu1 %v15752_v55 }
 0x28c   : > { %13852 = vmatprep.mubr.msk.bf16.mxu0 %vm14495_vm1, %v14494_v1  ;;  %13858 = vmatprep.mubr.msk.bf16.mxu1 %vm14495_vm1, %v14494_v1 }
 0x28d   : > { %v5022_v21 = vpop.f32.mrb[212].mxu0  ;;  %v5062_v41 = vpop.f32.mrb[212].mxu1  ;;  %13862 = vmatprep.subr.bf16.mxu0 %v14494_v1  ;;  %13868 = vmatprep.subr.bf16.mxu1 %v14494_v1 }
 0x28e   : > { %v13530_v58 = vpop.f32.mrb[213].mxu0  ;;  %v13536_v12 = vpop.f32.mrb[213].mxu1 }
 0x28f   : > { %v5025_v39 = vpop.f32.mrb[214].mxu0  ;;  %v5065_v59 = vpop.f32.mrb[214].mxu1 }
 0x290   : > { %v13531_v2 = vpop.f32.mrb[215].mxu0  ;;  %v13537_v53 = vpop.f32.mrb[215].mxu1 }
 0x292   : > { %13853 = vmatmul.mubr.msk.bf16.vlgmr.msra.gmra.mrb[64].mxu0 %vm212_vm2, %v15767_v45  ;;  %13859 = vmatmul.mubr.msk.bf16.vlgmr.msra.gmra.mrb[64].mxu1 %vm212_vm2, %v15770_v52 }
 0x293   : > { %13863 = vmatpush3.bf16.msra.mxu0 %v15752_v55  ;;  %13869 = vmatpush3.bf16.msra.mxu1 %v15752_v55 }
 0x294   : > { %13864 = vmatprep.mubr.msk.bf16.mxu0 %vm14495_vm1, %v14494_v1  ;;  %13870 = vmatprep.mubr.msk.bf16.mxu1 %vm14495_vm1, %v14494_v1 }
 0x295   : > { %v5102_v43 = vpop.f32.mrb[216].mxu0  ;;  %v5142_v15 = vpop.f32.mrb[216].mxu1  ;;  %13874 = vmatprep.subr.bf16.mxu0 %v14494_v1  ;;  %13880 = vmatprep.subr.bf16.mxu1 %v14494_v1 }
 0x296   : > { %v15784_v46 = vadd.f32 %v5102_v43, %v4942_v49  ;;  %v15786_v32 = vadd.f32 %v5142_v15, %v4982_v63  ;;  %v13542_v34 = vpop.f32.mrb[217].mxu0  ;;  %v13548_v44 = vpop.f32.mrb[217].mxu1 }
 0x297   : > { %v5105_v16 = vpop.f32.mrb[218].mxu0  ;;  %v5145_v28 = vpop.f32.mrb[218].mxu1 }
 0x298   : > { %v13543_v35 = vpop.f32.mrb[219].mxu0  ;;  %v13549_v40 = vpop.f32.mrb[219].mxu1 }
 0x29a   : > { %13865 = vmatmul.mubr.msk.bf16.vlgmr.msra.gmra.mrb[68].mxu0 %vm212_vm2, %v15789_v37  ;;  %13871 = vmatmul.mubr.msk.bf16.vlgmr.msra.gmra.mrb[68].mxu1 %vm212_vm2, %v15792_v30 }
 0x29b   : > { %13875 = vmatpush3.bf16.msra.mxu0 %v15524_v20  ;;  %13881 = vmatpush3.bf16.msra.mxu1 %v15524_v20 }
 0x29c   : > { %13876 = vmatprep.mubr.msk.bf16.mxu0 %vm14495_vm1, %v14494_v1  ;;  %13882 = vmatprep.mubr.msk.bf16.mxu1 %vm14495_vm1, %v14494_v1 }
 0x29d   : > { %v5182_v57 = vpop.f32.mrb[220].mxu0  ;;  %v5222_v13 = vpop.f32.mrb[220].mxu1  ;;  %13886 = vmatprep.subr.bf16.mxu0 %v14494_v1  ;;  %13892 = vmatprep.subr.bf16.mxu1 %v14494_v1 }
 0x29e   : > { %v15806_v14 = vadd.f32 %v5182_v57, %v5022_v21  ;;  %v15808_v5 = vadd.f32 %v5222_v13, %v5062_v41  ;;  %v13554_v61 = vpop.f32.mrb[221].mxu0  ;;  %v13560_v23 = vpop.f32.mrb[221].mxu1 }
 0x29f   : > { %v5185_v54 = vpop.f32.mrb[222].mxu0  ;;  %v5225_v17 = vpop.f32.mrb[222].mxu1 }
 0x2a0   : > { %v13555_v26 = vpop.f32.mrb[223].mxu0  ;;  %v13561_v49 = vpop.f32.mrb[223].mxu1 }
 0x2a2   : > { %13877 = vmatmul.mubr.msk.bf16.vlgmr.msra.gmra.mrb[72].mxu0 %vm212_vm2, %v15767_v45  ;;  %13883 = vmatmul.mubr.msk.bf16.vlgmr.msra.gmra.mrb[72].mxu1 %vm212_vm2, %v15770_v52 }
 0x2a3   : > { %13887 = vmatpush3.bf16.msra.mxu0 %v15524_v20  ;;  %13893 = vmatpush3.bf16.msra.mxu1 %v15524_v20 }
 0x2a4   : > { %13888 = vmatprep.mubr.msk.bf16.mxu0 %vm14495_vm1, %v14494_v1  ;;  %13894 = vmatprep.mubr.msk.bf16.mxu1 %vm14495_vm1, %v14494_v1 }
 0x2a5   : > { %v5279_v63 = vpop.f32.mrb[224].mxu0  ;;  %v5332_v47 = vpop.f32.mrb[224].mxu1  ;;  %13898 = vmatprep.subr.bf16.mxu0 %v14494_v1  ;;  %13904 = vmatprep.subr.bf16.mxu1 %v14494_v1 }
 0x2a6   : > { %v15823_v27 = vadd.f32 %v5279_v63, %v15677_v19  ;;  %v15826_v8 = vadd.f32 %v5332_v47, %v15680_v10  ;;  %v13566_v31 = vpop.f32.mrb[225].mxu0  ;;  %v13572_v4 = vpop.f32.mrb[225].mxu1 }
 0x2a7   : > { %v5282_v29 = vpop.f32.mrb[226].mxu0  ;;  %v5335_v51 = vpop.f32.mrb[226].mxu1  ;;  %v14461_v31 = vld [vmem:[%s14546_s19 + $0xf0] ss:$0 sps:$4 sm:$0x77]  }
 0x2a8   : > { %v13567_v21 = vpop.f32.mrb[227].mxu0  ;;  %v13573_v41 = vpop.f32.mrb[227].mxu1  ;;  %v14462_v4 = vld [vmem:[%s14546_s19 + $0xf4] ss:$0 sps:$4 sm:$0x77]  }
 0x2a9   : > { %v8107_v29 = vshll.u32 %v14462_v4, 16 }
 0x2aa   : > { %13889 = vmatmul.mubr.msk.bf16.vlgmr.msra.gmra.mrb[76].mxu0 %vm212_vm2, %v15789_v37  ;;  %13895 = vmatmul.mubr.msk.bf16.vlgmr.msra.gmra.mrb[76].mxu1 %vm212_vm2, %v15792_v30 }
 0x2ab   : > { %13899 = vmatpush3.bf16.msra.mxu0 %v14854_v25  ;;  %13905 = vmatpush3.bf16.msra.mxu1 %v14854_v25 }
 0x2ac   : > { %13900 = vmatprep.mubr.msk.bf16.mxu0 %vm14495_vm1, %v14494_v1  ;;  %13906 = vmatprep.mubr.msk.bf16.mxu1 %vm14495_vm1, %v14494_v1 }
 0x2ad   : > { %v5385_v19 = vpop.f32.mrb[228].mxu0  ;;  %v5438_v10 = vpop.f32.mrb[228].mxu1  ;;  %13910 = vmatprep.subr.bf16.mxu0 %v14494_v1  ;;  %13916 = vmatprep.subr.bf16.mxu1 %v14494_v1 }
 0x2ae   : > { %v15841_v58 = vadd.f32 %v5385_v19, %v15695_v7  ;;  %v15844_v12 = vadd.f32 %v5438_v10, %v15698_v9  ;;  %v13578_v39 = vpop.f32.mrb[229].mxu0  ;;  %v13584_v59 = vpop.f32.mrb[229].mxu1 }
 0x2af   : > { %v5388_v2 = vpop.f32.mrb[230].mxu0  ;;  %v5441_v53 = vpop.f32.mrb[230].mxu1  ;;  %v8052_v59 = vshrl.u32 %v14461_v31, 16 }
 0x2b0   : > { %v13579_v43 = vpop.f32.mrb[231].mxu0  ;;  %v13585_v15 = vpop.f32.mrb[231].mxu1  ;;  %v8105_v53 = vshrl.u32 %v14462_v4, 16 }
 0x2b1   : > { %v8109_v43 = vrot.slane %v8107_v29, 1  ;;  %v14463_v15 = vld [vmem:[%s14546_s19 + $0xf8] ss:$0 sps:$4 sm:$0x77]  }
 0x2b2   : > { %13901 = vmatmul.mubr.msk.bf16.vlgmr.msra.gmra.mrb[80].mxu0 %vm212_vm2, %v15767_v45  ;;  %13907 = vmatmul.mubr.msk.bf16.vlgmr.msra.gmra.mrb[80].mxu1 %vm212_vm2, %v15770_v52 }
 0x2b3   : > { %13911 = vmatpush3.bf16.msra.mxu0 %v14854_v25  ;;  %13917 = vmatpush3.bf16.msra.mxu1 %v14854_v25 }
 0x2b4   : > { %13912 = vmatprep.mubr.msk.bf16.mxu0 %vm14495_vm1, %v14494_v1  ;;  %13918 = vmatprep.mubr.msk.bf16.mxu1 %vm14495_vm1, %v14494_v1 }
 0x2b5   : > { %v5482_v7 = vpop.f32.mrb[232].mxu0  ;;  %v5522_v9 = vpop.f32.mrb[232].mxu1  ;;  %13922 = vmatprep.subr.bf16.mxu0 %v14494_v1  ;;  %13928 = vmatprep.subr.bf16.mxu1 %v14494_v1 }
 0x2b6   : > { %v15859_v34 = vadd.f32 %v5482_v7, %v15784_v46  ;;  %v15862_v44 = vadd.f32 %v5522_v9, %v15786_v32  ;;  %v13590_v16 = vpop.f32.mrb[233].mxu0  ;;  %v13596_v28 = vpop.f32.mrb[233].mxu1 }
 0x2b7   : > { %v5485_v35 = vpop.f32.mrb[234].mxu0  ;;  %v5525_v40 = vpop.f32.mrb[234].mxu1  ;;  %v8160_v28 = vshll.u32 %v14463_v15, 16 }
 0x2b8   : > { %v13591_v57 = vpop.f32.mrb[235].mxu0  ;;  %v13597_v13 = vpop.f32.mrb[235].mxu1 }
 0x2ba   : > { %13913 = vmatmul.mubr.msk.bf16.vlgmr.msra.gmra.mrb[84].mxu0 %vm212_vm2, %v15789_v37  ;;  %13919 = vmatmul.mubr.msk.bf16.vlgmr.msra.gmra.mrb[84].mxu1 %vm212_vm2, %v15792_v30 }
 0x2bb   : > { %13923 = vmatpush3.bf16.msra.mxu0 %v14774_v11  ;;  %13929 = vmatpush3.bf16.msra.mxu1 %v14774_v11 }
 0x2bc   : > { %13924 = vmatprep.mubr.msk.bf16.mxu0 %vm14495_vm1, %v14494_v1  ;;  %13930 = vmatprep.mubr.msk.bf16.mxu1 %vm14495_vm1, %v14494_v1 }
 0x2bd   : > { %v5562_v46 = vpop.f32.mrb[236].mxu0  ;;  %v5602_v32 = vpop.f32.mrb[236].mxu1  ;;  %13934 = vmatprep.subr.bf16.mxu0 %v14494_v1  ;;  %13940 = vmatprep.subr.bf16.mxu1 %v14494_v1 }
 0x2be   : > { %v15877_v61 = vadd.f32 %v5562_v46, %v15806_v14  ;;  %v15880_v23 = vadd.f32 %v5602_v32, %v15808_v5  ;;  %v13602_v54 = vpop.f32.mrb[237].mxu0  ;;  %v13608_v17 = vpop.f32.mrb[237].mxu1 }
 0x2bf   : > { %v5565_v26 = vpop.f32.mrb[238].mxu0  ;;  %v5605_v49 = vpop.f32.mrb[238].mxu1  ;;  %v8158_v17 = vshrl.u32 %v14463_v15, 16 }
 0x2c0   : > { %v13603_v63 = vpop.f32.mrb[239].mxu0  ;;  %v13609_v47 = vpop.f32.mrb[239].mxu1  ;;  %v8162_v26 = vrot.slane %v8160_v28, 1 }
 0x2c2   : > { %13925 = vmatmul.mubr.msk.bf16.vlgmr.msra.gmra.mrb[88].mxu0 %vm212_vm2, %v15767_v45  ;;  %13931 = vmatmul.mubr.msk.bf16.vlgmr.msra.gmra.mrb[88].mxu1 %vm212_vm2, %v15770_v52  ;;  %v8054_v45 = vshll.u32 %v14461_v31, 16  ;;  %v8163_v4 = vor.u32 %v8162_v26, %v8158_v17 }
 0x2c3   : > { %13935 = vmatpush3.bf16.msra.mxu0 %v14774_v11  ;;  %13941 = vmatpush3.bf16.msra.mxu1 %v14774_v11 }
 0x2c4   : > { %13936 = vmatprep.mubr.msk.bf16.mxu0 %vm14495_vm1, %v14494_v1  ;;  %13942 = vmatprep.mubr.msk.bf16.mxu1 %vm14495_vm1, %v14494_v1  ;;  %v8056_v2 = vrot.slane %v8054_v45, 1 }
 0x2c5   : > { %v5663_v14 = vpop.f32.mrb[240].mxu0  ;;  %v5716_v5 = vpop.f32.mrb[240].mxu1  ;;  %13946 = vmatprep.subr.bf16.mxu0 %v14494_v1  ;;  %13952 = vmatprep.subr.bf16.mxu1 %v14494_v1 }
 0x2c6   : > { %v13614_v52 = vpop.f32.mrb[241].mxu0  ;;  %v13620_v51 = vpop.f32.mrb[241].mxu1  ;;  %v15897_v11 = vadd.f32 %v5663_v14, %v15823_v27  ;;  %v15900_v21 = vadd.f32 %v5716_v5, %v15826_v8  ;;  %v14464_v27 = vld [vmem:[%s14546_s19 + $0xfc] ss:$0 sps:$4 sm:$0x77]  }
 0x2c7   : > { %v5666_v41 = vpop.f32.mrb[242].mxu0  ;;  %v5719_v19 = vpop.f32.mrb[242].mxu1  ;;  %v8213_v35 = vshll.u32 %v14464_v27, 16  ;;  %v8211_v49 = vshrl.u32 %v14464_v27, 16 }
 0x2c8   : > { %v13615_v10 = vpop.f32.mrb[243].mxu0  ;;  %v13621_v39 = vpop.f32.mrb[243].mxu1  ;;  %v14465_v27 = vld [vmem:[%s14546_s19 + $0x104] ss:$0 sps:$4 sm:$0x77]  }
 0x2c9   : > { %v8215_v63 = vrot.slane %v8213_v35, 1 }
 0x2ca   : > { %13937 = vmatmul.mubr.msk.bf16.vlgmr.msra.gmra.mrb[92].mxu0 %vm212_vm2, %v15789_v37  ;;  %13943 = vmatmul.mubr.msk.bf16.vlgmr.msra.gmra.mrb[92].mxu1 %vm212_vm2, %v15792_v30  ;;  %v8057_v37 = vor.u32 %v8056_v2, %v8052_v59  ;;  %v8110_v30 = vor.u32 %v8109_v43, %v8105_v53 }
 0x2cb   : > { %13947 = vmatpush3.bf16.msra.mxu0 %v15598_v48  ;;  %13953 = vmatpush3.bf16.msra.mxu1 %v15598_v48  ;;  %v8216_v14 = vor.u32 %v8215_v63, %v8211_v49  ;;  %v14467_v49 = vld [vmem:[%s14546_s19 + $0x10c] ss:$0 sps:$4 sm:$0x77]  }
 0x2cc   : > { %13948 = vmatprep.mubr.msk.bf16.mxu0 %vm14495_vm1, %v14494_v1  ;;  %13954 = vmatprep.mubr.msk.bf16.mxu1 %vm14495_vm1, %v14494_v1 }
 0x2cd   : > { %v5769_v8 = vpop.f32.mrb[244].mxu0  ;;  %v5822_v7 = vpop.f32.mrb[244].mxu1  ;;  %13958 = vmatprep.subr.bf16.mxu0 %v14494_v1  ;;  %13964 = vmatprep.subr.bf16.mxu1 %v14494_v1 }
 0x2ce   : > { %v13626_v9 = vpop.f32.mrb[245].mxu0  ;;  %v13632_v16 = vpop.f32.mrb[245].mxu1  ;;  %v15917_v40 = vadd.f32 %v5769_v8, %v15841_v58  ;;  %v15920_v57 = vadd.f32 %v5822_v7, %v15844_v12  ;;  %v14466_v8 = vld [vmem:[%s14546_s19 + $0x108] ss:$0 sps:$4 sm:$0x77]   ;;  %v8438_v7 = vshll.u32 %v14465_v27, 16 }
 0x2cf   : > { %v5772_v13 = vpop.f32.mrb[246].mxu0  ;;  %v5825_v46 = vpop.f32.mrb[246].mxu1  ;;  %v8489_v17 = vshrl.u32 %v14466_v8, 16 }
 0x2d0   : > { %v13627_v32 = vpop.f32.mrb[247].mxu0  ;;  %v13633_v54 = vpop.f32.mrb[247].mxu1 }
 0x2d1   : > { %v8436_v32 = vshrl.u32 %v14465_v27, 16  ;;  %v8440_v54 = vrot.slane %v8438_v7, 1 }
 0x2d2   : > { %13949 = vmatmul.mubr.msk.bf16.vlgmr.msra.gmra.mrb[96].mxu0 %vm212_vm2, %v8057_v37  ;;  %13955 = vmatmul.mubr.msk.bf16.vlgmr.msra.gmra.mrb[96].mxu1 %vm212_vm2, %v8110_v30 }
 0x2d3   : > { %13959 = vmatpush3.bf16.msra.mxu0 %v15598_v48  ;;  %13965 = vmatpush3.bf16.msra.mxu1 %v15598_v48 }
 0x2d4   : > { %13960 = vmatprep.mubr.msk.bf16.mxu0 %vm14495_vm1, %v14494_v1  ;;  %13966 = vmatprep.mubr.msk.bf16.mxu1 %vm14495_vm1, %v14494_v1 }
 0x2d5   : > { %v5866_v58 = vpop.f32.mrb[248].mxu0  ;;  %v5906_v12 = vpop.f32.mrb[248].mxu1  ;;  %13970 = vmatprep.subr.bf16.mxu0 %v14494_v1  ;;  %13976 = vmatprep.subr.bf16.mxu1 %v14494_v1 }
 0x2d6   : > { %v13638_v47 = vpop.f32.mrb[249].mxu0  ;;  %v13644_v31 = vpop.f32.mrb[249].mxu1  ;;  %v15933_v5 = vadd.f32 %v5866_v58, %v15859_v34  ;;  %v15936_v45 = vadd.f32 %v5906_v12, %v15862_v44  ;;  %v8441_v58 = vor.u32 %v8440_v54, %v8436_v32 }
 0x2d7   : > { %v5869_v29 = vpop.f32.mrb[250].mxu0  ;;  %v5909_v52 = vpop.f32.mrb[250].mxu1 }
 0x2d8   : > { %v13639_v51 = vpop.f32.mrb[251].mxu0  ;;  %v13645_v41 = vpop.f32.mrb[251].mxu1  ;;  %v8544_v29 = vshll.u32 %v14467_v49, 16 }
 0x2da   : > { %13961 = vmatmul.mubr.msk.bf16.vlgmr.msra.gmra.mrb[100].mxu0 %vm212_vm2, %v8163_v4  ;;  %13967 = vmatmul.mubr.msk.bf16.vlgmr.msra.gmra.mrb[100].mxu1 %vm212_vm2, %v8216_v14 }
 0x2db   : > { %13971 = vmatpush3.bf16.msra.mxu0 %v14804_v18  ;;  %13977 = vmatpush3.bf16.msra.mxu1 %v14804_v18 }
 0x2dc   : > { %13972 = vmatprep.mubr.msk.bf16.mxu0 %vm14495_vm1, %v14494_v1  ;;  %13978 = vmatprep.mubr.msk.bf16.mxu1 %vm14495_vm1, %v14494_v1 }
 0x2dd   : > { %v5946_v34 = vpop.f32.mrb[252].mxu0  ;;  %v5986_v44 = vpop.f32.mrb[252].mxu1  ;;  %13982 = vmatprep.subr.bf16.mxu0 %v14494_v1  ;;  %13988 = vmatprep.subr.bf16.mxu1 %v14494_v1 }
 0x2de   : > { %v13650_v19 = vpop.f32.mrb[253].mxu0  ;;  %v13656_v10 = vpop.f32.mrb[253].mxu1  ;;  %v15949_v39 = vadd.f32 %v5946_v34, %v15877_v61  ;;  %v15952_v59 = vadd.f32 %v5986_v44, %v15880_v23 }
 0x2df   : > { %v5949_v2 = vpop.f32.mrb[254].mxu0  ;;  %v5989_v53 = vpop.f32.mrb[254].mxu1  ;;  %v8542_v19 = vshrl.u32 %v14467_v49, 16  ;;  %v8546_v10 = vrot.slane %v8544_v29, 1 }
 0x2e0   : > { %v13651_v43 = vpop.f32.mrb[255].mxu0  ;;  %v13657_v15 = vpop.f32.mrb[255].mxu1 }
 0x2e2   : > { %13973 = vmatmul.mubr.msk.bf16.vlgmr.msra.gmra.mrb[104].mxu0 %vm212_vm2, %v8057_v37  ;;  %13979 = vmatmul.mubr.msk.bf16.vlgmr.msra.gmra.mrb[104].mxu1 %vm212_vm2, %v8110_v30  ;;  %v8491_v37 = vshll.u32 %v14466_v8, 16 }
 0x2e3   : > { %13983 = vmatpush3.bf16.msra.mxu0 %v14804_v18  ;;  %13989 = vmatpush3.bf16.msra.mxu1 %v14804_v18 }
 0x2e4   : > { %13984 = vmatprep.mubr.msk.bf16.mxu0 %vm14495_vm1, %v14494_v1  ;;  %13990 = vmatprep.mubr.msk.bf16.mxu1 %vm14495_vm1, %v14494_v1  ;;  %v8493_v26 = vrot.slane %v8491_v37, 1 }
 0x2e5   : > { %v6041_v61 = vpop.f32.mrb[0].mxu0  ;;  %v6084_v23 = vpop.f32.mrb[0].mxu1  ;;  %13994 = vmatprep.subr.bf16.mxu0 %v14494_v1  ;;  %14000 = vmatprep.subr.bf16.mxu1 %v14494_v1 }
 0x2e6   : > { %v15967_v30 = vadd.f32 %v6041_v61, %v15641_v60  ;;  %v15970_v18 = vadd.f32 %v6084_v23, %v15644_v0  ;;  %v13662_v9 = vpop.f32.mrb[1].mxu0  ;;  %v13668_v16 = vpop.f32.mrb[1].mxu1  ;;  %v14468_v60 = vld [vmem:[%s14546_s19 + $0x110] ss:$0 sps:$4 sm:$0x77]   ;;  %v8494_v12 = vor.u32 %v8493_v26, %v8489_v17  ;;  %v8547_v61 = vor.u32 %v8546_v10, %v8542_v19 }
 0x2e7   : > { %v6044_v28 = vpop.f32.mrb[2].mxu0  ;;  %v6087_v35 = vpop.f32.mrb[2].mxu1  ;;  %v8597_v52 = vshll.u32 %v14468_v60, 16  ;;  %v8595_v2 = vshrl.u32 %v14468_v60, 16  ;;  %v12247_v19 = vld [vmem:[%s14546_s19 + $0x8] sm:$0x3] }
 0x2e8   : > { %v13663_v13 = vpop.f32.mrb[3].mxu0  ;;  %v13669_v46 = vpop.f32.mrb[3].mxu1 }
 0x2ea   : > { %13985 = vmatmul.mubr.msk.bf16.vlgmr.msra.gmra.mrb[108].mxu0 %vm212_vm2, %v8163_v4  ;;  %13991 = vmatmul.mubr.msk.bf16.vlgmr.msra.gmra.mrb[108].mxu1 %vm212_vm2, %v8216_v14 }
 0x2eb   : > { %13995 = vmatpush3.bf16.msra.mxu0 %v15752_v55  ;;  %14001 = vmatpush3.bf16.msra.mxu1 %v15752_v55 }
 0x2ec   : > { %13996 = vmatprep.mubr.msk.bf16.mxu0 %vm14495_vm1, %v14494_v1  ;;  %14002 = vmatprep.mubr.msk.bf16.mxu1 %vm14495_vm1, %v14494_v1 }
 0x2ed   : > { %v6127_v0 = vpop.f32.mrb[4].mxu0  ;;  %v6170_v63 = vpop.f32.mrb[4].mxu1  ;;  %14006 = vmatprep.subr.bf16.mxu0 %v14494_v1  ;;  %14012 = vmatprep.subr.bf16.mxu1 %v14494_v1 }
 0x2ee   : > { %v15985_v47 = vadd.f32 %v6127_v0, %v15659_v42  ;;  %v15988_v31 = vadd.f32 %v6170_v63, %v15662_v6  ;;  %v13674_v4 = vpop.f32.mrb[5].mxu0  ;;  %v13680_v14 = vpop.f32.mrb[5].mxu1  ;;  %v8599_v42 = vrot.slane %v8597_v52, 1 }
 0x2ef   : > { %v6130_v51 = vpop.f32.mrb[6].mxu0  ;;  %v6173_v41 = vpop.f32.mrb[6].mxu1 }
 0x2f0   : > { %v13675_v34 = vpop.f32.mrb[7].mxu0  ;;  %v13681_v44 = vpop.f32.mrb[7].mxu1  ;;  %v8600_v23 = vor.u32 %v8599_v42, %v8595_v2 }
 0x2f1   : > { %v12246_v44 = vld [vmem:[%s14546_s19 + $0x4] sm:$0x3] }
 0x2f2   : > { %13997 = vmatmul.mubr.msk.bf16.vlgmr.msra.gmra.mrb[112].mxu0 %vm212_vm2, %v8441_v58  ;;  %14003 = vmatmul.mubr.msk.bf16.vlgmr.msra.gmra.mrb[112].mxu1 %vm212_vm2, %v8494_v12 }
 0x2f3   : > { %14007 = vmatpush3.bf16.msra.mxu0 %v15752_v55  ;;  %14013 = vmatpush3.bf16.msra.mxu1 %v15752_v55 }
 0x2f4   : > { %14008 = vmatprep.mubr.msk.bf16.mxu0 %vm14495_vm1, %v14494_v1  ;;  %14014 = vmatprep.mubr.msk.bf16.mxu1 %vm14495_vm1, %v14494_v1 }
 0x2f5   : > { %v6214_v6 = vpop.f32.mrb[8].mxu0  ;;  %v6254_v53 = vpop.f32.mrb[8].mxu1  ;;  %14018 = vmatprep.subr.bf16.mxu0 %v14494_v1  ;;  %14024 = vmatprep.subr.bf16.mxu1 %v14494_v1 }
 0x2f6   : > { %v16001_v43 = vadd.f32 %v6214_v6, %v15713_v56  ;;  %v16004_v15 = vadd.f32 %v6254_v53, %v15716_v24  ;;  %v13686_v27 = vpop.f32.mrb[9].mxu0  ;;  %v13692_v8 = vpop.f32.mrb[9].mxu1 }
 0x2f7   : > { %v6217_v7 = vpop.f32.mrb[10].mxu0  ;;  %v6257_v37 = vpop.f32.mrb[10].mxu1 }
 0x2f8   : > { %v13687_v9 = vpop.f32.mrb[11].mxu0  ;;  %v13693_v16 = vpop.f32.mrb[11].mxu1  ;;  %v12249_v7 = vld [vmem:[%s14546_s19 + $0x10] sm:$0x3] }
 0x2fa   : > { %14009 = vmatmul.mubr.msk.bf16.vlgmr.msra.gmra.mrb[116].mxu0 %vm212_vm2, %v8547_v61  ;;  %14015 = vmatmul.mubr.msk.bf16.vlgmr.msra.gmra.mrb[116].mxu1 %vm212_vm2, %v8600_v23 }
 0x2fb   : > { %14019 = vmatpush3.bf16.msra.mxu0 %v14854_v25  ;;  %14025 = vmatpush3.bf16.msra.mxu1 %v14854_v25 }
 0x2fc   : > { %14020 = vmatprep.mubr.msk.bf16.mxu0 %vm14495_vm1, %v14494_v1  ;;  %14026 = vmatprep.mubr.msk.bf16.mxu1 %vm14495_vm1, %v14494_v1 }
 0x2fd   : > { %v6294_v56 = vpop.f32.mrb[12].mxu0  ;;  %v6334_v24 = vpop.f32.mrb[12].mxu1  ;;  %14030 = vmatprep.subr.bf16.mxu0 %v14494_v1  ;;  %14036 = vmatprep.subr.bf16.mxu1 %v14494_v1 }
 0x2fe   : > { %v16017_v28 = vadd.f32 %v6294_v56, %v15731_v22  ;;  %v16020_v35 = vadd.f32 %v6334_v24, %v15734_v38  ;;  %v13698_v13 = vpop.f32.mrb[13].mxu0  ;;  %v13704_v46 = vpop.f32.mrb[13].mxu1 }
 0x2ff   : > { %v6297_v32 = vpop.f32.mrb[14].mxu0  ;;  %v6337_v54 = vpop.f32.mrb[14].mxu1 }
 0x300   : > { %v13699_v17 = vpop.f32.mrb[15].mxu0  ;;  %v13705_v26 = vpop.f32.mrb[15].mxu1  ;;  %v12254_v54 = vld [vmem:[%s14546_s19 + $0x18] sm:$0x3] }
 0x301   : > { %v12255_v17 = vld [vmem:[%s14546_s19 + $0x1c] sm:$0x3] }
 0x302   : > { %14021 = vmatmul.mubr.msk.bf16.vlgmr.msra.gmra.mrb[120].mxu0 %vm212_vm2, %v8441_v58  ;;  %14027 = vmatmul.mubr.msk.bf16.vlgmr.msra.gmra.mrb[120].mxu1 %vm212_vm2, %v8494_v12 }
 0x303   : > { %14031 = vmatpush3.bf16.msra.mxu0 %v14854_v25  ;;  %14037 = vmatpush3.bf16.msra.mxu1 %v14854_v25 }
 0x304   : > { %14032 = vmatprep.mubr.msk.bf16.mxu0 %vm14495_vm1, %v14494_v1  ;;  %14038 = vmatprep.mubr.msk.bf16.mxu1 %vm14495_vm1, %v14494_v1 }
 0x305   : > { %v6389_v22 = vpop.f32.mrb[16].mxu0  ;;  %v6432_v38 = vpop.f32.mrb[16].mxu1  ;;  %14042 = vmatprep.subr.bf16.mxu0 %v14494_v1  ;;  %14048 = vmatprep.subr.bf16.mxu1 %v14494_v1 }
 0x306   : > { %v16033_v49 = vadd.f32 %v6389_v22, %v15967_v30  ;;  %v16036_v60 = vadd.f32 %v6432_v38, %v15970_v18  ;;  %v13710_v0 = vpop.f32.mrb[17].mxu0  ;;  %v13716_v25 = vpop.f32.mrb[17].mxu1 }
 0x307   : > { %v6392_v63 = vpop.f32.mrb[18].mxu0  ;;  %v6435_v58 = vpop.f32.mrb[18].mxu1 }
 0x308   : > { %v13711_v12 = vpop.f32.mrb[19].mxu0  ;;  %v13717_v4 = vpop.f32.mrb[19].mxu1 }
 0x309   : > { %v12256_v4 = vld [vmem:[%s14546_s19 + $0x20] sm:$0x3] }
 0x30a   : > { %14033 = vmatmul.mubr.msk.bf16.vlgmr.msra.gmra.mrb[124].mxu0 %vm212_vm2, %v8547_v61  ;;  %14039 = vmatmul.mubr.msk.bf16.vlgmr.msra.gmra.mrb[124].mxu1 %vm212_vm2, %v8600_v23  ;;  %v12248_v23 = vld [vmem:[%s14546_s19 + $0xc] sm:$0x3] }
 0x30b   : > { %14043 = vmatpush3.bf16.msra.mxu0 %v14952_v62  ;;  %14049 = vmatpush3.bf16.msra.mxu1 %v14952_v62 }
 0x30c   : > { %14044 = vmatprep.mubr.msk.bf16.mxu0 %vm14495_vm1, %v14494_v1  ;;  %14050 = vmatprep.mubr.msk.bf16.mxu1 %vm14495_vm1, %v14494_v1 }
 0x30d   : > { %v6475_v30 = vpop.f32.mrb[20].mxu0  ;;  %v6518_v18 = vpop.f32.mrb[20].mxu1  ;;  %14054 = vmatprep.subr.bf16.mxu0 %v14494_v1  ;;  %14060 = vmatprep.subr.bf16.mxu1 %v14494_v1 }
 0x30e   : > { %v16049_v14 = vadd.f32 %v6475_v30, %v15985_v47  ;;  %v16052_v29 = vadd.f32 %v6518_v18, %v15988_v31  ;;  %v13722_v52 = vpop.f32.mrb[21].mxu0  ;;  %v13728_v51 = vpop.f32.mrb[21].mxu1  ;;  %v12257_v30 = vld [vmem:[%s14546_s19 + $0x24] sm:$0x3] }
 0x30f   : > { %v6478_v41 = vpop.f32.mrb[22].mxu0  ;;  %v6521_v34 = vpop.f32.mrb[22].mxu1 }
 0x310   : > { %v13723_v10 = vpop.f32.mrb[23].mxu0  ;;  %v13729_v2 = vpop.f32.mrb[23].mxu1 }
 0x311   : > { %v12262_v2 = vld [vmem:[%s14546_s19 + $0x2c] sm:$0x3] }
 0x312   : > { %14045 = vmatmul.mubr.msk.bf16.vlgmr.msra.gmra.mrb[128].mxu0 %vm212_vm2, %v12246_v44  ;;  %14051 = vmatmul.mubr.msk.bf16.vlgmr.msra.gmra.mrb[128].mxu1 %vm212_vm2, %v12247_v19 }
 0x313   : > { %14055 = vmatpush3.bf16.msra.mxu0 %v14952_v62  ;;  %14061 = vmatpush3.bf16.msra.mxu1 %v14952_v62 }
 0x314   : > { %14056 = vmatprep.mubr.msk.bf16.mxu0 %vm14495_vm1, %v14494_v1  ;;  %14062 = vmatprep.mubr.msk.bf16.mxu1 %vm14495_vm1, %v14494_v1 }
 0x315   : > { %v6562_v47 = vpop.f32.mrb[24].mxu0  ;;  %v6602_v31 = vpop.f32.mrb[24].mxu1  ;;  %14066 = vmatprep.subr.bf16.mxu0 %v14494_v1  ;;  %14072 = vmatprep.subr.bf16.mxu1 %v14494_v1 }
 0x316   : > { %v16067_v42 = vadd.f32 %v6562_v47, %v16001_v43  ;;  %v16070_v6 = vadd.f32 %v6602_v31, %v16004_v15  ;;  %v13734_v53 = vpop.f32.mrb[25].mxu0  ;;  %v13740_v27 = vpop.f32.mrb[25].mxu1  ;;  %v12263_v47 = vld [vmem:[%s14546_s19 + $0x30] sm:$0x3] }
 0x317   : > { %v6565_v8 = vpop.f32.mrb[26].mxu0  ;;  %v6605_v61 = vpop.f32.mrb[26].mxu1 }
 0x318   : > { %v13735_v37 = vpop.f32.mrb[27].mxu0  ;;  %v13741_v9 = vpop.f32.mrb[27].mxu1 }
 0x319   : > { %v12264_v9 = vld [vmem:[%s14546_s19 + $0x34] sm:$0x3] }
 0x31a   : > { %14057 = vmatmul.mubr.msk.bf16.vlgmr.msra.gmra.mrb[132].mxu0 %vm212_vm2, %v12248_v23  ;;  %14063 = vmatmul.mubr.msk.bf16.vlgmr.msra.gmra.mrb[132].mxu1 %vm212_vm2, %v12249_v7 }
 0x31b   : > { %14067 = vmatpush3.bf16.msra.mxu0 %v14996_v33  ;;  %14073 = vmatpush3.bf16.msra.mxu1 %v14996_v33 }
 0x31c   : > { %14068 = vmatprep.mubr.msk.bf16.mxu0 %vm14495_vm1, %v14494_v1  ;;  %14074 = vmatprep.mubr.msk.bf16.mxu1 %vm14495_vm1, %v14494_v1 }
 0x31d   : > { %v6642_v43 = vpop.f32.mrb[28].mxu0  ;;  %v6682_v15 = vpop.f32.mrb[28].mxu1  ;;  %14078 = vmatprep.subr.bf16.mxu0 %v14494_v1  ;;  %14084 = vmatprep.subr.bf16.mxu1 %v14494_v1 }
 0x31e   : > { %v16085_v16 = vadd.f32 %v6642_v43, %v16017_v28  ;;  %v16088_v56 = vadd.f32 %v6682_v15, %v16020_v35  ;;  %v13746_v24 = vpop.f32.mrb[29].mxu0  ;;  %v13752_v13 = vpop.f32.mrb[29].mxu1  ;;  %v12265_v43 = vld [vmem:[%s14546_s19 + $0x38] sm:$0x3] }
 0x31f   : > { %v6645_v46 = vpop.f32.mrb[30].mxu0  ;;  %v6685_v32 = vpop.f32.mrb[30].mxu1 }
 0x320   : > { %v13747_v26 = vpop.f32.mrb[31].mxu0  ;;  %v13753_v22 = vpop.f32.mrb[31].mxu1 }
 0x322   : > { %14069 = vmatmul.mubr.msk.bf16.vlgmr.msra.gmra.mrb[136].mxu0 %vm212_vm2, %v12254_v54  ;;  %14075 = vmatmul.mubr.msk.bf16.vlgmr.msra.gmra.mrb[136].mxu1 %vm212_vm2, %v12255_v17 }
 0x323   : > { %14079 = vmatpush3.bf16.msra.mxu0 %v14996_v33  ;;  %14085 = vmatpush3.bf16.msra.mxu1 %v14996_v33 }
 0x324   : > { %14080 = vmatprep.mubr.msk.bf16.mxu0 %vm14495_vm1, %v14494_v1  ;;  %14086 = vmatprep.mubr.msk.bf16.mxu1 %vm14495_vm1, %v14494_v1 }
 0x325   : > { %v6737_v28 = vpop.f32.mrb[32].mxu0  ;;  %v6780_v35 = vpop.f32.mrb[32].mxu1  ;;  %14090 = vmatprep.subr.bf16.mxu0 %v14494_v1  ;;  %14096 = vmatprep.subr.bf16.mxu1 %v14494_v1 }
 0x326   : > { %v16103_v38 = vadd.f32 %v6737_v28, %v16033_v49  ;;  %v16106_v0 = vadd.f32 %v6780_v35, %v16036_v60  ;;  %v13758_v25 = vpop.f32.mrb[33].mxu0  ;;  %v13764_v63 = vpop.f32.mrb[33].mxu1 }
 0x327   : > { %v6740_v58 = vpop.f32.mrb[34].mxu0  ;;  %v6783_v12 = vpop.f32.mrb[34].mxu1 }
 0x328   : > { %v13759_v18 = vpop.f32.mrb[35].mxu0  ;;  %v13765_v52 = vpop.f32.mrb[35].mxu1 }
 0x32a   : > { %14081 = vmatmul.mubr.msk.bf16.vlgmr.msra.gmra.mrb[140].mxu0 %vm212_vm2, %v12256_v4  ;;  %14087 = vmatmul.mubr.msk.bf16.vlgmr.msra.gmra.mrb[140].mxu1 %vm212_vm2, %v12257_v30 }
 0x32b   : > { %14091 = vmatpush3.bf16.msra.mxu0 %v15074_v50  ;;  %14097 = vmatpush3.bf16.msra.mxu1 %v15074_v50 }
 0x32c   : > { %14092 = vmatprep.mubr.msk.bf16.mxu0 %vm14495_vm1, %v14494_v1  ;;  %14098 = vmatprep.mubr.msk.bf16.mxu1 %vm14495_vm1, %v14494_v1 }
 0x32d   : > { %v6823_v49 = vpop.f32.mrb[36].mxu0  ;;  %v6866_v60 = vpop.f32.mrb[36].mxu1  ;;  %14102 = vmatprep.subr.bf16.mxu0 %v14494_v1  ;;  %14108 = vmatprep.subr.bf16.mxu1 %v14494_v1 }
 0x32e   : > { %v16121_v51 = vadd.f32 %v6823_v49, %v16049_v14  ;;  %v16124_v41 = vadd.f32 %v6866_v60, %v16052_v29  ;;  %v13770_v34 = vpop.f32.mrb[37].mxu0  ;;  %v13776_v44 = vpop.f32.mrb[37].mxu1 }
 0x32f   : > { %v6826_v19 = vpop.f32.mrb[38].mxu0  ;;  %v6869_v10 = vpop.f32.mrb[38].mxu1 }
 0x330   : > { %v13771_v31 = vpop.f32.mrb[39].mxu0  ;;  %v13777_v53 = vpop.f32.mrb[39].mxu1  ;;  %v12274_v19 = vld [vmem:[%s14546_s19 + $0x40] sm:$0x3]  ;;  %v12275_v10 = vld [vmem:[%s14546_s19 + $0x44] sm:$0x3] }
 0x332   : > { %14093 = vmatmul.mubr.msk.bf16.vlgmr.msra.gmra.mrb[144].mxu0 %vm212_vm2, %v12262_v2  ;;  %14099 = vmatmul.mubr.msk.bf16.vlgmr.msra.gmra.mrb[144].mxu1 %vm212_vm2, %v12263_v47 }
 0x333   : > { %14103 = vmatpush3.bf16.msra.mxu0 %v15074_v50  ;;  %14109 = vmatpush3.bf16.msra.mxu1 %v15074_v50 }
 0x334   : > { %14104 = vmatprep.mubr.msk.bf16.mxu0 %vm14495_vm1, %v14494_v1  ;;  %14110 = vmatprep.mubr.msk.bf16.mxu1 %vm14495_vm1, %v14494_v1 }
 0x335   : > { %v6910_v14 = vpop.f32.mrb[40].mxu0  ;;  %v6950_v29 = vpop.f32.mrb[40].mxu1  ;;  %14114 = vmatprep.subr.bf16.mxu0 %v14494_v1  ;;  %14120 = vmatprep.subr.bf16.mxu1 %v14494_v1 }
 0x336   : > { %v16139_v27 = vadd.f32 %v6910_v14, %v15897_v11  ;;  %v16142_v8 = vadd.f32 %v6950_v29, %v15900_v21  ;;  %v13782_v61 = vpop.f32.mrb[41].mxu0  ;;  %v13788_v23 = vpop.f32.mrb[41].mxu1 }
 0x337   : > { %v6913_v7 = vpop.f32.mrb[42].mxu0  ;;  %v6953_v37 = vpop.f32.mrb[42].mxu1 }
 0x338   : > { %v13783_v15 = vpop.f32.mrb[43].mxu0  ;;  %v13789_v24 = vpop.f32.mrb[43].mxu1  ;;  %v12276_v7 = vld [vmem:[%s14546_s19 + $0x48] sm:$0x3]  ;;  %v12277_v37 = vld [vmem:[%s14546_s19 + $0x4c] sm:$0x3] }
 0x33a   : > { %14105 = vmatmul.mubr.msk.bf16.vlgmr.msra.gmra.mrb[148].mxu0 %vm212_vm2, %v12264_v9  ;;  %14111 = vmatmul.mubr.msk.bf16.vlgmr.msra.gmra.mrb[148].mxu1 %vm212_vm2, %v12265_v43 }
 0x33b   : > { %14115 = vmatpush3.bf16.msra.mxu0 %v14952_v62  ;;  %14121 = vmatpush3.bf16.msra.mxu1 %v14952_v62 }
 0x33c   : > { %14116 = vmatprep.mubr.msk.bf16.mxu0 %vm14495_vm1, %v14494_v1  ;;  %14122 = vmatprep.mubr.msk.bf16.mxu1 %vm14495_vm1, %v14494_v1 }
 0x33d   : > { %v6990_v11 = vpop.f32.mrb[44].mxu0  ;;  %v7030_v21 = vpop.f32.mrb[44].mxu1  ;;  %14126 = vmatprep.subr.bf16.mxu0 %v14494_v1  ;;  %14132 = vmatprep.subr.bf16.mxu1 %v14494_v1 }
 0x33e   : > { %v16157_v13 = vadd.f32 %v6990_v11, %v15917_v40  ;;  %v16160_v46 = vadd.f32 %v7030_v21, %v15920_v57  ;;  %v13794_v32 = vpop.f32.mrb[45].mxu0  ;;  %v13800_v54 = vpop.f32.mrb[45].mxu1 }
 0x33f   : > { %v6993_v17 = vpop.f32.mrb[46].mxu0  ;;  %v7033_v26 = vpop.f32.mrb[46].mxu1 }
 0x340   : > { %v13795_v22 = vpop.f32.mrb[47].mxu0  ;;  %v13801_v28 = vpop.f32.mrb[47].mxu1 }
 0x341   : > { %v14469_v22 = vld [vmem:[%s14546_s19 + $0x4] ss:$0 sps:$4 sm:$0x77]   ;;  %v14470_v28 = vld [vmem:[%s14546_s19 + $0x8] ss:$0 sps:$4 sm:$0x77]  }
 0x342   : > { %14117 = vmatmul.mubr.msk.bf16.vlgmr.msra.gmra.mrb[152].mxu0 %vm212_vm2, %v12262_v2  ;;  %14123 = vmatmul.mubr.msk.bf16.vlgmr.msra.gmra.mrb[152].mxu1 %vm212_vm2, %v12263_v47 }
 0x343   : > { %14127 = vmatpush3.bf16.msra.mxu0 %v14952_v62  ;;  %14133 = vmatpush3.bf16.msra.mxu1 %v14952_v62 }
 0x344   : > { %14128 = vmatprep.mubr.msk.bf16.mxu0 %vm14495_vm1, %v14494_v1  ;;  %14134 = vmatprep.mubr.msk.bf16.mxu1 %vm14495_vm1, %v14494_v1 }
 0x345   : > { %v7074_v40 = vpop.f32.mrb[48].mxu0  ;;  %v7114_v57 = vpop.f32.mrb[48].mxu1  ;;  %14138 = vmatprep.subr.bf16.mxu0 %v14494_v1  ;;  %14144 = vmatprep.subr.bf16.mxu1 %v14494_v1 }
 0x346   : > { %v16173_v35 = vadd.f32 %v7074_v40, %v16067_v42  ;;  %v16176_v25 = vadd.f32 %v7114_v57, %v16070_v6  ;;  %v13806_v63 = vpop.f32.mrb[49].mxu0  ;;  %v13812_v62 = vpop.f32.mrb[49].mxu1  ;;  %v9874_v40 = vshll.u32 %v14469_v22, 16  ;;  %v9927_v57 = vshll.u32 %v14470_v28, 16 }
 0x347   : > { %v7077_v58 = vpop.f32.mrb[50].mxu0  ;;  %v7117_v12 = vpop.f32.mrb[50].mxu1 }
 0x348   : > { %v13807_v4 = vpop.f32.mrb[51].mxu0  ;;  %v13813_v30 = vpop.f32.mrb[51].mxu1 }
 0x34a   : > { %14129 = vmatmul.mubr.msk.bf16.vlgmr.msra.gmra.mrb[156].mxu0 %vm212_vm2, %v12264_v9  ;;  %14135 = vmatmul.mubr.msk.bf16.vlgmr.msra.gmra.mrb[156].mxu1 %vm212_vm2, %v12265_v43 }
 0x34b   : > { %14139 = vmatpush3.bf16.msra.mxu0 %v15176_v3  ;;  %14145 = vmatpush3.bf16.msra.mxu1 %v15176_v3 }
 0x34c   : > { %14140 = vmatprep.mubr.msk.bf16.mxu0 %vm14495_vm1, %v14494_v1  ;;  %14146 = vmatprep.mubr.msk.bf16.mxu1 %vm14495_vm1, %v14494_v1 }
 0x34d   : > { %v7154_v42 = vpop.f32.mrb[52].mxu0  ;;  %v7194_v6 = vpop.f32.mrb[52].mxu1  ;;  %14150 = vmatprep.subr.bf16.mxu0 %v14494_v1  ;;  %14156 = vmatprep.subr.bf16.mxu1 %v14494_v1 }
 0x34e   : > { %v16189_v18 = vadd.f32 %v7154_v42, %v16085_v16  ;;  %v16192_v52 = vadd.f32 %v7194_v6, %v16088_v56  ;;  %v13818_v49 = vpop.f32.mrb[53].mxu0  ;;  %v13824_v60 = vpop.f32.mrb[53].mxu1  ;;  %v9872_v6 = vshrl.u32 %v14469_v22, 16 }
 0x34f   : > { %v7157_v34 = vpop.f32.mrb[54].mxu0  ;;  %v7197_v44 = vpop.f32.mrb[54].mxu1  ;;  %v9876_v49 = vrot.slane %v9874_v40, 1  ;;  %v9925_v60 = vshrl.u32 %v14470_v28, 16 }
 0x350   : > { %v13819_v2 = vpop.f32.mrb[55].mxu0  ;;  %v13825_v47 = vpop.f32.mrb[55].mxu1  ;;  %v9929_v34 = vrot.slane %v9927_v57, 1  ;;  %v14471_v44 = vld [vmem:[%s14546_s19 + $0xc] ss:$0 sps:$4 sm:$0x77]  }
 0x352   : > { %14141 = vmatmul.mubr.msk.bf16.vlgmr.msra.gmra.mrb[160].mxu0 %vm212_vm2, %v12274_v19  ;;  %14147 = vmatmul.mubr.msk.bf16.vlgmr.msra.gmra.mrb[160].mxu1 %vm212_vm2, %v12275_v10  ;;  %v9930_v2 = vor.u32 %v9929_v34, %v9925_v60 }
 0x353   : > { %14151 = vmatpush3.bf16.msra.mxu0 %v15176_v3  ;;  %14157 = vmatpush3.bf16.msra.mxu1 %v15176_v3 }
 0x354   : > { %14152 = vmatprep.mubr.msk.bf16.mxu0 %vm14495_vm1, %v14494_v1  ;;  %14158 = vmatprep.mubr.msk.bf16.mxu1 %vm14495_vm1, %v14494_v1 }
 0x355   : > { %v7238_v16 = vpop.f32.mrb[56].mxu0  ;;  %v7278_v56 = vpop.f32.mrb[56].mxu1  ;;  %14162 = vmatprep.subr.bf16.mxu0 %v14494_v1  ;;  %14168 = vmatprep.subr.bf16.mxu1 %v14494_v1 }
 0x356   : > { %v16207_v31 = vadd.f32 %v7238_v16, %v15933_v5  ;;  %v16210_v53 = vadd.f32 %v7278_v56, %v15936_v45  ;;  %v13830_v14 = vpop.f32.mrb[57].mxu0  ;;  %v13836_v29 = vpop.f32.mrb[57].mxu1 }
 0x357   : > { %v7241_v61 = vpop.f32.mrb[58].mxu0  ;;  %v7281_v23 = vpop.f32.mrb[58].mxu1  ;;  %v9980_v29 = vshll.u32 %v14471_v44, 16 }
 0x358   : > { %v13831_v9 = vpop.f32.mrb[59].mxu0  ;;  %v13837_v43 = vpop.f32.mrb[59].mxu1 }
 0x359   : > { %v14473_v43 = vld [vmem:[%s14546_s19 + $0x18] ss:$0 sps:$4 sm:$0x77]  }
 0x35a   : > { %14153 = vmatmul.mubr.msk.bf16.vlgmr.msra.gmra.mrb[164].mxu0 %vm212_vm2, %v12276_v7  ;;  %14159 = vmatmul.mubr.msk.bf16.vlgmr.msra.gmra.mrb[164].mxu1 %vm212_vm2, %v12277_v37 }
 0x35b   : > { %14163 = vmatpush3.bf16.msra.mxu0 %v14996_v33  ;;  %14169 = vmatpush3.bf16.msra.mxu1 %v14996_v33 }
 0x35c   : > { %14164 = vmatprep.mubr.msk.bf16.mxu0 %vm14495_vm1, %v14494_v1  ;;  %14170 = vmatprep.mubr.msk.bf16.mxu1 %vm14495_vm1, %v14494_v1 }
 0x35d   : > { %v7318_v5 = vpop.f32.mrb[60].mxu0  ;;  %v7358_v45 = vpop.f32.mrb[60].mxu1  ;;  %14174 = vmatprep.subr.bf16.mxu0 %v14494_v1  ;;  %14180 = vmatprep.subr.bf16.mxu1 %v14494_v1 }
 0x35e   : > { %v16225_v15 = vadd.f32 %v7318_v5, %v15949_v39  ;;  %v16228_v24 = vadd.f32 %v7358_v45, %v15952_v59  ;;  %v13842_v11 = vpop.f32.mrb[61].mxu0  ;;  %v13848_v21 = vpop.f32.mrb[61].mxu1  ;;  %v14474_v5 = vld [vmem:[%s14546_s19 + $0x1c] ss:$0 sps:$4 sm:$0x77]   ;;  %v9978_v45 = vshrl.u32 %v14471_v44, 16 }
 0x35f   : > { %v7321_v32 = vpop.f32.mrb[62].mxu0  ;;  %v7361_v54 = vpop.f32.mrb[62].mxu1 }
 0x360   : > { %v13843_v17 = vpop.f32.mrb[63].mxu0  ;;  %v13849_v26 = vpop.f32.mrb[63].mxu1  ;;  %v10094_v54 = vshll.u32 %v14473_v43, 16 }
 0x361   : > { %v10147_v17 = vshll.u32 %v14474_v5, 16 }
 0x362   : > { %14165 = vmatmul.mubr.msk.bf16.vlgmr.msra.gmra.mrb[168].mxu0 %vm212_vm2, %v12274_v19  ;;  %14171 = vmatmul.mubr.msk.bf16.vlgmr.msra.gmra.mrb[168].mxu1 %vm212_vm2, %v12275_v10  ;;  %v9877_v10 = vor.u32 %v9876_v49, %v9872_v6 }
 0x363   : > { %14175 = vmatpush3.bf16.msra.mxu0 %v14996_v33  ;;  %14181 = vmatpush3.bf16.msra.mxu1 %v14996_v33 }
 0x364   : > { %14176 = vmatprep.mubr.msk.bf16.mxu0 %vm14495_vm1, %v14494_v1  ;;  %14182 = vmatprep.mubr.msk.bf16.mxu1 %vm14495_vm1, %v14494_v1 }
 0x365   : > { %v7413_v39 = vpop.f32.mrb[64].mxu0  ;;  %v7456_v59 = vpop.f32.mrb[64].mxu1  ;;  %14186 = vmatprep.subr.bf16.mxu0 %v14494_v1  ;;  %14192 = vmatprep.subr.bf16.mxu1 %v14494_v1 }
 0x366   : > { %v16243_v63 = vadd.f32 %v7413_v39, %v16103_v38  ;;  %v16246_v33 = vadd.f32 %v7456_v59, %v16106_v0  ;;  %v13854_v62 = vpop.f32.mrb[65].mxu0  ;;  %v13860_v58 = vpop.f32.mrb[65].mxu1  ;;  %v14472_v38 = vld [vmem:[%s14546_s19 + $0x10] ss:$0 sps:$4 sm:$0x77]  }
 0x367   : > { %v7416_v12 = vpop.f32.mrb[66].mxu0  ;;  %v7459_v4 = vpop.f32.mrb[66].mxu1  ;;  %v10033_v61 = vshll.u32 %v14472_v38, 16  ;;  %v10031_v11 = vshrl.u32 %v14472_v38, 16 }
 0x368   : > { %v13855_v30 = vpop.f32.mrb[67].mxu0  ;;  %v13861_v42 = vpop.f32.mrb[67].mxu1  ;;  %v10092_v12 = vshrl.u32 %v14473_v43, 16  ;;  %v10096_v4 = vrot.slane %v10094_v54, 1 }
 0x369   : > { %v10035_v21 = vrot.slane %v10033_v61, 1  ;;  %v10145_v30 = vshrl.u32 %v14474_v5, 16  ;;  %v10149_v42 = vrot.slane %v10147_v17, 1 }
 0x36a   : > { %14177 = vmatmul.mubr.msk.bf16.vlgmr.msra.gmra.mrb[172].mxu0 %vm212_vm2, %v12276_v7  ;;  %14183 = vmatmul.mubr.msk.bf16.vlgmr.msra.gmra.mrb[172].mxu1 %vm212_vm2, %v12277_v37  ;;  %v10097_v60 = vor.u32 %v10096_v4, %v10092_v12 }
 0x36b   : > { %14187 = vmatpush3.bf16.msra.mxu0 %v15074_v50  ;;  %14193 = vmatpush3.bf16.msra.mxu1 %v15074_v50  ;;  %v10036_v59 = vor.u32 %v10035_v21, %v10031_v11  ;;  %v10150_v34 = vor.u32 %v10149_v42, %v10145_v30 }
 0x36c   : > { %14188 = vmatprep.mubr.msk.bf16.mxu0 %vm14495_vm1, %v14494_v1  ;;  %14194 = vmatprep.mubr.msk.bf16.mxu1 %vm14495_vm1, %v14494_v1 }
 0x36d   : > { %v7499_v0 = vpop.f32.mrb[68].mxu0  ;;  %v7542_v19 = vpop.f32.mrb[68].mxu1  ;;  %14198 = vmatprep.subr.bf16.mxu0 %v14494_v1  ;;  %14204 = vmatprep.subr.bf16.mxu1 %v14494_v1 }
 0x36e   : > { %v16261_v47 = vadd.f32 %v7499_v0, %v16121_v51  ;;  %v16264_v16 = vadd.f32 %v7542_v19, %v16124_v41  ;;  %v13866_v56 = vpop.f32.mrb[69].mxu0  ;;  %v13872_v14 = vpop.f32.mrb[69].mxu1  ;;  %v9982_v51 = vrot.slane %v9980_v29, 1 }
 0x36f   : > { %v7502_v23 = vpop.f32.mrb[70].mxu0  ;;  %v7545_v7 = vpop.f32.mrb[70].mxu1 }
 0x370   : > { %v13867_v37 = vpop.f32.mrb[71].mxu0  ;;  %v13873_v9 = vpop.f32.mrb[71].mxu1  ;;  %v9983_v39 = vor.u32 %v9982_v51, %v9978_v45 }
 0x372   : > { %14189 = vmatmul.mubr.msk.bf16.vlgmr.msra.gmra.mrb[176].mxu0 %vm212_vm2, %v9877_v10  ;;  %14195 = vmatmul.mubr.msk.bf16.vlgmr.msra.gmra.mrb[176].mxu1 %vm212_vm2, %v9930_v2 }
 0x373   : > { %14199 = vmatpush3.bf16.msra.mxu0 %v15074_v50  ;;  %14205 = vmatpush3.bf16.msra.mxu1 %v15074_v50 }
 0x374   : > { %14200 = vmatprep.mubr.msk.bf16.mxu0 %vm14495_vm1, %v14494_v1  ;;  %14206 = vmatprep.mubr.msk.bf16.mxu1 %vm14495_vm1, %v14494_v1 }
 0x375   : > { %v7586_v41 = vpop.f32.mrb[72].mxu0  ;;  %v7626_v32 = vpop.f32.mrb[72].mxu1  ;;  %14210 = vmatprep.subr.bf16.mxu0 %v14494_v1  ;;  %14216 = vmatprep.subr.bf16.mxu1 %v14494_v1 }
 0x376   : > { %v16279_v26 = vadd.f32 %v7586_v41, %v16139_v27  ;;  %v16282_v50 = vadd.f32 %v7626_v32, %v16142_v8  ;;  %v13878_v22 = vpop.f32.mrb[73].mxu0  ;;  %v13884_v28 = vpop.f32.mrb[73].mxu1  ;;  %v14475_v27 = vld [vmem:[%s14546_s19 + $0x20] ss:$0 sps:$4 sm:$0x77]  }
 0x377   : > { %v7589_v40 = vpop.f32.mrb[74].mxu0  ;;  %v7629_v57 = vpop.f32.mrb[74].mxu1  ;;  %v14476_v8 = vld [vmem:[%s14546_s19 + $0x24] ss:$0 sps:$4 sm:$0x77]   ;;  %v10200_v10 = vshll.u32 %v14475_v27, 16 }
 0x378   : > { %v13879_v62 = vpop.f32.mrb[75].mxu0  ;;  %v13885_v58 = vpop.f32.mrb[75].mxu1  ;;  %v10253_v2 = vshll.u32 %v14476_v8, 16  ;;  %v10198_v23 = vshrl.u32 %v14475_v27, 16  ;;  %v10251_v37 = vshrl.u32 %v14476_v8, 16 }
 0x379   : > { %v10202_v7 = vrot.slane %v10200_v10, 1  ;;  %v12310_v57 = vld [vmem:[%s14546_s19 + $0x54] sm:$0x3]  ;;  %v12311_v62 = vld [vmem:[%s14546_s19 + $0x58] sm:$0x3] }
 0x37a   : > { %14201 = vmatmul.mubr.msk.bf16.vlgmr.msra.gmra.mrb[180].mxu0 %vm212_vm2, %v9983_v39  ;;  %14207 = vmatmul.mubr.msk.bf16.vlgmr.msra.gmra.mrb[180].mxu1 %vm212_vm2, %v10036_v59 }
 0x37b   : > { %14211 = vmatpush3.bf16.msra.mxu0 %v15176_v3  ;;  %14217 = vmatpush3.bf16.msra.mxu1 %v15176_v3  ;;  %v10203_v51 = vor.u32 %v10202_v7, %v10198_v23  ;;  %v12319_v23 = vld [vmem:[%s14546_s19 + $0x6c] sm:$0x3] }
 0x37c   : > { %14212 = vmatprep.mubr.msk.bf16.mxu0 %vm14495_vm1, %v14494_v1  ;;  %14218 = vmatprep.mubr.msk.bf16.mxu1 %vm14495_vm1, %v14494_v1 }
 0x37d   : > { %v7666_v6 = vpop.f32.mrb[76].mxu0  ;;  %v7706_v49 = vpop.f32.mrb[76].mxu1  ;;  %14222 = vmatprep.subr.bf16.mxu0 %v14494_v1  ;;  %14228 = vmatprep.subr.bf16.mxu1 %v14494_v1 }
 0x37e   : > { %v16297_v44 = vadd.f32 %v7666_v6, %v16157_v13  ;;  %v16300_v38 = vadd.f32 %v7706_v49, %v16160_v46  ;;  %v13890_v0 = vpop.f32.mrb[77].mxu0  ;;  %v13896_v19 = vpop.f32.mrb[77].mxu1  ;;  %v10255_v13 = vrot.slane %v10253_v2, 1  ;;  %v12312_v49 = vld [vmem:[%s14546_s19 + $0x5c] sm:$0x3] }
 0x37f   : > { %v7669_v56 = vpop.f32.mrb[78].mxu0  ;;  %v7709_v14 = vpop.f32.mrb[78].mxu1 }
 0x380   : > { %v13891_v29 = vpop.f32.mrb[79].mxu0  ;;  %v13897_v61 = vpop.f32.mrb[79].mxu1  ;;  %v10256_v11 = vor.u32 %v10255_v13, %v10251_v37 }
 0x381   : > { %v12318_v61 = vld [vmem:[%s14546_s19 + $0x68] sm:$0x3] }
 0x382   : > { %14213 = vmatmul.mubr.msk.bf16.vlgmr.msra.gmra.mrb[184].mxu0 %vm212_vm2, %v10097_v60  ;;  %14219 = vmatmul.mubr.msk.bf16.vlgmr.msra.gmra.mrb[184].mxu1 %vm212_vm2, %v10150_v34  ;;  %v12313_v60 = vld [vmem:[%s14546_s19 + $0x60] sm:$0x3] }
 0x383   : > { %14223 = vmatpush3.bf16.msra.mxu0 %v15176_v3  ;;  %14229 = vmatpush3.bf16.msra.mxu1 %v15176_v3 }
 0x384   : > { %14224 = vmatprep.mubr.msk.bf16.mxu0 %vm14495_vm1, %v14494_v1  ;;  %14230 = vmatprep.mubr.msk.bf16.mxu1 %vm14495_vm1, %v14494_v1 }
 0x385   : > { %v7750_v46 = vpop.f32.mrb[80].mxu0  ;;  %v7790_v9 = vpop.f32.mrb[80].mxu1  ;;  %14234 = vmatprep.subr.bf16.mxu0 %v14494_v1  ;;  %14240 = vmatprep.subr.bf16.mxu1 %v14494_v1 }
 0x386   : > { %v16313_v43 = vadd.f32 %v7750_v46, %v16173_v35  ;;  %v16316_v5 = vadd.f32 %v7790_v9, %v16176_v25  ;;  %v13902_v45 = vpop.f32.mrb[81].mxu0  ;;  %v13908_v3 = vpop.f32.mrb[81].mxu1 }
 0x387   : > { %v7753_v21 = vpop.f32.mrb[82].mxu0  ;;  %v7793_v41 = vpop.f32.mrb[82].mxu1 }
 0x388   : > { %v13903_v32 = vpop.f32.mrb[83].mxu0  ;;  %v13909_v54 = vpop.f32.mrb[83].mxu1  ;;  %v12321_v21 = vld [vmem:[%s14546_s19 + $0x74] sm:$0x3] }
 0x38a   : > { %14225 = vmatmul.mubr.msk.bf16.vlgmr.msra.gmra.mrb[188].mxu0 %vm212_vm2, %v10203_v51  ;;  %14231 = vmatmul.mubr.msk.bf16.vlgmr.msra.gmra.mrb[188].mxu1 %vm212_vm2, %v10256_v11  ;;  %v12320_v11 = vld [vmem:[%s14546_s19 + $0x70] sm:$0x3] }
 0x38b   : > { %14235 = vmatpush3.bf16.msra.mxu0 %v15460_v36  ;;  %14241 = vmatpush3.bf16.msra.mxu1 %v15460_v36 }
 0x38c   : > { %14236 = vmatprep.mubr.msk.bf16.mxu0 %vm14495_vm1, %v14494_v1  ;;  %14242 = vmatprep.mubr.msk.bf16.mxu1 %vm14495_vm1, %v14494_v1 }
 0x38d   : > { %v7830_v35 = vpop.f32.mrb[84].mxu0  ;;  %v7870_v25 = vpop.f32.mrb[84].mxu1  ;;  %14246 = vmatprep.subr.bf16.mxu0 %v14494_v1  ;;  %14252 = vmatprep.subr.bf16.mxu1 %v14494_v1 }
 0x38e   : > { %v16329_v17 = vadd.f32 %v7830_v35, %v16189_v18  ;;  %v16332_v22 = vadd.f32 %v7870_v25, %v16192_v52  ;;  %v13914_v28 = vpop.f32.mrb[85].mxu0  ;;  %v13920_v39 = vpop.f32.mrb[85].mxu1 }
 0x38f   : > { %v7833_v59 = vpop.f32.mrb[86].mxu0  ;;  %v7873_v40 = vpop.f32.mrb[86].mxu1 }
 0x390   : > { %v13915_v58 = vpop.f32.mrb[87].mxu0  ;;  %v13921_v12 = vpop.f32.mrb[87].mxu1  ;;  %v12326_v40 = vld [vmem:[%s14546_s19 + $0x7c] sm:$0x3] }
 0x392   : > { %14237 = vmatmul.mubr.msk.bf16.vlgmr.msra.gmra.mrb[192].mxu0 %vm212_vm2, %v12310_v57  ;;  %14243 = vmatmul.mubr.msk.bf16.vlgmr.msra.gmra.mrb[192].mxu1 %vm212_vm2, %v12311_v62  ;;  %v12327_v57 = vld [vmem:[%s14546_s19 + $0x80] sm:$0x3] }
 0x393   : > { %14247 = vmatpush3.bf16.msra.mxu0 %v15460_v36  ;;  %14253 = vmatpush3.bf16.msra.mxu1 %v15460_v36 }
 0x394   : > { %14248 = vmatprep.mubr.msk.bf16.mxu0 %vm14495_vm1, %v14494_v1  ;;  %14254 = vmatprep.mubr.msk.bf16.mxu1 %vm14495_vm1, %v14494_v1 }
 0x395   : > { %v7914_v18 = vpop.f32.mrb[88].mxu0  ;;  %v7954_v52 = vpop.f32.mrb[88].mxu1  ;;  %14258 = vmatprep.subr.bf16.mxu0 %v14494_v1  ;;  %14264 = vmatprep.subr.bf16.mxu1 %v14494_v1 }
 0x396   : > { %v16347_v4 = vadd.f32 %v7914_v18, %v16207_v31  ;;  %v16350_v30 = vadd.f32 %v7954_v52, %v16210_v53  ;;  %v13926_v42 = vpop.f32.mrb[89].mxu0  ;;  %v13932_v27 = vpop.f32.mrb[89].mxu1 }
 0x397   : > { %v7917_v8 = vpop.f32.mrb[90].mxu0  ;;  %v7957_v6 = vpop.f32.mrb[90].mxu1 }
 0x398   : > { %v13927_v34 = vpop.f32.mrb[91].mxu0  ;;  %v13933_v0 = vpop.f32.mrb[91].mxu1  ;;  %v12328_v6 = vld [vmem:[%s14546_s19 + $0x84] sm:$0x3] }
 0x39a   : > { %14249 = vmatmul.mubr.msk.bf16.vlgmr.msra.gmra.mrb[196].mxu0 %vm212_vm2, %v12312_v49  ;;  %14255 = vmatmul.mubr.msk.bf16.vlgmr.msra.gmra.mrb[196].mxu1 %vm212_vm2, %v12313_v60  ;;  %v12329_v49 = vld [vmem:[%s14546_s19 + $0x88] sm:$0x3] }
 0x39b   : > { %14259 = vmatpush3.bf16.msra.mxu0 %v15524_v20  ;;  %14265 = vmatpush3.bf16.msra.mxu1 %v15524_v20 }
 0x39c   : > { %14260 = vmatprep.mubr.msk.bf16.mxu0 %vm14495_vm1, %v14494_v1  ;;  %14266 = vmatprep.mubr.msk.bf16.mxu1 %vm14495_vm1, %v14494_v1 }
 0x39d   : > { %v7994_v31 = vpop.f32.mrb[92].mxu0  ;;  %v8034_v53 = vpop.f32.mrb[92].mxu1  ;;  %14270 = vmatprep.subr.bf16.mxu0 %v14494_v1  ;;  %14276 = vmatprep.subr.bf16.mxu1 %v14494_v1 }
 0x39e   : > { %v16365_v19 = vadd.f32 %v7994_v31, %v16225_v15  ;;  %v16368_v10 = vadd.f32 %v8034_v53, %v16228_v24  ;;  %v13938_v2 = vpop.f32.mrb[93].mxu0  ;;  %v13944_v56 = vpop.f32.mrb[93].mxu1 }
 0x39f   : > { %v7997_v14 = vpop.f32.mrb[94].mxu0  ;;  %v8037_v29 = vpop.f32.mrb[94].mxu1 }
 0x3a0   : > { %v13939_v7 = vpop.f32.mrb[95].mxu0  ;;  %v13945_v37 = vpop.f32.mrb[95].mxu1 }
 0x3a2   : > { %14261 = vmatmul.mubr.msk.bf16.vlgmr.msra.gmra.mrb[200].mxu0 %vm212_vm2, %v12318_v61  ;;  %14267 = vmatmul.mubr.msk.bf16.vlgmr.msra.gmra.mrb[200].mxu1 %vm212_vm2, %v12319_v23  ;;  %v16447_v23 = vld [vmem:[%s16655_s2] ss:$0 sm:$0xff] }
 0x3a3   : > { %14271 = vmatpush3.bf16.msra.mxu0 %v15524_v20  ;;  %14277 = vmatpush3.bf16.msra.mxu1 %v15524_v20  ;;  %v11803_v7 = vadd.f32 %v16447_v23, %v16243_v63  ;;  %v11804_v37 = vadd.f32 %v16447_v23, %v16246_v33 }
 0x3a4   : > { %14272 = vmatprep.mubr.msk.bf16.mxu0 %vm14495_vm1, %v14494_v1  ;;  %14278 = vmatprep.mubr.msk.bf16.mxu1 %vm14495_vm1, %v14494_v1 }
 0x3a5   : > { %v8095_v15 = vpop.f32.mrb[96].mxu0  ;;  %v8148_v24 = vpop.f32.mrb[96].mxu1  ;;  %14282 = vmatprep.subr.bf16.mxu0 %v14494_v1  ;;  %14288 = vmatprep.subr.bf16.mxu1 %v14494_v1 }
 0x3a6   : > { %v16383_v13 = vadd.f32 %v8095_v15, %v16279_v26  ;;  %v16386_v46 = vadd.f32 %v8148_v24, %v16282_v50  ;;  %v13950_v9 = vpop.f32.mrb[97].mxu0  ;;  %v13956_v45 = vpop.f32.mrb[97].mxu1 }
 0x3a7   : > { %v8098_v3 = vpop.f32.mrb[98].mxu0  ;;  %v8151_v51 = vpop.f32.mrb[98].mxu1 }
 0x3a8   : > { %v13951_v41 = vpop.f32.mrb[99].mxu0  ;;  %v13957_v32 = vpop.f32.mrb[99].mxu1 }
 0x3a9   : > { %v11807_v32 = vmax.f32 %v11803_v7, 0.0 }
 0x3aa   : > { %14273 = vmatmul.mubr.msk.bf16.vlgmr.msra.gmra.mrb[204].mxu0 %vm212_vm2, %v12320_v11  ;;  %14279 = vmatmul.mubr.msk.bf16.vlgmr.msra.gmra.mrb[204].mxu1 %vm212_vm2, %v12321_v21 }
 0x3ab   : > { %14283 = vmatpush3.bf16.msra.mxu0 %v15598_v48  ;;  %14289 = vmatpush3.bf16.msra.mxu1 %v15598_v48 }
 0x3ac   : > { %14284 = vmatprep.mubr.msk.bf16.mxu0 %vm14495_vm1, %v14494_v1  ;;  %14290 = vmatprep.mubr.msk.bf16.mxu1 %vm14495_vm1, %v14494_v1 }
 0x3ad   : > { %v8201_v26 = vpop.f32.mrb[100].mxu0  ;;  %v8254_v50 = vpop.f32.mrb[100].mxu1  ;;  %14294 = vmatprep.subr.bf16.mxu0 %v14494_v1  ;;  %14300 = vmatprep.subr.bf16.mxu1 %v14494_v1 }
 0x3ae   : > { %v16401_v54 = vadd.f32 %v8201_v26, %v16297_v44  ;;  %v16404_v35 = vadd.f32 %v8254_v50, %v16300_v38  ;;  %v13962_v25 = vpop.f32.mrb[101].mxu0  ;;  %v13968_v28 = vpop.f32.mrb[101].mxu1  ;;  %v11808_v26 = vmax.f32 %v11804_v37, 0.0 }
 0x3af   : > { %v8204_v39 = vpop.f32.mrb[102].mxu0  ;;  %v8257_v59 = vpop.f32.mrb[102].mxu1  ;;  %v11805_v28 = vadd.f32 %v16447_v23, %v16261_v47 }
 0x3b0   : > { %v13963_v62 = vpop.f32.mrb[103].mxu0  ;;  %v13969_v58 = vpop.f32.mrb[103].mxu1  ;;  %v11806_v39 = vadd.f32 %v16447_v23, %v16264_v16 }
 0x3b1   : > { %v11809_v47 = vmax.f32 %v11805_v28, 0.0 }
 0x3b2   : > { %14285 = vmatmul.mubr.msk.bf16.vlgmr.msra.gmra.mrb[208].mxu0 %vm212_vm2, %v12326_v40  ;;  %14291 = vmatmul.mubr.msk.bf16.vlgmr.msra.gmra.mrb[208].mxu1 %vm212_vm2, %v12327_v57 }
 0x3b3   : > { %14295 = vmatpush3.bf16.msra.mxu0 %v15598_v48  ;;  %14301 = vmatpush3.bf16.msra.mxu1 %v15598_v48 }
 0x3b4   : > { %14296 = vmatprep.mubr.msk.bf16.mxu0 %vm14495_vm1, %v14494_v1  ;;  %14302 = vmatprep.mubr.msk.bf16.mxu1 %vm14495_vm1, %v14494_v1 }
 0x3b5   : > { %v8298_v44 = vpop.f32.mrb[104].mxu0  ;;  %v8338_v38 = vpop.f32.mrb[104].mxu1  ;;  %14306 = vmatprep.subr.bf16.mxu0 %v14494_v1  ;;  %14312 = vmatprep.subr.bf16.mxu1 %v14494_v1 }
 0x3b6   : > { %v16419_v12 = vadd.f32 %v8298_v44, %v16347_v4  ;;  %v16422_v18 = vadd.f32 %v8338_v38, %v16350_v30  ;;  %v13974_v52 = vpop.f32.mrb[105].mxu0  ;;  %v13980_v42 = vpop.f32.mrb[105].mxu1  ;;  %v12338_v38 = vld [vmem:[%s14546_s19 + $0x90] sm:$0x3] }
 0x3b7   : > { %v8301_v27 = vpop.f32.mrb[106].mxu0  ;;  %v8341_v8 = vpop.f32.mrb[106].mxu1  ;;  %v12339_v52 = vld [vmem:[%s14546_s19 + $0x94] sm:$0x3] }
 0x3b8   : > { %v13975_v60 = vpop.f32.mrb[107].mxu0  ;;  %v13981_v34 = vpop.f32.mrb[107].mxu1 }
 0x3ba   : > { %14297 = vmatmul.mubr.msk.bf16.vlgmr.msra.gmra.mrb[212].mxu0 %vm212_vm2, %v12328_v6  ;;  %14303 = vmatmul.mubr.msk.bf16.vlgmr.msra.gmra.mrb[212].mxu1 %vm212_vm2, %v12329_v49 }
 0x3bb   : > { %14307 = vmatpush3.bf16.msra.mxu0 %v15460_v36  ;;  %14313 = vmatpush3.bf16.msra.mxu1 %v15460_v36 }
 0x3bc   : > { %14308 = vmatprep.mubr.msk.bf16.mxu0 %vm14495_vm1, %v14494_v1  ;;  %14314 = vmatprep.mubr.msk.bf16.mxu1 %vm14495_vm1, %v14494_v1 }
 0x3bd   : > { %v8378_v4 = vpop.f32.mrb[108].mxu0  ;;  %v8418_v30 = vpop.f32.mrb[108].mxu1  ;;  %14318 = vmatprep.subr.bf16.mxu0 %v14494_v1  ;;  %14324 = vmatprep.subr.bf16.mxu1 %v14494_v1 }
 0x3be   : > { %v16437_v0 = vadd.f32 %v8378_v4, %v16365_v19  ;;  %v16440_v31 = vadd.f32 %v8418_v30, %v16368_v10  ;;  %v13986_v53 = vpop.f32.mrb[109].mxu0  ;;  %v13992_v2 = vpop.f32.mrb[109].mxu1 }
 0x3bf   : > { %v8381_v56 = vpop.f32.mrb[110].mxu0  ;;  %v8421_v14 = vpop.f32.mrb[110].mxu1 }
 0x3c0   : > { %v13987_v29 = vpop.f32.mrb[111].mxu0  ;;  %v13993_v61 = vpop.f32.mrb[111].mxu1 }
 0x3c1   : > { %v12340_v61 = vld [vmem:[%s14546_s19 + $0x98] sm:$0x3] }
 0x3c2   : > { %14309 = vmatmul.mubr.msk.bf16.vlgmr.msra.gmra.mrb[216].mxu0 %vm212_vm2, %v12326_v40  ;;  %14315 = vmatmul.mubr.msk.bf16.vlgmr.msra.gmra.mrb[216].mxu1 %vm212_vm2, %v12327_v57 }
 0x3c3   : > { %14319 = vmatpush3.bf16.msra.mxu0 %v15460_v36  ;;  %14325 = vmatpush3.bf16.msra.mxu1 %v15460_v36 }
 0x3c4   : > { %14320 = vmatprep.mubr.msk.bf16.mxu0 %vm14495_vm1, %v14494_v1  ;;  %14326 = vmatprep.mubr.msk.bf16.mxu1 %vm14495_vm1, %v14494_v1 }
 0x3c5   : > { %v8479_v19 = vpop.f32.mrb[112].mxu0  ;;  %v8532_v10 = vpop.f32.mrb[112].mxu1  ;;  %14330 = vmatprep.subr.bf16.mxu0 %v14494_v1  ;;  %14336 = vmatprep.subr.bf16.mxu1 %v14494_v1 }
 0x3c6   : > { %v8644_v36 = vadd.f32 %v8479_v19, %v16383_v13  ;;  %v8645_v15 = vadd.f32 %v8532_v10, %v16386_v46  ;;  %v13998_v24 = vpop.f32.mrb[113].mxu0  ;;  %v14004_v9 = vpop.f32.mrb[113].mxu1  ;;  %v12341_v19 = vld [vmem:[%s14546_s19 + $0x9c] sm:$0x3] }
 0x3c7   : > { %v8482_v45 = vpop.f32.mrb[114].mxu0  ;;  %v8535_v3 = vpop.f32.mrb[114].mxu1 }
 0x3c8   : > { %v11811_v51 = vadd.f32 %v16447_v23, %v8644_v36  ;;  %v11812_v11 = vadd.f32 %v16447_v23, %v8645_v15  ;;  %v13999_v21 = vpop.f32.mrb[115].mxu0  ;;  %v14005_v41 = vpop.f32.mrb[115].mxu1 }
 0x3c9   : > { %v14478_v21 = vld [vmem:[%s14546_s19 + $0x58] ss:$0 sps:$4 sm:$0x77]  }
 0x3ca   : > { %v11815_v63 = vmax.f32 %v11811_v51, 0.0  ;;  %v11816_v50 = vmax.f32 %v11812_v11, 0.0  ;;  %14321 = vmatmul.mubr.msk.bf16.vlgmr.msra.gmra.mrb[220].mxu0 %vm212_vm2, %v12328_v6  ;;  %14327 = vmatmul.mubr.msk.bf16.vlgmr.msra.gmra.mrb[220].mxu1 %vm212_vm2, %v12329_v49  ;;  %v11810_v49 = vmax.f32 %v11806_v39, 0.0  ;;  %v14477_v11 = vld [vmem:[%s14546_s19 + $0x54] ss:$0 sps:$4 sm:$0x77]  }
 0x3cb   : > { %14331 = vmatpush3.bf16.msra.mxu0 %v15752_v55  ;;  %14337 = vmatpush3.bf16.msra.mxu1 %v15752_v55  ;;  %v11366_v41 = vshll.u32 %v14477_v11, 16 }
 0x3cc   : > { %v16469_v33 = vmax.f32 %v11807_v32, %v11815_v63  ;;  %v16471_v13 = vmax.f32 %v11808_v26, %v11816_v50  ;;  %14332 = vmatprep.mubr.msk.bf16.mxu0 %vm14495_vm1, %v14494_v1  ;;  %14338 = vmatprep.mubr.msk.bf16.mxu1 %vm14495_vm1, %v14494_v1  ;;  %v11419_v32 = vshll.u32 %v14478_v21, 16 }
 0x3cd   : > { %v8585_v46 = vpop.f32.mrb[116].mxu0  ;;  %v8638_v25 = vpop.f32.mrb[116].mxu1  ;;  %14342 = vmatprep.subr.bf16.mxu0 %v14494_v1  ;;  %14348 = vmatprep.subr.bf16.mxu1 %v14494_v1 }
 0x3ce   : > { %v8646_v59 = vadd.f32 %v8585_v46, %v16401_v54  ;;  %v8647_v40 = vadd.f32 %v8638_v25, %v16404_v35  ;;  %v14010_v57 = vpop.f32.mrb[117].mxu0  ;;  %v14016_v62 = vpop.f32.mrb[117].mxu1 }
 0x3cf   : > { %v8588_v58 = vpop.f32.mrb[118].mxu0  ;;  %v8641_v44 = vpop.f32.mrb[118].mxu1  ;;  %v11417_v57 = vshrl.u32 %v14478_v21, 16  ;;  %v11421_v62 = vrot.slane %v11419_v32, 1 }
 0x3d0   : > { %v11813_v42 = vadd.f32 %v16447_v23, %v8646_v59  ;;  %v11814_v27 = vadd.f32 %v16447_v23, %v8647_v40  ;;  %v14011_v8 = vpop.f32.mrb[119].mxu0  ;;  %v14017_v6 = vpop.f32.mrb[119].mxu1  ;;  %v11364_v59 = vshrl.u32 %v14477_v11, 16  ;;  %v11368_v40 = vrot.slane %v11366_v41, 1 }
 0x3d1   : > { %v14479_v58 = vld [vmem:[%s14546_s19 + $0x5c] ss:$0 sps:$4 sm:$0x77]   ;;  %v14480_v44 = vld [vmem:[%s14546_s19 + $0x60] ss:$0 sps:$4 sm:$0x77]  }
 0x3d2   : > { %v11817_v60 = vmax.f32 %v11813_v42, 0.0  ;;  %v11818_v16 = vmax.f32 %v11814_v27, 0.0  ;;  %14333 = vmatmul.mubr.msk.bf16.vlgmr.msra.gmra.mrb[224].mxu0 %vm212_vm2, %v12338_v38  ;;  %14339 = vmatmul.mubr.msk.bf16.vlgmr.msra.gmra.mrb[224].mxu1 %vm212_vm2, %v12339_v52  ;;  %v14483_v32 = vld [vmem:[%s14546_s19 + $0x70] ss:$0 sps:$4 sm:$0x77]  }
 0x3d3   : > { %14343 = vmatpush3.bf16.msra.mxu0 %v15752_v55  ;;  %14349 = vmatpush3.bf16.msra.mxu1 %v15752_v55 }
 0x3d4   : > { %v16493_v54 = vmax.f32 %v11809_v47, %v11817_v60  ;;  %v16495_v35 = vmax.f32 %v11810_v49, %v11818_v16  ;;  %14344 = vmatprep.mubr.msk.bf16.mxu0 %vm14495_vm1, %v14494_v1  ;;  %14350 = vmatprep.mubr.msk.bf16.mxu1 %vm14495_vm1, %v14494_v1  ;;  %v11472_v47 = vshll.u32 %v14479_v58, 16  ;;  %v11525_v49 = vshll.u32 %v14480_v44, 16 }
 0x3d5   : > { %v8682_v34 = vpop.f32.mrb[120].mxu0  ;;  %v8722_v4 = vpop.f32.mrb[120].mxu1  ;;  %14354 = vmatprep.subr.bf16.mxu0 %v14494_v1  ;;  %14360 = vmatprep.subr.bf16.mxu1 %v14494_v1 }
 0x3d6   : > { %v16504_v30 = vadd.f32 %v8682_v34, %v16419_v12  ;;  %v16507_v53 = vadd.f32 %v8722_v4, %v16422_v18  ;;  %v14022_v2 = vpop.f32.mrb[121].mxu0  ;;  %v14028_v56 = vpop.f32.mrb[121].mxu1 }
 0x3d7   : > { %v8685_v14 = vpop.f32.mrb[122].mxu0  ;;  %v8725_v29 = vpop.f32.mrb[122].mxu1  ;;  %v14481_v2 = vld [vmem:[%s14546_s19 + $0x68] ss:$0 sps:$4 sm:$0x77]  }
 0x3d8   : > { %v14023_v10 = vpop.f32.mrb[123].mxu0  ;;  %v14029_v7 = vpop.f32.mrb[123].mxu1  ;;  %v14482_v56 = vld [vmem:[%s14546_s19 + $0x6c] ss:$0 sps:$4 sm:$0x77]   ;;  %v11470_v14 = vshrl.u32 %v14479_v58, 16 }
 0x3d9   : > { %v11474_v29 = vrot.slane %v11472_v47, 1  ;;  %v11586_v10 = vshll.u32 %v14481_v2, 16  ;;  %v11639_v7 = vshll.u32 %v14482_v56, 16  ;;  %v11584_v21 = vshrl.u32 %v14481_v2, 16 }
 0x3da   : > { %14345 = vmatmul.mubr.msk.bf16.vlgmr.msra.gmra.mrb[228].mxu0 %vm212_vm2, %v12340_v61  ;;  %14351 = vmatmul.mubr.msk.bf16.vlgmr.msra.gmra.mrb[228].mxu1 %vm212_vm2, %v12341_v19 }
 0x3db   : > { %14355 = vmatpush3.bf16.msra.mxu0 %v15524_v20  ;;  %14361 = vmatpush3.bf16.msra.mxu1 %v15524_v20  ;;  %v11641_v41 = vrot.slane %v11639_v7, 1 }
 0x3dc   : > { %14356 = vmatprep.mubr.msk.bf16.mxu0 %vm14495_vm1, %v14494_v1  ;;  %14362 = vmatprep.mubr.msk.bf16.mxu1 %vm14495_vm1, %v14494_v1 }
 0x3dd   : > { %v8762_v12 = vpop.f32.mrb[124].mxu0  ;;  %v8802_v18 = vpop.f32.mrb[124].mxu1  ;;  %14366 = vmatprep.subr.bf16.mxu0 %v14494_v1  ;;  %14372 = vmatprep.subr.bf16.mxu1 %v14494_v1 }
 0x3de   : > { %v16522_v37 = vadd.f32 %v8762_v12, %v16437_v0  ;;  %v16525_v36 = vadd.f32 %v8802_v18, %v16440_v31  ;;  %v14034_v15 = vpop.f32.mrb[125].mxu0  ;;  %v14040_v24 = vpop.f32.mrb[125].mxu1 }
 0x3df   : > { %v8765_v9 = vpop.f32.mrb[126].mxu0  ;;  %v8805_v45 = vpop.f32.mrb[126].mxu1  ;;  %v11475_v24 = vor.u32 %v11474_v29, %v11470_v14 }
 0x3e0   : > { %v14035_v3 = vpop.f32.mrb[127].mxu0  ;;  %v14041_v51 = vpop.f32.mrb[127].mxu1 }
 0x3e2   : > { %14357 = vmatmul.mubr.msk.bf16.vlgmr.msra.gmra.mrb[232].mxu0 %vm212_vm2, %v12338_v38  ;;  %14363 = vmatmul.mubr.msk.bf16.vlgmr.msra.gmra.mrb[232].mxu1 %vm212_vm2, %v12339_v52  ;;  %v11369_v38 = vor.u32 %v11368_v40, %v11364_v59  ;;  %v11422_v52 = vor.u32 %v11421_v62, %v11417_v57  ;;  %v11692_v40 = vshll.u32 %v14483_v32, 16 }
 0x3e3   : > { %14367 = vmatpush3.bf16.msra.mxu0 %v15524_v20  ;;  %14373 = vmatpush3.bf16.msra.mxu1 %v15524_v20 }
 0x3e4   : > { %14368 = vmatprep.mubr.msk.bf16.mxu0 %vm14495_vm1, %v14494_v1  ;;  %14374 = vmatprep.mubr.msk.bf16.mxu1 %vm14495_vm1, %v14494_v1 }
 0x3e5   : > { %v8854_v0 = vpop.f32.mrb[128].mxu0  ;;  %v8897_v31 = vpop.f32.mrb[128].mxu1  ;;  %14378 = vmatprep.subr.bf16.mxu0 %v14494_v1  ;;  %14384 = vmatprep.subr.bf16.mxu1 %v14494_v1 }
 0x3e6   : > { %v8989_v26 = vadd.f32 %v8854_v0, %v16313_v43  ;;  %v8990_v20 = vadd.f32 %v8897_v31, %v16316_v5  ;;  %v14046_v63 = vpop.f32.mrb[129].mxu0  ;;  %v14052_v50 = vpop.f32.mrb[129].mxu1  ;;  %v11588_v0 = vrot.slane %v11586_v10, 1  ;;  %v11637_v31 = vshrl.u32 %v14482_v56, 16 }
 0x3e7   : > { %v8857_v46 = vpop.f32.mrb[130].mxu0  ;;  %v8900_v25 = vpop.f32.mrb[130].mxu1 }
 0x3e8   : > { %v14047_v28 = vpop.f32.mrb[131].mxu0  ;;  %v14053_v39 = vpop.f32.mrb[131].mxu1  ;;  %v11589_v50 = vor.u32 %v11588_v0, %v11584_v21  ;;  %v11642_v46 = vor.u32 %v11641_v41, %v11637_v31 }
 0x3ea   : > { %14369 = vmatmul.mubr.msk.bf16.vlgmr.msra.gmra.mrb[236].mxu0 %vm212_vm2, %v12340_v61  ;;  %14375 = vmatmul.mubr.msk.bf16.vlgmr.msra.gmra.mrb[236].mxu1 %vm212_vm2, %v12341_v19  ;;  %v11523_v61 = vshrl.u32 %v14480_v44, 16 }
 0x3eb   : > { %14379 = vmatpush3.bf16.msra.mxu0 %v15598_v48  ;;  %14385 = vmatpush3.bf16.msra.mxu1 %v15598_v48 }
 0x3ec   : > { %14380 = vmatprep.mubr.msk.bf16.mxu0 %vm14495_vm1, %v14494_v1  ;;  %14386 = vmatprep.mubr.msk.bf16.mxu1 %vm14495_vm1, %v14494_v1 }
 0x3ed   : > { %v8940_v43 = vpop.f32.mrb[132].mxu0  ;;  %v8983_v5 = vpop.f32.mrb[132].mxu1  ;;  %14390 = vmatprep.subr.bf16.mxu0 %v14494_v1  ;;  %14396 = vmatprep.subr.bf16.mxu1 %v14494_v1 }
 0x3ee   : > { %v8991_v42 = vadd.f32 %v8940_v43, %v16329_v17  ;;  %v8992_v27 = vadd.f32 %v8983_v5, %v16332_v22  ;;  %v14058_v8 = vpop.f32.mrb[133].mxu0  ;;  %v14064_v6 = vpop.f32.mrb[133].mxu1  ;;  %v11527_v17 = vrot.slane %v11525_v49, 1  ;;  %v11690_v5 = vshrl.u32 %v14483_v32, 16 }
 0x3ef   : > { %v8943_v60 = vpop.f32.mrb[134].mxu0  ;;  %v8986_v16 = vpop.f32.mrb[134].mxu1 }
 0x3f0   : > { %v14059_v34 = vpop.f32.mrb[135].mxu0  ;;  %v14065_v4 = vpop.f32.mrb[135].mxu1  ;;  %v11528_v9 = vor.u32 %v11527_v17, %v11523_v61 }
 0x3f2   : > { %14381 = vmatmul.mubr.msk.bf16.vlgmr.msra.gmra.mrb[240].mxu0 %vm212_vm2, %v11369_v38  ;;  %14387 = vmatmul.mubr.msk.bf16.vlgmr.msra.gmra.mrb[240].mxu1 %vm212_vm2, %v11422_v52  ;;  %v11694_v38 = vrot.slane %v11692_v40, 1 }
 0x3f3   : > { %14391 = vmatpush3.bf16.msra.mxu0 %v15598_v48  ;;  %14397 = vmatpush3.bf16.msra.mxu1 %v15598_v48 }
 0x3f4   : > { %14392 = vmatprep.mubr.msk.bf16.mxu0 %vm14495_vm1, %v14494_v1  ;;  %14398 = vmatprep.mubr.msk.bf16.mxu1 %vm14495_vm1, %v14494_v1  ;;  %v11695_v16 = vor.u32 %v11694_v38, %v11690_v5 }
 0x3f5   : > { %v9035_v22 = vpop.f32.mrb[136].mxu0  ;;  %v9078_v19 = vpop.f32.mrb[136].mxu1  ;;  %14402 = vmatprep.subr.bf16.mxu0 %v14494_v1  ;;  %14408 = vmatprep.subr.bf16.mxu1 %v14494_v1 }
 0x3f6   : > { %v9170_v12 = vadd.f32 %v9035_v22, %v8989_v26  ;;  %v9171_v18 = vadd.f32 %v9078_v19, %v8990_v20  ;;  %v14070_v15 = vpop.f32.mrb[137].mxu0  ;;  %v14076_v48 = vpop.f32.mrb[137].mxu1  ;;  %v14484_v26 = vld [vmem:[%s14546_s19 + $0x74] ss:$0 sps:$4 sm:$0x77]   ;;  %s12377_s19 = sshll.u32 %s16658_s13, 3 }
 0x3f7   : > { %v9038_v45 = vpop.f32.mrb[138].mxu0  ;;  %v9081_v3 = vpop.f32.mrb[138].mxu1  ;;  %v11745_v57 = vshll.u32 %v14484_v26, 16  ;;  %v11743_v52 = vshrl.u32 %v14484_v26, 16  ;;  %s170_s30 = scalar_lea.vmem %s16656_s3, %s12377_s19 }
 0x3f8   : > { %v14071_v51 = vpop.f32.mrb[139].mxu0  ;;  %v14077_v11 = vpop.f32.mrb[139].mxu1 }
 0x3f9   : > { %v11747_v8 = vrot.slane %v11745_v57, 1 }
 0x3fa   : > { %14393 = vmatmul.mubr.msk.bf16.vlgmr.msra.gmra.mrb[244].mxu0 %vm212_vm2, %v11475_v24  ;;  %14399 = vmatmul.mubr.msk.bf16.vlgmr.msra.gmra.mrb[244].mxu1 %vm212_vm2, %v11528_v9 }
 0x3fb   : > { %14403 = vmatpush3.bf16.msra.mxu0 %v15752_v55  ;;  %14409 = vmatpush3.bf16.msra.mxu1 %v15752_v55  ;;  %v11748_v34 = vor.u32 %v11747_v8, %v11743_v52 }
 0x3fc   : > { %14404 = vmatprep.mubr.msk.bf16.mxu0 %vm14495_vm1, %v14494_v1  ;;  %14410 = vmatprep.mubr.msk.bf16.mxu1 %vm14495_vm1, %v14494_v1 }
 0x3fd   : > { %v9121_v20 = vpop.f32.mrb[140].mxu0  ;;  %v9164_v63 = vpop.f32.mrb[140].mxu1  ;;  %14414 = vmatprep.subr.bf16.mxu0 %v14494_v1  ;;  %14420 = vmatprep.subr.bf16.mxu1 %v14494_v1 }
 0x3fe   : > { %v9172_v25 = vadd.f32 %v9121_v20, %v8991_v42  ;;  %v9173_v28 = vadd.f32 %v9164_v63, %v8992_v27  ;;  %v14082_v39 = vpop.f32.mrb[141].mxu0  ;;  %v14088_v59 = vpop.f32.mrb[141].mxu1 }
 0x3ff   : > { %v9124_v62 = vpop.f32.mrb[142].mxu0  ;;  %v9167_v58 = vpop.f32.mrb[142].mxu1 }
 0x400   : > { %v14083_v44 = vpop.f32.mrb[143].mxu0  ;;  %v14089_v43 = vpop.f32.mrb[143].mxu1 }
 0x402   : > { %14405 = vmatmul.mubr.msk.bf16.vlgmr.msra.gmra.mrb[248].mxu0 %vm212_vm2, %v11589_v50  ;;  %14411 = vmatmul.mubr.msk.bf16.vlgmr.msra.gmra.mrb[248].mxu1 %vm212_vm2, %v11642_v46 }
 0x403   : > { %14415 = vmatpush3.bf16.msra.mxu0 %v15752_v55  ;;  %14421 = vmatpush3.bf16.msra.mxu1 %v15752_v55 }
 0x404   : > { %14416 = vmatprep.mubr.msk.bf16.mxu0 %vm14495_vm1, %v14494_v1  ;;  %14422 = vmatprep.mubr.msk.bf16.mxu1 %vm14495_vm1, %v14494_v1 }
 0x405   : > { %v9216_v42 = vpop.f32.mrb[144].mxu0  ;;  %v9259_v27 = vpop.f32.mrb[144].mxu1 }
 0x406   : > { %v9351_v6 = vadd.f32 %v9216_v42, %v9170_v12  ;;  %v9352_v47 = vadd.f32 %v9259_v27, %v9171_v18  ;;  %v14094_v49 = vpop.f32.mrb[145].mxu0  ;;  %v14100_v60 = vpop.f32.mrb[145].mxu1 }
 0x407   : > { %v9219_v4 = vpop.f32.mrb[146].mxu0  ;;  %v9262_v2 = vpop.f32.mrb[146].mxu1 }
 0x408   : > { %v14095_v56 = vpop.f32.mrb[147].mxu0  ;;  %v14101_v14 = vpop.f32.mrb[147].mxu1 }
 0x40a   : > { %14417 = vmatmul.mubr.msk.bf16.vlgmr.msra.gmra.mrb[252].mxu0 %vm212_vm2, %v11695_v16  ;;  %14423 = vmatmul.mubr.msk.bf16.vlgmr.msra.gmra.mrb[252].mxu1 %vm212_vm2, %v11748_v34 }
 0x40d   : > { %v9302_v55 = vpop.f32.mrb[148].mxu0  ;;  %v9345_v29 = vpop.f32.mrb[148].mxu1 }
 0x40e   : > { %v9353_v61 = vadd.f32 %v9302_v55, %v9172_v25  ;;  %v9354_v1 = vadd.f32 %v9345_v29, %v9173_v28  ;;  %v14106_v17 = vpop.f32.mrb[149].mxu0  ;;  %v14112_v22 = vpop.f32.mrb[149].mxu1 }
 0x40f   : > { %v9305_v19 = vpop.f32.mrb[150].mxu0  ;;  %v9348_v10 = vpop.f32.mrb[150].mxu1 }
 0x410   : > { %v14107_v7 = vpop.f32.mrb[151].mxu0  ;;  %v14113_v12 = vpop.f32.mrb[151].mxu1 }
 0x415   : > { %v9389_v18 = vpop.f32.mrb[152].mxu0  ;;  %v9429_v15 = vpop.f32.mrb[152].mxu1 }
 0x416   : > { %v9515_v48 = vadd.f32 %v9389_v18, %v16504_v30  ;;  %v9516_v24 = vadd.f32 %v9429_v15, %v16507_v53  ;;  %v14118_v9 = vpop.f32.mrb[153].mxu0  ;;  %v14124_v45 = vpop.f32.mrb[153].mxu1 }
 0x417   : > { %v9392_v3 = vpop.f32.mrb[154].mxu0  ;;  %v9432_v51 = vpop.f32.mrb[154].mxu1 }
 0x418   : > { %v14119_v11 = vpop.f32.mrb[155].mxu0  ;;  %v14125_v21 = vpop.f32.mrb[155].mxu1 }
 0x41d   : > { %v9469_v0 = vpop.f32.mrb[156].mxu0  ;;  %v9509_v31 = vpop.f32.mrb[156].mxu1 }
 0x41e   : > { %v9517_v41 = vadd.f32 %v9469_v0, %v16522_v37  ;;  %v9518_v32 = vadd.f32 %v9509_v31, %v16525_v36  ;;  %v14130_v26 = vpop.f32.mrb[157].mxu0  ;;  %v14136_v20 = vpop.f32.mrb[157].mxu1 }
 0x41f   : > { %v9472_v63 = vpop.f32.mrb[158].mxu0  ;;  %v9512_v50 = vpop.f32.mrb[158].mxu1 }
 0x420   : > { %v14131_v46 = vpop.f32.mrb[159].mxu0  ;;  %v14137_v30 = vpop.f32.mrb[159].mxu1 }
 0x425   : > { %v9561_v25 = vpop.f32.mrb[160].mxu0  ;;  %v9604_v53 = vpop.f32.mrb[160].mxu1 }
 0x426   : > { %v16593_v28 = vadd.f32 %v9561_v25, %v9351_v6  ;;  %v16595_v39 = vadd.f32 %v9604_v53, %v9352_v47  ;;  %v14142_v59 = vpop.f32.mrb[161].mxu0  ;;  %v14148_v40 = vpop.f32.mrb[161].mxu1 }
 0x427   : > { %v9564_v57 = vpop.f32.mrb[162].mxu0  ;;  %v9607_v62 = vpop.f32.mrb[162].mxu1 }
 0x428   : > { %v14143_v58 = vpop.f32.mrb[163].mxu0  ;;  %v14149_v37 = vpop.f32.mrb[163].mxu1 }
 0x42d   : > { %v9647_v44 = vpop.f32.mrb[164].mxu0  ;;  %v9690_v36 = vpop.f32.mrb[164].mxu1 }
 0x42e   : > { %v16597_v43 = vadd.f32 %v9647_v44, %v9353_v61  ;;  %v16599_v5 = vadd.f32 %v9690_v36, %v9354_v1  ;;  %v14154_v38 = vpop.f32.mrb[165].mxu0  ;;  %v14160_v52 = vpop.f32.mrb[165].mxu1 }
 0x42f   : > { %v9650_v8 = vpop.f32.mrb[166].mxu0  ;;  %v9693_v42 = vpop.f32.mrb[166].mxu1 }
 0x430   : > { %v14155_v27 = vpop.f32.mrb[167].mxu0  ;;  %v14161_v6 = vpop.f32.mrb[167].mxu1 }
 0x435   : > { %v9734_v47 = vpop.f32.mrb[168].mxu0  ;;  %v9774_v49 = vpop.f32.mrb[168].mxu1 }
 0x436   : > { %v9860_v60 = vadd.f32 %v9734_v47, %v9515_v48  ;;  %v9861_v16 = vadd.f32 %v9774_v49, %v9516_v24  ;;  %v14166_v34 = vpop.f32.mrb[169].mxu0  ;;  %v14172_v4 = vpop.f32.mrb[169].mxu1 }
 0x437   : > { %v9737_v2 = vpop.f32.mrb[170].mxu0  ;;  %v9777_v56 = vpop.f32.mrb[170].mxu1 }
 0x438   : > { %v14167_v14 = vpop.f32.mrb[171].mxu0  ;;  %v14173_v55 = vpop.f32.mrb[171].mxu1 }
 0x43d   : > { %v9814_v29 = vpop.f32.mrb[172].mxu0  ;;  %v9854_v61 = vpop.f32.mrb[172].mxu1 }
 0x43e   : > { %v9862_v1 = vadd.f32 %v9814_v29, %v9517_v41  ;;  %v9863_v17 = vadd.f32 %v9854_v61, %v9518_v32  ;;  %v14178_v22 = vpop.f32.mrb[173].mxu0  ;;  %v14184_v19 = vpop.f32.mrb[173].mxu1 }
 0x43f   : > { %v9817_v10 = vpop.f32.mrb[174].mxu0  ;;  %v9857_v7 = vpop.f32.mrb[174].mxu1 }
 0x440   : > { %v14179_v12 = vpop.f32.mrb[175].mxu0  ;;  %v14185_v18 = vpop.f32.mrb[175].mxu1 }
 0x445   : > { %v9915_v15 = vpop.f32.mrb[176].mxu0  ;;  %v9968_v9 = vpop.f32.mrb[176].mxu1 }
 0x446   : > { %v10080_v48 = vadd.f32 %v9915_v15, %v9860_v60  ;;  %v10081_v24 = vadd.f32 %v9968_v9, %v9861_v16  ;;  %v14190_v45 = vpop.f32.mrb[177].mxu0  ;;  %v14196_v3 = vpop.f32.mrb[177].mxu1 }
 0x447   : > { %v9918_v51 = vpop.f32.mrb[178].mxu0  ;;  %v9971_v11 = vpop.f32.mrb[178].mxu1 }
 0x448   : > { %v14191_v21 = vpop.f32.mrb[179].mxu0  ;;  %v14197_v0 = vpop.f32.mrb[179].mxu1 }
 0x44d   : > { %v10021_v31 = vpop.f32.mrb[180].mxu0  ;;  %v10074_v26 = vpop.f32.mrb[180].mxu1 }
 0x44e   : > { %v10082_v41 = vadd.f32 %v10021_v31, %v9862_v1  ;;  %v10083_v32 = vadd.f32 %v10074_v26, %v9863_v17  ;;  %v14202_v20 = vpop.f32.mrb[181].mxu0  ;;  %v14208_v63 = vpop.f32.mrb[181].mxu1 }
 0x44f   : > { %v10024_v50 = vpop.f32.mrb[182].mxu0  ;;  %v10077_v46 = vpop.f32.mrb[182].mxu1 }
 0x450   : > { %v14203_v30 = vpop.f32.mrb[183].mxu0  ;;  %v14209_v25 = vpop.f32.mrb[183].mxu1 }
 0x455   : > { %v10135_v53 = vpop.f32.mrb[184].mxu0  ;;  %v10188_v59 = vpop.f32.mrb[184].mxu1 }
 0x456   : > { %v16601_v40 = vadd.f32 %v10135_v53, %v10080_v48  ;;  %v16603_v57 = vadd.f32 %v10188_v59, %v10081_v24  ;;  %v14214_v62 = vpop.f32.mrb[185].mxu0  ;;  %v14220_v58 = vpop.f32.mrb[185].mxu1 }
 0x457   : > { %v10138_v37 = vpop.f32.mrb[186].mxu0  ;;  %v10191_v44 = vpop.f32.mrb[186].mxu1 }
 0x458   : > { %v14215_v36 = vpop.f32.mrb[187].mxu0  ;;  %v14221_v38 = vpop.f32.mrb[187].mxu1 }
 0x45d   : > { %v10241_v52 = vpop.f32.mrb[188].mxu0  ;;  %v10294_v8 = vpop.f32.mrb[188].mxu1 }
 0x45e   : > { %v16605_v42 = vadd.f32 %v10241_v52, %v10082_v41  ;;  %v16607_v27 = vadd.f32 %v10294_v8, %v10083_v32  ;;  %v14226_v6 = vpop.f32.mrb[189].mxu0  ;;  %v14232_v47 = vpop.f32.mrb[189].mxu1 }
 0x45f   : > { %v10244_v49 = vpop.f32.mrb[190].mxu0  ;;  %v10297_v60 = vpop.f32.mrb[190].mxu1 }
 0x460   : > { %v14227_v16 = vpop.f32.mrb[191].mxu0  ;;  %v14233_v34 = vpop.f32.mrb[191].mxu1 }
 0x465   : > { %v10346_v4 = vpop.f32.mrb[192].mxu0  ;;  %v10389_v2 = vpop.f32.mrb[192].mxu1 }
 0x466   : > { %v10481_v56 = vadd.f32 %v10346_v4, %v16593_v28  ;;  %v10482_v14 = vadd.f32 %v10389_v2, %v16595_v39  ;;  %v14238_v55 = vpop.f32.mrb[193].mxu0  ;;  %v14244_v29 = vpop.f32.mrb[193].mxu1 }
 0x467   : > { %v10349_v61 = vpop.f32.mrb[194].mxu0  ;;  %v10392_v1 = vpop.f32.mrb[194].mxu1 }
 0x468   : > { %v14239_v17 = vpop.f32.mrb[195].mxu0  ;;  %v14245_v22 = vpop.f32.mrb[195].mxu1 }
 0x46d   : > { %v10432_v19 = vpop.f32.mrb[196].mxu0  ;;  %v10475_v10 = vpop.f32.mrb[196].mxu1 }
 0x46e   : > { %v10483_v7 = vadd.f32 %v10432_v19, %v16597_v43  ;;  %v10484_v12 = vadd.f32 %v10475_v10, %v16599_v5  ;;  %v14250_v18 = vpop.f32.mrb[197].mxu0  ;;  %v14256_v15 = vpop.f32.mrb[197].mxu1 }
 0x46f   : > { %v10435_v9 = vpop.f32.mrb[198].mxu0  ;;  %v10478_v48 = vpop.f32.mrb[198].mxu1 }
 0x470   : > { %v14251_v24 = vpop.f32.mrb[199].mxu0  ;;  %v14257_v28 = vpop.f32.mrb[199].mxu1 }
 0x475   : > { %v10527_v45 = vpop.f32.mrb[200].mxu0  ;;  %v10570_v39 = vpop.f32.mrb[200].mxu1 }
 0x476   : > { %v10662_v3 = vadd.f32 %v10527_v45, %v10481_v56  ;;  %v10663_v51 = vadd.f32 %v10570_v39, %v10482_v14  ;;  %v14262_v11 = vpop.f32.mrb[201].mxu0  ;;  %v14268_v21 = vpop.f32.mrb[201].mxu1 }
 0x477   : > { %v10530_v0 = vpop.f32.mrb[202].mxu0  ;;  %v10573_v31 = vpop.f32.mrb[202].mxu1 }
 0x478   : > { %v14263_v26 = vpop.f32.mrb[203].mxu0  ;;  %v14269_v41 = vpop.f32.mrb[203].mxu1 }
 0x47d   : > { %v10613_v32 = vpop.f32.mrb[204].mxu0  ;;  %v10656_v43 = vpop.f32.mrb[204].mxu1 }
 0x47e   : > { %v10664_v20 = vadd.f32 %v10613_v32, %v10483_v7  ;;  %v10665_v5 = vadd.f32 %v10656_v43, %v10484_v12  ;;  %v14274_v63 = vpop.f32.mrb[205].mxu0  ;;  %v14280_v50 = vpop.f32.mrb[205].mxu1 }
 0x47f   : > { %v10616_v46 = vpop.f32.mrb[206].mxu0  ;;  %v10659_v30 = vpop.f32.mrb[206].mxu1 }
 0x480   : > { %v14275_v25 = vpop.f32.mrb[207].mxu0  ;;  %v14281_v53 = vpop.f32.mrb[207].mxu1 }
 0x485   : > { %v10708_v59 = vpop.f32.mrb[208].mxu0  ;;  %v10751_v62 = vpop.f32.mrb[208].mxu1 }
 0x486   : > { %v10843_v58 = vadd.f32 %v10708_v59, %v10662_v3  ;;  %v10844_v37 = vadd.f32 %v10751_v62, %v10663_v51  ;;  %v14286_v44 = vpop.f32.mrb[209].mxu0  ;;  %v14292_v36 = vpop.f32.mrb[209].mxu1 }
 0x487   : > { %v10711_v38 = vpop.f32.mrb[210].mxu0  ;;  %v10754_v52 = vpop.f32.mrb[210].mxu1 }
 0x488   : > { %v14287_v8 = vpop.f32.mrb[211].mxu0  ;;  %v14293_v6 = vpop.f32.mrb[211].mxu1 }
 0x48d   : > { %v10794_v47 = vpop.f32.mrb[212].mxu0  ;;  %v10837_v49 = vpop.f32.mrb[212].mxu1 }
 0x48e   : > { %v10845_v60 = vadd.f32 %v10794_v47, %v10664_v20  ;;  %v10846_v16 = vadd.f32 %v10837_v49, %v10665_v5  ;;  %v14298_v34 = vpop.f32.mrb[213].mxu0  ;;  %v14304_v4 = vpop.f32.mrb[213].mxu1 }
 0x48f   : > { %v10797_v2 = vpop.f32.mrb[214].mxu0  ;;  %v10840_v56 = vpop.f32.mrb[214].mxu1 }
 0x490   : > { %v14299_v14 = vpop.f32.mrb[215].mxu0  ;;  %v14305_v55 = vpop.f32.mrb[215].mxu1 }
 0x495   : > { %v10881_v29 = vpop.f32.mrb[216].mxu0  ;;  %v10921_v61 = vpop.f32.mrb[216].mxu1 }
 0x496   : > { %v11007_v1 = vadd.f32 %v10881_v29, %v16601_v40  ;;  %v11008_v17 = vadd.f32 %v10921_v61, %v16603_v57  ;;  %v14310_v22 = vpop.f32.mrb[217].mxu0  ;;  %v14316_v19 = vpop.f32.mrb[217].mxu1 }
 0x497   : > { %v10884_v10 = vpop.f32.mrb[218].mxu0  ;;  %v10924_v7 = vpop.f32.mrb[218].mxu1 }
 0x498   : > { %v14311_v12 = vpop.f32.mrb[219].mxu0  ;;  %v14317_v18 = vpop.f32.mrb[219].mxu1 }
 0x49d   : > { %v10961_v15 = vpop.f32.mrb[220].mxu0  ;;  %v11001_v9 = vpop.f32.mrb[220].mxu1 }
 0x49e   : > { %v11009_v48 = vadd.f32 %v10961_v15, %v16605_v42  ;;  %v11010_v24 = vadd.f32 %v11001_v9, %v16607_v27  ;;  %v14322_v28 = vpop.f32.mrb[221].mxu0  ;;  %v14328_v45 = vpop.f32.mrb[221].mxu1 }
 0x49f   : > { %v10964_v39 = vpop.f32.mrb[222].mxu0  ;;  %v11004_v3 = vpop.f32.mrb[222].mxu1 }
 0x4a0   : > { %v14323_v51 = vpop.f32.mrb[223].mxu0  ;;  %v14329_v40 = vpop.f32.mrb[223].mxu1 }
 0x4a5   : > { %v11053_v11 = vpop.f32.mrb[224].mxu0  ;;  %v11096_v57 = vpop.f32.mrb[224].mxu1 }
 0x4a6   : > { %v11188_v21 = vadd.f32 %v11053_v11, %v10843_v58  ;;  %v11189_v0 = vadd.f32 %v11096_v57, %v10844_v37  ;;  %v14334_v31 = vpop.f32.mrb[225].mxu0  ;;  %v14340_v26 = vpop.f32.mrb[225].mxu1 }
 0x4a7   : > { %v11056_v41 = vpop.f32.mrb[226].mxu0  ;;  %v11099_v32 = vpop.f32.mrb[226].mxu1 }
 0x4a8   : > { %v11823_v43 = vadd.f32 %v16447_v23, %v11188_v21  ;;  %v11824_v42 = vadd.f32 %v16447_v23, %v11189_v0  ;;  %v14335_v20 = vpop.f32.mrb[227].mxu0  ;;  %v14341_v27 = vpop.f32.mrb[227].mxu1 }
 0x4aa   : > { %v11827_v5 = vmax.f32 %v11823_v43, 0.0  ;;  %v11828_v63 = vmax.f32 %v11824_v42, 0.0 }
 0x4ac   : > { %v16620_v50 = vmax.f32 %v16469_v33, %v11827_v5  ;;  %v16623_v46 = vmax.f32 %v16471_v13, %v11828_v63 }
 0x4ad   : > { %v11139_v30 = vpop.f32.mrb[228].mxu0  ;;  %v11182_v25 = vpop.f32.mrb[228].mxu1 }
 0x4ae   : > { %v11190_v53 = vadd.f32 %v11139_v30, %v10845_v60  ;;  %v11191_v59 = vadd.f32 %v11182_v25, %v10846_v16  ;;  %v14346_v62 = vpop.f32.mrb[229].mxu0  ;;  %v14352_v58 = vpop.f32.mrb[229].mxu1 }
 0x4af   : > { %v11142_v37 = vpop.f32.mrb[230].mxu0  ;;  %v11185_v44 = vpop.f32.mrb[230].mxu1 }
 0x4b0   : > { %v11825_v36 = vadd.f32 %v16447_v23, %v11190_v53  ;;  %v11826_v38 = vadd.f32 %v16447_v23, %v11191_v59  ;;  %v14347_v52 = vpop.f32.mrb[231].mxu0  ;;  %v14353_v8 = vpop.f32.mrb[231].mxu1 }
 0x4b2   : > { %v11829_v6 = vmax.f32 %v11825_v36, 0.0  ;;  %v11830_v33 = vmax.f32 %v11826_v38, 0.0 }
 0x4b4   : > { %v16628_v47 = vmax.f32 %v16493_v54, %v11829_v6  ;;  %v16631_v13 = vmax.f32 %v16495_v35, %v11830_v33 }
 0x4b5   : > { %v11226_v49 = vpop.f32.mrb[232].mxu0  ;;  %v11266_v60 = vpop.f32.mrb[232].mxu1 }
 0x4b6   : > { %v11352_v16 = vadd.f32 %v11226_v49, %v11007_v1  ;;  %v11353_v34 = vadd.f32 %v11266_v60, %v11008_v17  ;;  %v14358_v4 = vpop.f32.mrb[233].mxu0  ;;  %v14364_v2 = vpop.f32.mrb[233].mxu1 }
 0x4b7   : > { %v11229_v56 = vpop.f32.mrb[234].mxu0  ;;  %v11269_v14 = vpop.f32.mrb[234].mxu1 }
 0x4b8   : > { %v14359_v55 = vpop.f32.mrb[235].mxu0  ;;  %v14365_v29 = vpop.f32.mrb[235].mxu1 }
 0x4bd   : > { %v11306_v61 = vpop.f32.mrb[236].mxu0  ;;  %v11346_v22 = vpop.f32.mrb[236].mxu1 }
 0x4be   : > { %v11354_v19 = vadd.f32 %v11306_v61, %v11009_v48  ;;  %v11355_v10 = vadd.f32 %v11346_v22, %v11010_v24  ;;  %v14370_v7 = vpop.f32.mrb[237].mxu0  ;;  %v14376_v54 = vpop.f32.mrb[237].mxu1 }
 0x4bf   : > { %v11309_v12 = vpop.f32.mrb[238].mxu0  ;;  %v11349_v18 = vpop.f32.mrb[238].mxu1 }
 0x4c0   : > { %v14371_v35 = vpop.f32.mrb[239].mxu0  ;;  %v14377_v15 = vpop.f32.mrb[239].mxu1 }
 0x4c5   : > { %v11407_v9 = vpop.f32.mrb[240].mxu0  ;;  %v11460_v28 = vpop.f32.mrb[240].mxu1 }
 0x4c6   : > { %v11572_v1 = vadd.f32 %v11407_v9, %v11352_v16  ;;  %v11573_v17 = vadd.f32 %v11460_v28, %v11353_v34  ;;  %v14382_v45 = vpop.f32.mrb[241].mxu0  ;;  %v14388_v39 = vpop.f32.mrb[241].mxu1 }
 0x4c7   : > { %v11410_v3 = vpop.f32.mrb[242].mxu0  ;;  %v11463_v51 = vpop.f32.mrb[242].mxu1 }
 0x4c8   : > { %v14383_v40 = vpop.f32.mrb[243].mxu0  ;;  %v14389_v11 = vpop.f32.mrb[243].mxu1 }
 0x4cd   : > { %v11513_v57 = vpop.f32.mrb[244].mxu0  ;;  %v11566_v21 = vpop.f32.mrb[244].mxu1 }
 0x4ce   : > { %v11574_v48 = vadd.f32 %v11513_v57, %v11354_v19  ;;  %v11575_v24 = vadd.f32 %v11566_v21, %v11355_v10  ;;  %v14394_v0 = vpop.f32.mrb[245].mxu0  ;;  %v14400_v31 = vpop.f32.mrb[245].mxu1 }
 0x4cf   : > { %v11516_v26 = vpop.f32.mrb[246].mxu0  ;;  %v11569_v41 = vpop.f32.mrb[246].mxu1 }
 0x4d0   : > { %v14395_v32 = vpop.f32.mrb[247].mxu0  ;;  %v14401_v43 = vpop.f32.mrb[247].mxu1 }
 0x4d5   : > { %v11627_v42 = vpop.f32.mrb[248].mxu0  ;;  %v11680_v20 = vpop.f32.mrb[248].mxu1 }
 0x4d6   : > { %v11792_v27 = vadd.f32 %v11627_v42, %v11572_v1  ;;  %v11793_v5 = vadd.f32 %v11680_v20, %v11573_v17  ;;  %v14406_v63 = vpop.f32.mrb[249].mxu0  ;;  %v14412_v30 = vpop.f32.mrb[249].mxu1 }
 0x4d7   : > { %v11630_v25 = vpop.f32.mrb[250].mxu0  ;;  %v11683_v53 = vpop.f32.mrb[250].mxu1 }
 0x4d8   : > { %v11835_v59 = vadd.f32 %v16447_v23, %v11792_v27  ;;  %v11836_v62 = vadd.f32 %v16447_v23, %v11793_v5  ;;  %v14407_v58 = vpop.f32.mrb[251].mxu0  ;;  %v14413_v37 = vpop.f32.mrb[251].mxu1 }
 0x4da   : > { %v11839_v44 = vmax.f32 %v11835_v59, 0.0  ;;  %v11840_v36 = vmax.f32 %v11836_v62, 0.0 }
 0x4dc   : > { %v11843_v38 = vmax.f32 %v16620_v50, %v11839_v44  ;;  %v11844_v52 = vmax.f32 %v16623_v46, %v11840_v36  ;;  %v14485_v50 = vld [vmem:[%s16655_s2] ss:$0 sm:$0xff] }
 0x4dd   : > { %v11733_v8 = vpop.f32.mrb[252].mxu0  ;;  %v11786_v6 = vpop.f32.mrb[252].mxu1 }
 0x4de   : > { %v11847_v33 = vpack.c.bf16 %v11843_v38, %v11843_v38  ;;  %v11848_v49 = vpack.c.bf16 %v11844_v52, %v11844_v52  ;;  %v11794_v60 = vadd.f32 %v11733_v8, %v11574_v48  ;;  %v11795_v23 = vadd.f32 %v11786_v6, %v11575_v24  ;;  %v14418_v16 = vpop.f32.mrb[253].mxu0  ;;  %v14424_v34 = vpop.f32.mrb[253].mxu1 }
 0x4df   : > { %v11736_v4 = vpop.f32.mrb[254].mxu0  ;;  %v11789_v2 = vpop.f32.mrb[254].mxu1 }
 0x4e0   : > { %11852 = vst.msk [vmem:[%s170_s30] sm:$0x3] %vm11851_vm3, %v11847_v33  ;;  %11853 = vst.msk [vmem:[%s170_s30 + $0x2] sm:$0x3] %vm11851_vm3, %v11848_v49  ;;  %v11837_v46 = vadd.f32 %v14485_v50, %v11794_v60  ;;  %v11838_v56 = vadd.f32 %v14485_v50, %v11795_v23  ;;  %v14419_v14 = vpop.f32.mrb[255].mxu0  ;;  %v14425_v55 = vpop.f32.mrb[255].mxu1 }
 0x4e2   : > { %v11841_v29 = vmax.f32 %v11837_v46, 0.0  ;;  %v11842_v61 = vmax.f32 %v11838_v56, 0.0 }
 0x4e4   : > { %v11845_v22 = vmax.f32 %v16628_v47, %v11841_v29  ;;  %v11846_v19 = vmax.f32 %v16631_v13, %v11842_v61 }
 0x4e6   : > { %v11849_v10 = vpack.c.bf16 %v11845_v22, %v11845_v22  ;;  %v11850_v7 = vpack.c.bf16 %v11846_v19, %v11846_v19 }
 0x4e8   : > { %11854 = vst.msk [vmem:[%s170_s30 + $0x4] sm:$0x3] %vm11851_vm3, %v11849_v10  ;;  %11855 = vst.msk [vmem:[%s170_s30 + $0x6] sm:$0x3] %vm11851_vm3, %v11850_v7 }
 0x4e9 PF: > { %s13_s12 = sadd.s32 1, %s14492_s12  }
 0x4ea   : > { %p10_p4 = scmp.ge.s32.totalorder %s13_s12, 4  }
 0x4ec   :  { %12 = sbr.rel (!%p10_p4) target bundleno = 1 (0x1), region = 100 }

</bundles_post_ra>
